<compile_context>
chip_gen: v7x
topology: tpu7x:2x2x1
jax: 0.10.0
libtpu: 0.0.40
codegen_flags: <defaults>
</compile_context>

<pallas_src>
import jax
import jax.numpy as jnp
from jax.experimental import pallas as pl
from jax.experimental.pallas import tpu as pltpu

NUM_FREQS_POS = 6
NUM_FREQS_DIR = 4
IN_POS = 3 + NUM_FREQS_POS * 2 * 3   # 39
IN_DIR = 3 + NUM_FREQS_DIR * 2 * 3   # 27
PAD = 128       # lane width of the packed input / small heads / packed output
H = 256         # hidden width
H2 = 128        # fc11 output width
TB = 256        # batch tile: fills the 256x256 MXU (v6e/v7x); 2 passes on v5e


def _nerf_kernel(xd_ref,
                 w1, b1, w2, b2, w3, b3, w4, b4, w5, b5,
                 w6h, w6x, b6, w7, b7, w8, b8, w9, b9, w10, b10,
                 wfs, bfs, w11f, w11d, b11, w12, b12,
                 out_ref):
    xd = xd_ref[...]          # (TB, 128) bf16; x enc in lanes 0:39, d in 39:66

    def lin(h, w, b):
        return jnp.dot(h, w[...], preferred_element_type=jnp.float32) + b[...]

    def relu_bf16(v):
        return jnp.maximum(v, 0.0).astype(jnp.bfloat16)

    h = relu_bf16(lin(xd, w1, b1))      # w1 rows 39:128 are zero -> uses x only
    h = relu_bf16(lin(h, w2, b2))
    h = relu_bf16(lin(h, w3, b3))
    h = relu_bf16(lin(h, w4, b4))
    h = relu_bf16(lin(h, w5, b5))

    # skip: cat([h, x]) @ W6 == h @ W6h + x @ W6x   (W6x rows 39:128 are zero)
    h = relu_bf16(jnp.dot(h, w6h[...], preferred_element_type=jnp.float32)
                  + jnp.dot(xd, w6x[...], preferred_element_type=jnp.float32)
                  + b6[...])
    h = relu_bf16(lin(h, w7, b7))
    h = relu_bf16(lin(h, w8, b8))
    h = relu_bf16(lin(h, w9, b9))
    h = relu_bf16(lin(h, w10, b10))

    # fused feature_head + sigma_head: single (256, 256+128) matmul.
    fs = lin(h, wfs, bfs)                          # (TB, 384) f32
    feature = fs[:, :H].astype(jnp.bfloat16)       # (TB, 256)
    # sigma column was packed at lane 3 of the trailing 128-lane group; all
    # other lanes of that group are exactly zero.
    sigma_slab = jnp.maximum(fs[:, H:H + PAD], 0.0)   # (TB, 128)

    # skip: cat([feature, d]) @ W11 == feature @ W11f + d @ W11d
    # (W11d rows outside 39:66 are zero, so only the d lanes of xd contribute)
    h = relu_bf16(jnp.dot(feature, w11f[...], preferred_element_type=jnp.float32)
                  + jnp.dot(xd, w11d[...], preferred_element_type=jnp.float32)
                  + b11[...])
    rgb = jax.nn.sigmoid(lin(h, w12, b12))         # (TB, 128) f32, rgb lanes 0:3

    # pack: rgb -> lanes 0..2, sigma -> lane 3, lanes 4..127 exactly zero.
    lane = jax.lax.broadcasted_iota(jnp.int32, (TB, PAD), 1)
    out_ref[...] = jnp.where(lane < 3, rgb, sigma_slab).astype(out_ref.dtype)


def _xavier(key, fan_in, fan_out):
    limit = jnp.sqrt(6.0 / (fan_in + fan_out))
    return jax.random.uniform(key, (fan_in, fan_out), jnp.float32, -limit, limit)


def init_params(seed=0):
    """Xavier-uniform weights (stored as (in, out)), zero biases, packed/padded
    for the kernel layout and cast to bf16."""
    key = jax.random.PRNGKey(seed)
    ks = jax.random.split(key, 14)

    w1 = _xavier(ks[0], IN_POS, H)
    w2 = _xavier(ks[1], H, H)
    w3 = _xavier(ks[2], H, H)
    w4 = _xavier(ks[3], H, H)
    w5 = _xavier(ks[4], H, H)
    w6 = _xavier(ks[5], H + IN_POS, H)
    w7 = _xavier(ks[6], H, H)
    w8 = _xavier(ks[7], H, H)
    w9 = _xavier(ks[8], H, H)
    w10 = _xavier(ks[9], H, H)
    wsig = _xavier(ks[10], H, 1)
    wfeat = _xavier(ks[11], H, H)
    w11 = _xavier(ks[12], H + IN_DIR, H2)
    w12 = _xavier(ks[13], H2, 3)

    bf = lambda a: a.astype(jnp.bfloat16)
    zeros_b = lambda n: jnp.zeros((1, n), jnp.float32)

    # lane packing for the merged (x | d) 128-lane input
    w1p = jnp.pad(w1, ((0, PAD - IN_POS), (0, 0)))              # x rows 0:39
    w6xp = jnp.pad(w6[H:, :], ((0, PAD - IN_POS), (0, 0)))      # x rows 0:39
    w11dp = jnp.pad(w11[H:, :],
                    ((IN_POS, PAD - IN_POS - IN_DIR), (0, 0)))  # d rows 39:66

    # fused feature_head + sigma_head -> (256, 256+128); sigma column at lane 3
    # of the trailing 128-lane group so the output packing needs no shuffle.
    wsig_pad = jnp.pad(wsig, ((0, 0), (3, PAD - 4)))
    wfs = jnp.concatenate([wfeat, wsig_pad], axis=1)            # (256, 384)
    w12p = jnp.pad(w12, ((0, 0), (0, PAD - 3)))                 # rgb lanes 0:3

    params = {
        "w1": bf(w1p), "b1": zeros_b(H),
        "w2": bf(w2), "b2": zeros_b(H),
        "w3": bf(w3), "b3": zeros_b(H),
        "w4": bf(w4), "b4": zeros_b(H),
        "w5": bf(w5), "b5": zeros_b(H),
        "w6h": bf(w6[:H, :]), "w6x": bf(w6xp), "b6": zeros_b(H),
        "w7": bf(w7), "b7": zeros_b(H),
        "w8": bf(w8), "b8": zeros_b(H),
        "w9": bf(w9), "b9": zeros_b(H),
        "w10": bf(w10), "b10": zeros_b(H),
        "wfs": bf(wfs), "bfs": zeros_b(H + PAD),
        "w11f": bf(w11[:H, :]), "w11d": bf(w11dp), "b11": zeros_b(H2),
        "w12": bf(w12p), "b12": zeros_b(PAD),
    }
    # unpadded f32 copies for the pure-JAX reference check
    raw = dict(w1=w1, w2=w2, w3=w3, w4=w4, w5=w5, w6=w6, w7=w7, w8=w8, w9=w9,
               w10=w10, wsig=wsig, wfeat=wfeat, w11=w11, w12=w12)
    return params, raw


_PARAM_ORDER = ["w1", "b1", "w2", "b2", "w3", "b3", "w4", "b4", "w5", "b5",
                "w6h", "w6x", "b6", "w7", "b7", "w8", "b8", "w9", "b9",
                "w10", "b10", "wfs", "bfs", "w11f", "w11d", "b11",
                "w12", "b12"]


@jax.jit
def nerf_forward(x, d, params):
    """x: (B, 39) encoded positions, d: (B, 27) encoded directions."""
    B = x.shape[0]
    n_tiles = pl.cdiv(B, TB)
    Bp = n_tiles * TB

    # merged 128-lane input: x enc in lanes 0:39, d enc in lanes 39:66;
    # rows B:Bp are zero padding and are sliced off after the kernel.
    xd = jnp.zeros((Bp, PAD), jnp.float32)
    xd = xd.at[:B, :IN_POS].set(x.astype(jnp.float32))
    xd = xd.at[:B, IN_POS:IN_POS + IN_DIR].set(d.astype(jnp.float32))
    xd = xd.astype(jnp.bfloat16)

    param_list = [params[k] for k in _PARAM_ORDER]

    def full_spec(arr):
        # whole-array block with a constant index_map -> fetched once, reused
        # across all grid steps.
        return pl.BlockSpec(arr.shape, lambda i: (0,) * arr.ndim)

    in_specs = [pl.BlockSpec((TB, PAD), lambda i: (i, 0))]
    in_specs += [full_spec(p) for p in param_list]

    out = pl.pallas_call(
        _nerf_kernel,
        grid=(n_tiles,),
        in_specs=in_specs,
        out_specs=pl.BlockSpec((TB, PAD), lambda i: (i, 0)),
        out_shape=jax.ShapeDtypeStruct((Bp, PAD), jnp.float32),
        compiler_params=pltpu.CompilerParams(
            dimension_semantics=("parallel",)),
    )(xd, *param_list)

    return out[:B, :3], out[:B, 3:4]


def nerf_reference(x, d, raw):
    """Pure-JAX reference matching the PyTorch forward, evaluated in the same
    mixed precision as the kernel (bf16 operands, f32 accumulation)."""
    bf = lambda a: a.astype(jnp.bfloat16)
    mm = lambda a, w: jnp.dot(bf(a), bf(w), preferred_element_type=jnp.float32)
    relu = lambda v: jnp.maximum(v, 0.0)

    h = relu(mm(x, raw["w1"]))
    for k in ("w2", "w3", "w4", "w5"):
        h = relu(mm(h, raw[k]))
    h = relu(mm(jnp.concatenate([h, x], axis=-1), raw["w6"]))
    for k in ("w7", "w8", "w9", "w10"):
        h = relu(mm(h, raw[k]))
    sigma = relu(mm(h, raw["wsig"]))
    feature = mm(h, raw["wfeat"])
    h = relu(mm(jnp.concatenate([feature, d], axis=-1), raw["w11"]))
    rgb = jax.nn.sigmoid(mm(h, raw["w12"]))
    return rgb, sigma


if __name__ == "__main__":
    key = jax.random.PRNGKey(0)
    kx, kd = jax.random.split(key)
    B = 512   # 2 batch tiles -> grid of 2 parallel steps (feeds both v7x TCs)
    # forward() consumes already positionally-encoded inputs (see layout note)
    x = jax.random.normal(kx, (B, IN_POS), jnp.float32)
    d = jax.random.normal(kd, (B, IN_DIR), jnp.float32)

    params, raw = init_params(seed=0)

    rgb, sigma = nerf_forward(x, d, params)
    jax.block_until_ready((rgb, sigma))

    rgb_ref, sigma_ref = nerf_reference(x, d, raw)
    assert rgb.shape == (B, 3) and sigma.shape == (B, 1)
    # bf16 weights/activations -> relaxed tolerance vs. the mixed-precision ref
    assert jnp.allclose(rgb, rgb_ref, atol=1e-2, rtol=1e-2), (
        float(jnp.max(jnp.abs(rgb - rgb_ref))))
    assert jnp.allclose(sigma, sigma_ref, atol=1e-2, rtol=1e-2), (
        float(jnp.max(jnp.abs(sigma - sigma_ref))))

    print("KERNEL_OK")
</pallas_src>

<mosaic_0001>
module attributes {stable_mosaic.version = 11 : i64} {
  func.func @_nerf_kernel(%arg0: i32, %arg1: memref<256x128xbf16, #tpu.memory_space<vmem>>, %arg2: memref<128x256xbf16, #tpu.memory_space<vmem>>, %arg3: memref<1x256xf32, #tpu.memory_space<vmem>>, %arg4: memref<256x256xbf16, #tpu.memory_space<vmem>>, %arg5: memref<1x256xf32, #tpu.memory_space<vmem>>, %arg6: memref<256x256xbf16, #tpu.memory_space<vmem>>, %arg7: memref<1x256xf32, #tpu.memory_space<vmem>>, %arg8: memref<256x256xbf16, #tpu.memory_space<vmem>>, %arg9: memref<1x256xf32, #tpu.memory_space<vmem>>, %arg10: memref<256x256xbf16, #tpu.memory_space<vmem>>, %arg11: memref<1x256xf32, #tpu.memory_space<vmem>>, %arg12: memref<256x256xbf16, #tpu.memory_space<vmem>>, %arg13: memref<128x256xbf16, #tpu.memory_space<vmem>>, %arg14: memref<1x256xf32, #tpu.memory_space<vmem>>, %arg15: memref<256x256xbf16, #tpu.memory_space<vmem>>, %arg16: memref<1x256xf32, #tpu.memory_space<vmem>>, %arg17: memref<256x256xbf16, #tpu.memory_space<vmem>>, %arg18: memref<1x256xf32, #tpu.memory_space<vmem>>, %arg19: memref<256x256xbf16, #tpu.memory_space<vmem>>, %arg20: memref<1x256xf32, #tpu.memory_space<vmem>>, %arg21: memref<256x256xbf16, #tpu.memory_space<vmem>>, %arg22: memref<1x256xf32, #tpu.memory_space<vmem>>, %arg23: memref<256x384xbf16, #tpu.memory_space<vmem>>, %arg24: memref<1x384xf32, #tpu.memory_space<vmem>>, %arg25: memref<256x128xbf16, #tpu.memory_space<vmem>>, %arg26: memref<128x128xbf16, #tpu.memory_space<vmem>>, %arg27: memref<1x128xf32, #tpu.memory_space<vmem>>, %arg28: memref<128x128xbf16, #tpu.memory_space<vmem>>, %arg29: memref<1x128xf32, #tpu.memory_space<vmem>>, %arg30: memref<256x128xf32, #tpu.memory_space<vmem>>) attributes {dimension_semantics = [#tpu.dimension_semantics<parallel>], iteration_bounds = array<i64: 2>, scalar_prefetch = 0 : i64, scratch_operands = 0 : i64, tpu.core_type = #tpu.core_type<tc>, window_params = [{transform_indices = @transform_0, window_bounds = array<i64: 256, 128>}, {pipeline_mode = #tpu.pipeline_mode<synchronous>, transform_indices = @transform_1, window_bounds = array<i64: 128, 256>}, {pipeline_mode = #tpu.pipeline_mode<synchronous>, transform_indices = @transform_2, window_bounds = array<i64: 1, 256>}, {pipeline_mode = #tpu.pipeline_mode<synchronous>, transform_indices = @transform_3, window_bounds = array<i64: 256, 256>}, {pipeline_mode = #tpu.pipeline_mode<synchronous>, transform_indices = @transform_4, window_bounds = array<i64: 1, 256>}, {pipeline_mode = #tpu.pipeline_mode<synchronous>, transform_indices = @transform_5, window_bounds = array<i64: 256, 256>}, {pipeline_mode = #tpu.pipeline_mode<synchronous>, transform_indices = @transform_6, window_bounds = array<i64: 1, 256>}, {pipeline_mode = #tpu.pipeline_mode<synchronous>, transform_indices = @transform_7, window_bounds = array<i64: 256, 256>}, {pipeline_mode = #tpu.pipeline_mode<synchronous>, transform_indices = @transform_8, window_bounds = array<i64: 1, 256>}, {pipeline_mode = #tpu.pipeline_mode<synchronous>, transform_indices = @transform_9, window_bounds = array<i64: 256, 256>}, {pipeline_mode = #tpu.pipeline_mode<synchronous>, transform_indices = @transform_10, window_bounds = array<i64: 1, 256>}, {pipeline_mode = #tpu.pipeline_mode<synchronous>, transform_indices = @transform_11, window_bounds = array<i64: 256, 256>}, {pipeline_mode = #tpu.pipeline_mode<synchronous>, transform_indices = @transform_12, window_bounds = array<i64: 128, 256>}, {pipeline_mode = #tpu.pipeline_mode<synchronous>, transform_indices = @transform_13, window_bounds = array<i64: 1, 256>}, {pipeline_mode = #tpu.pipeline_mode<synchronous>, transform_indices = @transform_14, window_bounds = array<i64: 256, 256>}, {pipeline_mode = #tpu.pipeline_mode<synchronous>, transform_indices = @transform_15, window_bounds = array<i64: 1, 256>}, {pipeline_mode = #tpu.pipeline_mode<synchronous>, transform_indices = @transform_16, window_bounds = array<i64: 256, 256>}, {pipeline_mode = #tpu.pipeline_mode<synchronous>, transform_indices = @transform_17, window_bounds = array<i64: 1, 256>}, {pipeline_mode = #tpu.pipeline_mode<synchronous>, transform_indices = @transform_18, window_bounds = array<i64: 256, 256>}, {pipeline_mode = #tpu.pipeline_mode<synchronous>, transform_indices = @transform_19, window_bounds = array<i64: 1, 256>}, {pipeline_mode = #tpu.pipeline_mode<synchronous>, transform_indices = @transform_20, window_bounds = array<i64: 256, 256>}, {pipeline_mode = #tpu.pipeline_mode<synchronous>, transform_indices = @transform_21, window_bounds = array<i64: 1, 256>}, {pipeline_mode = #tpu.pipeline_mode<synchronous>, transform_indices = @transform_22, window_bounds = array<i64: 256, 384>}, {pipeline_mode = #tpu.pipeline_mode<synchronous>, transform_indices = @transform_23, window_bounds = array<i64: 1, 384>}, {pipeline_mode = #tpu.pipeline_mode<synchronous>, transform_indices = @transform_24, window_bounds = array<i64: 256, 128>}, {pipeline_mode = #tpu.pipeline_mode<synchronous>, transform_indices = @transform_25, window_bounds = array<i64: 128, 128>}, {pipeline_mode = #tpu.pipeline_mode<synchronous>, transform_indices = @transform_26, window_bounds = array<i64: 1, 128>}, {pipeline_mode = #tpu.pipeline_mode<synchronous>, transform_indices = @transform_27, window_bounds = array<i64: 128, 128>}, {pipeline_mode = #tpu.pipeline_mode<synchronous>, transform_indices = @transform_28, window_bounds = array<i64: 1, 128>}, {transform_indices = @transform_29, window_bounds = array<i64: 256, 128>}]} {
    %c0 = arith.constant 0 : index
    %c0_0 = arith.constant 0 : index
    %0 = vector.load %arg1[%c0, %c0_0] : memref<256x128xbf16, #tpu.memory_space<vmem>>, vector<256x128xbf16>
    %c0_1 = arith.constant 0 : index
    %c0_2 = arith.constant 0 : index
    %1 = vector.load %arg2[%c0_1, %c0_2] : memref<128x256xbf16, #tpu.memory_space<vmem>>, vector<128x256xbf16>
    %cst = arith.constant dense<0.000000e+00> : vector<256x256xf32>
    %2 = tpu.matmul %0, %1, %cst {dimension_numbers = #tpu.dot_dimension_numbers<[1], [0], [0], [1], [0, 0, 1, 1], [], []>} : vector<256x128xbf16>, vector<128x256xbf16>, vector<256x256xf32> -> vector<256x256xf32>
    %c0_3 = arith.constant 0 : index
    %c0_4 = arith.constant 0 : index
    %3 = vector.load %arg3[%c0_3, %c0_4] : memref<1x256xf32, #tpu.memory_space<vmem>>, vector<1x256xf32>
    %4 = vector.broadcast %3 : vector<1x256xf32> to vector<256x256xf32>
    %5 = arith.addf %2, %4 : vector<256x256xf32>
    %cst_5 = arith.constant 0.000000e+00 : f32
    %6 = vector.broadcast %cst_5 : f32 to vector<256x256xf32>
    %7 = arith.maximumf %5, %6 : vector<256x256xf32>
    %8 = arith.truncf %7 : vector<256x256xf32> to vector<256x256xbf16>
    %c0_6 = arith.constant 0 : index
    %c0_7 = arith.constant 0 : index
    %9 = vector.load %arg4[%c0_6, %c0_7] : memref<256x256xbf16, #tpu.memory_space<vmem>>, vector<256x256xbf16>
    %cst_8 = arith.constant dense<0.000000e+00> : vector<256x256xf32>
    %10 = tpu.matmul %8, %9, %cst_8 {dimension_numbers = #tpu.dot_dimension_numbers<[1], [0], [0], [1], [0, 0, 1, 1], [], []>} : vector<256x256xbf16>, vector<256x256xbf16>, vector<256x256xf32> -> vector<256x256xf32>
    %c0_9 = arith.constant 0 : index
    %c0_10 = arith.constant 0 : index
    %11 = vector.load %arg5[%c0_9, %c0_10] : memref<1x256xf32, #tpu.memory_space<vmem>>, vector<1x256xf32>
    %12 = vector.broadcast %11 : vector<1x256xf32> to vector<256x256xf32>
    %13 = arith.addf %10, %12 : vector<256x256xf32>
    %cst_11 = arith.constant 0.000000e+00 : f32
    %14 = vector.broadcast %cst_11 : f32 to vector<256x256xf32>
    %15 = arith.maximumf %13, %14 : vector<256x256xf32>
    %16 = arith.truncf %15 : vector<256x256xf32> to vector<256x256xbf16>
    %c0_12 = arith.constant 0 : index
    %c0_13 = arith.constant 0 : index
    %17 = vector.load %arg6[%c0_12, %c0_13] : memref<256x256xbf16, #tpu.memory_space<vmem>>, vector<256x256xbf16>
    %cst_14 = arith.constant dense<0.000000e+00> : vector<256x256xf32>
    %18 = tpu.matmul %16, %17, %cst_14 {dimension_numbers = #tpu.dot_dimension_numbers<[1], [0], [0], [1], [0, 0, 1, 1], [], []>} : vector<256x256xbf16>, vector<256x256xbf16>, vector<256x256xf32> -> vector<256x256xf32>
    %c0_15 = arith.constant 0 : index
    %c0_16 = arith.constant 0 : index
    %19 = vector.load %arg7[%c0_15, %c0_16] : memref<1x256xf32, #tpu.memory_space<vmem>>, vector<1x256xf32>
    %20 = vector.broadcast %19 : vector<1x256xf32> to vector<256x256xf32>
    %21 = arith.addf %18, %20 : vector<256x256xf32>
    %cst_17 = arith.constant 0.000000e+00 : f32
    %22 = vector.broadcast %cst_17 : f32 to vector<256x256xf32>
    %23 = arith.maximumf %21, %22 : vector<256x256xf32>
    %24 = arith.truncf %23 : vector<256x256xf32> to vector<256x256xbf16>
    %c0_18 = arith.constant 0 : index
    %c0_19 = arith.constant 0 : index
    %25 = vector.load %arg8[%c0_18, %c0_19] : memref<256x256xbf16, #tpu.memory_space<vmem>>, vector<256x256xbf16>
    %cst_20 = arith.constant dense<0.000000e+00> : vector<256x256xf32>
    %26 = tpu.matmul %24, %25, %cst_20 {dimension_numbers = #tpu.dot_dimension_numbers<[1], [0], [0], [1], [0, 0, 1, 1], [], []>} : vector<256x256xbf16>, vector<256x256xbf16>, vector<256x256xf32> -> vector<256x256xf32>
    %c0_21 = arith.constant 0 : index
    %c0_22 = arith.constant 0 : index
    %27 = vector.load %arg9[%c0_21, %c0_22] : memref<1x256xf32, #tpu.memory_space<vmem>>, vector<1x256xf32>
    %28 = vector.broadcast %27 : vector<1x256xf32> to vector<256x256xf32>
    %29 = arith.addf %26, %28 : vector<256x256xf32>
    %cst_23 = arith.constant 0.000000e+00 : f32
    %30 = vector.broadcast %cst_23 : f32 to vector<256x256xf32>
    %31 = arith.maximumf %29, %30 : vector<256x256xf32>
    %32 = arith.truncf %31 : vector<256x256xf32> to vector<256x256xbf16>
    %c0_24 = arith.constant 0 : index
    %c0_25 = arith.constant 0 : index
    %33 = vector.load %arg10[%c0_24, %c0_25] : memref<256x256xbf16, #tpu.memory_space<vmem>>, vector<256x256xbf16>
    %cst_26 = arith.constant dense<0.000000e+00> : vector<256x256xf32>
    %34 = tpu.matmul %32, %33, %cst_26 {dimension_numbers = #tpu.dot_dimension_numbers<[1], [0], [0], [1], [0, 0, 1, 1], [], []>} : vector<256x256xbf16>, vector<256x256xbf16>, vector<256x256xf32> -> vector<256x256xf32>
    %c0_27 = arith.constant 0 : index
    %c0_28 = arith.constant 0 : index
    %35 = vector.load %arg11[%c0_27, %c0_28] : memref<1x256xf32, #tpu.memory_space<vmem>>, vector<1x256xf32>
    %36 = vector.broadcast %35 : vector<1x256xf32> to vector<256x256xf32>
    %37 = arith.addf %34, %36 : vector<256x256xf32>
    %cst_29 = arith.constant 0.000000e+00 : f32
    %38 = vector.broadcast %cst_29 : f32 to vector<256x256xf32>
    %39 = arith.maximumf %37, %38 : vector<256x256xf32>
    %40 = arith.truncf %39 : vector<256x256xf32> to vector<256x256xbf16>
    %c0_30 = arith.constant 0 : index
    %c0_31 = arith.constant 0 : index
    %41 = vector.load %arg12[%c0_30, %c0_31] : memref<256x256xbf16, #tpu.memory_space<vmem>>, vector<256x256xbf16>
    %cst_32 = arith.constant dense<0.000000e+00> : vector<256x256xf32>
    %42 = tpu.matmul %40, %41, %cst_32 {dimension_numbers = #tpu.dot_dimension_numbers<[1], [0], [0], [1], [0, 0, 1, 1], [], []>} : vector<256x256xbf16>, vector<256x256xbf16>, vector<256x256xf32> -> vector<256x256xf32>
    %c0_33 = arith.constant 0 : index
    %c0_34 = arith.constant 0 : index
    %43 = vector.load %arg13[%c0_33, %c0_34] : memref<128x256xbf16, #tpu.memory_space<vmem>>, vector<128x256xbf16>
    %cst_35 = arith.constant dense<0.000000e+00> : vector<256x256xf32>
    %44 = tpu.matmul %0, %43, %cst_35 {dimension_numbers = #tpu.dot_dimension_numbers<[1], [0], [0], [1], [0, 0, 1, 1], [], []>} : vector<256x128xbf16>, vector<128x256xbf16>, vector<256x256xf32> -> vector<256x256xf32>
    %45 = arith.addf %42, %44 : vector<256x256xf32>
    %c0_36 = arith.constant 0 : index
    %c0_37 = arith.constant 0 : index
    %46 = vector.load %arg14[%c0_36, %c0_37] : memref<1x256xf32, #tpu.memory_space<vmem>>, vector<1x256xf32>
    %47 = vector.broadcast %46 : vector<1x256xf32> to vector<256x256xf32>
    %48 = arith.addf %45, %47 : vector<256x256xf32>
    %cst_38 = arith.constant 0.000000e+00 : f32
    %49 = vector.broadcast %cst_38 : f32 to vector<256x256xf32>
    %50 = arith.maximumf %48, %49 : vector<256x256xf32>
    %51 = arith.truncf %50 : vector<256x256xf32> to vector<256x256xbf16>
    %c0_39 = arith.constant 0 : index
    %c0_40 = arith.constant 0 : index
    %52 = vector.load %arg15[%c0_39, %c0_40] : memref<256x256xbf16, #tpu.memory_space<vmem>>, vector<256x256xbf16>
    %cst_41 = arith.constant dense<0.000000e+00> : vector<256x256xf32>
    %53 = tpu.matmul %51, %52, %cst_41 {dimension_numbers = #tpu.dot_dimension_numbers<[1], [0], [0], [1], [0, 0, 1, 1], [], []>} : vector<256x256xbf16>, vector<256x256xbf16>, vector<256x256xf32> -> vector<256x256xf32>
    %c0_42 = arith.constant 0 : index
    %c0_43 = arith.constant 0 : index
    %54 = vector.load %arg16[%c0_42, %c0_43] : memref<1x256xf32, #tpu.memory_space<vmem>>, vector<1x256xf32>
    %55 = vector.broadcast %54 : vector<1x256xf32> to vector<256x256xf32>
    %56 = arith.addf %53, %55 : vector<256x256xf32>
    %cst_44 = arith.constant 0.000000e+00 : f32
    %57 = vector.broadcast %cst_44 : f32 to vector<256x256xf32>
    %58 = arith.maximumf %56, %57 : vector<256x256xf32>
    %59 = arith.truncf %58 : vector<256x256xf32> to vector<256x256xbf16>
    %c0_45 = arith.constant 0 : index
    %c0_46 = arith.constant 0 : index
    %60 = vector.load %arg17[%c0_45, %c0_46] : memref<256x256xbf16, #tpu.memory_space<vmem>>, vector<256x256xbf16>
    %cst_47 = arith.constant dense<0.000000e+00> : vector<256x256xf32>
    %61 = tpu.matmul %59, %60, %cst_47 {dimension_numbers = #tpu.dot_dimension_numbers<[1], [0], [0], [1], [0, 0, 1, 1], [], []>} : vector<256x256xbf16>, vector<256x256xbf16>, vector<256x256xf32> -> vector<256x256xf32>
    %c0_48 = arith.constant 0 : index
    %c0_49 = arith.constant 0 : index
    %62 = vector.load %arg18[%c0_48, %c0_49] : memref<1x256xf32, #tpu.memory_space<vmem>>, vector<1x256xf32>
    %63 = vector.broadcast %62 : vector<1x256xf32> to vector<256x256xf32>
    %64 = arith.addf %61, %63 : vector<256x256xf32>
    %cst_50 = arith.constant 0.000000e+00 : f32
    %65 = vector.broadcast %cst_50 : f32 to vector<256x256xf32>
    %66 = arith.maximumf %64, %65 : vector<256x256xf32>
    %67 = arith.truncf %66 : vector<256x256xf32> to vector<256x256xbf16>
    %c0_51 = arith.constant 0 : index
    %c0_52 = arith.constant 0 : index
    %68 = vector.load %arg19[%c0_51, %c0_52] : memref<256x256xbf16, #tpu.memory_space<vmem>>, vector<256x256xbf16>
    %cst_53 = arith.constant dense<0.000000e+00> : vector<256x256xf32>
    %69 = tpu.matmul %67, %68, %cst_53 {dimension_numbers = #tpu.dot_dimension_numbers<[1], [0], [0], [1], [0, 0, 1, 1], [], []>} : vector<256x256xbf16>, vector<256x256xbf16>, vector<256x256xf32> -> vector<256x256xf32>
    %c0_54 = arith.constant 0 : index
    %c0_55 = arith.constant 0 : index
    %70 = vector.load %arg20[%c0_54, %c0_55] : memref<1x256xf32, #tpu.memory_space<vmem>>, vector<1x256xf32>
    %71 = vector.broadcast %70 : vector<1x256xf32> to vector<256x256xf32>
    %72 = arith.addf %69, %71 : vector<256x256xf32>
    %cst_56 = arith.constant 0.000000e+00 : f32
    %73 = vector.broadcast %cst_56 : f32 to vector<256x256xf32>
    %74 = arith.maximumf %72, %73 : vector<256x256xf32>
    %75 = arith.truncf %74 : vector<256x256xf32> to vector<256x256xbf16>
    %c0_57 = arith.constant 0 : index
    %c0_58 = arith.constant 0 : index
    %76 = vector.load %arg21[%c0_57, %c0_58] : memref<256x256xbf16, #tpu.memory_space<vmem>>, vector<256x256xbf16>
    %cst_59 = arith.constant dense<0.000000e+00> : vector<256x256xf32>
    %77 = tpu.matmul %75, %76, %cst_59 {dimension_numbers = #tpu.dot_dimension_numbers<[1], [0], [0], [1], [0, 0, 1, 1], [], []>} : vector<256x256xbf16>, vector<256x256xbf16>, vector<256x256xf32> -> vector<256x256xf32>
    %c0_60 = arith.constant 0 : index
    %c0_61 = arith.constant 0 : index
    %78 = vector.load %arg22[%c0_60, %c0_61] : memref<1x256xf32, #tpu.memory_space<vmem>>, vector<1x256xf32>
    %79 = vector.broadcast %78 : vector<1x256xf32> to vector<256x256xf32>
    %80 = arith.addf %77, %79 : vector<256x256xf32>
    %cst_62 = arith.constant 0.000000e+00 : f32
    %81 = vector.broadcast %cst_62 : f32 to vector<256x256xf32>
    %82 = arith.maximumf %80, %81 : vector<256x256xf32>
    %83 = arith.truncf %82 : vector<256x256xf32> to vector<256x256xbf16>
    %c0_63 = arith.constant 0 : index
    %c0_64 = arith.constant 0 : index
    %84 = vector.load %arg23[%c0_63, %c0_64] : memref<256x384xbf16, #tpu.memory_space<vmem>>, vector<256x384xbf16>
    %cst_65 = arith.constant dense<0.000000e+00> : vector<256x384xf32>
    %85 = tpu.matmul %83, %84, %cst_65 {dimension_numbers = #tpu.dot_dimension_numbers<[1], [0], [0], [1], [0, 0, 1, 1], [], []>} : vector<256x256xbf16>, vector<256x384xbf16>, vector<256x384xf32> -> vector<256x384xf32>
    %c0_66 = arith.constant 0 : index
    %c0_67 = arith.constant 0 : index
    %86 = vector.load %arg24[%c0_66, %c0_67] : memref<1x384xf32, #tpu.memory_space<vmem>>, vector<1x384xf32>
    %87 = vector.broadcast %86 : vector<1x384xf32> to vector<256x384xf32>
    %88 = arith.addf %85, %87 : vector<256x384xf32>
    %89 = vector.extract_strided_slice %88 {offsets = [0, 0], sizes = [256, 256], strides = [1, 1]} : vector<256x384xf32> to vector<256x256xf32>
    %90 = arith.truncf %89 : vector<256x256xf32> to vector<256x256xbf16>
    %91 = vector.extract_strided_slice %88 {offsets = [0, 256], sizes = [256, 128], strides = [1, 1]} : vector<256x384xf32> to vector<256x128xf32>
    %cst_68 = arith.constant 0.000000e+00 : f32
    %92 = vector.broadcast %cst_68 : f32 to vector<256x128xf32>
    %93 = arith.maximumf %91, %92 : vector<256x128xf32>
    %c0_69 = arith.constant 0 : index
    %c0_70 = arith.constant 0 : index
    %94 = vector.load %arg25[%c0_69, %c0_70] : memref<256x128xbf16, #tpu.memory_space<vmem>>, vector<256x128xbf16>
    %cst_71 = arith.constant dense<0.000000e+00> : vector<256x128xf32>
    %95 = tpu.matmul %90, %94, %cst_71 {dimension_numbers = #tpu.dot_dimension_numbers<[1], [0], [0], [1], [0, 0, 1, 1], [], []>} : vector<256x256xbf16>, vector<256x128xbf16>, vector<256x128xf32> -> vector<256x128xf32>
    %c0_72 = arith.constant 0 : index
    %c0_73 = arith.constant 0 : index
    %96 = vector.load %arg26[%c0_72, %c0_73] : memref<128x128xbf16, #tpu.memory_space<vmem>>, vector<128x128xbf16>
    %cst_74 = arith.constant dense<0.000000e+00> : vector<256x128xf32>
    %97 = tpu.matmul %0, %96, %cst_74 {dimension_numbers = #tpu.dot_dimension_numbers<[1], [0], [0], [1], [0, 0, 1, 1], [], []>} : vector<256x128xbf16>, vector<128x128xbf16>, vector<256x128xf32> -> vector<256x128xf32>
    %98 = arith.addf %95, %97 : vector<256x128xf32>
    %c0_75 = arith.constant 0 : index
    %c0_76 = arith.constant 0 : index
    %99 = vector.load %arg27[%c0_75, %c0_76] : memref<1x128xf32, #tpu.memory_space<vmem>>, vector<1x128xf32>
    %100 = vector.broadcast %99 : vector<1x128xf32> to vector<256x128xf32>
    %101 = arith.addf %98, %100 : vector<256x128xf32>
    %cst_77 = arith.constant 0.000000e+00 : f32
    %102 = vector.broadcast %cst_77 : f32 to vector<256x128xf32>
    %103 = arith.maximumf %101, %102 : vector<256x128xf32>
    %104 = arith.truncf %103 : vector<256x128xf32> to vector<256x128xbf16>
    %c0_78 = arith.constant 0 : index
    %c0_79 = arith.constant 0 : index
    %105 = vector.load %arg28[%c0_78, %c0_79] : memref<128x128xbf16, #tpu.memory_space<vmem>>, vector<128x128xbf16>
    %cst_80 = arith.constant dense<0.000000e+00> : vector<256x128xf32>
    %106 = tpu.matmul %104, %105, %cst_80 {dimension_numbers = #tpu.dot_dimension_numbers<[1], [0], [0], [1], [0, 0, 1, 1], [], []>} : vector<256x128xbf16>, vector<128x128xbf16>, vector<256x128xf32> -> vector<256x128xf32>
    %c0_81 = arith.constant 0 : index
    %c0_82 = arith.constant 0 : index
    %107 = vector.load %arg29[%c0_81, %c0_82] : memref<1x128xf32, #tpu.memory_space<vmem>>, vector<1x128xf32>
    %108 = vector.broadcast %107 : vector<1x128xf32> to vector<256x128xf32>
    %109 = arith.addf %106, %108 : vector<256x128xf32>
    %110 = arith.negf %109 : vector<256x128xf32>
    %111 = math.exp %110 : vector<256x128xf32>
    %cst_83 = arith.constant 1.000000e+00 : f32
    %112 = vector.broadcast %cst_83 : f32 to vector<256x128xf32>
    %113 = arith.addf %112, %111 : vector<256x128xf32>
    %114 = arith.divf %112, %113 : vector<256x128xf32>
    %115 = tpu.iota {dimensions = array<i32: 1>} : vector<256x128xi32>
    %c3_i32 = arith.constant 3 : i32
    %116 = vector.broadcast %c3_i32 : i32 to vector<256x128xi32>
    %117 = arith.cmpi slt, %115, %116 : vector<256x128xi32>
    %118 = arith.select %117, %114, %93 : vector<256x128xi1>, vector<256x128xf32>
    %c0_84 = arith.constant 0 : index
    %c0_85 = arith.constant 0 : index
    %119 = vector.load %arg30[%c0_84, %c0_85] : memref<256x128xf32, #tpu.memory_space<vmem>>, vector<256x128xf32>
    tpu.vector_store %arg30[%c0_84, %c0_85], %118 {strides = array<i32>} : memref<256x128xf32, #tpu.memory_space<vmem>>, vector<256x128xf32>,
    return
  }
  func.func @transform_0(%arg0: i32) -> (i32, i32) {
    %c0_i32 = arith.constant 0 : i32
    %c0_i32_0 = arith.constant 0 : i32
    return %arg0, %c0_i32 : i32, i32
  }
  func.func @transform_1(%arg0: i32) -> (i32, i32) {
    %c0_i32 = arith.constant 0 : i32
    %c0_i32_0 = arith.constant 0 : i32
    %c0_i32_1 = arith.constant 0 : i32
    return %c0_i32, %c0_i32_0 : i32, i32
  }
  func.func @transform_2(%arg0: i32) -> (i32, i32) {
    %c0_i32 = arith.constant 0 : i32
    %c0_i32_0 = arith.constant 0 : i32
    %c0_i32_1 = arith.constant 0 : i32
    return %c0_i32, %c0_i32_0 : i32, i32
  }
  func.func @transform_3(%arg0: i32) -> (i32, i32) {
    %c0_i32 = arith.constant 0 : i32
    %c0_i32_0 = arith.constant 0 : i32
    %c0_i32_1 = arith.constant 0 : i32
    return %c0_i32, %c0_i32_0 : i32, i32
  }
  func.func @transform_4(%arg0: i32) -> (i32, i32) {
    %c0_i32 = arith.constant 0 : i32
    %c0_i32_0 = arith.constant 0 : i32
    %c0_i32_1 = arith.constant 0 : i32
    return %c0_i32, %c0_i32_0 : i32, i32
  }
  func.func @transform_5(%arg0: i32) -> (i32, i32) {
    %c0_i32 = arith.constant 0 : i32
    %c0_i32_0 = arith.constant 0 : i32
    %c0_i32_1 = arith.constant 0 : i32
    return %c0_i32, %c0_i32_0 : i32, i32
  }
  func.func @transform_6(%arg0: i32) -> (i32, i32) {
    %c0_i32 = arith.constant 0 : i32
    %c0_i32_0 = arith.constant 0 : i32
    %c0_i32_1 = arith.constant 0 : i32
    return %c0_i32, %c0_i32_0 : i32, i32
  }
  func.func @transform_7(%arg0: i32) -> (i32, i32) {
    %c0_i32 = arith.constant 0 : i32
    %c0_i32_0 = arith.constant 0 : i32
    %c0_i32_1 = arith.constant 0 : i32
    return %c0_i32, %c0_i32_0 : i32, i32
  }
  func.func @transform_8(%arg0: i32) -> (i32, i32) {
    %c0_i32 = arith.constant 0 : i32
    %c0_i32_0 = arith.constant 0 : i32
    %c0_i32_1 = arith.constant 0 : i32
    return %c0_i32, %c0_i32_0 : i32, i32
  }
  func.func @transform_9(%arg0: i32) -> (i32, i32) {
    %c0_i32 = arith.constant 0 : i32
    %c0_i32_0 = arith.constant 0 : i32
    %c0_i32_1 = arith.constant 0 : i32
    return %c0_i32, %c0_i32_0 : i32, i32
  }
  func.func @transform_10(%arg0: i32) -> (i32, i32) {
    %c0_i32 = arith.constant 0 : i32
    %c0_i32_0 = arith.constant 0 : i32
    %c0_i32_1 = arith.constant 0 : i32
    return %c0_i32, %c0_i32_0 : i32, i32
  }
  func.func @transform_11(%arg0: i32) -> (i32, i32) {
    %c0_i32 = arith.constant 0 : i32
    %c0_i32_0 = arith.constant 0 : i32
    %c0_i32_1 = arith.constant 0 : i32
    return %c0_i32, %c0_i32_0 : i32, i32
  }
  func.func @transform_12(%arg0: i32) -> (i32, i32) {
    %c0_i32 = arith.constant 0 : i32
    %c0_i32_0 = arith.constant 0 : i32
    %c0_i32_1 = arith.constant 0 : i32
    return %c0_i32, %c0_i32_0 : i32, i32
  }
  func.func @transform_13(%arg0: i32) -> (i32, i32) {
    %c0_i32 = arith.constant 0 : i32
    %c0_i32_0 = arith.constant 0 : i32
    %c0_i32_1 = arith.constant 0 : i32
    return %c0_i32, %c0_i32_0 : i32, i32
  }
  func.func @transform_14(%arg0: i32) -> (i32, i32) {
    %c0_i32 = arith.constant 0 : i32
    %c0_i32_0 = arith.constant 0 : i32
    %c0_i32_1 = arith.constant 0 : i32
    return %c0_i32, %c0_i32_0 : i32, i32
  }
  func.func @transform_15(%arg0: i32) -> (i32, i32) {
    %c0_i32 = arith.constant 0 : i32
    %c0_i32_0 = arith.constant 0 : i32
    %c0_i32_1 = arith.constant 0 : i32
    return %c0_i32, %c0_i32_0 : i32, i32
  }
  func.func @transform_16(%arg0: i32) -> (i32, i32) {
    %c0_i32 = arith.constant 0 : i32
    %c0_i32_0 = arith.constant 0 : i32
    %c0_i32_1 = arith.constant 0 : i32
    return %c0_i32, %c0_i32_0 : i32, i32
  }
  func.func @transform_17(%arg0: i32) -> (i32, i32) {
    %c0_i32 = arith.constant 0 : i32
    %c0_i32_0 = arith.constant 0 : i32
    %c0_i32_1 = arith.constant 0 : i32
    return %c0_i32, %c0_i32_0 : i32, i32
  }
  func.func @transform_18(%arg0: i32) -> (i32, i32) {
    %c0_i32 = arith.constant 0 : i32
    %c0_i32_0 = arith.constant 0 : i32
    %c0_i32_1 = arith.constant 0 : i32
    return %c0_i32, %c0_i32_0 : i32, i32
  }
  func.func @transform_19(%arg0: i32) -> (i32, i32) {
    %c0_i32 = arith.constant 0 : i32
    %c0_i32_0 = arith.constant 0 : i32
    %c0_i32_1 = arith.constant 0 : i32
    return %c0_i32, %c0_i32_0 : i32, i32
  }
  func.func @transform_20(%arg0: i32) -> (i32, i32) {
    %c0_i32 = arith.constant 0 : i32
    %c0_i32_0 = arith.constant 0 : i32
    %c0_i32_1 = arith.constant 0 : i32
    return %c0_i32, %c0_i32_0 : i32, i32
  }
  func.func @transform_21(%arg0: i32) -> (i32, i32) {
    %c0_i32 = arith.constant 0 : i32
    %c0_i32_0 = arith.constant 0 : i32
    %c0_i32_1 = arith.constant 0 : i32
    return %c0_i32, %c0_i32_0 : i32, i32
  }
  func.func @transform_22(%arg0: i32) -> (i32, i32) {
    %c0_i32 = arith.constant 0 : i32
    %c0_i32_0 = arith.constant 0 : i32
    %c0_i32_1 = arith.constant 0 : i32
    return %c0_i32, %c0_i32_0 : i32, i32
  }
  func.func @transform_23(%arg0: i32) -> (i32, i32) {
    %c0_i32 = arith.constant 0 : i32
    %c0_i32_0 = arith.constant 0 : i32
    %c0_i32_1 = arith.constant 0 : i32
    return %c0_i32, %c0_i32_0 : i32, i32
  }
  func.func @transform_24(%arg0: i32) -> (i32, i32) {
    %c0_i32 = arith.constant 0 : i32
    %c0_i32_0 = arith.constant 0 : i32
    %c0_i32_1 = arith.constant 0 : i32
    return %c0_i32, %c0_i32_0 : i32, i32
  }
  func.func @transform_25(%arg0: i32) -> (i32, i32) {
    %c0_i32 = arith.constant 0 : i32
    %c0_i32_0 = arith.constant 0 : i32
    %c0_i32_1 = arith.constant 0 : i32
    return %c0_i32, %c0_i32_0 : i32, i32
  }
  func.func @transform_26(%arg0: i32) -> (i32, i32) {
    %c0_i32 = arith.constant 0 : i32
    %c0_i32_0 = arith.constant 0 : i32
    %c0_i32_1 = arith.constant 0 : i32
    return %c0_i32, %c0_i32_0 : i32, i32
  }
  func.func @transform_27(%arg0: i32) -> (i32, i32) {
    %c0_i32 = arith.constant 0 : i32
    %c0_i32_0 = arith.constant 0 : i32
    %c0_i32_1 = arith.constant 0 : i32
    return %c0_i32, %c0_i32_0 : i32, i32
  }
  func.func @transform_28(%arg0: i32) -> (i32, i32) {
    %c0_i32 = arith.constant 0 : i32
    %c0_i32_0 = arith.constant 0 : i32
    %c0_i32_1 = arith.constant 0 : i32
    return %c0_i32, %c0_i32_0 : i32, i32
  }
  func.func @transform_29(%arg0: i32) -> (i32, i32) {
    %c0_i32 = arith.constant 0 : i32
    %c0_i32_0 = arith.constant 0 : i32
    return %arg0, %c0_i32 : i32, i32
  }
}

</mosaic_0001>

<bundles_post_ra>
// kernel: nerf_forward.1
= control target key start
LH: loop header
LB: loop body
LE: loop exit
PB: predicated region body
PF: predicated region fallthrough
CT: control target
= control target key end

     0   :  { %s10123_s6 = smov 1   ;;  %s10124_s10 = smov 2   ;;  %s12032_s0 = inlined_call_operand.smem [shape: u32[30], index: -1, kind: input, shape index: {}] }
   0x1   :  { %s10169_s5 = sld [smem:[%s12032_s0]]   ;;  %s10125_s14 = smov 3  }
   0x2   :  { %s10174_s9 = sld [smem:[%s12032_s0 + %s10123_s6]]   ;;  %s10126_s18 = smov 4  }
   0x3   :  { %s10179_s13 = sld [smem:[%s12032_s0 + %s10124_s10]]   ;;  %s10127_s22 = smov 5  }
   0x4   :  { %s10184_s17 = sld [smem:[%s12032_s0 + %s10125_s14]]   ;;  %s10128_s26 = smov 6  }
   0x5   :  { %s10189_s21 = sld [smem:[%s12032_s0 + %s10126_s18]]   ;;  %s10129_s30 = smov 7  }
   0x6   :  { %s10194_s25 = sld [smem:[%s12032_s0 + %s10127_s22]]   ;;  %s10130_s4 = smov 8  }
   0x7   :  { %s10199_s29 = sld [smem:[%s12032_s0 + %s10128_s26]]   ;;  %s10131_s10 = smov 9  }
   0x8   :  { %s10204_s3 = sld [smem:[%s12032_s0 + %s10129_s30]]   ;;  %s10132_s15 = smov 10  }
   0x9   :  { %s10209_s8 = sld [smem:[%s12032_s0 + %s10130_s4]]   ;;  %s10133_s20 = smov 11  }
   0xa   :  { %s10214_s14 = sld [smem:[%s12032_s0 + %s10131_s10]]   ;;  %s10134_s26 = smov 12  }
   0xb   :  { %s10219_s19 = sld [smem:[%s12032_s0 + %s10132_s15]]   ;;  %s10135_s1 = smov 13  }
   0xc   :  { %s10224_s24 = sld [smem:[%s12032_s0 + %s10133_s20]]   ;;  %s10136_s7 = smov 14  }
   0xd   :  { %s10229_s30 = sld [smem:[%s12032_s0 + %s10134_s26]]   ;;  %s10137_s15 = smov 15  }
   0xe   :  { %s10234_s6 = sld [smem:[%s12032_s0 + %s10135_s1]]   ;;  %s10138_s22 = smov 16  }
   0xf   :  { %s10239_s12 = sld [smem:[%s12032_s0 + %s10136_s7]]   ;;  %s10139_s28 = smov 17  }
  0x10   :  { %s10244_s20 = sld [smem:[%s12032_s0 + %s10137_s15]]   ;;  %s10140_s7 = smov 18  }
  0x11   :  { %12043 = sst [smem:[#allocation12_spill]] %s10219_s19  ;;  %s10141_s15 = smov 19  }
  0x12   :  { %s10249_s27 = sld [smem:[%s12032_s0 + %s10138_s22]]   ;;  %s10142_s22 = smov 20  }
  0x13   :  { %s10254_s4 = sld [smem:[%s12032_s0 + %s10139_s28]]   ;;  %s10143_s28 = smov 21  }
  0x14   :  { %12044 = sst [smem:[#allocation13_spill]] %s10234_s6 }
  0x15   :  { %s10259_s6 = sld [smem:[%s12032_s0 + %s10140_s7]]   ;;  %s10144_s7 = smov 22  }
  0x16   :  { %12045 = sst [smem:[#allocation14_spill]] %s10244_s20 }
  0x17   :  { %s10264_s20 = sld [smem:[%s12032_s0 + %s10141_s15]]   ;;  %s10145_s15 = smov 23  }
  0x18   :  { %12046 = sst [smem:[#allocation15_spill]] %s10249_s27 }
  0x19   :  { %12047 = sst [smem:[#allocation16_spill]] %s10254_s4 }
  0x1a   :  { %s10269_s27 = sld [smem:[%s12032_s0 + %s10142_s22]]   ;;  %s10146_s22 = smov 24  }
  0x1b   :  { %12048 = sst [smem:[#allocation17_spill]] %s10259_s6 }
  0x1c   :  { %s10274_s4 = sld [smem:[%s12032_s0 + %s10143_s28]]   ;;  %s10147_s28 = smov 25  }
  0x1d   :  { %12049 = sst [smem:[#allocation18_spill]] %s10264_s20 }
  0x1e   :  { %s10279_s6 = sld [smem:[%s12032_s0 + %s10144_s7]]   ;;  %s10148_s7 = smov 26  }
  0x1f   :  { %s10284_s20 = sld [smem:[%s12032_s0 + %s10145_s15]]   ;;  %s10149_s15 = smov 27  }
  0x20   :  { %12050 = sst [smem:[#allocation19_spill]] %s10269_s27 }
  0x21   :  { %s10289_s27 = sld [smem:[%s12032_s0 + %s10146_s22]]   ;;  %s10150_s22 = smov 28  }
  0x22   :  { %12051 = sst [smem:[#allocation20_spill]] %s10274_s4 }
  0x23   :  { %s10294_s4 = sld [smem:[%s12032_s0 + %s10147_s28]]   ;;  %s10151_s28 = smov 29  }
  0x24   :  { %12052 = sst [smem:[#allocation21_spill]] %s10279_s6 }
  0x25   :  { %12053 = sst [smem:[#allocation22_spill]] %s10284_s20 }
  0x26   :  { %s10299_s6 = sld [smem:[%s12032_s0 + %s10148_s7]]  }
  0x27   :  { %s10304_s20 = sld [smem:[%s12032_s0 + %s10149_s15]]  }
  0x28   :  { %s10309_s19 = sld [smem:[%s12032_s0 + %s10150_s22]]  }
  0x29   :  { %12054 = sst [smem:[#allocation23_spill]] %s10294_s4 }
  0x2a   :  { %s10314_s4 = sld [smem:[%s12032_s0 + %s10151_s28]]  }
  0x2b   :  { %64 = vsyncpa [#allocation3], 0 }
  0x2c   :  { %65 = vsyncpa [#allocation5], 0 }
  0x2d   :  { %66 = vsyncpa [#allocation8], 0  ;;  %s10316_s7 = smov 0  }
  0x2e LB: > { %s8254_s10 = sadd.s32 4294967295, %s10121_s7   ;;  %p8256_p0 = scmp.ge.s32.totalorder %s10121_s7, 1  ;;  %s10121_s7 = sphi %s10316_s7, %s72_s7  }
  0x2f   : > { %p717_p1 = scmp.lt.s32.totalorder %s10121_s7, 3  ;;  %p10326_p2 = scmp.eq.s32.totalorder %s8254_s10, 0 }
  0x30   : > { %s10152_s15 = smov [#allocation4]   ;;  %s10153_s18 = smov [#allocation2]  }
  0x31   : > { %s12055_s0 = scalar_select %p10326_p2, 1, 0 }
  0x32   : > { %p10330_p3 = pnand %p8256_p0, %p717_p1  ;;  %s772_s16 = sshll.u32 %s10152_s15, 4  ;;  %s10334_s16 = int_to_ptr.vmem [resolvable:$true] %s772_s16 }
  0x33   : > { %s729_s22 = sshll.u32 %s10153_s18, 4  ;;  %s10154_s26 = smov [#allocation6]   ;;  %s10338_s22 = int_to_ptr.vmem [resolvable:$true] %s729_s22 }
  0x34   : > { %s12056_s11 = scalar_select %p10330_p3, 1, 0 }
  0x35   : > { %p9171_p4 = pneg %p10330_p3  ;;  %s818_s28 = sshll.u32 %s10154_s26, 4  ;;  %s10346_s28 = int_to_ptr.vmem [resolvable:$true] %s818_s28 }
  0x36   : > { %s9991_s1 = scalar_lea.hbm %s10229_s30, 2048 }
  0x37   : > { %p10342_p5 = pnand %p10326_p2, %p9171_p4  ;;  %p9992_p6 = scmp.ne.s32.totalorder %s10229_s30, %s9991_s1 }
  0x38   : > { %p9998_p10 = scmp.lt.u32.totalorder %s9991_s1, %s10229_s30 }
  0x39   : > { %p10352_p7 = pneg %p10342_p5 }
  0x3b   : > { %p9994_p8 = pnand %p10352_p7, %p9992_p6 }
  0x3d   : > { %p9995_p9 = pneg %p9994_p8 }
  0x3f   : > { %p10000_p11 = pnand %p9998_p10, %p9995_p9 }
  0x41   : > { %10003 = shalt.err (!%p10000_p11)
}
  0x42   : > { %s10004_s15 = scalar_lea.vmem %s10334_s16, 2048  ;;  %p10012_p1 = scmp.lt.s32.totalorder %s10334_s16, %s10334_s16 }
  0x43   : > { %p10005_p12 = scmp.ne.s32.totalorder %s10334_s16, %s10004_s15  ;;  %p10013_p4 = scmp.lt.s32.totalorder %s10004_s15, %s10004_s15 }
  0x45   : > { %p10007_p13 = pnand %p10005_p12, %p10352_p7  ;;  %p10014_p2 = por %p10013_p4, %p10012_p1 }
  0x47   : > { %p10008_p0 = pneg %p10007_p13 }
  0x49   : > { %p10015_p3 = pnand %p10014_p2, %p10008_p0 }
  0x4b   : > { %10018 = shalt.err (!%p10015_p3)
}
  0x4c   : > { %s10155_s18 = smov 128   ;;  %s10156_s26 = smov 8  }
  0x4d   : > { %9177 = dma.hbm_to_vmem [thread:$0]  (!%p10342_p5), %s10229_s30, 2048, %s10334_s16, [#allocation5], %s10155_s18, %s10155_s18, %s10156_s26  }
  0x4e   : > { %s10019_s1 = scalar_lea.hbm %s10174_s9, 2048 }
  0x4f   : > { %p10020_p6 = scmp.ne.s32.totalorder %s10174_s9, %s10019_s1  ;;  %p10026_p10 = scmp.lt.u32.totalorder %s10019_s1, %s10174_s9 }
  0x51   : > { %p10022_p8 = pnand %p10020_p6, %p10352_p7 }
  0x53   : > { %p10023_p9 = pneg %p10022_p8 }
  0x55   : > { %p10028_p11 = pnand %p10026_p10, %p10023_p9 }
  0x57   : > { %10031 = shalt.err (!%p10028_p11)
}
  0x58   : > { %s10032_s15 = scalar_lea.vmem %s10338_s22, 2048  ;;  %p10040_p13 = scmp.lt.s32.totalorder %s10338_s22, %s10338_s22 }
  0x59   : > { %p10033_p2 = scmp.ne.s32.totalorder %s10338_s22, %s10032_s15  ;;  %p10041_p0 = scmp.lt.s32.totalorder %s10032_s15, %s10032_s15 }
  0x5b   : > { %p10035_p3 = pnand %p10033_p2, %p10352_p7  ;;  %p10042_p1 = por %p10041_p0, %p10040_p13 }
  0x5d   : > { %p10036_p12 = pneg %p10035_p3 }
  0x5f   : > { %p10043_p4 = pnand %p10042_p1, %p10036_p12 }
  0x61   : > { %10046 = shalt.err (!%p10043_p4)
}
  0x62   : > { %9174 = dma.hbm_to_vmem [thread:$0]  (!%p10342_p5), %s10174_s9, 2048, %s10338_s22, [#allocation3], %s10155_s18, %s10155_s18, %s10156_s26  }
  0x63   : > { %s10047_s16 = scalar_lea.hbm %s10289_s27, 2048 }
  0x64   : > { %p10048_p6 = scmp.ne.s32.totalorder %s10289_s27, %s10047_s16  ;;  %p10054_p10 = scmp.lt.u32.totalorder %s10047_s16, %s10289_s27 }
  0x66   : > { %p10050_p8 = pnand %p10048_p6, %p10352_p7 }
  0x68   : > { %p10051_p9 = pneg %p10050_p8 }
  0x6a   : > { %p10056_p11 = pnand %p10054_p10, %p10051_p9 }
  0x6c   : > { %10059 = shalt.err (!%p10056_p11)
}
  0x6d   : > { %s10060_s1 = scalar_lea.vmem %s10346_s28, 2048  ;;  %p10068_p13 = scmp.lt.s32.totalorder %s10346_s28, %s10346_s28 }
  0x6e   : > { %p10061_p2 = scmp.ne.s32.totalorder %s10346_s28, %s10060_s1  ;;  %p10069_p0 = scmp.lt.s32.totalorder %s10060_s1, %s10060_s1 }
  0x70   : > { %p10063_p3 = pnand %p10061_p2, %p10352_p7  ;;  %p10070_p1 = por %p10069_p0, %p10068_p13 }
  0x72   : > { %p10064_p12 = pneg %p10063_p3 }
  0x74   : > { %p10071_p4 = pnand %p10070_p1, %p10064_p12 }
  0x76   : > { %10074 = shalt.err (!%p10071_p4)
}
  0x77   : > { %s10157_s22 = smov 64   ;;  %s10158_s18 = smov 4  }
  0x78   : > { %9180 = dma.hbm_to_vmem [thread:$0]  (!%p10342_p5), %s10289_s27, 2048, %s10346_s28, [#allocation5], %s10157_s22, %s10157_s22, %s10158_s18  }
  0x79   : > { %s10159_s26 = smov [#allocation7]   ;;  %s10075_s16 = scalar_lea.hbm %s10304_s20, 1024 }
  0x7a   : > { %s837_s15 = sshll.u32 %s10159_s26, 4  ;;  %p10076_p6 = scmp.ne.s32.totalorder %s10304_s20, %s10075_s16  ;;  %s838_s15 = int_to_ptr.vmem [resolvable:$true] %s837_s15 }
  0x7b   : > { %p10082_p10 = scmp.lt.u32.totalorder %s10075_s16, %s10304_s20 }
  0x7c   : > { %p10078_p8 = pnand %p10076_p6, %p10352_p7 }
  0x7e   : > { %p10079_p9 = pneg %p10078_p8 }
  0x80   : > { %p10084_p11 = pnand %p10082_p10, %p10079_p9 }
  0x82   : > { %10087 = shalt.err (!%p10084_p11)
}
  0x83   : > { %s10088_s1 = scalar_lea.vmem %s838_s15, 1024  ;;  %p10096_p13 = scmp.lt.s32.totalorder %s838_s15, %s838_s15 }
  0x84   : > { %p10089_p2 = scmp.ne.s32.totalorder %s838_s15, %s10088_s1  ;;  %p10097_p0 = scmp.lt.s32.totalorder %s10088_s1, %s10088_s1 }
  0x86   : > { %p10091_p3 = pnand %p10089_p2, %p10352_p7  ;;  %p10098_p1 = por %p10097_p0, %p10096_p13 }
  0x88   : > { %p10092_p12 = pneg %p10091_p3 }
  0x8a   : > { %p10099_p4 = pnand %p10098_p1, %p10092_p12 }
  0x8c   : > { %10102 = shalt.err (!%p10099_p4)
}
  0x8d   : > { %9183 = dma.hbm_to_vmem [thread:$0]  (!%p10342_p5), %s10304_s20, 1024, %s838_s15, [#allocation8], %s10157_s22, %s10157_s22, %s10158_s18  }
  0x8e   : > { %p12059_p6 = scmp.ne.s32.totalorder %s12056_s11, 0 }
  0x90   : > { %865 = sbr.rel (%p12059_p6) target bundleno = 3223 (0xc97), region = 136 }
  0x97   : > { %p12060_p8 = scmp.ne.s32.totalorder %s12055_s0, 0 }
  0x99   : > { %10108 = dma.done.wait (%p12060_p8), [#allocation3], 2048  }
  0x9a   : > { %10110 = vsyncadd (%p12060_p8), [#allocation3], 4294965248 }
  0x9b   : > { %10112 = dma.done.wait (%p12060_p8), [#allocation5], 4096  }
  0x9c   : > { %10114 = vsyncadd (%p12060_p8), [#allocation5], 4294963200 }
  0x9d   : > { %10116 = dma.done.wait (%p12060_p8), [#allocation8], 1024  }
  0x9e   : > { %10118 = vsyncadd (%p12060_p8), [#allocation8], 4294966272  ;;  %v10160_v0 = vmov 0   ;;  %s8267_s11 = sshll.u32 %s8254_s10, 5  ;;  %v9238_v1 = vld [vmem:[#allocation2 + $0x4] ss:$8 sps:$4 sm:$0xff]  }
  0x9f   : > { %1234 = vmatprep.mubr.bf16.mxu0 %v10160_v0  ;;  %p954_p5 = scmp.lt.s32.totalorder %s8267_s11, 63  ;;  %v9240_v2 = vld [vmem:[#allocation2] ss:$8 sps:$4 sm:$0xff]   ;;  %1202 = vmatprep.subr.bf16.mxu0 %v9238_v1  ;;  %v9241_v3 = vld [vmem:[#allocation2 + $0x14] ss:$8 sps:$4 sm:$0xff]   ;;  %s12061_s10 = sld [smem:[#allocation12_spill]] }
  0xa0   : > { %1203 = vmatpush1.bf16.msra.mxu0 %v9240_v2  ;;  %v9243_v4 = vld [vmem:[#allocation2 + $0x10] ss:$8 sps:$4 sm:$0xff]   ;;  %v9244_v5 = vld [vmem:[#allocation2 + $0x24] ss:$8 sps:$4 sm:$0xff]   ;;  %v9246_v6 = vld [vmem:[#allocation2 + $0x20] ss:$8 sps:$4 sm:$0xff]  }
  0xa1   : > { %s12119_s11 = smov (!%p954_p5, %s8267_s11), 63  ;;  %1204 = vmatprep.subr.bf16.mxu0 %v9241_v3  ;;  %v9247_v7 = vld [vmem:[#allocation2 + $0x34] ss:$8 sps:$4 sm:$0xff]   ;;  %v9249_v8 = vld [vmem:[#allocation2 + $0x30] ss:$8 sps:$4 sm:$0xff]   ;;  %s12062_s28 = sld [smem:[#allocation15_spill]] }
  0xa2   : > { %s8268_s0 = sshll.u32 %s12119_s11, 2  ;;  %v9250_v9 = vld [vmem:[#allocation2 + $0x44] ss:$8 sps:$4 sm:$0xff]   ;;  %v9252_v10 = vld [vmem:[#allocation2 + $0x40] ss:$8 sps:$4 sm:$0xff]   ;;  %s12063_s2 = sld [smem:[#allocation13_spill]] }
  0xa3   : > { %s10430_s23 = scalar_lea.vmem %s10169_s5, %s8268_s0  ;;  %v9253_v11 = vld [vmem:[#allocation2 + $0x54] ss:$8 sps:$4 sm:$0xff]   ;;  %v9255_v12 = vld [vmem:[#allocation2 + $0x50] ss:$8 sps:$4 sm:$0xff]   ;;  %v9256_v13 = vld [vmem:[#allocation2 + $0x64] ss:$8 sps:$4 sm:$0xff]  }
  0xa4   : > { %1205 = vmatpush1.bf16.msra.mxu0 %v9243_v4  ;;  %v9258_v14 = vld [vmem:[#allocation2 + $0x60] ss:$8 sps:$4 sm:$0xff]   ;;  %v9259_v15 = vld [vmem:[#allocation2 + $0x74] ss:$8 sps:$4 sm:$0xff]   ;;  %v9261_v16 = vld [vmem:[#allocation2 + $0x70] ss:$8 sps:$4 sm:$0xff]   ;;  %v12042_v4 = vlaneseq }
  0xa5   : > { %1206 = vmatprep.subr.bf16.mxu0 %v9244_v5  ;;  %v9278_v17 = vld [vmem:[%s10184_s17 + $0x4] ss:$8 sps:$4 sm:$0xff]   ;;  %v9280_v18 = vld [vmem:[%s10184_s17] ss:$8 sps:$4 sm:$0xff]   ;;  %v9281_v19 = vld [vmem:[%s10184_s17 + $0x14] ss:$8 sps:$4 sm:$0xff]  }
  0xa6   : > { %1695 = vmatprep.subr.bf16.mxu1 %v9278_v17  ;;  %v9262_v20 = vld [vmem:[%s10430_s23] sm:$0xff]   ;;  %v9283_v21 = vld [vmem:[%s10184_s17 + $0x10] ss:$8 sps:$4 sm:$0xff]   ;;  %v9287_v24 = vld [vmem:[%s10184_s17 + $0x34] ss:$8 sps:$4 sm:$0xff]   ;;  %s12064_s22 = sld [smem:[#allocation17_spill]] }
  0xa7   : > { %1696 = vmatpush1.bf16.msra.mxu1 %v9280_v18  ;;  %v9284_v22 = vld [vmem:[%s10184_s17 + $0x24] ss:$8 sps:$4 sm:$0xff]   ;;  %v9286_v23 = vld [vmem:[%s10184_s17 + $0x20] ss:$8 sps:$4 sm:$0xff]   ;;  %v9289_v26 = vld [vmem:[%s10184_s17 + $0x30] ss:$8 sps:$4 sm:$0xff]  }
  0xa8   : > { %1207 = vmatpush1.bf16.msra.mxu0 %v9246_v6  ;;  %1697 = vmatprep.subr.bf16.mxu1 %v9281_v19  ;;  %v9263_v25 = vld [vmem:[%s10430_s23 + $0x8] sm:$0xff]   ;;  %v9293_v29 = vld [vmem:[%s10184_s17 + $0x54] ss:$8 sps:$4 sm:$0xff]   ;;  %v9295_v31 = vld [vmem:[%s10184_s17 + $0x50] ss:$8 sps:$4 sm:$0xff]   ;;  %s12065_s18 = sld [smem:[#allocation14_spill]] }
  0xa9   : > { %1208 = vmatprep.subr.bf16.mxu0 %v9247_v7  ;;  %v9290_v27 = vld [vmem:[%s10184_s17 + $0x44] ss:$8 sps:$4 sm:$0xff]   ;;  %v9292_v28 = vld [vmem:[%s10184_s17 + $0x40] ss:$8 sps:$4 sm:$0xff]   ;;  %v9264_v30 = vld [vmem:[%s10430_s23 + $0x10] sm:$0xff]   ;;  %v10500_v7 = vshrl.u32 %v12042_v4, 7 }
  0xaa   : > { %v9296_v32 = vld [vmem:[%s10184_s17 + $0x64] ss:$8 sps:$4 sm:$0xff]   ;;  %v9298_v33 = vld [vmem:[%s10184_s17 + $0x60] ss:$8 sps:$4 sm:$0xff]   ;;  %v9299_v34 = vld [vmem:[%s10184_s17 + $0x74] ss:$8 sps:$4 sm:$0xff]  }
  0xab   : > { %1698 = vmatpush1.bf16.msra.mxu1 %v9283_v21  ;;  %v9265_v35 = vld [vmem:[%s10430_s23 + $0x18] sm:$0xff]   ;;  %v9302_v37 = vld [vmem:[%s10184_s17 + $0x84] ss:$8 sps:$4 sm:$0xff]   ;;  %v9304_v38 = vld [vmem:[%s10184_s17 + $0x80] ss:$8 sps:$4 sm:$0xff]   ;;  %s12066_s26 = sld [smem:[#allocation19_spill]] }
  0xac   : > { %1209 = vmatpush1.bf16.msra.mxu0 %v9249_v8  ;;  %1699 = vmatprep.subr.bf16.mxu1 %v9284_v22  ;;  %v9301_v36 = vld [vmem:[%s10184_s17 + $0x70] ss:$8 sps:$4 sm:$0xff]   ;;  %v9305_v39 = vld [vmem:[%s10184_s17 + $0x94] ss:$8 sps:$4 sm:$0xff]   ;;  %v9266_v40 = vld [vmem:[%s10430_s23 + $0x20] sm:$0xff]   ;;  %v10503_v8 = vsub.s32 0, %v10500_v7 }
  0xad   : > { %1210 = vmatprep.subr.bf16.mxu0 %v9250_v9  ;;  %v9307_v41 = vld [vmem:[%s10184_s17 + $0x90] ss:$8 sps:$4 sm:$0xff]   ;;  %v9308_v42 = vld [vmem:[%s10184_s17 + $0xa4] ss:$8 sps:$4 sm:$0xff]   ;;  %v9310_v43 = vld [vmem:[%s10184_s17 + $0xa0] ss:$8 sps:$4 sm:$0xff]  }
  0xae   : > { %v9311_v44 = vld [vmem:[%s10184_s17 + $0xb4] ss:$8 sps:$4 sm:$0xff]   ;;  %v9267_v45 = vld [vmem:[%s10430_s23 + $0x28] sm:$0xff]   ;;  %v9313_v46 = vld [vmem:[%s10184_s17 + $0xb0] ss:$8 sps:$4 sm:$0xff]   ;;  %s12067_s15 = sld [smem:[#allocation16_spill]] }
  0xaf   : > { %1700 = vmatpush1.bf16.msra.mxu1 %v9286_v23  ;;  %v9314_v47 = vld [vmem:[%s10184_s17 + $0xc4] ss:$8 sps:$4 sm:$0xff]   ;;  %v9316_v48 = vld [vmem:[%s10184_s17 + $0xc0] ss:$8 sps:$4 sm:$0xff]   ;;  %v9317_v49 = vld [vmem:[%s10184_s17 + $0xd4] ss:$8 sps:$4 sm:$0xff]  }
  0xb0   : > { %1211 = vmatpush1.bf16.msra.mxu0 %v9252_v10  ;;  %1701 = vmatprep.subr.bf16.mxu1 %v9287_v24  ;;  %v9268_v50 = vld [vmem:[%s10430_s23 + $0x30] sm:$0xff]   ;;  %v9269_v51 = vld [vmem:[%s10430_s23 + $0x38] sm:$0xff]   ;;  %v9270_v52 = vld [vmem:[%s10430_s23 + $0x40] sm:$0xff]   ;;  %v10507_v10 = vsub.s32 1, %v10500_v7  ;;  %s12068_s16 = sld [smem:[#allocation21_spill]]  ;;  %s12069_s1 = sld [smem:[#allocation18_spill]] }
  0xb1   : > { %1212 = vmatprep.subr.bf16.mxu0 %v9253_v11  ;;  %v9271_v53 = vld [vmem:[%s10430_s23 + $0x48] sm:$0xff]   ;;  %v9272_v54 = vld [vmem:[%s10430_s23 + $0x50] sm:$0xff]   ;;  %v9273_v56 = vld [vmem:[%s10430_s23 + $0x58] sm:$0xff]   ;;  %s12070_s0 = sld [smem:[#allocation23_spill]] }
  0xb2   : > { %v9319_v55 = vld [vmem:[%s10184_s17 + $0xd0] ss:$8 sps:$4 sm:$0xff]   ;;  %v9320_v57 = vld [vmem:[%s10184_s17 + $0xe4] ss:$8 sps:$4 sm:$0xff]   ;;  %v9322_v58 = vld [vmem:[%s10184_s17 + $0xe0] ss:$8 sps:$4 sm:$0xff]  }
  0xb3   : > { %1702 = vmatpush1.bf16.msra.mxu1 %v9289_v26  ;;  %v9323_v59 = vld [vmem:[%s10184_s17 + $0xf4] ss:$8 sps:$4 sm:$0xff]   ;;  %v9325_v60 = vld [vmem:[%s10184_s17 + $0xf0] ss:$8 sps:$4 sm:$0xff]   ;;  %v9274_v61 = vld [vmem:[%s10430_s23 + $0x60] sm:$0xff]  }
  0xb4   : > { %1213 = vmatpush1.bf16.msra.mxu0 %v9255_v12  ;;  %1703 = vmatprep.subr.bf16.mxu1 %v9290_v27  ;;  %v9275_v62 = vld [vmem:[%s10430_s23 + $0x68] sm:$0xff]   ;;  %v9276_v63 = vld [vmem:[%s10430_s23 + $0x70] sm:$0xff]   ;;  %v9277_v1 = vld [vmem:[%s10430_s23 + $0x78] sm:$0xff]  }
  0xb5   : > { %1214 = vmatprep.subr.bf16.mxu0 %v9256_v13  ;;  %v9326_v2 = vld [vmem:[%s10194_s25] ss:$8 sps:$4 sm:$0xff]   ;;  %v9328_v3 = vld [vmem:[%s10194_s25 + $0x4] ss:$8 sps:$4 sm:$0xff]   ;;  %v9329_v5 = vld [vmem:[%s10194_s25 + $0x10] ss:$8 sps:$4 sm:$0xff]  }
  0xb6   : > { %v9331_v6 = vld [vmem:[%s10194_s25 + $0x14] ss:$8 sps:$4 sm:$0xff]   ;;  %v1014_v9 = vld [vmem:[%s10179_s13] sm:$0x3]  ;;  %v9334_v12 = vld [vmem:[%s10194_s25 + $0x24] ss:$8 sps:$4 sm:$0xff]  }
  0xb7   : > { %1704 = vmatpush1.bf16.msra.mxu1 %v9292_v28  ;;  %v9332_v11 = vld [vmem:[%s10194_s25 + $0x20] ss:$8 sps:$4 sm:$0xff]   ;;  %v10512_v13 = vrot.slane %v1014_v9, %v10503_v8  ;;  %v9343_v27 = vld [vmem:[%s10194_s25 + $0x54] ss:$8 sps:$4 sm:$0xff]  }
  0xb8   : > { %1215 = vmatpush1.bf16.msra.mxu0 %v9258_v14  ;;  %1705 = vmatprep.subr.bf16.mxu1 %v9293_v29  ;;  %v10515_v14 = vrot.slane %v1014_v9, %v10507_v10  ;;  %v9338_v24 = vld [vmem:[%s10194_s25 + $0x40] ss:$8 sps:$4 sm:$0xff]  }
  0xb9   : > { %1216 = vmatprep.subr.bf16.mxu0 %v9259_v15  ;;  %v9335_v15 = vld [vmem:[%s10194_s25 + $0x30] ss:$8 sps:$4 sm:$0xff]  }
  0xbb   : > { %1706 = vmatpush1.bf16.msra.mxu1 %v9295_v31 }
  0xbc   : > { %1217 = vmatpush1.bf16.msra.mxu0 %v9261_v16  ;;  %1707 = vmatprep.subr.bf16.mxu1 %v9296_v32  ;;  %v9337_v16 = vld [vmem:[%s10194_s25 + $0x34] ss:$8 sps:$4 sm:$0xff]   ;;  %v9341_v32 = vld [vmem:[%s10194_s25 + $0x50] ss:$8 sps:$4 sm:$0xff]  }
  0xbd   : > { %2188 = vmatprep.subr.bf16.mxu0 %v9328_v3 }
  0xbf   : > { %1235 = vmatmul.mubr.bf16.vlgmr.msra.gmra.mrb[0].mxu0 %v9262_v20  ;;  %1708 = vmatpush1.bf16.msra.mxu1 %v9298_v33 }
  0xc0   : > { %1244 = vmatprep.mubr.bf16.mxu0 %v10160_v0  ;;  %1709 = vmatprep.subr.bf16.mxu1 %v9299_v34  ;;  %v9346_v34 = vld [vmem:[%s10194_s25 + $0x64] ss:$8 sps:$4 sm:$0xff]  }
  0xc1   : > { %2189 = vmatpush1.bf16.msra.mxu0 %v9326_v2 }
  0xc2   : > { %2190 = vmatprep.subr.bf16.mxu0 %v9331_v6  ;;  %v9353_v6 = vld [vmem:[%s10194_s25 + $0x90] ss:$8 sps:$4 sm:$0xff]  }
  0xc3   : > { %1710 = vmatpush1.bf16.msra.mxu1 %v9301_v36 }
  0xc4   : > { %1711 = vmatprep.subr.bf16.mxu1 %v9302_v37 }
  0xc5   : > { %2191 = vmatpush1.bf16.msra.mxu0 %v9329_v5 }
  0xc6   : > { %2192 = vmatprep.subr.bf16.mxu0 %v9334_v12 }
  0xc7   : > { %1245 = vmatmul.mubr.bf16.gmra.mrb[4].mxu0 %v9263_v25  ;;  %1712 = vmatpush1.bf16.msra.mxu1 %v9304_v38  ;;  %v9340_v25 = vld [vmem:[%s10194_s25 + $0x44] ss:$8 sps:$4 sm:$0xff]  }
  0xc8   : > { %1254 = vmatprep.mubr.bf16.mxu0 %v10160_v0  ;;  %1713 = vmatprep.subr.bf16.mxu1 %v9305_v39 }
  0xc9   : > { %2193 = vmatpush1.bf16.msra.mxu0 %v9332_v11  ;;  %v9358_v11 = vld [vmem:[%s10194_s25 + $0xa4] ss:$8 sps:$4 sm:$0xff]  }
  0xca   : > { %2194 = vmatprep.subr.bf16.mxu0 %v9337_v16 }
  0xcb   : > { %1714 = vmatpush1.bf16.msra.mxu1 %v9307_v41  ;;  %v9344_v41 = vld [vmem:[%s10194_s25 + $0x60] ss:$8 sps:$4 sm:$0xff]  }
  0xcc   : > { %1715 = vmatprep.subr.bf16.mxu1 %v9308_v42 }
  0xcd   : > { %2195 = vmatpush1.bf16.msra.mxu0 %v9335_v15 }
  0xce   : > { %2196 = vmatprep.subr.bf16.mxu0 %v9340_v25 }
  0xcf   : > { %1255 = vmatmul.mubr.bf16.gmra.mrb[8].mxu0 %v9264_v30  ;;  %1716 = vmatpush1.bf16.msra.mxu1 %v9310_v43 }
  0xd0   : > { %1264 = vmatprep.mubr.bf16.mxu0 %v10160_v0  ;;  %1717 = vmatprep.subr.bf16.mxu1 %v9311_v44  ;;  %v9349_v44 = vld [vmem:[%s10194_s25 + $0x74] ss:$8 sps:$4 sm:$0xff]  }
  0xd1   : > { %2197 = vmatpush1.bf16.msra.mxu0 %v9338_v24 }
  0xd2   : > { %2198 = vmatprep.subr.bf16.mxu0 %v9343_v27 }
  0xd3   : > { %1718 = vmatpush1.bf16.msra.mxu1 %v9313_v46 }
  0xd4   : > { %1719 = vmatprep.subr.bf16.mxu1 %v9314_v47 }
  0xd5   : > { %2199 = vmatpush1.bf16.msra.mxu0 %v9341_v32 }
  0xd6   : > { %2200 = vmatprep.subr.bf16.mxu0 %v9346_v34 }
  0xd7   : > { %1265 = vmatmul.mubr.bf16.gmra.mrb[12].mxu0 %v9265_v35  ;;  %1720 = vmatpush1.bf16.msra.mxu1 %v9316_v48 }
  0xd8   : > { %1274 = vmatprep.mubr.bf16.mxu0 %v10160_v0  ;;  %1721 = vmatprep.subr.bf16.mxu1 %v9317_v49 }
  0xd9   : > { %2201 = vmatpush1.bf16.msra.mxu0 %v9344_v41  ;;  %v9367_v41 = vld [vmem:[%s10194_s25 + $0xd4] ss:$8 sps:$4 sm:$0xff]  }
  0xda   : > { %2202 = vmatprep.subr.bf16.mxu0 %v9349_v44 }
  0xdb   : > { %1722 = vmatpush1.bf16.msra.mxu1 %v9319_v55 }
  0xdc   : > { %1723 = vmatprep.subr.bf16.mxu1 %v9320_v57 }
  0xdf   : > { %1275 = vmatmul.mubr.bf16.gmra.mrb[16].mxu0 %v9266_v40  ;;  %1724 = vmatpush1.bf16.msra.mxu1 %v9322_v58 }
  0xe0   : > { %1284 = vmatprep.mubr.bf16.mxu0 %v10160_v0  ;;  %1725 = vmatprep.subr.bf16.mxu1 %v9323_v59  ;;  %v9350_v59 = vld [vmem:[%s10194_s25 + $0x80] ss:$8 sps:$4 sm:$0xff]  }
  0xe3   : > { %1726 = vmatpush1.bf16.msra.mxu1 %v9325_v60 }
  0xe7   : > { %1285 = vmatmul.mubr.bf16.gmra.mrb[20].mxu0 %v9267_v45 }
  0xe8   : > { %1294 = vmatprep.mubr.bf16.mxu0 %v10160_v0 }
  0xef   : > { %1295 = vmatmul.mubr.bf16.gmra.mrb[24].mxu0 %v9268_v50  ;;  %v9347_v50 = vld [vmem:[%s10194_s25 + $0x70] ss:$8 sps:$4 sm:$0xff]  }
  0xf0   : > { %1304 = vmatprep.mubr.bf16.mxu0 %v10160_v0  ;;  %2203 = vmatpush1.bf16.msra.mxu0 %v9347_v50 }
  0xf7   : > { %1305 = vmatmul.mubr.bf16.gmra.mrb[28].mxu0 %v9269_v51 }
  0xf8   : > { %1314 = vmatprep.mubr.bf16.mxu0 %v10160_v0 }
  0xff   : > { %1315 = vmatmul.mubr.bf16.gmra.mrb[32].mxu0 %v9270_v52  ;;  %v9352_v52 = vld [vmem:[%s10194_s25 + $0x84] ss:$8 sps:$4 sm:$0xff]  }
 0x100   : > { %1324 = vmatprep.mubr.bf16.mxu0 %v10160_v0  ;;  %2204 = vmatprep.subr.bf16.mxu0 %v9352_v52 }
 0x101   : > { %2205 = vmatpush1.bf16.msra.mxu0 %v9350_v59 }
 0x107   : > { %1325 = vmatmul.mubr.bf16.gmra.mrb[36].mxu0 %v9271_v53 }
 0x108   : > { %1334 = vmatprep.mubr.bf16.mxu0 %v10160_v0 }
 0x10f   : > { %1335 = vmatmul.mubr.bf16.gmra.mrb[40].mxu0 %v9272_v54 }
 0x110   : > { %1344 = vmatprep.mubr.bf16.mxu0 %v10160_v0 }
 0x117   : > { %1345 = vmatmul.mubr.bf16.gmra.mrb[44].mxu0 %v9273_v56 }
 0x118   : > { %1354 = vmatprep.mubr.bf16.mxu0 %v10160_v0 }
 0x11f   : > { %1355 = vmatmul.mubr.bf16.gmra.mrb[48].mxu0 %v9274_v61 }
 0x120   : > { %1364 = vmatprep.mubr.bf16.mxu0 %v10160_v0 }
 0x127   : > { %1365 = vmatmul.mubr.bf16.gmra.mrb[52].mxu0 %v9275_v62  ;;  %v9355_v62 = vld [vmem:[%s10194_s25 + $0x94] ss:$8 sps:$4 sm:$0xff]  }
 0x128   : > { %1374 = vmatprep.mubr.bf16.mxu0 %v10160_v0  ;;  %2206 = vmatprep.subr.bf16.mxu0 %v9355_v62 }
 0x129   : > { %2207 = vmatpush1.bf16.msra.mxu0 %v9353_v6 }
 0x12a   : > { %2208 = vmatprep.subr.bf16.mxu0 %v9358_v11 }
 0x12f   : > { %1375 = vmatmul.mubr.bf16.gmra.mrb[56].mxu0 %v9276_v63 }
 0x130   : > { %1384 = vmatprep.mubr.bf16.mxu0 %v10160_v0 }
 0x137   : > { %1385 = vmatmul.mubr.bf16.gmra.mrb[60].mxu0 %v9277_v1 }
 0x192   : > { %v1236_v17 = vpop.f32.mrb[0].mxu0 }
 0x193   : > { %v1237_v18 = vadd.f32 %v1236_v17, %v10512_v13  ;;  %v1238_v19 = vpop.f32.mrb[1].mxu0 }
 0x194   : > { %v1240_v20 = vpop.f32.mrb[2].mxu0  ;;  %v1239_v21 = vadd.f32 %v1238_v19, %v10515_v14 }
 0x195   : > { %v1241_v22 = vadd.f32 %v1240_v20, %v10512_v13  ;;  %v1242_v23 = vpop.f32.mrb[3].mxu0  ;;  %v1395_v28 = vmax.f32 %v1237_v18, 0.0  ;;  %v9356_v20 = vld [vmem:[%s10194_s25 + $0xa0] ss:$8 sps:$4 sm:$0xff]  }
 0x196   : > { %v1243_v26 = vadd.f32 %v1242_v23, %v10515_v14  ;;  %v1396_v30 = vmax.f32 %v1239_v21, 0.0  ;;  %v9361_v23 = vld [vmem:[%s10194_s25 + $0xb4] ss:$8 sps:$4 sm:$0xff]   ;;  %2209 = vmatpush1.bf16.msra.mxu0 %v9356_v20 }
 0x197   : > { %v1397_v29 = vmax.f32 %v1241_v22, 0.0  ;;  %2210 = vmatprep.subr.bf16.mxu0 %v9361_v23 }
 0x198   : > { %v1398_v31 = vmax.f32 %v1243_v26, 0.0 }
 0x199   : > { %v1459_v33 = vpack.c.bf16 %v1397_v29, %v1395_v28  ;;  %v9359_v29 = vld [vmem:[%s10194_s25 + $0xb0] ss:$8 sps:$4 sm:$0xff]  }
 0x19a   : > { %v1246_v35 = vpop.f32.mrb[4].mxu0  ;;  %v1460_v36 = vpack.c.bf16 %v1398_v31, %v1396_v30  ;;  %v9364_v31 = vld [vmem:[%s10194_s25 + $0xc4] ss:$8 sps:$4 sm:$0xff]   ;;  %2211 = vmatpush1.bf16.msra.mxu0 %v9359_v29 }
 0x19b   : > { %v1247_v37 = vadd.f32 %v1246_v35, %v10512_v13  ;;  %v1248_v38 = vpop.f32.mrb[5].mxu0  ;;  %2212 = vmatprep.subr.bf16.mxu0 %v9364_v31 }
 0x19c   : > { %v1249_v39 = vadd.f32 %v1248_v38, %v10515_v14  ;;  %v1250_v40 = vpop.f32.mrb[6].mxu0  ;;  %1727 = vmatprep.mubr.bf16.mxu1 %v1460_v36  ;;  %v9362_v38 = vld [vmem:[%s10194_s25 + $0xc0] ss:$8 sps:$4 sm:$0xff]  }
 0x19d   : > { %v1251_v42 = vadd.f32 %v1250_v40, %v10512_v13  ;;  %v1252_v43 = vpop.f32.mrb[7].mxu0  ;;  %1728 = vmatmul.mubr.bf16.vlgmr.msra.gmra.mrb[0].mxu1 %v1459_v33  ;;  %v1399_v46 = vmax.f32 %v1247_v37, 0.0 }
 0x19e   : > { %v1253_v45 = vadd.f32 %v1252_v43, %v10515_v14  ;;  %v1400_v48 = vmax.f32 %v1249_v39, 0.0  ;;  %2213 = vmatpush1.bf16.msra.mxu0 %v9362_v38 }
 0x19f   : > { %v1401_v47 = vmax.f32 %v1251_v42, 0.0  ;;  %2214 = vmatprep.subr.bf16.mxu0 %v9367_v41 }
 0x1a0   : > { %v1402_v49 = vmax.f32 %v1253_v45, 0.0 }
 0x1a1   : > { %v1461_v51 = vpack.c.bf16 %v1401_v47, %v1399_v46  ;;  %v9365_v47 = vld [vmem:[%s10194_s25 + $0xd0] ss:$8 sps:$4 sm:$0xff]  }
 0x1a2   : > { %v1256_v53 = vpop.f32.mrb[8].mxu0  ;;  %v1462_v54 = vpack.c.bf16 %v1402_v49, %v1400_v48  ;;  %v9370_v49 = vld [vmem:[%s10194_s25 + $0xe4] ss:$8 sps:$4 sm:$0xff]   ;;  %2215 = vmatpush1.bf16.msra.mxu0 %v9365_v47 }
 0x1a3   : > { %v1257_v55 = vadd.f32 %v1256_v53, %v10512_v13  ;;  %v1258_v56 = vpop.f32.mrb[9].mxu0  ;;  %2216 = vmatprep.subr.bf16.mxu0 %v9370_v49 }
 0x1a4   : > { %v1259_v57 = vadd.f32 %v1258_v56, %v10515_v14  ;;  %v1260_v58 = vpop.f32.mrb[10].mxu0  ;;  %1737 = vmatprep.mubr.bf16.mxu1 %v1462_v54  ;;  %v9368_v56 = vld [vmem:[%s10194_s25 + $0xe0] ss:$8 sps:$4 sm:$0xff]  }
 0x1a5   : > { %v1261_v60 = vadd.f32 %v1260_v58, %v10512_v13  ;;  %v1262_v61 = vpop.f32.mrb[11].mxu0  ;;  %1738 = vmatmul.mubr.bf16.gmra.mrb[4].mxu1 %v1461_v51  ;;  %v1403_v1 = vmax.f32 %v1257_v55, 0.0 }
 0x1a6   : > { %v1263_v63 = vadd.f32 %v1262_v61, %v10515_v14  ;;  %v1404_v3 = vmax.f32 %v1259_v57, 0.0  ;;  %2217 = vmatpush1.bf16.msra.mxu0 %v9368_v56 }
 0x1a7   : > { %v1405_v2 = vmax.f32 %v1261_v60, 0.0 }
 0x1a8   : > { %v1406_v5 = vmax.f32 %v1263_v63, 0.0 }
 0x1a9   : > { %v1463_v9 = vpack.c.bf16 %v1405_v2, %v1403_v1 }
 0x1aa   : > { %v1266_v12 = vpop.f32.mrb[12].mxu0  ;;  %v1464_v15 = vpack.c.bf16 %v1406_v5, %v1404_v3 }
 0x1ab   : > { %v1267_v16 = vadd.f32 %v1266_v12, %v10512_v13  ;;  %v1268_v17 = vpop.f32.mrb[13].mxu0 }
 0x1ac   : > { %v1269_v18 = vadd.f32 %v1268_v17, %v10515_v14  ;;  %v1270_v19 = vpop.f32.mrb[14].mxu0  ;;  %1747 = vmatprep.mubr.bf16.mxu1 %v1464_v15 }
 0x1ad   : > { %v1271_v21 = vadd.f32 %v1270_v19, %v10512_v13  ;;  %v1272_v22 = vpop.f32.mrb[15].mxu0  ;;  %1748 = vmatmul.mubr.bf16.gmra.mrb[8].mxu1 %v1463_v9  ;;  %v1407_v25 = vmax.f32 %v1267_v16, 0.0 }
 0x1ae   : > { %v1273_v24 = vadd.f32 %v1272_v22, %v10515_v14  ;;  %v1408_v27 = vmax.f32 %v1269_v18, 0.0 }
 0x1af   : > { %v1409_v26 = vmax.f32 %v1271_v21, 0.0 }
 0x1b0   : > { %v1410_v28 = vmax.f32 %v1273_v24, 0.0 }
 0x1b1   : > { %v1465_v30 = vpack.c.bf16 %v1409_v26, %v1407_v25 }
 0x1b2   : > { %v1276_v32 = vpop.f32.mrb[16].mxu0  ;;  %v1466_v33 = vpack.c.bf16 %v1410_v28, %v1408_v27 }
 0x1b3   : > { %v1277_v34 = vadd.f32 %v1276_v32, %v10512_v13  ;;  %v1278_v35 = vpop.f32.mrb[17].mxu0 }
 0x1b4   : > { %v1279_v36 = vadd.f32 %v1278_v35, %v10515_v14  ;;  %v1280_v37 = vpop.f32.mrb[18].mxu0  ;;  %1757 = vmatprep.mubr.bf16.mxu1 %v1466_v33 }
 0x1b5   : > { %v1281_v39 = vadd.f32 %v1280_v37, %v10512_v13  ;;  %v1282_v40 = vpop.f32.mrb[19].mxu0  ;;  %1758 = vmatmul.mubr.bf16.gmra.mrb[12].mxu1 %v1465_v30  ;;  %v1411_v43 = vmax.f32 %v1277_v34, 0.0 }
 0x1b6   : > { %v1283_v42 = vadd.f32 %v1282_v40, %v10515_v14  ;;  %v1412_v45 = vmax.f32 %v1279_v36, 0.0 }
 0x1b7   : > { %v1413_v44 = vmax.f32 %v1281_v39, 0.0 }
 0x1b8   : > { %v1414_v46 = vmax.f32 %v1283_v42, 0.0 }
 0x1b9   : > { %v1467_v48 = vpack.c.bf16 %v1413_v44, %v1411_v43 }
 0x1ba   : > { %v1286_v50 = vpop.f32.mrb[20].mxu0  ;;  %v1468_v51 = vpack.c.bf16 %v1414_v46, %v1412_v45 }
 0x1bb   : > { %v1287_v52 = vadd.f32 %v1286_v50, %v10512_v13  ;;  %v1288_v53 = vpop.f32.mrb[21].mxu0 }
 0x1bc   : > { %v1289_v54 = vadd.f32 %v1288_v53, %v10515_v14  ;;  %v1290_v55 = vpop.f32.mrb[22].mxu0  ;;  %1767 = vmatprep.mubr.bf16.mxu1 %v1468_v51 }
 0x1bd   : > { %v1291_v57 = vadd.f32 %v1290_v55, %v10512_v13  ;;  %v1292_v58 = vpop.f32.mrb[23].mxu0  ;;  %1768 = vmatmul.mubr.bf16.gmra.mrb[16].mxu1 %v1467_v48  ;;  %v1415_v60 = vmax.f32 %v1287_v52, 0.0 }
 0x1be   : > { %v1293_v59 = vadd.f32 %v1292_v58, %v10515_v14  ;;  %v1416_v62 = vmax.f32 %v1289_v54, 0.0 }
 0x1bf   : > { %v1417_v61 = vmax.f32 %v1291_v57, 0.0 }
 0x1c0   : > { %v1418_v63 = vmax.f32 %v1293_v59, 0.0 }
 0x1c1   : > { %v1469_v1 = vpack.c.bf16 %v1417_v61, %v1415_v60 }
 0x1c2   : > { %v1296_v2 = vpop.f32.mrb[24].mxu0  ;;  %v1470_v3 = vpack.c.bf16 %v1418_v63, %v1416_v62 }
 0x1c3   : > { %v1297_v5 = vadd.f32 %v1296_v2, %v10512_v13  ;;  %v1298_v6 = vpop.f32.mrb[25].mxu0 }
 0x1c4   : > { %v1299_v9 = vadd.f32 %v1298_v6, %v10515_v14  ;;  %v1300_v11 = vpop.f32.mrb[26].mxu0  ;;  %1777 = vmatprep.mubr.bf16.mxu1 %v1470_v3 }
 0x1c5   : > { %v1301_v12 = vadd.f32 %v1300_v11, %v10512_v13  ;;  %v1302_v15 = vpop.f32.mrb[27].mxu0  ;;  %1778 = vmatmul.mubr.bf16.gmra.mrb[20].mxu1 %v1469_v1  ;;  %v1419_v17 = vmax.f32 %v1297_v5, 0.0 }
 0x1c6   : > { %v1303_v16 = vadd.f32 %v1302_v15, %v10515_v14  ;;  %v1420_v19 = vmax.f32 %v1299_v9, 0.0 }
 0x1c7   : > { %v1421_v18 = vmax.f32 %v1301_v12, 0.0 }
 0x1c8   : > { %v1422_v20 = vmax.f32 %v1303_v16, 0.0 }
 0x1c9   : > { %v1471_v21 = vpack.c.bf16 %v1421_v18, %v1419_v17 }
 0x1ca   : > { %v1306_v22 = vpop.f32.mrb[28].mxu0  ;;  %v1472_v23 = vpack.c.bf16 %v1422_v20, %v1420_v19 }
 0x1cb   : > { %v1307_v24 = vadd.f32 %v1306_v22, %v10512_v13  ;;  %v1308_v25 = vpop.f32.mrb[29].mxu0 }
 0x1cc   : > { %v1309_v26 = vadd.f32 %v1308_v25, %v10515_v14  ;;  %v1310_v27 = vpop.f32.mrb[30].mxu0  ;;  %1787 = vmatprep.mubr.bf16.mxu1 %v1472_v23 }
 0x1cd   : > { %v1311_v28 = vadd.f32 %v1310_v27, %v10512_v13  ;;  %v1312_v29 = vpop.f32.mrb[31].mxu0  ;;  %1788 = vmatmul.mubr.bf16.gmra.mrb[24].mxu1 %v1471_v21  ;;  %v1423_v31 = vmax.f32 %v1307_v24, 0.0 }
 0x1ce   : > { %v1313_v30 = vadd.f32 %v1312_v29, %v10515_v14  ;;  %v1424_v33 = vmax.f32 %v1309_v26, 0.0 }
 0x1cf   : > { %v1425_v32 = vmax.f32 %v1311_v28, 0.0 }
 0x1d0   : > { %v1426_v34 = vmax.f32 %v1313_v30, 0.0 }
 0x1d1   : > { %v1473_v35 = vpack.c.bf16 %v1425_v32, %v1423_v31 }
 0x1d2   : > { %v1316_v36 = vpop.f32.mrb[32].mxu0  ;;  %v1474_v37 = vpack.c.bf16 %v1426_v34, %v1424_v33 }
 0x1d3   : > { %v1317_v38 = vadd.f32 %v1316_v36, %v10512_v13  ;;  %v1318_v39 = vpop.f32.mrb[33].mxu0 }
 0x1d4   : > { %v1319_v40 = vadd.f32 %v1318_v39, %v10515_v14  ;;  %v1320_v41 = vpop.f32.mrb[34].mxu0  ;;  %1797 = vmatprep.mubr.bf16.mxu1 %v1474_v37 }
 0x1d5   : > { %v1321_v42 = vadd.f32 %v1320_v41, %v10512_v13  ;;  %v1322_v43 = vpop.f32.mrb[35].mxu0  ;;  %1798 = vmatmul.mubr.bf16.gmra.mrb[28].mxu1 %v1473_v35  ;;  %v1427_v45 = vmax.f32 %v1317_v38, 0.0 }
 0x1d6   : > { %v1323_v44 = vadd.f32 %v1322_v43, %v10515_v14  ;;  %v1428_v47 = vmax.f32 %v1319_v40, 0.0  ;;  %v9373_v43 = vld [vmem:[%s10194_s25 + $0xf4] ss:$8 sps:$4 sm:$0xff]  }
 0x1d7   : > { %v1429_v46 = vmax.f32 %v1321_v42, 0.0  ;;  %2218 = vmatprep.subr.bf16.mxu0 %v9373_v43 }
 0x1d8   : > { %v1430_v48 = vmax.f32 %v1323_v44, 0.0 }
 0x1d9   : > { %v1475_v49 = vpack.c.bf16 %v1429_v46, %v1427_v45  ;;  %v9371_v45 = vld [vmem:[%s10194_s25 + $0xf0] ss:$8 sps:$4 sm:$0xff]  }
 0x1da   : > { %v1326_v50 = vpop.f32.mrb[36].mxu0  ;;  %v1476_v51 = vpack.c.bf16 %v1430_v48, %v1428_v47  ;;  %2219 = vmatpush1.bf16.msra.mxu0 %v9371_v45  ;;  %v9385_v45 = vld [vmem:[%s10204_s3 + $0x34] ss:$8 sps:$4 sm:$0xff]  }
 0x1db   : > { %v1327_v52 = vadd.f32 %v1326_v50, %v10512_v13  ;;  %v1328_v53 = vpop.f32.mrb[37].mxu0 }
 0x1dc   : > { %v1329_v54 = vadd.f32 %v1328_v53, %v10515_v14  ;;  %v1330_v55 = vpop.f32.mrb[38].mxu0  ;;  %1807 = vmatprep.mubr.bf16.mxu1 %v1476_v51 }
 0x1dd   : > { %v1331_v56 = vadd.f32 %v1330_v55, %v10512_v13  ;;  %v1332_v57 = vpop.f32.mrb[39].mxu0  ;;  %1808 = vmatmul.mubr.bf16.gmra.mrb[32].mxu1 %v1475_v49  ;;  %v1431_v59 = vmax.f32 %v1327_v52, 0.0 }
 0x1de   : > { %v1333_v58 = vadd.f32 %v1332_v57, %v10515_v14  ;;  %v1432_v61 = vmax.f32 %v1329_v54, 0.0 }
 0x1df   : > { %v1433_v60 = vmax.f32 %v1331_v56, 0.0 }
 0x1e0   : > { %v1434_v62 = vmax.f32 %v1333_v58, 0.0 }
 0x1e1   : > { %v1477_v63 = vpack.c.bf16 %v1433_v60, %v1431_v59 }
 0x1e2   : > { %v1336_v1 = vpop.f32.mrb[40].mxu0  ;;  %v1478_v2 = vpack.c.bf16 %v1434_v62, %v1432_v61 }
 0x1e3   : > { %v1337_v3 = vadd.f32 %v1336_v1, %v10512_v13  ;;  %v1338_v5 = vpop.f32.mrb[41].mxu0 }
 0x1e4   : > { %v1339_v6 = vadd.f32 %v1338_v5, %v10515_v14  ;;  %v1340_v9 = vpop.f32.mrb[42].mxu0  ;;  %1817 = vmatprep.mubr.bf16.mxu1 %v1478_v2 }
 0x1e5   : > { %v1341_v11 = vadd.f32 %v1340_v9, %v10512_v13  ;;  %v1342_v12 = vpop.f32.mrb[43].mxu0  ;;  %1818 = vmatmul.mubr.bf16.gmra.mrb[36].mxu1 %v1477_v63  ;;  %v1435_v16 = vmax.f32 %v1337_v3, 0.0 }
 0x1e6   : > { %v1343_v15 = vadd.f32 %v1342_v12, %v10515_v14  ;;  %v1436_v18 = vmax.f32 %v1339_v6, 0.0 }
 0x1e7   : > { %v1437_v17 = vmax.f32 %v1341_v11, 0.0 }
 0x1e8   : > { %v1438_v19 = vmax.f32 %v1343_v15, 0.0 }
 0x1e9   : > { %v1479_v20 = vpack.c.bf16 %v1437_v17, %v1435_v16 }
 0x1ea   : > { %v1346_v21 = vpop.f32.mrb[44].mxu0  ;;  %v1480_v22 = vpack.c.bf16 %v1438_v19, %v1436_v18 }
 0x1eb   : > { %v1347_v23 = vadd.f32 %v1346_v21, %v10512_v13  ;;  %v1348_v24 = vpop.f32.mrb[45].mxu0 }
 0x1ec   : > { %v1349_v25 = vadd.f32 %v1348_v24, %v10515_v14  ;;  %v1350_v26 = vpop.f32.mrb[46].mxu0  ;;  %1827 = vmatprep.mubr.bf16.mxu1 %v1480_v22 }
 0x1ed   : > { %v1351_v27 = vadd.f32 %v1350_v26, %v10512_v13  ;;  %v1352_v28 = vpop.f32.mrb[47].mxu0  ;;  %1828 = vmatmul.mubr.bf16.gmra.mrb[40].mxu1 %v1479_v20  ;;  %v1439_v30 = vmax.f32 %v1347_v23, 0.0 }
 0x1ee   : > { %v1353_v29 = vadd.f32 %v1352_v28, %v10515_v14  ;;  %v1440_v32 = vmax.f32 %v1349_v25, 0.0 }
 0x1ef   : > { %v1441_v31 = vmax.f32 %v1351_v27, 0.0 }
 0x1f0   : > { %v1442_v33 = vmax.f32 %v1353_v29, 0.0 }
 0x1f1   : > { %v1481_v34 = vpack.c.bf16 %v1441_v31, %v1439_v30 }
 0x1f2   : > { %v1356_v35 = vpop.f32.mrb[48].mxu0  ;;  %v1482_v36 = vpack.c.bf16 %v1442_v33, %v1440_v32 }
 0x1f3   : > { %v1357_v37 = vadd.f32 %v1356_v35, %v10512_v13  ;;  %v1358_v38 = vpop.f32.mrb[49].mxu0 }
 0x1f4   : > { %v1359_v39 = vadd.f32 %v1358_v38, %v10515_v14  ;;  %v1360_v40 = vpop.f32.mrb[50].mxu0  ;;  %1837 = vmatprep.mubr.bf16.mxu1 %v1482_v36  ;;  %v9377_v38 = vld [vmem:[%s10204_s3 + $0x10] ss:$8 sps:$4 sm:$0xff]  }
 0x1f5   : > { %v1361_v41 = vadd.f32 %v1360_v40, %v10512_v13  ;;  %v1362_v42 = vpop.f32.mrb[51].mxu0  ;;  %1838 = vmatmul.mubr.bf16.gmra.mrb[44].mxu1 %v1481_v34  ;;  %v1443_v46 = vmax.f32 %v1357_v37, 0.0  ;;  %v9374_v37 = vld [vmem:[%s10204_s3] ss:$8 sps:$4 sm:$0xff]  }
 0x1f6   : > { %v1363_v44 = vadd.f32 %v1362_v42, %v10515_v14  ;;  %v1444_v48 = vmax.f32 %v1359_v39, 0.0  ;;  %v9379_v39 = vld [vmem:[%s10204_s3 + $0x14] ss:$8 sps:$4 sm:$0xff]   ;;  %v9380_v40 = vld [vmem:[%s10204_s3 + $0x20] ss:$8 sps:$4 sm:$0xff]  }
 0x1f7   : > { %v1445_v47 = vmax.f32 %v1361_v41, 0.0  ;;  %v9382_v41 = vld [vmem:[%s10204_s3 + $0x24] ss:$8 sps:$4 sm:$0xff]  }
 0x1f8   : > { %v1446_v49 = vmax.f32 %v1363_v44, 0.0  ;;  %v9383_v44 = vld [vmem:[%s10204_s3 + $0x30] ss:$8 sps:$4 sm:$0xff]  }
 0x1f9   : > { %v1483_v50 = vpack.c.bf16 %v1445_v47, %v1443_v46 }
 0x1fa   : > { %v1366_v51 = vpop.f32.mrb[52].mxu0  ;;  %v1484_v52 = vpack.c.bf16 %v1446_v49, %v1444_v48 }
 0x1fb   : > { %v1367_v53 = vadd.f32 %v1366_v51, %v10512_v13  ;;  %v1368_v54 = vpop.f32.mrb[53].mxu0 }
 0x1fc   : > { %v1369_v55 = vadd.f32 %v1368_v54, %v10515_v14  ;;  %v1370_v56 = vpop.f32.mrb[54].mxu0  ;;  %1847 = vmatprep.mubr.bf16.mxu1 %v1484_v52  ;;  %v9388_v54 = vld [vmem:[%s10204_s3 + $0x44] ss:$8 sps:$4 sm:$0xff]  }
 0x1fd   : > { %v1371_v57 = vadd.f32 %v1370_v56, %v10512_v13  ;;  %v1372_v58 = vpop.f32.mrb[55].mxu0  ;;  %1848 = vmatmul.mubr.bf16.gmra.mrb[48].mxu1 %v1483_v50  ;;  %v1447_v60 = vmax.f32 %v1367_v53, 0.0  ;;  %v9386_v53 = vld [vmem:[%s10204_s3 + $0x40] ss:$8 sps:$4 sm:$0xff]   ;;  %v9391_v56 = vld [vmem:[%s10204_s3 + $0x54] ss:$8 sps:$4 sm:$0xff]  }
 0x1fe   : > { %v1373_v59 = vadd.f32 %v1372_v58, %v10515_v14  ;;  %v1448_v62 = vmax.f32 %v1369_v55, 0.0 }
 0x1ff   : > { %v1449_v61 = vmax.f32 %v1371_v57, 0.0 }
 0x200   : > { %v1450_v63 = vmax.f32 %v1373_v59, 0.0 }
 0x201   : > { %v1485_v1 = vpack.c.bf16 %v1449_v61, %v1447_v60  ;;  %v9389_v61 = vld [vmem:[%s10204_s3 + $0x50] ss:$8 sps:$4 sm:$0xff]  }
 0x202   : > { %v1376_v2 = vpop.f32.mrb[56].mxu0  ;;  %v1486_v3 = vpack.c.bf16 %v1450_v63, %v1448_v62  ;;  %v9394_v63 = vld [vmem:[%s10204_s3 + $0x64] ss:$8 sps:$4 sm:$0xff]  }
 0x203   : > { %v1377_v5 = vadd.f32 %v1376_v2, %v10512_v13  ;;  %v1378_v6 = vpop.f32.mrb[57].mxu0 }
 0x204   : > { %v1379_v9 = vadd.f32 %v1378_v6, %v10515_v14  ;;  %v1380_v11 = vpop.f32.mrb[58].mxu0  ;;  %1857 = vmatprep.mubr.bf16.mxu1 %v1486_v3 }
 0x205   : > { %v1381_v12 = vadd.f32 %v1380_v11, %v10512_v13  ;;  %v1382_v15 = vpop.f32.mrb[59].mxu0  ;;  %1858 = vmatmul.mubr.bf16.gmra.mrb[52].mxu1 %v1485_v1  ;;  %v1451_v17 = vmax.f32 %v1377_v5, 0.0  ;;  %v9392_v11 = vld [vmem:[%s10204_s3 + $0x60] ss:$8 sps:$4 sm:$0xff]  }
 0x206   : > { %v1383_v16 = vadd.f32 %v1382_v15, %v10515_v14  ;;  %v1452_v19 = vmax.f32 %v1379_v9, 0.0 }
 0x207   : > { %v1453_v18 = vmax.f32 %v1381_v12, 0.0 }
 0x208   : > { %v1454_v20 = vmax.f32 %v1383_v16, 0.0  ;;  %v9397_v16 = vld [vmem:[%s10204_s3 + $0x74] ss:$8 sps:$4 sm:$0xff]  }
 0x209   : > { %v1487_v21 = vpack.c.bf16 %v1453_v18, %v1451_v17 }
 0x20a   : > { %v1386_v22 = vpop.f32.mrb[60].mxu0  ;;  %v1488_v23 = vpack.c.bf16 %v1454_v20, %v1452_v19 }
 0x20b   : > { %v1387_v24 = vadd.f32 %v1386_v22, %v10512_v13  ;;  %v1388_v25 = vpop.f32.mrb[61].mxu0  ;;  %v9395_v22 = vld [vmem:[%s10204_s3 + $0x70] ss:$8 sps:$4 sm:$0xff]  }
 0x20c   : > { %v1389_v26 = vadd.f32 %v1388_v25, %v10515_v14  ;;  %v1390_v27 = vpop.f32.mrb[62].mxu0  ;;  %1867 = vmatprep.mubr.bf16.mxu1 %v1488_v23 }
 0x20d   : > { %v1391_v28 = vadd.f32 %v1390_v27, %v10512_v13  ;;  %v1392_v29 = vpop.f32.mrb[63].mxu0  ;;  %1868 = vmatmul.mubr.bf16.gmra.mrb[56].mxu1 %v1487_v21  ;;  %v1455_v31 = vmax.f32 %v1387_v24, 0.0  ;;  %v9376_v13 = vld [vmem:[%s10204_s3 + $0x4] ss:$8 sps:$4 sm:$0xff]  }
 0x20e   : > { %v1393_v30 = vadd.f32 %v1392_v29, %v10515_v14  ;;  %v1456_v33 = vmax.f32 %v1389_v26, 0.0  ;;  %2681 = vmatprep.subr.bf16.mxu1 %v9376_v13  ;;  %v1523_v14 = vld [vmem:[%s10189_s21] sm:$0x3]  ;;  %v9400_v24 = vld [vmem:[%s10204_s3 + $0x84] ss:$8 sps:$4 sm:$0xff]  }
 0x20f   : > { %v1457_v32 = vmax.f32 %v1391_v28, 0.0  ;;  %2682 = vmatpush1.bf16.msra.mxu1 %v9374_v37  ;;  %v10615_v42 = vrot.slane %v1523_v14, %v10503_v8  ;;  %v10618_v43 = vrot.slane %v1523_v14, %v10507_v10 }
 0x210   : > { %v1458_v34 = vmax.f32 %v1393_v30, 0.0  ;;  %2683 = vmatprep.subr.bf16.mxu1 %v9379_v39  ;;  %v9401_v39 = vld [vmem:[%s10204_s3 + $0x90] ss:$8 sps:$4 sm:$0xff]  }
 0x211   : > { %v1489_v35 = vpack.c.bf16 %v1457_v32, %v1455_v31  ;;  %v9398_v31 = vld [vmem:[%s10204_s3 + $0x80] ss:$8 sps:$4 sm:$0xff]  }
 0x212   : > { %v1490_v36 = vpack.c.bf16 %v1458_v34, %v1456_v33  ;;  %v9403_v34 = vld [vmem:[%s10204_s3 + $0x94] ss:$8 sps:$4 sm:$0xff]  }
 0x213   : > { %2684 = vmatpush1.bf16.msra.mxu1 %v9377_v38 }
 0x214   : > { %1877 = vmatprep.mubr.bf16.mxu1 %v1490_v36  ;;  %2685 = vmatprep.subr.bf16.mxu1 %v9382_v41 }
 0x215   : > { %1878 = vmatmul.mubr.bf16.gmra.mrb[60].mxu1 %v1489_v35 }
 0x217   : > { %2686 = vmatpush1.bf16.msra.mxu1 %v9380_v40  ;;  %v9406_v40 = vld [vmem:[%s10204_s3 + $0xa4] ss:$8 sps:$4 sm:$0xff]  }
 0x218   : > { %2687 = vmatprep.subr.bf16.mxu1 %v9385_v45 }
 0x21b   : > { %2688 = vmatpush1.bf16.msra.mxu1 %v9383_v44 }
 0x21c   : > { %2689 = vmatprep.subr.bf16.mxu1 %v9388_v54 }
 0x21f   : > { %2690 = vmatpush1.bf16.msra.mxu1 %v9386_v53 }
 0x220   : > { %2691 = vmatprep.subr.bf16.mxu1 %v9391_v56 }
 0x223   : > { %2692 = vmatpush1.bf16.msra.mxu1 %v9389_v61 }
 0x224   : > { %2693 = vmatprep.subr.bf16.mxu1 %v9394_v63 }
 0x227   : > { %2694 = vmatpush1.bf16.msra.mxu1 %v9392_v11  ;;  %v9415_v11 = vld [vmem:[%s10204_s3 + $0xd4] ss:$8 sps:$4 sm:$0xff]  }
 0x228   : > { %2695 = vmatprep.subr.bf16.mxu1 %v9397_v16 }
 0x22b   : > { %2696 = vmatpush1.bf16.msra.mxu1 %v9395_v22 }
 0x22c   : > { %2697 = vmatprep.subr.bf16.mxu1 %v9400_v24 }
 0x22f   : > { %2698 = vmatpush1.bf16.msra.mxu1 %v9398_v31 }
 0x230   : > { %2699 = vmatprep.subr.bf16.mxu1 %v9403_v34 }
 0x233   : > { %2700 = vmatpush1.bf16.msra.mxu1 %v9401_v39 }
 0x234   : > { %2701 = vmatprep.subr.bf16.mxu1 %v9406_v40 }
 0x270   : > { %v1729_v46 = vpop.f32.mrb[0].mxu1 }
 0x271   : > { %v1730_v47 = vadd.f32 %v1729_v46, %v10615_v42  ;;  %v1731_v48 = vpop.f32.mrb[1].mxu1 }
 0x272   : > { %v1732_v49 = vadd.f32 %v1731_v48, %v10618_v43  ;;  %v1733_v50 = vpop.f32.mrb[2].mxu1 }
 0x273   : > { %v1734_v51 = vadd.f32 %v1733_v50, %v10615_v42  ;;  %v1735_v52 = vpop.f32.mrb[3].mxu1  ;;  %v1888_v57 = vmax.f32 %v1730_v47, 0.0 }
 0x274   : > { %v1736_v55 = vadd.f32 %v1735_v52, %v10618_v43  ;;  %v1889_v59 = vmax.f32 %v1732_v49, 0.0  ;;  %v9404_v49 = vld [vmem:[%s10204_s3 + $0xa0] ss:$8 sps:$4 sm:$0xff]   ;;  %v9409_v52 = vld [vmem:[%s10204_s3 + $0xb4] ss:$8 sps:$4 sm:$0xff]  }
 0x275   : > { %v1890_v58 = vmax.f32 %v1734_v51, 0.0  ;;  %2702 = vmatpush1.bf16.msra.mxu1 %v9404_v49 }
 0x276   : > { %v1891_v60 = vmax.f32 %v1736_v55, 0.0  ;;  %2703 = vmatprep.subr.bf16.mxu1 %v9409_v52 }
 0x277   : > { %v1952_v62 = vpack.c.bf16 %v1890_v58, %v1888_v57  ;;  %v9407_v58 = vld [vmem:[%s10204_s3 + $0xb0] ss:$8 sps:$4 sm:$0xff]  }
 0x278   : > { %v1739_v1 = vpop.f32.mrb[4].mxu1  ;;  %v1953_v2 = vpack.c.bf16 %v1891_v60, %v1889_v59  ;;  %v9412_v60 = vld [vmem:[%s10204_s3 + $0xc4] ss:$8 sps:$4 sm:$0xff]  }
 0x279   : > { %v1740_v3 = vadd.f32 %v1739_v1, %v10615_v42  ;;  %v1741_v5 = vpop.f32.mrb[5].mxu1  ;;  %2704 = vmatpush1.bf16.msra.mxu1 %v9407_v58 }
 0x27a   : > { %v1742_v6 = vadd.f32 %v1741_v5, %v10618_v43  ;;  %v1743_v9 = vpop.f32.mrb[6].mxu1  ;;  %2220 = vmatprep.mubr.bf16.mxu0 %v1953_v2  ;;  %v9410_v5 = vld [vmem:[%s10204_s3 + $0xc0] ss:$8 sps:$4 sm:$0xff]   ;;  %2705 = vmatprep.subr.bf16.mxu1 %v9412_v60 }
 0x27b   : > { %v1744_v12 = vadd.f32 %v1743_v9, %v10615_v42  ;;  %v1745_v15 = vpop.f32.mrb[7].mxu1  ;;  %2221 = vmatmul.mubr.bf16.vlgmr.msra.gmra.mrb[64].mxu0 %v1952_v62  ;;  %v1892_v18 = vmax.f32 %v1740_v3, 0.0 }
 0x27c   : > { %v1746_v17 = vadd.f32 %v1745_v15, %v10618_v43  ;;  %v1893_v20 = vmax.f32 %v1742_v6, 0.0 }
 0x27d   : > { %v1894_v19 = vmax.f32 %v1744_v12, 0.0  ;;  %2706 = vmatpush1.bf16.msra.mxu1 %v9410_v5 }
 0x27e   : > { %v1895_v21 = vmax.f32 %v1746_v17, 0.0  ;;  %2707 = vmatprep.subr.bf16.mxu1 %v9415_v11 }
 0x27f   : > { %v1954_v23 = vpack.c.bf16 %v1894_v19, %v1892_v18  ;;  %v9413_v19 = vld [vmem:[%s10204_s3 + $0xd0] ss:$8 sps:$4 sm:$0xff]  }
 0x280   : > { %v1749_v25 = vpop.f32.mrb[8].mxu1  ;;  %v1955_v26 = vpack.c.bf16 %v1895_v21, %v1893_v20  ;;  %v9418_v21 = vld [vmem:[%s10204_s3 + $0xe4] ss:$8 sps:$4 sm:$0xff]  }
 0x281   : > { %v1750_v27 = vadd.f32 %v1749_v25, %v10615_v42  ;;  %v1751_v28 = vpop.f32.mrb[9].mxu1  ;;  %2708 = vmatpush1.bf16.msra.mxu1 %v9413_v19 }
 0x282   : > { %v1752_v29 = vadd.f32 %v1751_v28, %v10618_v43  ;;  %v1753_v30 = vpop.f32.mrb[10].mxu1  ;;  %2230 = vmatprep.mubr.bf16.mxu0 %v1955_v26  ;;  %v9416_v28 = vld [vmem:[%s10204_s3 + $0xe0] ss:$8 sps:$4 sm:$0xff]   ;;  %2709 = vmatprep.subr.bf16.mxu1 %v9418_v21 }
 0x283   : > { %v1754_v32 = vadd.f32 %v1753_v30, %v10615_v42  ;;  %v1755_v33 = vpop.f32.mrb[11].mxu1  ;;  %2231 = vmatmul.mubr.bf16.gmra.mrb[68].mxu0 %v1954_v23  ;;  %v1896_v36 = vmax.f32 %v1750_v27, 0.0 }
 0x284   : > { %v1756_v35 = vadd.f32 %v1755_v33, %v10618_v43  ;;  %v1897_v13 = vmax.f32 %v1752_v29, 0.0 }
 0x285   : > { %v1898_v37 = vmax.f32 %v1754_v32, 0.0  ;;  %2710 = vmatpush1.bf16.msra.mxu1 %v9416_v28 }
 0x286   : > { %v1899_v38 = vmax.f32 %v1756_v35, 0.0 }
 0x287   : > { %v1956_v14 = vpack.c.bf16 %v1898_v37, %v1896_v36 }
 0x288   : > { %v1759_v41 = vpop.f32.mrb[12].mxu1  ;;  %v1957_v44 = vpack.c.bf16 %v1899_v38, %v1897_v13 }
 0x289   : > { %v1760_v45 = vadd.f32 %v1759_v41, %v10615_v42  ;;  %v1761_v46 = vpop.f32.mrb[13].mxu1 }
 0x28a   : > { %v1762_v47 = vadd.f32 %v1761_v46, %v10618_v43  ;;  %v1763_v48 = vpop.f32.mrb[14].mxu1  ;;  %2240 = vmatprep.mubr.bf16.mxu0 %v1957_v44 }
 0x28b   : > { %v1764_v50 = vadd.f32 %v1763_v48, %v10615_v42  ;;  %v1765_v51 = vpop.f32.mrb[15].mxu1  ;;  %2241 = vmatmul.mubr.bf16.gmra.mrb[72].mxu0 %v1956_v14  ;;  %v1900_v54 = vmax.f32 %v1760_v45, 0.0 }
 0x28c   : > { %v1766_v53 = vadd.f32 %v1765_v51, %v10618_v43  ;;  %v1901_v56 = vmax.f32 %v1762_v47, 0.0 }
 0x28d   : > { %v1902_v55 = vmax.f32 %v1764_v50, 0.0 }
 0x28e   : > { %v1903_v57 = vmax.f32 %v1766_v53, 0.0 }
 0x28f   : > { %v1958_v59 = vpack.c.bf16 %v1902_v55, %v1900_v54 }
 0x290   : > { %v1769_v61 = vpop.f32.mrb[16].mxu1  ;;  %v1959_v62 = vpack.c.bf16 %v1903_v57, %v1901_v56 }
 0x291   : > { %v1770_v63 = vadd.f32 %v1769_v61, %v10615_v42  ;;  %v1771_v1 = vpop.f32.mrb[17].mxu1 }
 0x292   : > { %v1772_v2 = vadd.f32 %v1771_v1, %v10618_v43  ;;  %v1773_v3 = vpop.f32.mrb[18].mxu1  ;;  %2250 = vmatprep.mubr.bf16.mxu0 %v1959_v62 }
 0x293   : > { %v1774_v6 = vadd.f32 %v1773_v3, %v10615_v42  ;;  %v1775_v9 = vpop.f32.mrb[19].mxu1  ;;  %2251 = vmatmul.mubr.bf16.gmra.mrb[76].mxu0 %v1958_v59  ;;  %v1904_v15 = vmax.f32 %v1770_v63, 0.0 }
 0x294   : > { %v1776_v12 = vadd.f32 %v1775_v9, %v10618_v43  ;;  %v1905_v17 = vmax.f32 %v1772_v2, 0.0 }
 0x295   : > { %v1906_v16 = vmax.f32 %v1774_v6, 0.0 }
 0x296   : > { %v1907_v18 = vmax.f32 %v1776_v12, 0.0 }
 0x297   : > { %v1960_v20 = vpack.c.bf16 %v1906_v16, %v1904_v15 }
 0x298   : > { %v1779_v22 = vpop.f32.mrb[20].mxu1  ;;  %v1961_v23 = vpack.c.bf16 %v1907_v18, %v1905_v17 }
 0x299   : > { %v1780_v24 = vadd.f32 %v1779_v22, %v10615_v42  ;;  %v1781_v25 = vpop.f32.mrb[21].mxu1 }
 0x29a   : > { %v1782_v26 = vadd.f32 %v1781_v25, %v10618_v43  ;;  %v1783_v27 = vpop.f32.mrb[22].mxu1  ;;  %2260 = vmatprep.mubr.bf16.mxu0 %v1961_v23 }
 0x29b   : > { %v1784_v29 = vadd.f32 %v1783_v27, %v10615_v42  ;;  %v1785_v30 = vpop.f32.mrb[23].mxu1  ;;  %2261 = vmatmul.mubr.bf16.gmra.mrb[80].mxu0 %v1960_v20  ;;  %v1908_v32 = vmax.f32 %v1780_v24, 0.0 }
 0x29c   : > { %v1786_v31 = vadd.f32 %v1785_v30, %v10618_v43  ;;  %v1909_v34 = vmax.f32 %v1782_v26, 0.0 }
 0x29d   : > { %v1910_v33 = vmax.f32 %v1784_v29, 0.0 }
 0x29e   : > { %v1911_v35 = vmax.f32 %v1786_v31, 0.0 }
 0x29f   : > { %v1962_v36 = vpack.c.bf16 %v1910_v33, %v1908_v32 }
 0x2a0   : > { %v1789_v37 = vpop.f32.mrb[24].mxu1  ;;  %v1963_v13 = vpack.c.bf16 %v1911_v35, %v1909_v34 }
 0x2a1   : > { %v1790_v38 = vadd.f32 %v1789_v37, %v10615_v42  ;;  %v1791_v39 = vpop.f32.mrb[25].mxu1 }
 0x2a2   : > { %v1792_v14 = vadd.f32 %v1791_v39, %v10618_v43  ;;  %v1793_v40 = vpop.f32.mrb[26].mxu1  ;;  %2270 = vmatprep.mubr.bf16.mxu0 %v1963_v13 }
 0x2a3   : > { %v1794_v41 = vadd.f32 %v1793_v40, %v10615_v42  ;;  %v1795_v44 = vpop.f32.mrb[27].mxu1  ;;  %2271 = vmatmul.mubr.bf16.gmra.mrb[84].mxu0 %v1962_v36  ;;  %v1912_v46 = vmax.f32 %v1790_v38, 0.0 }
 0x2a4   : > { %v1796_v45 = vadd.f32 %v1795_v44, %v10618_v43  ;;  %v1913_v48 = vmax.f32 %v1792_v14, 0.0 }
 0x2a5   : > { %v1914_v47 = vmax.f32 %v1794_v41, 0.0 }
 0x2a6   : > { %v1915_v49 = vmax.f32 %v1796_v45, 0.0 }
 0x2a7   : > { %v1964_v50 = vpack.c.bf16 %v1914_v47, %v1912_v46 }
 0x2a8   : > { %v1799_v51 = vpop.f32.mrb[28].mxu1  ;;  %v1965_v52 = vpack.c.bf16 %v1915_v49, %v1913_v48 }
 0x2a9   : > { %v1800_v53 = vadd.f32 %v1799_v51, %v10615_v42  ;;  %v1801_v54 = vpop.f32.mrb[29].mxu1 }
 0x2aa   : > { %v1802_v55 = vadd.f32 %v1801_v54, %v10618_v43  ;;  %v1803_v56 = vpop.f32.mrb[30].mxu1  ;;  %2280 = vmatprep.mubr.bf16.mxu0 %v1965_v52 }
 0x2ab   : > { %v1804_v57 = vadd.f32 %v1803_v56, %v10615_v42  ;;  %v1805_v58 = vpop.f32.mrb[31].mxu1  ;;  %2281 = vmatmul.mubr.bf16.gmra.mrb[88].mxu0 %v1964_v50  ;;  %v1916_v60 = vmax.f32 %v1800_v53, 0.0 }
 0x2ac   : > { %v1806_v59 = vadd.f32 %v1805_v58, %v10618_v43  ;;  %v1917_v62 = vmax.f32 %v1802_v55, 0.0 }
 0x2ad   : > { %v1918_v61 = vmax.f32 %v1804_v57, 0.0 }
 0x2ae   : > { %v1919_v63 = vmax.f32 %v1806_v59, 0.0 }
 0x2af   : > { %v1966_v1 = vpack.c.bf16 %v1918_v61, %v1916_v60 }
 0x2b0   : > { %v1809_v2 = vpop.f32.mrb[32].mxu1  ;;  %v1967_v3 = vpack.c.bf16 %v1919_v63, %v1917_v62 }
 0x2b1   : > { %v1810_v5 = vadd.f32 %v1809_v2, %v10615_v42  ;;  %v1811_v6 = vpop.f32.mrb[33].mxu1 }
 0x2b2   : > { %v1812_v9 = vadd.f32 %v1811_v6, %v10618_v43  ;;  %v1813_v11 = vpop.f32.mrb[34].mxu1  ;;  %2290 = vmatprep.mubr.bf16.mxu0 %v1967_v3 }
 0x2b3   : > { %v1814_v12 = vadd.f32 %v1813_v11, %v10615_v42  ;;  %v1815_v15 = vpop.f32.mrb[35].mxu1  ;;  %2291 = vmatmul.mubr.bf16.gmra.mrb[92].mxu0 %v1966_v1  ;;  %v1920_v17 = vmax.f32 %v1810_v5, 0.0 }
 0x2b4   : > { %v1816_v16 = vadd.f32 %v1815_v15, %v10618_v43  ;;  %v1921_v19 = vmax.f32 %v1812_v9, 0.0  ;;  %v9421_v15 = vld [vmem:[%s10204_s3 + $0xf4] ss:$8 sps:$4 sm:$0xff]  }
 0x2b5   : > { %v1922_v18 = vmax.f32 %v1814_v12, 0.0  ;;  %2711 = vmatprep.subr.bf16.mxu1 %v9421_v15 }
 0x2b6   : > { %v1923_v20 = vmax.f32 %v1816_v16, 0.0 }
 0x2b7   : > { %v1968_v21 = vpack.c.bf16 %v1922_v18, %v1920_v17  ;;  %v9419_v17 = vld [vmem:[%s10204_s3 + $0xf0] ss:$8 sps:$4 sm:$0xff]  }
 0x2b8   : > { %v1819_v22 = vpop.f32.mrb[36].mxu1  ;;  %v1969_v23 = vpack.c.bf16 %v1923_v20, %v1921_v19  ;;  %2712 = vmatpush1.bf16.msra.mxu1 %v9419_v17  ;;  %v9433_v17 = vld [vmem:[%s10214_s14 + $0x34] ss:$8 sps:$4 sm:$0xff]  }
 0x2b9   : > { %v1820_v24 = vadd.f32 %v1819_v22, %v10615_v42  ;;  %v1821_v25 = vpop.f32.mrb[37].mxu1 }
 0x2ba   : > { %v1822_v26 = vadd.f32 %v1821_v25, %v10618_v43  ;;  %v1823_v27 = vpop.f32.mrb[38].mxu1  ;;  %2300 = vmatprep.mubr.bf16.mxu0 %v1969_v23 }
 0x2bb   : > { %v1824_v28 = vadd.f32 %v1823_v27, %v10615_v42  ;;  %v1825_v29 = vpop.f32.mrb[39].mxu1  ;;  %2301 = vmatmul.mubr.bf16.gmra.mrb[96].mxu0 %v1968_v21  ;;  %v1924_v31 = vmax.f32 %v1820_v24, 0.0 }
 0x2bc   : > { %v1826_v30 = vadd.f32 %v1825_v29, %v10618_v43  ;;  %v1925_v33 = vmax.f32 %v1822_v26, 0.0 }
 0x2bd   : > { %v1926_v32 = vmax.f32 %v1824_v28, 0.0 }
 0x2be   : > { %v1927_v34 = vmax.f32 %v1826_v30, 0.0 }
 0x2bf   : > { %v1970_v35 = vpack.c.bf16 %v1926_v32, %v1924_v31 }
 0x2c0   : > { %v1829_v36 = vpop.f32.mrb[40].mxu1  ;;  %v1971_v37 = vpack.c.bf16 %v1927_v34, %v1925_v33 }
 0x2c1   : > { %v1830_v13 = vadd.f32 %v1829_v36, %v10615_v42  ;;  %v1831_v38 = vpop.f32.mrb[41].mxu1 }
 0x2c2   : > { %v1832_v39 = vadd.f32 %v1831_v38, %v10618_v43  ;;  %v1833_v14 = vpop.f32.mrb[42].mxu1  ;;  %2310 = vmatprep.mubr.bf16.mxu0 %v1971_v37 }
 0x2c3   : > { %v1834_v40 = vadd.f32 %v1833_v14, %v10615_v42  ;;  %v1835_v41 = vpop.f32.mrb[43].mxu1  ;;  %2311 = vmatmul.mubr.bf16.gmra.mrb[100].mxu0 %v1970_v35  ;;  %v1928_v45 = vmax.f32 %v1830_v13, 0.0 }
 0x2c4   : > { %v1836_v44 = vadd.f32 %v1835_v41, %v10618_v43  ;;  %v1929_v47 = vmax.f32 %v1832_v39, 0.0 }
 0x2c5   : > { %v1930_v46 = vmax.f32 %v1834_v40, 0.0 }
 0x2c6   : > { %v1931_v48 = vmax.f32 %v1836_v44, 0.0 }
 0x2c7   : > { %v1972_v49 = vpack.c.bf16 %v1930_v46, %v1928_v45 }
 0x2c8   : > { %v1839_v50 = vpop.f32.mrb[44].mxu1  ;;  %v1973_v51 = vpack.c.bf16 %v1931_v48, %v1929_v47 }
 0x2c9   : > { %v1840_v52 = vadd.f32 %v1839_v50, %v10615_v42  ;;  %v1841_v53 = vpop.f32.mrb[45].mxu1 }
 0x2ca   : > { %v1842_v54 = vadd.f32 %v1841_v53, %v10618_v43  ;;  %v1843_v55 = vpop.f32.mrb[46].mxu1  ;;  %2320 = vmatprep.mubr.bf16.mxu0 %v1973_v51 }
 0x2cb   : > { %v1844_v56 = vadd.f32 %v1843_v55, %v10615_v42  ;;  %v1845_v57 = vpop.f32.mrb[47].mxu1  ;;  %2321 = vmatmul.mubr.bf16.gmra.mrb[104].mxu0 %v1972_v49  ;;  %v1932_v59 = vmax.f32 %v1840_v52, 0.0 }
 0x2cc   : > { %v1846_v58 = vadd.f32 %v1845_v57, %v10618_v43  ;;  %v1933_v61 = vmax.f32 %v1842_v54, 0.0 }
 0x2cd   : > { %v1934_v60 = vmax.f32 %v1844_v56, 0.0 }
 0x2ce   : > { %v1935_v62 = vmax.f32 %v1846_v58, 0.0 }
 0x2cf   : > { %v1974_v63 = vpack.c.bf16 %v1934_v60, %v1932_v59 }
 0x2d0   : > { %v1849_v1 = vpop.f32.mrb[48].mxu1  ;;  %v1975_v2 = vpack.c.bf16 %v1935_v62, %v1933_v61 }
 0x2d1   : > { %v1850_v3 = vadd.f32 %v1849_v1, %v10615_v42  ;;  %v1851_v5 = vpop.f32.mrb[49].mxu1 }
 0x2d2   : > { %v1852_v6 = vadd.f32 %v1851_v5, %v10618_v43  ;;  %v1853_v9 = vpop.f32.mrb[50].mxu1  ;;  %2330 = vmatprep.mubr.bf16.mxu0 %v1975_v2  ;;  %v9425_v5 = vld [vmem:[%s10214_s14 + $0x10] ss:$8 sps:$4 sm:$0xff]  }
 0x2d3   : > { %v1854_v11 = vadd.f32 %v1853_v9, %v10615_v42  ;;  %v1855_v12 = vpop.f32.mrb[51].mxu1  ;;  %2331 = vmatmul.mubr.bf16.gmra.mrb[108].mxu0 %v1974_v63  ;;  %v1936_v18 = vmax.f32 %v1850_v3, 0.0  ;;  %v9422_v3 = vld [vmem:[%s10214_s14] ss:$8 sps:$4 sm:$0xff]  }
 0x2d4   : > { %v1856_v16 = vadd.f32 %v1855_v12, %v10618_v43  ;;  %v1937_v20 = vmax.f32 %v1852_v6, 0.0  ;;  %v9427_v6 = vld [vmem:[%s10214_s14 + $0x14] ss:$8 sps:$4 sm:$0xff]   ;;  %v9428_v9 = vld [vmem:[%s10214_s14 + $0x20] ss:$8 sps:$4 sm:$0xff]  }
 0x2d5   : > { %v1938_v19 = vmax.f32 %v1854_v11, 0.0  ;;  %v9430_v11 = vld [vmem:[%s10214_s14 + $0x24] ss:$8 sps:$4 sm:$0xff]  }
 0x2d6   : > { %v1939_v21 = vmax.f32 %v1856_v16, 0.0  ;;  %v9431_v16 = vld [vmem:[%s10214_s14 + $0x30] ss:$8 sps:$4 sm:$0xff]  }
 0x2d7   : > { %v1976_v22 = vpack.c.bf16 %v1938_v19, %v1936_v18 }
 0x2d8   : > { %v1859_v23 = vpop.f32.mrb[52].mxu1  ;;  %v1977_v24 = vpack.c.bf16 %v1939_v21, %v1937_v20 }
 0x2d9   : > { %v1860_v25 = vadd.f32 %v1859_v23, %v10615_v42  ;;  %v1861_v26 = vpop.f32.mrb[53].mxu1 }
 0x2da   : > { %v1862_v27 = vadd.f32 %v1861_v26, %v10618_v43  ;;  %v1863_v28 = vpop.f32.mrb[54].mxu1  ;;  %2340 = vmatprep.mubr.bf16.mxu0 %v1977_v24  ;;  %v9436_v26 = vld [vmem:[%s10214_s14 + $0x44] ss:$8 sps:$4 sm:$0xff]  }
 0x2db   : > { %v1864_v29 = vadd.f32 %v1863_v28, %v10615_v42  ;;  %v1865_v30 = vpop.f32.mrb[55].mxu1  ;;  %2341 = vmatmul.mubr.bf16.gmra.mrb[112].mxu0 %v1976_v22  ;;  %v1940_v32 = vmax.f32 %v1860_v25, 0.0  ;;  %v9434_v25 = vld [vmem:[%s10214_s14 + $0x40] ss:$8 sps:$4 sm:$0xff]   ;;  %v9439_v28 = vld [vmem:[%s10214_s14 + $0x54] ss:$8 sps:$4 sm:$0xff]  }
 0x2dc   : > { %v1866_v31 = vadd.f32 %v1865_v30, %v10618_v43  ;;  %v1941_v34 = vmax.f32 %v1862_v27, 0.0 }
 0x2dd   : > { %v1942_v33 = vmax.f32 %v1864_v29, 0.0 }
 0x2de   : > { %v1943_v35 = vmax.f32 %v1866_v31, 0.0 }
 0x2df   : > { %v1978_v36 = vpack.c.bf16 %v1942_v33, %v1940_v32  ;;  %v9437_v33 = vld [vmem:[%s10214_s14 + $0x50] ss:$8 sps:$4 sm:$0xff]  }
 0x2e0   : > { %v1869_v37 = vpop.f32.mrb[56].mxu1  ;;  %v1979_v13 = vpack.c.bf16 %v1943_v35, %v1941_v34  ;;  %v9442_v35 = vld [vmem:[%s10214_s14 + $0x64] ss:$8 sps:$4 sm:$0xff]  }
 0x2e1   : > { %v1870_v38 = vadd.f32 %v1869_v37, %v10615_v42  ;;  %v1871_v39 = vpop.f32.mrb[57].mxu1 }
 0x2e2   : > { %v1872_v14 = vadd.f32 %v1871_v39, %v10618_v43  ;;  %v1873_v40 = vpop.f32.mrb[58].mxu1  ;;  %2350 = vmatprep.mubr.bf16.mxu0 %v1979_v13 }
 0x2e3   : > { %v1874_v41 = vadd.f32 %v1873_v40, %v10615_v42  ;;  %v1875_v44 = vpop.f32.mrb[59].mxu1  ;;  %2351 = vmatmul.mubr.bf16.gmra.mrb[116].mxu0 %v1978_v36  ;;  %v1944_v46 = vmax.f32 %v1870_v38, 0.0  ;;  %v9440_v40 = vld [vmem:[%s10214_s14 + $0x60] ss:$8 sps:$4 sm:$0xff]  }
 0x2e4   : > { %v1876_v45 = vadd.f32 %v1875_v44, %v10618_v43  ;;  %v1945_v48 = vmax.f32 %v1872_v14, 0.0 }
 0x2e5   : > { %v1946_v47 = vmax.f32 %v1874_v41, 0.0  ;;  %v9458_v41 = vld [vmem:[#allocation4] ss:$8 sps:$4 sm:$0xff]  }
 0x2e6   : > { %v1947_v49 = vmax.f32 %v1876_v45, 0.0 }
 0x2e7   : > { %v1980_v50 = vpack.c.bf16 %v1946_v47, %v1944_v46  ;;  %v9445_v46 = vld [vmem:[%s10214_s14 + $0x74] ss:$8 sps:$4 sm:$0xff]   ;;  %v9460_v47 = vld [vmem:[#allocation4 + $0x4] ss:$8 sps:$4 sm:$0xff]  }
 0x2e8   : > { %v1879_v51 = vpop.f32.mrb[60].mxu1  ;;  %v1981_v52 = vpack.c.bf16 %v1947_v49, %v1945_v48  ;;  %3591 = vmatprep.subr.bf16.mxu1 %v9460_v47 }
 0x2e9   : > { %v1880_v53 = vadd.f32 %v1879_v51, %v10615_v42  ;;  %v1881_v54 = vpop.f32.mrb[61].mxu1 }
 0x2ea   : > { %v1882_v55 = vadd.f32 %v1881_v54, %v10618_v43  ;;  %v1883_v56 = vpop.f32.mrb[62].mxu1  ;;  %2360 = vmatprep.mubr.bf16.mxu0 %v1981_v52  ;;  %v9469_v54 = vld [vmem:[#allocation4 + $0x14] ss:$8 sps:$4 sm:$0xff]  }
 0x2eb   : > { %v1884_v57 = vadd.f32 %v1883_v56, %v10615_v42  ;;  %v1885_v58 = vpop.f32.mrb[63].mxu1  ;;  %2361 = vmatmul.mubr.bf16.gmra.mrb[120].mxu0 %v1980_v50  ;;  %v1948_v60 = vmax.f32 %v1880_v53, 0.0  ;;  %v9424_v42 = vld [vmem:[%s10214_s14 + $0x4] ss:$8 sps:$4 sm:$0xff]   ;;  %v9443_v53 = vld [vmem:[%s10214_s14 + $0x70] ss:$8 sps:$4 sm:$0xff]  }
 0x2ec   : > { %v1886_v59 = vadd.f32 %v1885_v58, %v10618_v43  ;;  %v1949_v62 = vmax.f32 %v1882_v55, 0.0  ;;  %3174 = vmatprep.subr.bf16.mxu0 %v9424_v42  ;;  %v2016_v43 = vld [vmem:[%s10199_s29] sm:$0x3]  ;;  %v9448_v56 = vld [vmem:[%s10214_s14 + $0x84] ss:$8 sps:$4 sm:$0xff]  }
 0x2ed   : > { %v1950_v61 = vmax.f32 %v1884_v57, 0.0  ;;  %3175 = vmatpush1.bf16.msra.mxu0 %v9422_v3  ;;  %v10718_v12 = vrot.slane %v2016_v43, %v10503_v8  ;;  %v10721_v15 = vrot.slane %v2016_v43, %v10507_v10  ;;  %v9451_v42 = vld [vmem:[%s10214_s14 + $0x94] ss:$8 sps:$4 sm:$0xff]  }
 0x2ee   : > { %v1951_v63 = vmax.f32 %v1886_v59, 0.0  ;;  %3176 = vmatprep.subr.bf16.mxu0 %v9427_v6  ;;  %v9467_v59 = vld [vmem:[#allocation4 + $0x10] ss:$8 sps:$4 sm:$0xff]  }
 0x2ef   : > { %v1982_v1 = vpack.c.bf16 %v1950_v61, %v1948_v60 }
 0x2f0   : > { %v1983_v2 = vpack.c.bf16 %v1951_v63, %v1949_v62 }
 0x2f1   : > { %3177 = vmatpush1.bf16.msra.mxu0 %v9425_v5 }
 0x2f2   : > { %2370 = vmatprep.mubr.bf16.mxu0 %v1983_v2  ;;  %3178 = vmatprep.subr.bf16.mxu0 %v9430_v11 }
 0x2f3   : > { %2371 = vmatmul.mubr.bf16.gmra.mrb[124].mxu0 %v1982_v1  ;;  %v9446_v1 = vld [vmem:[%s10214_s14 + $0x80] ss:$8 sps:$4 sm:$0xff]  }
 0x2f5   : > { %3179 = vmatpush1.bf16.msra.mxu0 %v9428_v9 }
 0x2f6   : > { %3180 = vmatprep.subr.bf16.mxu0 %v9433_v17 }
 0x2f9   : > { %3181 = vmatpush1.bf16.msra.mxu0 %v9431_v16  ;;  %v9449_v16 = vld [vmem:[%s10214_s14 + $0x90] ss:$8 sps:$4 sm:$0xff]  }
 0x2fa   : > { %3182 = vmatprep.subr.bf16.mxu0 %v9436_v26 }
 0x2fd   : > { %3183 = vmatpush1.bf16.msra.mxu0 %v9434_v25  ;;  %v9452_v25 = vld [vmem:[%s10214_s14 + $0xa0] ss:$8 sps:$4 sm:$0xff]  }
 0x2fe   : > { %3184 = vmatprep.subr.bf16.mxu0 %v9439_v28  ;;  %v9457_v28 = vld [vmem:[%s10214_s14 + $0xb4] ss:$8 sps:$4 sm:$0xff]  }
 0x301   : > { %3185 = vmatpush1.bf16.msra.mxu0 %v9437_v33 }
 0x302   : > { %3186 = vmatprep.subr.bf16.mxu0 %v9442_v35 }
 0x305   : > { %3187 = vmatpush1.bf16.msra.mxu0 %v9440_v40 }
 0x306   : > { %3188 = vmatprep.subr.bf16.mxu0 %v9445_v46  ;;  %v9466_v46 = vld [vmem:[%s10214_s14 + $0xd4] ss:$8 sps:$4 sm:$0xff]  }
 0x309   : > { %3189 = vmatpush1.bf16.msra.mxu0 %v9443_v53 }
 0x30a   : > { %3190 = vmatprep.subr.bf16.mxu0 %v9448_v56 }
 0x30d   : > { %3191 = vmatpush1.bf16.msra.mxu0 %v9446_v1 }
 0x30e   : > { %3192 = vmatprep.subr.bf16.mxu0 %v9451_v42 }
 0x311   : > { %3193 = vmatpush1.bf16.msra.mxu0 %v9449_v16 }
 0x34e   : > { %v2222_v18 = vpop.f32.mrb[64].mxu0 }
 0x34f   : > { %v2223_v19 = vadd.f32 %v2222_v18, %v10718_v12  ;;  %v2224_v20 = vpop.f32.mrb[65].mxu0  ;;  %v9454_v18 = vld [vmem:[%s10214_s14 + $0xa4] ss:$8 sps:$4 sm:$0xff]  }
 0x350   : > { %v2225_v21 = vadd.f32 %v2224_v20, %v10721_v15  ;;  %v2226_v22 = vpop.f32.mrb[66].mxu0  ;;  %3194 = vmatprep.subr.bf16.mxu0 %v9454_v18 }
 0x351   : > { %v2227_v23 = vadd.f32 %v2226_v22, %v10718_v12  ;;  %v2228_v24 = vpop.f32.mrb[67].mxu0  ;;  %v2381_v29 = vmax.f32 %v2223_v19, 0.0  ;;  %3195 = vmatpush1.bf16.msra.mxu0 %v9452_v25 }
 0x352   : > { %v2229_v27 = vadd.f32 %v2228_v24, %v10721_v15  ;;  %v2382_v31 = vmax.f32 %v2225_v21, 0.0  ;;  %3196 = vmatprep.subr.bf16.mxu0 %v9457_v28 }
 0x353   : > { %v2383_v30 = vmax.f32 %v2227_v23, 0.0 }
 0x354   : > { %v2384_v32 = vmax.f32 %v2229_v27, 0.0 }
 0x355   : > { %v2445_v34 = vpack.c.bf16 %v2383_v30, %v2381_v29 }
 0x356   : > { %v2232_v36 = vpop.f32.mrb[68].mxu0  ;;  %v2446_v37 = vpack.c.bf16 %v2384_v32, %v2382_v31 }
 0x357   : > { %v2233_v13 = vadd.f32 %v2232_v36, %v10718_v12  ;;  %v2234_v38 = vpop.f32.mrb[69].mxu0  ;;  %v9463_v36 = vld [vmem:[%s10214_s14 + $0xc4] ss:$8 sps:$4 sm:$0xff]  }
 0x358   : > { %v2235_v39 = vadd.f32 %v2234_v38, %v10721_v15  ;;  %v2236_v14 = vpop.f32.mrb[70].mxu0  ;;  %2713 = vmatprep.mubr.bf16.mxu1 %v2446_v37 }
 0x359   : > { %v2237_v44 = vadd.f32 %v2236_v14, %v10718_v12  ;;  %v2238_v45 = vpop.f32.mrb[71].mxu0  ;;  %2714 = vmatmul.mubr.bf16.vlgmr.msra.gmra.mrb[64].mxu1 %v2445_v34  ;;  %v2385_v49 = vmax.f32 %v2233_v13, 0.0  ;;  %v9455_v34 = vld [vmem:[%s10214_s14 + $0xb0] ss:$8 sps:$4 sm:$0xff]  }
 0x35a   : > { %v2239_v48 = vadd.f32 %v2238_v45, %v10721_v15  ;;  %v2386_v51 = vmax.f32 %v2235_v39, 0.0  ;;  %3592 = vmatpush1.bf16.msra.mxu1 %v9458_v41  ;;  %3197 = vmatpush1.bf16.msra.mxu0 %v9455_v34  ;;  %v9461_v41 = vld [vmem:[%s10214_s14 + $0xc0] ss:$8 sps:$4 sm:$0xff]  }
 0x35b   : > { %v2387_v50 = vmax.f32 %v2237_v44, 0.0  ;;  %3593 = vmatprep.subr.bf16.mxu1 %v9469_v54  ;;  %3198 = vmatprep.subr.bf16.mxu0 %v9463_v36  ;;  %v9472_v54 = vld [vmem:[%s10214_s14 + $0xe4] ss:$8 sps:$4 sm:$0xff]  }
 0x35c   : > { %v2388_v52 = vmax.f32 %v2239_v48, 0.0 }
 0x35d   : > { %v2447_v55 = vpack.c.bf16 %v2387_v50, %v2385_v49 }
 0x35e   : > { %v2242_v57 = vpop.f32.mrb[72].mxu0  ;;  %v2448_v58 = vpack.c.bf16 %v2388_v52, %v2386_v51  ;;  %3594 = vmatpush1.bf16.msra.mxu1 %v9467_v59  ;;  %3199 = vmatpush1.bf16.msra.mxu0 %v9461_v41  ;;  %v9464_v52 = vld [vmem:[%s10214_s14 + $0xd0] ss:$8 sps:$4 sm:$0xff]  }
 0x35f   : > { %v2243_v60 = vadd.f32 %v2242_v57, %v10718_v12  ;;  %v2244_v61 = vpop.f32.mrb[73].mxu0  ;;  %3200 = vmatprep.subr.bf16.mxu0 %v9466_v46 }
 0x360   : > { %v2245_v62 = vadd.f32 %v2244_v61, %v10721_v15  ;;  %v2246_v63 = vpop.f32.mrb[74].mxu0  ;;  %2723 = vmatprep.mubr.bf16.mxu1 %v2448_v58  ;;  %v9470_v61 = vld [vmem:[%s10214_s14 + $0xe0] ss:$8 sps:$4 sm:$0xff]  }
 0x361   : > { %v2247_v2 = vadd.f32 %v2246_v63, %v10718_v12  ;;  %v2248_v3 = vpop.f32.mrb[75].mxu0  ;;  %2724 = vmatmul.mubr.bf16.gmra.mrb[68].mxu1 %v2447_v55  ;;  %v2389_v6 = vmax.f32 %v2243_v60, 0.0 }
 0x362   : > { %v2249_v5 = vadd.f32 %v2248_v3, %v10721_v15  ;;  %v2390_v9 = vmax.f32 %v2245_v62, 0.0  ;;  %3201 = vmatpush1.bf16.msra.mxu0 %v9464_v52 }
 0x363   : > { %v2391_v43 = vmax.f32 %v2247_v2, 0.0  ;;  %3202 = vmatprep.subr.bf16.mxu0 %v9472_v54 }
 0x364   : > { %v2392_v11 = vmax.f32 %v2249_v5, 0.0 }
 0x365   : > { %v2449_v17 = vpack.c.bf16 %v2391_v43, %v2389_v6 }
 0x366   : > { %v2252_v19 = vpop.f32.mrb[76].mxu0  ;;  %v2450_v20 = vpack.c.bf16 %v2392_v11, %v2390_v9  ;;  %3203 = vmatpush1.bf16.msra.mxu0 %v9470_v61 }
 0x367   : > { %v2253_v21 = vadd.f32 %v2252_v19, %v10718_v12  ;;  %v2254_v22 = vpop.f32.mrb[77].mxu0 }
 0x368   : > { %v2255_v23 = vadd.f32 %v2254_v22, %v10721_v15  ;;  %v2256_v24 = vpop.f32.mrb[78].mxu0  ;;  %2733 = vmatprep.mubr.bf16.mxu1 %v2450_v20 }
 0x369   : > { %v2257_v26 = vadd.f32 %v2256_v24, %v10718_v12  ;;  %v2258_v27 = vpop.f32.mrb[79].mxu0  ;;  %2734 = vmatmul.mubr.bf16.gmra.mrb[72].mxu1 %v2449_v17  ;;  %v2393_v30 = vmax.f32 %v2253_v21, 0.0 }
 0x36a   : > { %v2259_v29 = vadd.f32 %v2258_v27, %v10721_v15  ;;  %v2394_v32 = vmax.f32 %v2255_v23, 0.0 }
 0x36b   : > { %v2395_v31 = vmax.f32 %v2257_v26, 0.0 }
 0x36c   : > { %v2396_v33 = vmax.f32 %v2259_v29, 0.0 }
 0x36d   : > { %v2451_v35 = vpack.c.bf16 %v2395_v31, %v2393_v30 }
 0x36e   : > { %v2262_v37 = vpop.f32.mrb[80].mxu0  ;;  %v2452_v13 = vpack.c.bf16 %v2396_v33, %v2394_v32 }
 0x36f   : > { %v2263_v38 = vadd.f32 %v2262_v37, %v10718_v12  ;;  %v2264_v39 = vpop.f32.mrb[81].mxu0 }
 0x370   : > { %v2265_v14 = vadd.f32 %v2264_v39, %v10721_v15  ;;  %v2266_v40 = vpop.f32.mrb[82].mxu0  ;;  %2743 = vmatprep.mubr.bf16.mxu1 %v2452_v13 }
 0x371   : > { %v2267_v44 = vadd.f32 %v2266_v40, %v10718_v12  ;;  %v2268_v45 = vpop.f32.mrb[83].mxu0  ;;  %2744 = vmatmul.mubr.bf16.gmra.mrb[76].mxu1 %v2451_v35  ;;  %v2397_v48 = vmax.f32 %v2263_v38, 0.0 }
 0x372   : > { %v2269_v47 = vadd.f32 %v2268_v45, %v10721_v15  ;;  %v2398_v50 = vmax.f32 %v2265_v14, 0.0 }
 0x373   : > { %v2399_v49 = vmax.f32 %v2267_v44, 0.0 }
 0x374   : > { %v2400_v51 = vmax.f32 %v2269_v47, 0.0 }
 0x375   : > { %v2453_v53 = vpack.c.bf16 %v2399_v49, %v2397_v48 }
 0x376   : > { %v2272_v55 = vpop.f32.mrb[84].mxu0  ;;  %v2454_v56 = vpack.c.bf16 %v2400_v51, %v2398_v50 }
 0x377   : > { %v2273_v57 = vadd.f32 %v2272_v55, %v10718_v12  ;;  %v2274_v58 = vpop.f32.mrb[85].mxu0 }
 0x378   : > { %v2275_v59 = vadd.f32 %v2274_v58, %v10721_v15  ;;  %v2276_v60 = vpop.f32.mrb[86].mxu0  ;;  %2753 = vmatprep.mubr.bf16.mxu1 %v2454_v56 }
 0x379   : > { %v2277_v62 = vadd.f32 %v2276_v60, %v10718_v12  ;;  %v2278_v63 = vpop.f32.mrb[87].mxu0  ;;  %2754 = vmatmul.mubr.bf16.gmra.mrb[80].mxu1 %v2453_v53  ;;  %v2401_v2 = vmax.f32 %v2273_v57, 0.0 }
 0x37a   : > { %v2279_v1 = vadd.f32 %v2278_v63, %v10721_v15  ;;  %v2402_v42 = vmax.f32 %v2275_v59, 0.0 }
 0x37b   : > { %v2403_v3 = vmax.f32 %v2277_v62, 0.0 }
 0x37c   : > { %v2404_v5 = vmax.f32 %v2279_v1, 0.0 }
 0x37d   : > { %v2455_v6 = vpack.c.bf16 %v2403_v3, %v2401_v2 }
 0x37e   : > { %v2282_v43 = vpop.f32.mrb[88].mxu0  ;;  %v2456_v9 = vpack.c.bf16 %v2404_v5, %v2402_v42 }
 0x37f   : > { %v2283_v11 = vadd.f32 %v2282_v43, %v10718_v12  ;;  %v2284_v16 = vpop.f32.mrb[89].mxu0 }
 0x380   : > { %v2285_v17 = vadd.f32 %v2284_v16, %v10721_v15  ;;  %v2286_v18 = vpop.f32.mrb[90].mxu0  ;;  %2763 = vmatprep.mubr.bf16.mxu1 %v2456_v9 }
 0x381   : > { %v2287_v19 = vadd.f32 %v2286_v18, %v10718_v12  ;;  %v2288_v20 = vpop.f32.mrb[91].mxu0  ;;  %2764 = vmatmul.mubr.bf16.gmra.mrb[84].mxu1 %v2455_v6  ;;  %v2405_v22 = vmax.f32 %v2283_v11, 0.0 }
 0x382   : > { %v2289_v21 = vadd.f32 %v2288_v20, %v10721_v15  ;;  %v2406_v24 = vmax.f32 %v2285_v17, 0.0 }
 0x383   : > { %v2407_v23 = vmax.f32 %v2287_v19, 0.0 }
 0x384   : > { %v2408_v25 = vmax.f32 %v2289_v21, 0.0 }
 0x385   : > { %v2457_v26 = vpack.c.bf16 %v2407_v23, %v2405_v22 }
 0x386   : > { %v2292_v27 = vpop.f32.mrb[92].mxu0  ;;  %v2458_v28 = vpack.c.bf16 %v2408_v25, %v2406_v24 }
 0x387   : > { %v2293_v29 = vadd.f32 %v2292_v27, %v10718_v12  ;;  %v2294_v30 = vpop.f32.mrb[93].mxu0 }
 0x388   : > { %v2295_v31 = vadd.f32 %v2294_v30, %v10721_v15  ;;  %v2296_v32 = vpop.f32.mrb[94].mxu0  ;;  %2773 = vmatprep.mubr.bf16.mxu1 %v2458_v28 }
 0x389   : > { %v2297_v33 = vadd.f32 %v2296_v32, %v10718_v12  ;;  %v2298_v34 = vpop.f32.mrb[95].mxu0  ;;  %2774 = vmatmul.mubr.bf16.gmra.mrb[88].mxu1 %v2457_v26  ;;  %v2409_v36 = vmax.f32 %v2293_v29, 0.0 }
 0x38a   : > { %v2299_v35 = vadd.f32 %v2298_v34, %v10721_v15  ;;  %v2410_v13 = vmax.f32 %v2295_v31, 0.0 }
 0x38b   : > { %v2411_v37 = vmax.f32 %v2297_v33, 0.0 }
 0x38c   : > { %v2412_v38 = vmax.f32 %v2299_v35, 0.0 }
 0x38d   : > { %v2459_v39 = vpack.c.bf16 %v2411_v37, %v2409_v36 }
 0x38e   : > { %v2302_v14 = vpop.f32.mrb[96].mxu0  ;;  %v2460_v40 = vpack.c.bf16 %v2412_v38, %v2410_v13 }
 0x38f   : > { %v2303_v41 = vadd.f32 %v2302_v14, %v10718_v12  ;;  %v2304_v44 = vpop.f32.mrb[97].mxu0 }
 0x390   : > { %v2305_v45 = vadd.f32 %v2304_v44, %v10721_v15  ;;  %v2306_v46 = vpop.f32.mrb[98].mxu0  ;;  %2783 = vmatprep.mubr.bf16.mxu1 %v2460_v40 }
 0x391   : > { %v2307_v47 = vadd.f32 %v2306_v46, %v10718_v12  ;;  %v2308_v48 = vpop.f32.mrb[99].mxu0  ;;  %2784 = vmatmul.mubr.bf16.gmra.mrb[92].mxu1 %v2459_v39  ;;  %v2413_v50 = vmax.f32 %v2303_v41, 0.0 }
 0x392   : > { %v2309_v49 = vadd.f32 %v2308_v48, %v10721_v15  ;;  %v2414_v52 = vmax.f32 %v2305_v45, 0.0  ;;  %v9475_v48 = vld [vmem:[%s10214_s14 + $0xf4] ss:$8 sps:$4 sm:$0xff]  }
 0x393   : > { %v2415_v51 = vmax.f32 %v2307_v47, 0.0  ;;  %3204 = vmatprep.subr.bf16.mxu0 %v9475_v48  ;;  %v9487_v48 = vld [vmem:[#allocation4 + $0x54] ss:$8 sps:$4 sm:$0xff]  }
 0x394   : > { %v2416_v53 = vmax.f32 %v2309_v49, 0.0 }
 0x395   : > { %v2461_v54 = vpack.c.bf16 %v2415_v51, %v2413_v50  ;;  %v9473_v50 = vld [vmem:[%s10214_s14 + $0xf0] ss:$8 sps:$4 sm:$0xff]  }
 0x396   : > { %v2312_v55 = vpop.f32.mrb[100].mxu0  ;;  %v2462_v56 = vpack.c.bf16 %v2416_v53, %v2414_v52  ;;  %3205 = vmatpush1.bf16.msra.mxu0 %v9473_v50  ;;  %v9491_v50 = vld [vmem:[#allocation4 + $0x70] ss:$8 sps:$4 sm:$0xff]  }
 0x397   : > { %v2313_v57 = vadd.f32 %v2312_v55, %v10718_v12  ;;  %v2314_v58 = vpop.f32.mrb[101].mxu0 }
 0x398   : > { %v2315_v59 = vadd.f32 %v2314_v58, %v10721_v15  ;;  %v2316_v60 = vpop.f32.mrb[102].mxu0  ;;  %2793 = vmatprep.mubr.bf16.mxu1 %v2462_v56 }
 0x399   : > { %v2317_v61 = vadd.f32 %v2316_v60, %v10718_v12  ;;  %v2318_v62 = vpop.f32.mrb[103].mxu0  ;;  %2794 = vmatmul.mubr.bf16.gmra.mrb[96].mxu1 %v2461_v54  ;;  %v2417_v1 = vmax.f32 %v2313_v57, 0.0  ;;  %v9476_v60 = vld [vmem:[#allocation4 + $0x20] ss:$8 sps:$4 sm:$0xff]  }
 0x39a   : > { %v2319_v63 = vadd.f32 %v2318_v62, %v10721_v15  ;;  %v2418_v3 = vmax.f32 %v2315_v59, 0.0 }
 0x39b   : > { %v2419_v2 = vmax.f32 %v2317_v61, 0.0  ;;  %v9478_v61 = vld [vmem:[#allocation4 + $0x24] ss:$8 sps:$4 sm:$0xff]  }
 0x39c   : > { %v2420_v42 = vmax.f32 %v2319_v63, 0.0  ;;  %3595 = vmatprep.subr.bf16.mxu1 %v9478_v61  ;;  %v9500_v61 = vld [vmem:[%s10224_s24 + $0x20] ss:$8 sps:$4 sm:$0xff]  }
 0x39d   : > { %v2463_v5 = vpack.c.bf16 %v2419_v2, %v2417_v1  ;;  %3596 = vmatpush1.bf16.msra.mxu1 %v9476_v60  ;;  %v2509_v60 = vld [vmem:[%s10209_s8] sm:$0x3] }
 0x39e   : > { %v2322_v6 = vpop.f32.mrb[104].mxu0  ;;  %v2464_v43 = vpack.c.bf16 %v2420_v42, %v2418_v3 }
 0x39f   : > { %v2323_v9 = vadd.f32 %v2322_v6, %v10718_v12  ;;  %v2324_v11 = vpop.f32.mrb[105].mxu0 }
 0x3a0   : > { %v2325_v16 = vadd.f32 %v2324_v11, %v10721_v15  ;;  %v2326_v17 = vpop.f32.mrb[106].mxu0  ;;  %2803 = vmatprep.mubr.bf16.mxu1 %v2464_v43 }
 0x3a1   : > { %v2327_v18 = vadd.f32 %v2326_v17, %v10718_v12  ;;  %v2328_v19 = vpop.f32.mrb[107].mxu0  ;;  %2804 = vmatmul.mubr.bf16.gmra.mrb[100].mxu1 %v2463_v5  ;;  %v2421_v21 = vmax.f32 %v2323_v9, 0.0 }
 0x3a2   : > { %v2329_v20 = vadd.f32 %v2328_v19, %v10721_v15  ;;  %v2422_v23 = vmax.f32 %v2325_v16, 0.0 }
 0x3a3   : > { %v2423_v22 = vmax.f32 %v2327_v18, 0.0 }
 0x3a4   : > { %v2424_v24 = vmax.f32 %v2329_v20, 0.0 }
 0x3a5   : > { %v2465_v25 = vpack.c.bf16 %v2423_v22, %v2421_v21 }
 0x3a6   : > { %v2332_v26 = vpop.f32.mrb[108].mxu0  ;;  %v2466_v27 = vpack.c.bf16 %v2424_v24, %v2422_v23 }
 0x3a7   : > { %v2333_v28 = vadd.f32 %v2332_v26, %v10718_v12  ;;  %v2334_v29 = vpop.f32.mrb[109].mxu0 }
 0x3a8   : > { %v2335_v30 = vadd.f32 %v2334_v29, %v10721_v15  ;;  %v2336_v31 = vpop.f32.mrb[110].mxu0  ;;  %2813 = vmatprep.mubr.bf16.mxu1 %v2466_v27 }
 0x3a9   : > { %v2337_v32 = vadd.f32 %v2336_v31, %v10718_v12  ;;  %v2338_v33 = vpop.f32.mrb[111].mxu0  ;;  %2814 = vmatmul.mubr.bf16.gmra.mrb[104].mxu1 %v2465_v25  ;;  %v2425_v35 = vmax.f32 %v2333_v28, 0.0 }
 0x3aa   : > { %v2339_v34 = vadd.f32 %v2338_v33, %v10721_v15  ;;  %v2426_v37 = vmax.f32 %v2335_v30, 0.0  ;;  %v9479_v33 = vld [vmem:[#allocation4 + $0x30] ss:$8 sps:$4 sm:$0xff]  }
 0x3ab   : > { %v2427_v36 = vmax.f32 %v2337_v32, 0.0 }
 0x3ac   : > { %v2428_v13 = vmax.f32 %v2339_v34, 0.0  ;;  %v9481_v34 = vld [vmem:[#allocation4 + $0x34] ss:$8 sps:$4 sm:$0xff]  }
 0x3ad   : > { %v2467_v38 = vpack.c.bf16 %v2427_v36, %v2425_v35  ;;  %3597 = vmatprep.subr.bf16.mxu1 %v9481_v34 }
 0x3ae   : > { %v2342_v39 = vpop.f32.mrb[112].mxu0  ;;  %v2468_v14 = vpack.c.bf16 %v2428_v13, %v2426_v37  ;;  %3598 = vmatpush1.bf16.msra.mxu1 %v9479_v33  ;;  %v9963_v33 = vld [vmem:[%s10430_s23 + $0x28] sm:$0xff]  }
 0x3af   : > { %v2343_v40 = vadd.f32 %v2342_v39, %v10718_v12  ;;  %v2344_v41 = vpop.f32.mrb[113].mxu0 }
 0x3b0   : > { %v2345_v44 = vadd.f32 %v2344_v41, %v10721_v15  ;;  %v2346_v45 = vpop.f32.mrb[114].mxu0  ;;  %2823 = vmatprep.mubr.bf16.mxu1 %v2468_v14 }
 0x3b1   : > { %v2347_v46 = vadd.f32 %v2346_v45, %v10718_v12  ;;  %v2348_v47 = vpop.f32.mrb[115].mxu0  ;;  %2824 = vmatmul.mubr.bf16.gmra.mrb[108].mxu1 %v2467_v38  ;;  %v2429_v51 = vmax.f32 %v2343_v40, 0.0 }
 0x3b2   : > { %v2349_v49 = vadd.f32 %v2348_v47, %v10721_v15  ;;  %v2430_v53 = vmax.f32 %v2345_v44, 0.0  ;;  %v9484_v47 = vld [vmem:[#allocation4 + $0x44] ss:$8 sps:$4 sm:$0xff]  }
 0x3b3   : > { %v2431_v52 = vmax.f32 %v2347_v46, 0.0  ;;  %v9482_v46 = vld [vmem:[#allocation4 + $0x40] ss:$8 sps:$4 sm:$0xff]   ;;  %3599 = vmatprep.subr.bf16.mxu1 %v9484_v47 }
 0x3b4   : > { %v2432_v54 = vmax.f32 %v2349_v49, 0.0  ;;  %3600 = vmatpush1.bf16.msra.mxu1 %v9482_v46  ;;  %v9490_v49 = vld [vmem:[#allocation4 + $0x64] ss:$8 sps:$4 sm:$0xff]   ;;  %v9515_v46 = vld [vmem:[%s10224_s24 + $0x70] ss:$8 sps:$4 sm:$0xff]  }
 0x3b5   : > { %v2469_v55 = vpack.c.bf16 %v2431_v52, %v2429_v51  ;;  %3601 = vmatprep.subr.bf16.mxu1 %v9487_v48  ;;  %v9493_v51 = vld [vmem:[#allocation4 + $0x74] ss:$8 sps:$4 sm:$0xff]   ;;  %v9958_v52 = vld [vmem:[%s10430_s23] sm:$0xff]  }
 0x3b6   : > { %v2352_v56 = vpop.f32.mrb[116].mxu0  ;;  %v2470_v57 = vpack.c.bf16 %v2432_v54, %v2430_v53  ;;  %v9959_v53 = vld [vmem:[%s10430_s23 + $0x8] sm:$0xff]  }
 0x3b7   : > { %v2353_v58 = vadd.f32 %v2352_v56, %v10718_v12  ;;  %v2354_v59 = vpop.f32.mrb[117].mxu0  ;;  %v9494_v54 = vld [vmem:[%s10224_s24] ss:$8 sps:$4 sm:$0xff]   ;;  %v9960_v56 = vld [vmem:[%s10430_s23 + $0x10] sm:$0xff]   ;;  %v9520_v48 = vld [vmem:[%s10224_s24 + $0x84] ss:$8 sps:$4 sm:$0xff]  }
 0x3b8   : > { %v2355_v62 = vadd.f32 %v2354_v59, %v10721_v15  ;;  %v2356_v63 = vpop.f32.mrb[118].mxu0  ;;  %2833 = vmatprep.mubr.bf16.mxu1 %v2470_v57  ;;  %v9497_v57 = vld [vmem:[%s10224_s24 + $0x10] ss:$8 sps:$4 sm:$0xff]  }
 0x3b9   : > { %v2357_v1 = vadd.f32 %v2356_v63, %v10718_v12  ;;  %v2358_v2 = vpop.f32.mrb[119].mxu0  ;;  %2834 = vmatmul.mubr.bf16.gmra.mrb[112].mxu1 %v2469_v55  ;;  %v2433_v42 = vmax.f32 %v2353_v58, 0.0  ;;  %v9496_v55 = vld [vmem:[%s10224_s24 + $0x4] ss:$8 sps:$4 sm:$0xff]   ;;  %v9499_v58 = vld [vmem:[%s10224_s24 + $0x14] ss:$8 sps:$4 sm:$0xff]   ;;  %v10830_v63 = vrot.slane %v2509_v60, %v10503_v8 }
 0x3ba   : > { %v2359_v3 = vadd.f32 %v2358_v2, %v10721_v15  ;;  %v2434_v6 = vmax.f32 %v2355_v62, 0.0  ;;  %v9961_v59 = vld [vmem:[%s10430_s23 + $0x18] sm:$0xff]   ;;  %v9502_v62 = vld [vmem:[%s10224_s24 + $0x24] ss:$8 sps:$4 sm:$0xff]  }
 0x3bb   : > { %v2435_v5 = vmax.f32 %v2357_v1, 0.0  ;;  %v10833_v1 = vrot.slane %v2509_v60, %v10507_v10  ;;  %v9503_v2 = vld [vmem:[%s10224_s24 + $0x30] ss:$8 sps:$4 sm:$0xff]  }
 0x3bc   : > { %v2436_v43 = vmax.f32 %v2359_v3, 0.0  ;;  %v9505_v3 = vld [vmem:[%s10224_s24 + $0x34] ss:$8 sps:$4 sm:$0xff]  }
 0x3bd   : > { %v2471_v9 = vpack.c.bf16 %v2435_v5, %v2433_v42 }
 0x3be   : > { %v2362_v11 = vpop.f32.mrb[120].mxu0  ;;  %v2472_v16 = vpack.c.bf16 %v2436_v43, %v2434_v6  ;;  %v9962_v43 = vld [vmem:[%s10430_s23 + $0x20] sm:$0xff]  }
 0x3bf   : > { %v2363_v17 = vadd.f32 %v2362_v11, %v10718_v12  ;;  %v2364_v18 = vpop.f32.mrb[121].mxu0 }
 0x3c0   : > { %v2365_v19 = vadd.f32 %v2364_v18, %v10721_v15  ;;  %v2366_v20 = vpop.f32.mrb[122].mxu0  ;;  %2843 = vmatprep.mubr.bf16.mxu1 %v2472_v16  ;;  %v9506_v18 = vld [vmem:[%s10224_s24 + $0x40] ss:$8 sps:$4 sm:$0xff]  }
 0x3c1   : > { %v2367_v21 = vadd.f32 %v2366_v20, %v10718_v12  ;;  %v2368_v22 = vpop.f32.mrb[123].mxu0  ;;  %2844 = vmatmul.mubr.bf16.gmra.mrb[116].mxu1 %v2471_v9  ;;  %v2437_v24 = vmax.f32 %v2363_v17, 0.0 }
 0x3c2   : > { %v2369_v23 = vadd.f32 %v2368_v22, %v10721_v15  ;;  %v2438_v26 = vmax.f32 %v2365_v19, 0.0  ;;  %v9508_v19 = vld [vmem:[%s10224_s24 + $0x44] ss:$8 sps:$4 sm:$0xff]  }
 0x3c3   : > { %v2439_v25 = vmax.f32 %v2367_v21, 0.0  ;;  %v9511_v21 = vld [vmem:[%s10224_s24 + $0x54] ss:$8 sps:$4 sm:$0xff]  }
 0x3c4   : > { %v2440_v27 = vmax.f32 %v2369_v23, 0.0 }
 0x3c5   : > { %v2473_v28 = vpack.c.bf16 %v2439_v25, %v2437_v24 }
 0x3c6   : > { %v2372_v29 = vpop.f32.mrb[124].mxu0  ;;  %v2474_v30 = vpack.c.bf16 %v2440_v27, %v2438_v26  ;;  %v9509_v26 = vld [vmem:[%s10224_s24 + $0x50] ss:$8 sps:$4 sm:$0xff]  }
 0x3c7   : > { %v2373_v31 = vadd.f32 %v2372_v29, %v10718_v12  ;;  %v2374_v32 = vpop.f32.mrb[125].mxu0 }
 0x3c8   : > { %v2375_v35 = vadd.f32 %v2374_v32, %v10721_v15  ;;  %v2376_v36 = vpop.f32.mrb[126].mxu0  ;;  %2853 = vmatprep.mubr.bf16.mxu1 %v2474_v30  ;;  %v9514_v30 = vld [vmem:[%s10224_s24 + $0x64] ss:$8 sps:$4 sm:$0xff]  }
 0x3c9   : > { %v2377_v37 = vadd.f32 %v2376_v36, %v10718_v12  ;;  %v2378_v13 = vpop.f32.mrb[127].mxu0  ;;  %2854 = vmatmul.mubr.bf16.gmra.mrb[120].mxu1 %v2473_v28  ;;  %v2441_v39 = vmax.f32 %v2373_v31, 0.0  ;;  %v9485_v12 = vld [vmem:[#allocation4 + $0x50] ss:$8 sps:$4 sm:$0xff]   ;;  %v9512_v36 = vld [vmem:[%s10224_s24 + $0x60] ss:$8 sps:$4 sm:$0xff]  }
 0x3ca   : > { %v2379_v38 = vadd.f32 %v2378_v13, %v10721_v15  ;;  %v2442_v40 = vmax.f32 %v2375_v35, 0.0  ;;  %3602 = vmatpush1.bf16.msra.mxu1 %v9485_v12  ;;  %v9488_v15 = vld [vmem:[#allocation4 + $0x60] ss:$8 sps:$4 sm:$0xff]  }
 0x3cb   : > { %v2443_v14 = vmax.f32 %v2377_v37, 0.0  ;;  %3603 = vmatprep.subr.bf16.mxu1 %v9490_v49 }
 0x3cc   : > { %v2444_v41 = vmax.f32 %v2379_v38, 0.0  ;;  %v9517_v38 = vld [vmem:[%s10224_s24 + $0x74] ss:$8 sps:$4 sm:$0xff]  }
 0x3cd   : > { %v2475_v44 = vpack.c.bf16 %v2443_v14, %v2441_v39 }
 0x3ce   : > { %v2476_v45 = vpack.c.bf16 %v2444_v41, %v2442_v40  ;;  %3604 = vmatpush1.bf16.msra.mxu1 %v9488_v15 }
 0x3cf   : > { %3605 = vmatprep.subr.bf16.mxu1 %v9493_v51 }
 0x3d0   : > { %2863 = vmatprep.mubr.bf16.mxu1 %v2476_v45 }
 0x3d1   : > { %2864 = vmatmul.mubr.bf16.gmra.mrb[124].mxu1 %v2475_v44 }
 0x3d2   : > { %3623 = vmatprep.mubr.bf16.mxu1 %v10160_v0  ;;  %3606 = vmatpush1.bf16.msra.mxu1 %v9491_v50  ;;  %v9964_v50 = vld [vmem:[%s10430_s23 + $0x30] sm:$0xff]  }
 0x3d3   : > { %3944 = vmatprep.subr.bf16.mxu1 %v9496_v55  ;;  %v9518_v55 = vld [vmem:[%s10224_s24 + $0x80] ss:$8 sps:$4 sm:$0xff]  }
 0x3d9   : > { %3624 = vmatmul.mubr.bf16.vlgmr.msra.gmra.mrb[128].mxu1 %v9958_v52 }
 0x3da   : > { %3633 = vmatprep.mubr.bf16.mxu1 %v10160_v0  ;;  %3945 = vmatpush1.bf16.msra.mxu1 %v9494_v54 }
 0x3db   : > { %3946 = vmatprep.subr.bf16.mxu1 %v9499_v58 }
 0x3de   : > { %3947 = vmatpush1.bf16.msra.mxu1 %v9497_v57  ;;  %v9523_v57 = vld [vmem:[%s10224_s24 + $0x94] ss:$8 sps:$4 sm:$0xff]  }
 0x3df   : > { %3948 = vmatprep.subr.bf16.mxu1 %v9502_v62 }
 0x3e1   : > { %3634 = vmatmul.mubr.bf16.gmra.mrb[132].mxu1 %v9959_v53 }
 0x3e2   : > { %3643 = vmatprep.mubr.bf16.mxu1 %v10160_v0  ;;  %3949 = vmatpush1.bf16.msra.mxu1 %v9500_v61 }
 0x3e3   : > { %3950 = vmatprep.subr.bf16.mxu1 %v9505_v3 }
 0x3e6   : > { %3951 = vmatpush1.bf16.msra.mxu1 %v9503_v2  ;;  %v9521_v2 = vld [vmem:[%s10224_s24 + $0x90] ss:$8 sps:$4 sm:$0xff]  }
 0x3e7   : > { %3952 = vmatprep.subr.bf16.mxu1 %v9508_v19  ;;  %v9524_v19 = vld [vmem:[%s10224_s24 + $0xa0] ss:$8 sps:$4 sm:$0xff]  }
 0x3e9   : > { %3644 = vmatmul.mubr.bf16.gmra.mrb[136].mxu1 %v9960_v56 }
 0x3ea   : > { %3653 = vmatprep.mubr.bf16.mxu1 %v10160_v0  ;;  %3953 = vmatpush1.bf16.msra.mxu1 %v9506_v18 }
 0x3eb   : > { %3954 = vmatprep.subr.bf16.mxu1 %v9511_v21  ;;  %v9529_v21 = vld [vmem:[%s10224_s24 + $0xb4] ss:$8 sps:$4 sm:$0xff]  }
 0x3ee   : > { %3955 = vmatpush1.bf16.msra.mxu1 %v9509_v26 }
 0x3ef   : > { %3956 = vmatprep.subr.bf16.mxu1 %v9514_v30  ;;  %v9532_v30 = vld [vmem:[%s10224_s24 + $0xc4] ss:$8 sps:$4 sm:$0xff]  }
 0x3f1   : > { %3654 = vmatmul.mubr.bf16.gmra.mrb[140].mxu1 %v9961_v59 }
 0x3f2   : > { %3663 = vmatprep.mubr.bf16.mxu1 %v10160_v0  ;;  %3957 = vmatpush1.bf16.msra.mxu1 %v9512_v36 }
 0x3f3   : > { %3958 = vmatprep.subr.bf16.mxu1 %v9517_v38 }
 0x3f6   : > { %3959 = vmatpush1.bf16.msra.mxu1 %v9515_v46  ;;  %v9533_v46 = vld [vmem:[%s10224_s24 + $0xd0] ss:$8 sps:$4 sm:$0xff]  }
 0x3f7   : > { %3960 = vmatprep.subr.bf16.mxu1 %v9520_v48  ;;  %v9538_v48 = vld [vmem:[%s10224_s24 + $0xe4] ss:$8 sps:$4 sm:$0xff]  }
 0x3f9   : > { %3664 = vmatmul.mubr.bf16.gmra.mrb[144].mxu1 %v9962_v43 }
 0x3fa   : > { %3673 = vmatprep.mubr.bf16.mxu1 %v10160_v0  ;;  %3961 = vmatpush1.bf16.msra.mxu1 %v9518_v55  ;;  %v9536_v55 = vld [vmem:[%s10224_s24 + $0xe0] ss:$8 sps:$4 sm:$0xff]  }
 0x3fb   : > { %3962 = vmatprep.subr.bf16.mxu1 %v9523_v57 }
 0x3fe   : > { %3963 = vmatpush1.bf16.msra.mxu1 %v9521_v2 }
 0x401   : > { %3674 = vmatmul.mubr.bf16.gmra.mrb[148].mxu1 %v9963_v33  ;;  %v9966_v33 = vld [vmem:[%s10430_s23 + $0x40] sm:$0xff]  }
 0x402   : > { %3683 = vmatprep.mubr.bf16.mxu1 %v10160_v0 }
 0x409   : > { %3684 = vmatmul.mubr.bf16.gmra.mrb[152].mxu1 %v9964_v50  ;;  %v9967_v50 = vld [vmem:[%s10430_s23 + $0x48] sm:$0xff]  }
 0x40a   : > { %3693 = vmatprep.mubr.bf16.mxu1 %v10160_v0 }
 0x42c   : > { %v2715_v42 = vpop.f32.mrb[64].mxu1 }
 0x42d   : > { %v2716_v5 = vadd.f32 %v2715_v42, %v10830_v63  ;;  %v2717_v6 = vpop.f32.mrb[65].mxu1 }
 0x42e   : > { %v2718_v9 = vadd.f32 %v2717_v6, %v10833_v1  ;;  %v2719_v11 = vpop.f32.mrb[66].mxu1 }
 0x42f   : > { %v2720_v16 = vadd.f32 %v2719_v11, %v10830_v63  ;;  %v2721_v17 = vpop.f32.mrb[67].mxu1  ;;  %v2874_v22 = vmax.f32 %v2716_v5, 0.0  ;;  %v9526_v5 = vld [vmem:[%s10224_s24 + $0xa4] ss:$8 sps:$4 sm:$0xff]  }
 0x430   : > { %v2722_v20 = vadd.f32 %v2721_v17, %v10833_v1  ;;  %v2875_v24 = vmax.f32 %v2718_v9, 0.0  ;;  %v9965_v9 = vld [vmem:[%s10430_s23 + $0x38] sm:$0xff]   ;;  %3964 = vmatprep.subr.bf16.mxu1 %v9526_v5  ;;  %v9968_v5 = vld [vmem:[%s10430_s23 + $0x50] sm:$0xff]  }
 0x431   : > { %v2876_v23 = vmax.f32 %v2720_v16, 0.0  ;;  %3694 = vmatmul.mubr.bf16.gmra.mrb[156].mxu1 %v9965_v9 }
 0x432   : > { %v2877_v25 = vmax.f32 %v2722_v20, 0.0  ;;  %3703 = vmatprep.mubr.bf16.mxu1 %v10160_v0  ;;  %3965 = vmatpush1.bf16.msra.mxu1 %v9524_v19 }
 0x433   : > { %v2938_v27 = vpack.c.bf16 %v2876_v23, %v2874_v22  ;;  %3966 = vmatprep.subr.bf16.mxu1 %v9529_v21 }
 0x434   : > { %v2725_v28 = vpop.f32.mrb[68].mxu1  ;;  %v2939_v29 = vpack.c.bf16 %v2877_v25, %v2875_v24 }
 0x435   : > { %v2726_v31 = vadd.f32 %v2725_v28, %v10830_v63  ;;  %v2727_v32 = vpop.f32.mrb[69].mxu1 }
 0x436   : > { %v2728_v34 = vadd.f32 %v2727_v32, %v10833_v1  ;;  %v2729_v35 = vpop.f32.mrb[70].mxu1  ;;  %3206 = vmatprep.mubr.bf16.mxu0 %v2939_v29 }
 0x437   : > { %v2730_v37 = vadd.f32 %v2729_v35, %v10830_v63  ;;  %v2731_v13 = vpop.f32.mrb[71].mxu1  ;;  %3207 = vmatmul.mubr.bf16.vlgmr.msra.gmra.mrb[128].mxu0 %v2938_v27  ;;  %v2878_v14 = vmax.f32 %v2726_v31, 0.0  ;;  %v9527_v27 = vld [vmem:[%s10224_s24 + $0xb0] ss:$8 sps:$4 sm:$0xff]  }
 0x438   : > { %v2732_v39 = vadd.f32 %v2731_v13, %v10833_v1  ;;  %v2879_v41 = vmax.f32 %v2728_v34, 0.0  ;;  %3967 = vmatpush1.bf16.msra.mxu1 %v9527_v27  ;;  %v9530_v13 = vld [vmem:[%s10224_s24 + $0xc0] ss:$8 sps:$4 sm:$0xff]  }
 0x439   : > { %v2880_v40 = vmax.f32 %v2730_v37, 0.0  ;;  %3704 = vmatmul.mubr.bf16.gmra.mrb[160].mxu1 %v9966_v33  ;;  %3968 = vmatprep.subr.bf16.mxu1 %v9532_v30 }
 0x43a   : > { %v2881_v44 = vmax.f32 %v2732_v39, 0.0  ;;  %3713 = vmatprep.mubr.bf16.mxu1 %v10160_v0  ;;  %v9535_v39 = vld [vmem:[%s10224_s24 + $0xd4] ss:$8 sps:$4 sm:$0xff]  }
 0x43b   : > { %v2940_v45 = vpack.c.bf16 %v2880_v40, %v2878_v14 }
 0x43c   : > { %v2735_v47 = vpop.f32.mrb[72].mxu1  ;;  %v2941_v12 = vpack.c.bf16 %v2881_v44, %v2879_v41  ;;  %3969 = vmatpush1.bf16.msra.mxu1 %v9530_v13 }
 0x43d   : > { %v2736_v15 = vadd.f32 %v2735_v47, %v10830_v63  ;;  %v2737_v49 = vpop.f32.mrb[73].mxu1  ;;  %3970 = vmatprep.subr.bf16.mxu1 %v9535_v39 }
 0x43e   : > { %v2738_v51 = vadd.f32 %v2737_v49, %v10833_v1  ;;  %v2739_v52 = vpop.f32.mrb[74].mxu1  ;;  %3216 = vmatprep.mubr.bf16.mxu0 %v2941_v12 }
 0x43f   : > { %v2740_v53 = vadd.f32 %v2739_v52, %v10830_v63  ;;  %v2741_v54 = vpop.f32.mrb[75].mxu1  ;;  %3217 = vmatmul.mubr.bf16.gmra.mrb[132].mxu0 %v2940_v45  ;;  %v2882_v58 = vmax.f32 %v2736_v15, 0.0 }
 0x440   : > { %v2742_v56 = vadd.f32 %v2741_v54, %v10833_v1  ;;  %v2883_v60 = vmax.f32 %v2738_v51, 0.0  ;;  %3971 = vmatpush1.bf16.msra.mxu1 %v9533_v46 }
 0x441   : > { %v2884_v59 = vmax.f32 %v2740_v53, 0.0  ;;  %3714 = vmatmul.mubr.bf16.gmra.mrb[164].mxu1 %v9967_v50  ;;  %3972 = vmatprep.subr.bf16.mxu1 %v9538_v48 }
 0x442   : > { %v2885_v61 = vmax.f32 %v2742_v56, 0.0  ;;  %3723 = vmatprep.mubr.bf16.mxu1 %v10160_v0 }
 0x443   : > { %v2942_v62 = vpack.c.bf16 %v2884_v59, %v2882_v58 }
 0x444   : > { %v2745_v3 = vpop.f32.mrb[76].mxu1  ;;  %v2943_v42 = vpack.c.bf16 %v2885_v61, %v2883_v60  ;;  %3973 = vmatpush1.bf16.msra.mxu1 %v9536_v55 }
 0x445   : > { %v2746_v6 = vadd.f32 %v2745_v3, %v10830_v63  ;;  %v2747_v43 = vpop.f32.mrb[77].mxu1 }
 0x446   : > { %v2748_v11 = vadd.f32 %v2747_v43, %v10833_v1  ;;  %v2749_v16 = vpop.f32.mrb[78].mxu1  ;;  %3226 = vmatprep.mubr.bf16.mxu0 %v2943_v42 }
 0x447   : > { %v2750_v17 = vadd.f32 %v2749_v16, %v10830_v63  ;;  %v2751_v18 = vpop.f32.mrb[79].mxu1  ;;  %3227 = vmatmul.mubr.bf16.gmra.mrb[136].mxu0 %v2942_v62  ;;  %v2886_v22 = vmax.f32 %v2746_v6, 0.0 }
 0x448   : > { %v2752_v20 = vadd.f32 %v2751_v18, %v10833_v1  ;;  %v2887_v24 = vmax.f32 %v2748_v11, 0.0 }
 0x449   : > { %v2888_v23 = vmax.f32 %v2750_v17, 0.0  ;;  %3724 = vmatmul.mubr.bf16.gmra.mrb[168].mxu1 %v9968_v5 }
 0x44a   : > { %v2889_v25 = vmax.f32 %v2752_v20, 0.0  ;;  %3733 = vmatprep.mubr.bf16.mxu1 %v10160_v0 }
 0x44b   : > { %v2944_v26 = vpack.c.bf16 %v2888_v23, %v2886_v22 }
 0x44c   : > { %v2755_v28 = vpop.f32.mrb[80].mxu1  ;;  %v2945_v29 = vpack.c.bf16 %v2889_v25, %v2887_v24 }
 0x44d   : > { %v2756_v31 = vadd.f32 %v2755_v28, %v10830_v63  ;;  %v2757_v32 = vpop.f32.mrb[81].mxu1 }
 0x44e   : > { %v2758_v34 = vadd.f32 %v2757_v32, %v10833_v1  ;;  %v2759_v35 = vpop.f32.mrb[82].mxu1  ;;  %3236 = vmatprep.mubr.bf16.mxu0 %v2945_v29 }
 0x44f   : > { %v2760_v36 = vadd.f32 %v2759_v35, %v10830_v63  ;;  %v2761_v37 = vpop.f32.mrb[83].mxu1  ;;  %3237 = vmatmul.mubr.bf16.gmra.mrb[140].mxu0 %v2944_v26  ;;  %v2890_v14 = vmax.f32 %v2756_v31, 0.0  ;;  %v9969_v26 = vld [vmem:[%s10430_s23 + $0x58] sm:$0xff]  }
 0x450   : > { %v2762_v38 = vadd.f32 %v2761_v37, %v10833_v1  ;;  %v2891_v41 = vmax.f32 %v2758_v34, 0.0 }
 0x451   : > { %v2892_v40 = vmax.f32 %v2760_v36, 0.0  ;;  %3734 = vmatmul.mubr.bf16.gmra.mrb[172].mxu1 %v9969_v26 }
 0x452   : > { %v2893_v44 = vmax.f32 %v2762_v38, 0.0  ;;  %3743 = vmatprep.mubr.bf16.mxu1 %v10160_v0 }
 0x453   : > { %v2946_v45 = vpack.c.bf16 %v2892_v40, %v2890_v14  ;;  %v9970_v14 = vld [vmem:[%s10430_s23 + $0x60] sm:$0xff]  }
 0x454   : > { %v2765_v47 = vpop.f32.mrb[84].mxu1  ;;  %v2947_v12 = vpack.c.bf16 %v2893_v44, %v2891_v41 }
 0x455   : > { %v2766_v15 = vadd.f32 %v2765_v47, %v10830_v63  ;;  %v2767_v49 = vpop.f32.mrb[85].mxu1 }
 0x456   : > { %v2768_v51 = vadd.f32 %v2767_v49, %v10833_v1  ;;  %v2769_v52 = vpop.f32.mrb[86].mxu1  ;;  %3246 = vmatprep.mubr.bf16.mxu0 %v2947_v12 }
 0x457   : > { %v2770_v53 = vadd.f32 %v2769_v52, %v10830_v63  ;;  %v2771_v54 = vpop.f32.mrb[87].mxu1  ;;  %3247 = vmatmul.mubr.bf16.gmra.mrb[144].mxu0 %v2946_v45  ;;  %v2894_v57 = vmax.f32 %v2766_v15, 0.0 }
 0x458   : > { %v2772_v56 = vadd.f32 %v2771_v54, %v10833_v1  ;;  %v2895_v59 = vmax.f32 %v2768_v51, 0.0  ;;  %v9971_v54 = vld [vmem:[%s10430_s23 + $0x68] sm:$0xff]  }
 0x459   : > { %v2896_v58 = vmax.f32 %v2770_v53, 0.0  ;;  %3744 = vmatmul.mubr.bf16.gmra.mrb[176].mxu1 %v9970_v14 }
 0x45a   : > { %v2897_v60 = vmax.f32 %v2772_v56, 0.0  ;;  %3753 = vmatprep.mubr.bf16.mxu1 %v10160_v0 }
 0x45b   : > { %v2948_v61 = vpack.c.bf16 %v2896_v58, %v2894_v57 }
 0x45c   : > { %v2775_v62 = vpop.f32.mrb[88].mxu1  ;;  %v2949_v2 = vpack.c.bf16 %v2897_v60, %v2895_v59 }
 0x45d   : > { %v2776_v3 = vadd.f32 %v2775_v62, %v10830_v63  ;;  %v2777_v42 = vpop.f32.mrb[89].mxu1 }
 0x45e   : > { %v2778_v6 = vadd.f32 %v2777_v42, %v10833_v1  ;;  %v2779_v43 = vpop.f32.mrb[90].mxu1  ;;  %3256 = vmatprep.mubr.bf16.mxu0 %v2949_v2 }
 0x45f   : > { %v2780_v9 = vadd.f32 %v2779_v43, %v10830_v63  ;;  %v2781_v11 = vpop.f32.mrb[91].mxu1  ;;  %3257 = vmatmul.mubr.bf16.gmra.mrb[148].mxu0 %v2948_v61  ;;  %v2898_v17 = vmax.f32 %v2776_v3, 0.0 }
 0x460   : > { %v2782_v16 = vadd.f32 %v2781_v11, %v10833_v1  ;;  %v2899_v19 = vmax.f32 %v2778_v6, 0.0 }
 0x461   : > { %v2900_v18 = vmax.f32 %v2780_v9, 0.0  ;;  %3754 = vmatmul.mubr.bf16.gmra.mrb[180].mxu1 %v9971_v54  ;;  %v9972_v9 = vld [vmem:[%s10430_s23 + $0x70] sm:$0xff]  }
 0x462   : > { %v2901_v20 = vmax.f32 %v2782_v16, 0.0  ;;  %3763 = vmatprep.mubr.bf16.mxu1 %v10160_v0 }
 0x463   : > { %v2950_v21 = vpack.c.bf16 %v2900_v18, %v2898_v17 }
 0x464   : > { %v2785_v22 = vpop.f32.mrb[92].mxu1  ;;  %v2951_v23 = vpack.c.bf16 %v2901_v20, %v2899_v19 }
 0x465   : > { %v2786_v24 = vadd.f32 %v2785_v22, %v10830_v63  ;;  %v2787_v25 = vpop.f32.mrb[93].mxu1 }
 0x466   : > { %v2788_v27 = vadd.f32 %v2787_v25, %v10833_v1  ;;  %v2789_v28 = vpop.f32.mrb[94].mxu1  ;;  %3266 = vmatprep.mubr.bf16.mxu0 %v2951_v23 }
 0x467   : > { %v2790_v29 = vadd.f32 %v2789_v28, %v10830_v63  ;;  %v2791_v30 = vpop.f32.mrb[95].mxu1  ;;  %3267 = vmatmul.mubr.bf16.gmra.mrb[152].mxu0 %v2950_v21  ;;  %v2902_v32 = vmax.f32 %v2786_v24, 0.0 }
 0x468   : > { %v2792_v31 = vadd.f32 %v2791_v30, %v10833_v1  ;;  %v2903_v34 = vmax.f32 %v2788_v27, 0.0 }
 0x469   : > { %v2904_v33 = vmax.f32 %v2790_v29, 0.0  ;;  %3764 = vmatmul.mubr.bf16.gmra.mrb[184].mxu1 %v9972_v9  ;;  %v9973_v29 = vld [vmem:[%s10430_s23 + $0x78] sm:$0xff]  }
 0x46a   : > { %v2905_v35 = vmax.f32 %v2792_v31, 0.0  ;;  %3773 = vmatprep.mubr.bf16.mxu1 %v10160_v0 }
 0x46b   : > { %v2952_v36 = vpack.c.bf16 %v2904_v33, %v2902_v32 }
 0x46c   : > { %v2795_v37 = vpop.f32.mrb[96].mxu1  ;;  %v2953_v13 = vpack.c.bf16 %v2905_v35, %v2903_v34 }
 0x46d   : > { %v2796_v38 = vadd.f32 %v2795_v37, %v10830_v63  ;;  %v2797_v39 = vpop.f32.mrb[97].mxu1 }
 0x46e   : > { %v2798_v40 = vadd.f32 %v2797_v39, %v10833_v1  ;;  %v2799_v41 = vpop.f32.mrb[98].mxu1  ;;  %3276 = vmatprep.mubr.bf16.mxu0 %v2953_v13 }
 0x46f   : > { %v2800_v44 = vadd.f32 %v2799_v41, %v10830_v63  ;;  %v2801_v45 = vpop.f32.mrb[99].mxu1  ;;  %3277 = vmatmul.mubr.bf16.gmra.mrb[156].mxu0 %v2952_v36  ;;  %v2906_v47 = vmax.f32 %v2796_v38, 0.0 }
 0x470   : > { %v2802_v46 = vadd.f32 %v2801_v45, %v10833_v1  ;;  %v2907_v48 = vmax.f32 %v2798_v40, 0.0 }
 0x471   : > { %v2908_v12 = vmax.f32 %v2800_v44, 0.0  ;;  %3774 = vmatmul.mubr.bf16.gmra.mrb[188].mxu1 %v9973_v29 }
 0x472   : > { %v2909_v15 = vmax.f32 %v2802_v46, 0.0 }
 0x473   : > { %v2954_v49 = vpack.c.bf16 %v2908_v12, %v2906_v47  ;;  %v9541_v47 = vld [vmem:[%s10224_s24 + $0xf4] ss:$8 sps:$4 sm:$0xff]  }
 0x474   : > { %v2805_v50 = vpop.f32.mrb[100].mxu1  ;;  %v2955_v51 = vpack.c.bf16 %v2909_v15, %v2907_v48  ;;  %v9539_v48 = vld [vmem:[%s10224_s24 + $0xf0] ss:$8 sps:$4 sm:$0xff]   ;;  %3974 = vmatprep.subr.bf16.mxu1 %v9541_v47 }
 0x475   : > { %v2806_v52 = vadd.f32 %v2805_v50, %v10830_v63  ;;  %v2807_v53 = vpop.f32.mrb[101].mxu1  ;;  %3975 = vmatpush1.bf16.msra.mxu1 %v9539_v48  ;;  %v9551_v47 = vld [vmem:[%s10239_s12 + $0x30] ss:$8 sps:$4 sm:$0xff]  }
 0x476   : > { %v2808_v55 = vadd.f32 %v2807_v53, %v10833_v1  ;;  %v2809_v56 = vpop.f32.mrb[102].mxu1  ;;  %3286 = vmatprep.mubr.bf16.mxu0 %v2955_v51 }
 0x477   : > { %v2810_v57 = vadd.f32 %v2809_v56, %v10830_v63  ;;  %v2811_v58 = vpop.f32.mrb[103].mxu1  ;;  %3287 = vmatmul.mubr.bf16.gmra.mrb[160].mxu0 %v2954_v49  ;;  %v2910_v60 = vmax.f32 %v2806_v52, 0.0 }
 0x478   : > { %v2812_v59 = vadd.f32 %v2811_v58, %v10833_v1  ;;  %v2911_v62 = vmax.f32 %v2808_v55, 0.0 }
 0x479   : > { %v2912_v61 = vmax.f32 %v2810_v57, 0.0 }
 0x47a   : > { %v2913_v2 = vmax.f32 %v2812_v59, 0.0 }
 0x47b   : > { %v2956_v3 = vpack.c.bf16 %v2912_v61, %v2910_v60 }
 0x47c   : > { %v2815_v42 = vpop.f32.mrb[104].mxu1  ;;  %v2957_v5 = vpack.c.bf16 %v2913_v2, %v2911_v62 }
 0x47d   : > { %v2816_v6 = vadd.f32 %v2815_v42, %v10830_v63  ;;  %v2817_v43 = vpop.f32.mrb[105].mxu1 }
 0x47e   : > { %v2818_v11 = vadd.f32 %v2817_v43, %v10833_v1  ;;  %v2819_v16 = vpop.f32.mrb[106].mxu1  ;;  %3296 = vmatprep.mubr.bf16.mxu0 %v2957_v5 }
 0x47f   : > { %v2820_v17 = vadd.f32 %v2819_v16, %v10830_v63  ;;  %v2821_v18 = vpop.f32.mrb[107].mxu1  ;;  %3297 = vmatmul.mubr.bf16.gmra.mrb[164].mxu0 %v2956_v3  ;;  %v2914_v20 = vmax.f32 %v2816_v6, 0.0 }
 0x480   : > { %v2822_v19 = vadd.f32 %v2821_v18, %v10833_v1  ;;  %v2915_v22 = vmax.f32 %v2818_v11, 0.0 }
 0x481   : > { %v2916_v21 = vmax.f32 %v2820_v17, 0.0 }
 0x482   : > { %v2917_v23 = vmax.f32 %v2822_v19, 0.0 }
 0x483   : > { %v2958_v24 = vpack.c.bf16 %v2916_v21, %v2914_v20 }
 0x484   : > { %v2825_v25 = vpop.f32.mrb[108].mxu1  ;;  %v2959_v26 = vpack.c.bf16 %v2917_v23, %v2915_v22 }
 0x485   : > { %v2826_v27 = vadd.f32 %v2825_v25, %v10830_v63  ;;  %v2827_v28 = vpop.f32.mrb[109].mxu1 }
 0x486   : > { %v2828_v0 = vadd.f32 %v2827_v28, %v10833_v1  ;;  %v2829_v30 = vpop.f32.mrb[110].mxu1  ;;  %3306 = vmatprep.mubr.bf16.mxu0 %v2959_v26 }
 0x487   : > { %v2830_v31 = vadd.f32 %v2829_v30, %v10830_v63  ;;  %v2831_v32 = vpop.f32.mrb[111].mxu1  ;;  %3307 = vmatmul.mubr.bf16.gmra.mrb[168].mxu0 %v2958_v24  ;;  %v2918_v34 = vmax.f32 %v2826_v27, 0.0 }
 0x488   : > { %v2832_v33 = vadd.f32 %v2831_v32, %v10833_v1  ;;  %v2919_v36 = vmax.f32 %v2828_v0, 0.0 }
 0x489   : > { %v2920_v35 = vmax.f32 %v2830_v31, 0.0 }
 0x48a   : > { %v2921_v37 = vmax.f32 %v2832_v33, 0.0 }
 0x48b   : > { %v2960_v13 = vpack.c.bf16 %v2920_v35, %v2918_v34 }
 0x48c   : > { %v2835_v38 = vpop.f32.mrb[112].mxu1  ;;  %v2961_v39 = vpack.c.bf16 %v2921_v37, %v2919_v36 }
 0x48d   : > { %v2836_v14 = vadd.f32 %v2835_v38, %v10830_v63  ;;  %v2837_v40 = vpop.f32.mrb[113].mxu1 }
 0x48e   : > { %v2838_v41 = vadd.f32 %v2837_v40, %v10833_v1  ;;  %v2839_v44 = vpop.f32.mrb[114].mxu1  ;;  %3316 = vmatprep.mubr.bf16.mxu0 %v2961_v39  ;;  %v9542_v39 = vld [vmem:[%s10239_s12] ss:$8 sps:$4 sm:$0xff]   ;;  %v9547_v40 = vld [vmem:[%s10239_s12 + $0x14] ss:$8 sps:$4 sm:$0xff]  }
 0x48f   : > { %v2840_v45 = vadd.f32 %v2839_v44, %v10830_v63  ;;  %v2841_v46 = vpop.f32.mrb[115].mxu1  ;;  %3317 = vmatmul.mubr.bf16.gmra.mrb[172].mxu0 %v2960_v13  ;;  %v2922_v15 = vmax.f32 %v2836_v14, 0.0  ;;  %v9545_v14 = vld [vmem:[%s10239_s12 + $0x10] ss:$8 sps:$4 sm:$0xff]   ;;  %v9550_v44 = vld [vmem:[%s10239_s12 + $0x24] ss:$8 sps:$4 sm:$0xff]  }
 0x490   : > { %v2842_v12 = vadd.f32 %v2841_v46, %v10833_v1  ;;  %v2923_v50 = vmax.f32 %v2838_v41, 0.0  ;;  %v9548_v41 = vld [vmem:[%s10239_s12 + $0x20] ss:$8 sps:$4 sm:$0xff]  }
 0x491   : > { %v2924_v49 = vmax.f32 %v2840_v45, 0.0 }
 0x492   : > { %v2925_v51 = vmax.f32 %v2842_v12, 0.0  ;;  %v9553_v12 = vld [vmem:[%s10239_s12 + $0x34] ss:$8 sps:$4 sm:$0xff]  }
 0x493   : > { %v2962_v52 = vpack.c.bf16 %v2924_v49, %v2922_v15 }
 0x494   : > { %v2845_v53 = vpop.f32.mrb[116].mxu1  ;;  %v2963_v54 = vpack.c.bf16 %v2925_v51, %v2923_v50 }
 0x495   : > { %v2846_v55 = vadd.f32 %v2845_v53, %v10830_v63  ;;  %v2847_v56 = vpop.f32.mrb[117].mxu1 }
 0x496   : > { %v2848_v57 = vadd.f32 %v2847_v56, %v10833_v1  ;;  %v2849_v58 = vpop.f32.mrb[118].mxu1  ;;  %3326 = vmatprep.mubr.bf16.mxu0 %v2963_v54  ;;  %v9554_v54 = vld [vmem:[%s10239_s12 + $0x40] ss:$8 sps:$4 sm:$0xff]  }
 0x497   : > { %v2850_v59 = vadd.f32 %v2849_v58, %v10830_v63  ;;  %v2851_v60 = vpop.f32.mrb[119].mxu1  ;;  %3327 = vmatmul.mubr.bf16.gmra.mrb[176].mxu0 %v2962_v52  ;;  %v2926_v62 = vmax.f32 %v2846_v55, 0.0  ;;  %v9556_v55 = vld [vmem:[%s10239_s12 + $0x44] ss:$8 sps:$4 sm:$0xff]  }
 0x498   : > { %v2852_v61 = vadd.f32 %v2851_v60, %v10833_v1  ;;  %v2927_v3 = vmax.f32 %v2848_v57, 0.0  ;;  %v9559_v57 = vld [vmem:[%s10239_s12 + $0x54] ss:$8 sps:$4 sm:$0xff]  }
 0x499   : > { %v2928_v2 = vmax.f32 %v2850_v59, 0.0 }
 0x49a   : > { %v2929_v42 = vmax.f32 %v2852_v61, 0.0 }
 0x49b   : > { %v2964_v5 = vpack.c.bf16 %v2928_v2, %v2926_v62  ;;  %v9557_v62 = vld [vmem:[%s10239_s12 + $0x50] ss:$8 sps:$4 sm:$0xff]  }
 0x49c   : > { %v2855_v6 = vpop.f32.mrb[120].mxu1  ;;  %v2965_v43 = vpack.c.bf16 %v2929_v42, %v2927_v3  ;;  %v9562_v3 = vld [vmem:[%s10239_s12 + $0x64] ss:$8 sps:$4 sm:$0xff]  }
 0x49d   : > { %v2856_v9 = vadd.f32 %v2855_v6, %v10830_v63  ;;  %v2857_v11 = vpop.f32.mrb[121].mxu1 }
 0x49e   : > { %v2858_v16 = vadd.f32 %v2857_v11, %v10833_v1  ;;  %v2859_v17 = vpop.f32.mrb[122].mxu1  ;;  %3336 = vmatprep.mubr.bf16.mxu0 %v2965_v43 }
 0x49f   : > { %v2860_v18 = vadd.f32 %v2859_v17, %v10830_v63  ;;  %v2861_v19 = vpop.f32.mrb[123].mxu1  ;;  %3337 = vmatmul.mubr.bf16.gmra.mrb[180].mxu0 %v2964_v5  ;;  %v2930_v21 = vmax.f32 %v2856_v9, 0.0 }
 0x4a0   : > { %v2862_v20 = vadd.f32 %v2861_v19, %v10833_v1  ;;  %v2931_v23 = vmax.f32 %v2858_v16, 0.0  ;;  %v9560_v16 = vld [vmem:[%s10239_s12 + $0x60] ss:$8 sps:$4 sm:$0xff]   ;;  %v9565_v19 = vld [vmem:[%s10239_s12 + $0x74] ss:$8 sps:$4 sm:$0xff]  }
 0x4a1   : > { %v2932_v22 = vmax.f32 %v2860_v18, 0.0 }
 0x4a2   : > { %v2933_v24 = vmax.f32 %v2862_v20, 0.0 }
 0x4a3   : > { %v2966_v25 = vpack.c.bf16 %v2932_v22, %v2930_v21 }
 0x4a4   : > { %v2865_v26 = vpop.f32.mrb[124].mxu1  ;;  %v2967_v27 = vpack.c.bf16 %v2933_v24, %v2931_v23 }
 0x4a5   : > { %v2866_v28 = vadd.f32 %v2865_v26, %v10830_v63  ;;  %v2867_v29 = vpop.f32.mrb[125].mxu1 }
 0x4a6   : > { %v2868_v0 = vadd.f32 %v2867_v29, %v10833_v1  ;;  %v2869_v30 = vpop.f32.mrb[126].mxu1  ;;  %3346 = vmatprep.mubr.bf16.mxu0 %v2967_v27  ;;  %v9568_v27 = vld [vmem:[%s10239_s12 + $0x84] ss:$8 sps:$4 sm:$0xff]  }
 0x4a7   : > { %v2870_v31 = vadd.f32 %v2869_v30, %v10830_v63  ;;  %v2871_v32 = vpop.f32.mrb[127].mxu1  ;;  %3347 = vmatmul.mubr.bf16.gmra.mrb[184].mxu0 %v2966_v25  ;;  %v2934_v34 = vmax.f32 %v2866_v28, 0.0  ;;  %v9544_v63 = vld [vmem:[%s10239_s12 + $0x4] ss:$8 sps:$4 sm:$0xff]   ;;  %v9563_v25 = vld [vmem:[%s10239_s12 + $0x70] ss:$8 sps:$4 sm:$0xff]  }
 0x4a8   : > { %v2872_v33 = vadd.f32 %v2871_v32, %v10833_v1  ;;  %v2935_v36 = vmax.f32 %v2868_v0, 0.0  ;;  %4513 = vmatprep.subr.bf16.mxu0 %v9544_v63  ;;  %v3002_v1 = vld [vmem:[%s12061_s10] sm:$0x3]  ;;  %s12071_s10 = sld [smem:[#allocation20_spill]] }
 0x4a9   : > { %v2936_v35 = vmax.f32 %v2870_v31, 0.0  ;;  %4514 = vmatpush1.bf16.msra.mxu0 %v9542_v39  ;;  %v10956_v45 = vrot.slane %v3002_v1, %v10503_v8  ;;  %v10959_v46 = vrot.slane %v3002_v1, %v10507_v10  ;;  %v9574_v1 = vld [vmem:[%s10239_s12 + $0xa4] ss:$8 sps:$4 sm:$0xff]  }
 0x4aa   : > { %v2937_v37 = vmax.f32 %v2872_v33, 0.0  ;;  %4515 = vmatprep.subr.bf16.mxu0 %v9547_v40  ;;  %v9566_v33 = vld [vmem:[%s10239_s12 + $0x80] ss:$8 sps:$4 sm:$0xff]  }
 0x4ab   : > { %v2968_v13 = vpack.c.bf16 %v2936_v35, %v2934_v34 }
 0x4ac   : > { %v2969_v38 = vpack.c.bf16 %v2937_v37, %v2935_v36  ;;  %v9571_v36 = vld [vmem:[%s10239_s12 + $0x94] ss:$8 sps:$4 sm:$0xff]  }
 0x4ad   : > { %4516 = vmatpush1.bf16.msra.mxu0 %v9545_v14  ;;  %v9569_v14 = vld [vmem:[%s10239_s12 + $0x90] ss:$8 sps:$4 sm:$0xff]  }
 0x4ae   : > { %3356 = vmatprep.mubr.bf16.mxu0 %v2969_v38  ;;  %4517 = vmatprep.subr.bf16.mxu0 %v9550_v44 }
 0x4af   : > { %3357 = vmatmul.mubr.bf16.gmra.mrb[188].mxu0 %v2968_v13 }
 0x4b1   : > { %4518 = vmatpush1.bf16.msra.mxu0 %v9548_v41 }
 0x4b2   : > { %4519 = vmatprep.subr.bf16.mxu0 %v9553_v12 }
 0x4b5   : > { %4520 = vmatpush1.bf16.msra.mxu0 %v9551_v47 }
 0x4b6   : > { %4521 = vmatprep.subr.bf16.mxu0 %v9556_v55 }
 0x4b9   : > { %4522 = vmatpush1.bf16.msra.mxu0 %v9554_v54 }
 0x4ba   : > { %4523 = vmatprep.subr.bf16.mxu0 %v9559_v57 }
 0x4bd   : > { %4524 = vmatpush1.bf16.msra.mxu0 %v9557_v62 }
 0x4be   : > { %4525 = vmatprep.subr.bf16.mxu0 %v9562_v3 }
 0x4c1   : > { %4526 = vmatpush1.bf16.msra.mxu0 %v9560_v16 }
 0x4c2   : > { %4527 = vmatprep.subr.bf16.mxu0 %v9565_v19 }
 0x4c5   : > { %4528 = vmatpush1.bf16.msra.mxu0 %v9563_v25 }
 0x4c6   : > { %4529 = vmatprep.subr.bf16.mxu0 %v9568_v27 }
 0x4c9   : > { %4530 = vmatpush1.bf16.msra.mxu0 %v9566_v33 }
 0x4ca   : > { %4531 = vmatprep.subr.bf16.mxu0 %v9571_v36 }
 0x4cd   : > { %4532 = vmatpush1.bf16.msra.mxu0 %v9569_v14 }
 0x4ce   : > { %4533 = vmatprep.subr.bf16.mxu0 %v9574_v1 }
 0x50a   : > { %v3208_v48 = vpop.f32.mrb[128].mxu0 }
 0x50b   : > { %v3209_v15 = vadd.f32 %v3208_v48, %v10956_v45  ;;  %v3210_v49 = vpop.f32.mrb[129].mxu0 }
 0x50c   : > { %v3211_v50 = vadd.f32 %v3210_v49, %v10959_v46  ;;  %v3212_v51 = vpop.f32.mrb[130].mxu0  ;;  %v9572_v49 = vld [vmem:[%s10239_s12 + $0xa0] ss:$8 sps:$4 sm:$0xff]  }
 0x50d   : > { %v3213_v52 = vadd.f32 %v3212_v51, %v10956_v45  ;;  %v3214_v53 = vpop.f32.mrb[131].mxu0  ;;  %v3367_v58 = vmax.f32 %v3209_v15, 0.0  ;;  %4534 = vmatpush1.bf16.msra.mxu0 %v9572_v49 }
 0x50e   : > { %v3215_v56 = vadd.f32 %v3214_v53, %v10959_v46  ;;  %v3368_v60 = vmax.f32 %v3211_v50, 0.0 }
 0x50f   : > { %v3369_v59 = vmax.f32 %v3213_v52, 0.0  ;;  %v9577_v52 = vld [vmem:[%s10239_s12 + $0xb4] ss:$8 sps:$4 sm:$0xff]  }
 0x510   : > { %v3370_v61 = vmax.f32 %v3215_v56, 0.0  ;;  %4535 = vmatprep.subr.bf16.mxu0 %v9577_v52 }
 0x511   : > { %v3431_v2 = vpack.c.bf16 %v3369_v59, %v3367_v58  ;;  %v9575_v58 = vld [vmem:[%s10239_s12 + $0xb0] ss:$8 sps:$4 sm:$0xff]  }
 0x512   : > { %v3218_v42 = vpop.f32.mrb[132].mxu0  ;;  %v3432_v5 = vpack.c.bf16 %v3370_v61, %v3368_v60  ;;  %v9580_v60 = vld [vmem:[%s10239_s12 + $0xc4] ss:$8 sps:$4 sm:$0xff]   ;;  %4536 = vmatpush1.bf16.msra.mxu0 %v9575_v58 }
 0x513   : > { %v3219_v6 = vadd.f32 %v3218_v42, %v10956_v45  ;;  %v3220_v43 = vpop.f32.mrb[133].mxu0  ;;  %4537 = vmatprep.subr.bf16.mxu0 %v9580_v60 }
 0x514   : > { %v3221_v9 = vadd.f32 %v3220_v43, %v10959_v46  ;;  %v3222_v11 = vpop.f32.mrb[134].mxu0  ;;  %3976 = vmatprep.mubr.bf16.mxu1 %v3432_v5 }
 0x515   : > { %v3223_v17 = vadd.f32 %v3222_v11, %v10956_v45  ;;  %v3224_v18 = vpop.f32.mrb[135].mxu0  ;;  %3977 = vmatmul.mubr.bf16.vlgmr.msra.gmra.mrb[128].mxu1 %v3431_v2  ;;  %v3371_v21 = vmax.f32 %v3219_v6, 0.0  ;;  %v9578_v6 = vld [vmem:[%s10239_s12 + $0xc0] ss:$8 sps:$4 sm:$0xff]   ;;  %v9583_v11 = vld [vmem:[%s10239_s12 + $0xd4] ss:$8 sps:$4 sm:$0xff]  }
 0x516   : > { %v3225_v20 = vadd.f32 %v3224_v18, %v10959_v46  ;;  %v3372_v23 = vmax.f32 %v3221_v9, 0.0  ;;  %4538 = vmatpush1.bf16.msra.mxu0 %v9578_v6 }
 0x517   : > { %v3373_v22 = vmax.f32 %v3223_v17, 0.0  ;;  %4539 = vmatprep.subr.bf16.mxu0 %v9583_v11 }
 0x518   : > { %v3374_v24 = vmax.f32 %v3225_v20, 0.0 }
 0x519   : > { %v3433_v26 = vpack.c.bf16 %v3373_v22, %v3371_v21  ;;  %v9581_v21 = vld [vmem:[%s10239_s12 + $0xd0] ss:$8 sps:$4 sm:$0xff]  }
 0x51a   : > { %v3228_v28 = vpop.f32.mrb[136].mxu0  ;;  %v3434_v29 = vpack.c.bf16 %v3374_v24, %v3372_v23  ;;  %v9586_v23 = vld [vmem:[%s10239_s12 + $0xe4] ss:$8 sps:$4 sm:$0xff]   ;;  %4540 = vmatpush1.bf16.msra.mxu0 %v9581_v21 }
 0x51b   : > { %v3229_v0 = vadd.f32 %v3228_v28, %v10956_v45  ;;  %v3230_v30 = vpop.f32.mrb[137].mxu0  ;;  %4541 = vmatprep.subr.bf16.mxu0 %v9586_v23 }
 0x51c   : > { %v3231_v31 = vadd.f32 %v3230_v30, %v10959_v46  ;;  %v3232_v32 = vpop.f32.mrb[138].mxu0  ;;  %3986 = vmatprep.mubr.bf16.mxu1 %v3434_v29 }
 0x51d   : > { %v3233_v34 = vadd.f32 %v3232_v32, %v10956_v45  ;;  %v3234_v35 = vpop.f32.mrb[139].mxu0  ;;  %3987 = vmatmul.mubr.bf16.gmra.mrb[132].mxu1 %v3433_v26  ;;  %v3375_v13 = vmax.f32 %v3229_v0, 0.0  ;;  %v9584_v0 = vld [vmem:[%s10239_s12 + $0xe0] ss:$8 sps:$4 sm:$0xff]  }
 0x51e   : > { %v3235_v37 = vadd.f32 %v3234_v35, %v10959_v46  ;;  %v3376_v39 = vmax.f32 %v3231_v31, 0.0  ;;  %4542 = vmatpush1.bf16.msra.mxu0 %v9584_v0 }
 0x51f   : > { %v3377_v38 = vmax.f32 %v3233_v34, 0.0 }
 0x520   : > { %v3378_v63 = vmax.f32 %v3235_v37, 0.0 }
 0x521   : > { %v3435_v40 = vpack.c.bf16 %v3377_v38, %v3375_v13 }
 0x522   : > { %v3238_v41 = vpop.f32.mrb[140].mxu0  ;;  %v3436_v44 = vpack.c.bf16 %v3378_v63, %v3376_v39 }
 0x523   : > { %v3239_v47 = vadd.f32 %v3238_v41, %v10956_v45  ;;  %v3240_v12 = vpop.f32.mrb[141].mxu0 }
 0x524   : > { %v3241_v48 = vadd.f32 %v3240_v12, %v10959_v46  ;;  %v3242_v15 = vpop.f32.mrb[142].mxu0  ;;  %3996 = vmatprep.mubr.bf16.mxu1 %v3436_v44 }
 0x525   : > { %v3243_v50 = vadd.f32 %v3242_v15, %v10956_v45  ;;  %v3244_v51 = vpop.f32.mrb[143].mxu0  ;;  %3997 = vmatmul.mubr.bf16.gmra.mrb[136].mxu1 %v3435_v40  ;;  %v3379_v54 = vmax.f32 %v3239_v47, 0.0 }
 0x526   : > { %v3245_v53 = vadd.f32 %v3244_v51, %v10959_v46  ;;  %v3380_v56 = vmax.f32 %v3241_v48, 0.0 }
 0x527   : > { %v3381_v55 = vmax.f32 %v3243_v50, 0.0 }
 0x528   : > { %v3382_v57 = vmax.f32 %v3245_v53, 0.0 }
 0x529   : > { %v3437_v59 = vpack.c.bf16 %v3381_v55, %v3379_v54 }
 0x52a   : > { %v3248_v61 = vpop.f32.mrb[144].mxu0  ;;  %v3438_v62 = vpack.c.bf16 %v3382_v57, %v3380_v56 }
 0x52b   : > { %v3249_v2 = vadd.f32 %v3248_v61, %v10956_v45  ;;  %v3250_v3 = vpop.f32.mrb[145].mxu0 }
 0x52c   : > { %v3251_v42 = vadd.f32 %v3250_v3, %v10959_v46  ;;  %v3252_v5 = vpop.f32.mrb[146].mxu0  ;;  %4006 = vmatprep.mubr.bf16.mxu1 %v3438_v62 }
 0x52d   : > { %v3253_v43 = vadd.f32 %v3252_v5, %v10956_v45  ;;  %v3254_v9 = vpop.f32.mrb[147].mxu0  ;;  %4007 = vmatmul.mubr.bf16.gmra.mrb[140].mxu1 %v3437_v59  ;;  %v3383_v17 = vmax.f32 %v3249_v2, 0.0 }
 0x52e   : > { %v3255_v16 = vadd.f32 %v3254_v9, %v10959_v46  ;;  %v3384_v19 = vmax.f32 %v3251_v42, 0.0 }
 0x52f   : > { %v3385_v18 = vmax.f32 %v3253_v43, 0.0 }
 0x530   : > { %v3386_v20 = vmax.f32 %v3255_v16, 0.0 }
 0x531   : > { %v3439_v22 = vpack.c.bf16 %v3385_v18, %v3383_v17 }
 0x532   : > { %v3258_v24 = vpop.f32.mrb[148].mxu0  ;;  %v3440_v25 = vpack.c.bf16 %v3386_v20, %v3384_v19 }
 0x533   : > { %v3259_v26 = vadd.f32 %v3258_v24, %v10956_v45  ;;  %v3260_v27 = vpop.f32.mrb[149].mxu0 }
 0x534   : > { %v3261_v28 = vadd.f32 %v3260_v27, %v10959_v46  ;;  %v3262_v29 = vpop.f32.mrb[150].mxu0  ;;  %4016 = vmatprep.mubr.bf16.mxu1 %v3440_v25 }
 0x535   : > { %v3263_v30 = vadd.f32 %v3262_v29, %v10956_v45  ;;  %v3264_v31 = vpop.f32.mrb[151].mxu0  ;;  %4017 = vmatmul.mubr.bf16.gmra.mrb[144].mxu1 %v3439_v22  ;;  %v3387_v33 = vmax.f32 %v3259_v26, 0.0 }
 0x536   : > { %v3265_v32 = vadd.f32 %v3264_v31, %v10959_v46  ;;  %v3388_v35 = vmax.f32 %v3261_v28, 0.0 }
 0x537   : > { %v3389_v34 = vmax.f32 %v3263_v30, 0.0 }
 0x538   : > { %v3390_v36 = vmax.f32 %v3265_v32, 0.0 }
 0x539   : > { %v3441_v37 = vpack.c.bf16 %v3389_v34, %v3387_v33 }
 0x53a   : > { %v3268_v13 = vpop.f32.mrb[152].mxu0  ;;  %v3442_v38 = vpack.c.bf16 %v3390_v36, %v3388_v35 }
 0x53b   : > { %v3269_v39 = vadd.f32 %v3268_v13, %v10956_v45  ;;  %v3270_v63 = vpop.f32.mrb[153].mxu0 }
 0x53c   : > { %v3271_v14 = vadd.f32 %v3270_v63, %v10959_v46  ;;  %v3272_v40 = vpop.f32.mrb[154].mxu0  ;;  %4026 = vmatprep.mubr.bf16.mxu1 %v3442_v38 }
 0x53d   : > { %v3273_v1 = vadd.f32 %v3272_v40, %v10956_v45  ;;  %v3274_v41 = vpop.f32.mrb[155].mxu0  ;;  %4027 = vmatmul.mubr.bf16.gmra.mrb[148].mxu1 %v3441_v37  ;;  %v3391_v47 = vmax.f32 %v3269_v39, 0.0 }
 0x53e   : > { %v3275_v44 = vadd.f32 %v3274_v41, %v10959_v46  ;;  %v3392_v48 = vmax.f32 %v3271_v14, 0.0 }
 0x53f   : > { %v3393_v12 = vmax.f32 %v3273_v1, 0.0 }
 0x540   : > { %v3394_v15 = vmax.f32 %v3275_v44, 0.0 }
 0x541   : > { %v3443_v49 = vpack.c.bf16 %v3393_v12, %v3391_v47 }
 0x542   : > { %v3278_v50 = vpop.f32.mrb[156].mxu0  ;;  %v3444_v51 = vpack.c.bf16 %v3394_v15, %v3392_v48 }
 0x543   : > { %v3279_v52 = vadd.f32 %v3278_v50, %v10956_v45  ;;  %v3280_v53 = vpop.f32.mrb[157].mxu0 }
 0x544   : > { %v3281_v54 = vadd.f32 %v3280_v53, %v10959_v46  ;;  %v3282_v55 = vpop.f32.mrb[158].mxu0  ;;  %4036 = vmatprep.mubr.bf16.mxu1 %v3444_v51 }
 0x545   : > { %v3283_v56 = vadd.f32 %v3282_v55, %v10956_v45  ;;  %v3284_v57 = vpop.f32.mrb[159].mxu0  ;;  %4037 = vmatmul.mubr.bf16.gmra.mrb[152].mxu1 %v3443_v49  ;;  %v3395_v59 = vmax.f32 %v3279_v52, 0.0 }
 0x546   : > { %v3285_v58 = vadd.f32 %v3284_v57, %v10959_v46  ;;  %v3396_v61 = vmax.f32 %v3281_v54, 0.0 }
 0x547   : > { %v3397_v60 = vmax.f32 %v3283_v56, 0.0 }
 0x548   : > { %v3398_v62 = vmax.f32 %v3285_v58, 0.0 }
 0x549   : > { %v3445_v2 = vpack.c.bf16 %v3397_v60, %v3395_v59 }
 0x54a   : > { %v3288_v3 = vpop.f32.mrb[160].mxu0  ;;  %v3446_v42 = vpack.c.bf16 %v3398_v62, %v3396_v61 }
 0x54b   : > { %v3289_v5 = vadd.f32 %v3288_v3, %v10956_v45  ;;  %v3290_v6 = vpop.f32.mrb[161].mxu0 }
 0x54c   : > { %v3291_v43 = vadd.f32 %v3290_v6, %v10959_v46  ;;  %v3292_v9 = vpop.f32.mrb[162].mxu0  ;;  %4046 = vmatprep.mubr.bf16.mxu1 %v3446_v42 }
 0x54d   : > { %v3293_v11 = vadd.f32 %v3292_v9, %v10956_v45  ;;  %v3294_v16 = vpop.f32.mrb[163].mxu0  ;;  %4047 = vmatmul.mubr.bf16.gmra.mrb[156].mxu1 %v3445_v2  ;;  %v3399_v18 = vmax.f32 %v3289_v5, 0.0 }
 0x54e   : > { %v3295_v17 = vadd.f32 %v3294_v16, %v10959_v46  ;;  %v3400_v20 = vmax.f32 %v3291_v43, 0.0 }
 0x54f   : > { %v3401_v19 = vmax.f32 %v3293_v11, 0.0  ;;  %v9589_v11 = vld [vmem:[%s10239_s12 + $0xf4] ss:$8 sps:$4 sm:$0xff]  }
 0x550   : > { %v3402_v21 = vmax.f32 %v3295_v17, 0.0  ;;  %v9587_v17 = vld [vmem:[%s10239_s12 + $0xf0] ss:$8 sps:$4 sm:$0xff]   ;;  %4543 = vmatprep.subr.bf16.mxu0 %v9589_v11 }
 0x551   : > { %v3447_v22 = vpack.c.bf16 %v3401_v19, %v3399_v18  ;;  %4544 = vmatpush1.bf16.msra.mxu0 %v9587_v17 }
 0x552   : > { %v3298_v23 = vpop.f32.mrb[164].mxu0  ;;  %v3448_v24 = vpack.c.bf16 %v3402_v21, %v3400_v20 }
 0x553   : > { %v3299_v25 = vadd.f32 %v3298_v23, %v10956_v45  ;;  %v3300_v26 = vpop.f32.mrb[165].mxu0 }
 0x554   : > { %v3301_v27 = vadd.f32 %v3300_v26, %v10959_v46  ;;  %v3302_v28 = vpop.f32.mrb[166].mxu0  ;;  %4056 = vmatprep.mubr.bf16.mxu1 %v3448_v24 }
 0x555   : > { %v3303_v29 = vadd.f32 %v3302_v28, %v10956_v45  ;;  %v3304_v0 = vpop.f32.mrb[167].mxu0  ;;  %4057 = vmatmul.mubr.bf16.gmra.mrb[160].mxu1 %v3447_v22  ;;  %v3403_v31 = vmax.f32 %v3299_v25, 0.0 }
 0x556   : > { %v3305_v30 = vadd.f32 %v3304_v0, %v10959_v46  ;;  %v3404_v33 = vmax.f32 %v3301_v27, 0.0 }
 0x557   : > { %v3405_v32 = vmax.f32 %v3303_v29, 0.0 }
 0x558   : > { %v3406_v34 = vmax.f32 %v3305_v30, 0.0 }
 0x559   : > { %v3449_v35 = vpack.c.bf16 %v3405_v32, %v3403_v31 }
 0x55a   : > { %v3308_v36 = vpop.f32.mrb[168].mxu0  ;;  %v3450_v37 = vpack.c.bf16 %v3406_v34, %v3404_v33 }
 0x55b   : > { %v3309_v13 = vadd.f32 %v3308_v36, %v10956_v45  ;;  %v3310_v38 = vpop.f32.mrb[169].mxu0 }
 0x55c   : > { %v3311_v39 = vadd.f32 %v3310_v38, %v10959_v46  ;;  %v3312_v63 = vpop.f32.mrb[170].mxu0  ;;  %4066 = vmatprep.mubr.bf16.mxu1 %v3450_v37 }
 0x55d   : > { %v3313_v14 = vadd.f32 %v3312_v63, %v10956_v45  ;;  %v3314_v40 = vpop.f32.mrb[171].mxu0  ;;  %4067 = vmatmul.mubr.bf16.gmra.mrb[164].mxu1 %v3449_v35  ;;  %v3407_v41 = vmax.f32 %v3309_v13, 0.0 }
 0x55e   : > { %v3315_v1 = vadd.f32 %v3314_v40, %v10959_v46  ;;  %v3408_v47 = vmax.f32 %v3311_v39, 0.0 }
 0x55f   : > { %v3409_v44 = vmax.f32 %v3313_v14, 0.0 }
 0x560   : > { %v3410_v12 = vmax.f32 %v3315_v1, 0.0 }
 0x561   : > { %v3451_v48 = vpack.c.bf16 %v3409_v44, %v3407_v41 }
 0x562   : > { %v3318_v15 = vpop.f32.mrb[172].mxu0  ;;  %v3452_v49 = vpack.c.bf16 %v3410_v12, %v3408_v47 }
 0x563   : > { %v3319_v50 = vadd.f32 %v3318_v15, %v10956_v45  ;;  %v3320_v51 = vpop.f32.mrb[173].mxu0 }
 0x564   : > { %v3321_v52 = vadd.f32 %v3320_v51, %v10959_v46  ;;  %v3322_v53 = vpop.f32.mrb[174].mxu0  ;;  %4076 = vmatprep.mubr.bf16.mxu1 %v3452_v49 }
 0x565   : > { %v3323_v54 = vadd.f32 %v3322_v53, %v10956_v45  ;;  %v3324_v55 = vpop.f32.mrb[175].mxu0  ;;  %4077 = vmatmul.mubr.bf16.gmra.mrb[168].mxu1 %v3451_v48  ;;  %v3411_v57 = vmax.f32 %v3319_v50, 0.0 }
 0x566   : > { %v3325_v56 = vadd.f32 %v3324_v55, %v10959_v46  ;;  %v3412_v59 = vmax.f32 %v3321_v52, 0.0 }
 0x567   : > { %v3413_v58 = vmax.f32 %v3323_v54, 0.0 }
 0x568   : > { %v3414_v60 = vmax.f32 %v3325_v56, 0.0 }
 0x569   : > { %v3453_v61 = vpack.c.bf16 %v3413_v58, %v3411_v57 }
 0x56a   : > { %v3328_v62 = vpop.f32.mrb[176].mxu0  ;;  %v3454_v2 = vpack.c.bf16 %v3414_v60, %v3412_v59 }
 0x56b   : > { %v3329_v3 = vadd.f32 %v3328_v62, %v10956_v45  ;;  %v3330_v42 = vpop.f32.mrb[177].mxu0 }
 0x56c   : > { %v3331_v5 = vadd.f32 %v3330_v42, %v10959_v46  ;;  %v3332_v6 = vpop.f32.mrb[178].mxu0  ;;  %4086 = vmatprep.mubr.bf16.mxu1 %v3454_v2  ;;  %v9592_v2 = vld [vmem:[%s12062_s28 + $0x4] ss:$8 sps:$4 sm:$0xff]  }
 0x56d   : > { %v3333_v43 = vadd.f32 %v3332_v6, %v10956_v45  ;;  %v3334_v9 = vpop.f32.mrb[179].mxu0  ;;  %4087 = vmatmul.mubr.bf16.gmra.mrb[172].mxu1 %v3453_v61  ;;  %v3415_v18 = vmax.f32 %v3329_v3, 0.0  ;;  %5006 = vmatprep.subr.bf16.mxu0 %v9592_v2  ;;  %v4137_v3 = vld [vmem:[%s12063_s2] sm:$0x3]  ;;  %s12072_s2 = sld [smem:[#allocation22_spill]] }
 0x56e   : > { %v3335_v16 = vadd.f32 %v3334_v9, %v10959_v46  ;;  %v3416_v20 = vmax.f32 %v3331_v5, 0.0  ;;  %v11054_v42 = vrot.slane %v4137_v3, %v10503_v8 }
 0x56f   : > { %v3417_v19 = vmax.f32 %v3333_v43, 0.0 }
 0x570   : > { %v3418_v21 = vmax.f32 %v3335_v16, 0.0 }
 0x571   : > { %v3455_v22 = vpack.c.bf16 %v3417_v19, %v3415_v18 }
 0x572   : > { %v3338_v23 = vpop.f32.mrb[180].mxu0  ;;  %v3456_v24 = vpack.c.bf16 %v3418_v21, %v3416_v20 }
 0x573   : > { %v3339_v25 = vadd.f32 %v3338_v23, %v10956_v45  ;;  %v3340_v26 = vpop.f32.mrb[181].mxu0 }
 0x574   : > { %v3341_v27 = vadd.f32 %v3340_v26, %v10959_v46  ;;  %v3342_v28 = vpop.f32.mrb[182].mxu0  ;;  %4096 = vmatprep.mubr.bf16.mxu1 %v3456_v24 }
 0x575   : > { %v3343_v29 = vadd.f32 %v3342_v28, %v10956_v45  ;;  %v3344_v0 = vpop.f32.mrb[183].mxu0  ;;  %4097 = vmatmul.mubr.bf16.gmra.mrb[176].mxu1 %v3455_v22  ;;  %v3419_v31 = vmax.f32 %v3339_v25, 0.0  ;;  %v9590_v25 = vld [vmem:[%s12062_s28] ss:$8 sps:$4 sm:$0xff]   ;;  %v9595_v28 = vld [vmem:[%s12062_s28 + $0x14] ss:$8 sps:$4 sm:$0xff]  }
 0x576   : > { %v3345_v30 = vadd.f32 %v3344_v0, %v10959_v46  ;;  %v3420_v33 = vmax.f32 %v3341_v27, 0.0 }
 0x577   : > { %v3421_v32 = vmax.f32 %v3343_v29, 0.0 }
 0x578   : > { %v3422_v34 = vmax.f32 %v3345_v30, 0.0 }
 0x579   : > { %v3457_v35 = vpack.c.bf16 %v3421_v32, %v3419_v31 }
 0x57a   : > { %v3348_v36 = vpop.f32.mrb[184].mxu0  ;;  %v3458_v37 = vpack.c.bf16 %v3422_v34, %v3420_v33  ;;  %v9593_v33 = vld [vmem:[%s12062_s28 + $0x10] ss:$8 sps:$4 sm:$0xff]  }
 0x57b   : > { %v3349_v13 = vadd.f32 %v3348_v36, %v10956_v45  ;;  %v3350_v38 = vpop.f32.mrb[185].mxu0  ;;  %v9598_v36 = vld [vmem:[%s12062_s28 + $0x24] ss:$8 sps:$4 sm:$0xff]  }
 0x57c   : > { %v3351_v39 = vadd.f32 %v3350_v38, %v10959_v46  ;;  %v3352_v63 = vpop.f32.mrb[186].mxu0  ;;  %4106 = vmatprep.mubr.bf16.mxu1 %v3458_v37 }
 0x57d   : > { %v3353_v14 = vadd.f32 %v3352_v63, %v10956_v45  ;;  %v3354_v40 = vpop.f32.mrb[187].mxu0  ;;  %4107 = vmatmul.mubr.bf16.gmra.mrb[180].mxu1 %v3457_v35  ;;  %v3423_v41 = vmax.f32 %v3349_v13, 0.0 }
 0x57e   : > { %v3355_v1 = vadd.f32 %v3354_v40, %v10959_v46  ;;  %v3424_v47 = vmax.f32 %v3351_v39, 0.0 }
 0x57f   : > { %v3425_v44 = vmax.f32 %v3353_v14, 0.0  ;;  %v9596_v14 = vld [vmem:[%s12062_s28 + $0x20] ss:$8 sps:$4 sm:$0xff]  }
 0x580   : > { %v3426_v12 = vmax.f32 %v3355_v1, 0.0 }
 0x581   : > { %v3459_v48 = vpack.c.bf16 %v3425_v44, %v3423_v41  ;;  %v9601_v41 = vld [vmem:[%s12062_s28 + $0x34] ss:$8 sps:$4 sm:$0xff]  }
 0x582   : > { %v3358_v15 = vpop.f32.mrb[188].mxu0  ;;  %v3460_v49 = vpack.c.bf16 %v3426_v12, %v3424_v47 }
 0x583   : > { %v3359_v50 = vadd.f32 %v3358_v15, %v10956_v45  ;;  %v3360_v51 = vpop.f32.mrb[189].mxu0 }
 0x584   : > { %v3361_v52 = vadd.f32 %v3360_v51, %v10959_v46  ;;  %v3362_v53 = vpop.f32.mrb[190].mxu0  ;;  %4116 = vmatprep.mubr.bf16.mxu1 %v3460_v49  ;;  %v9599_v49 = vld [vmem:[%s12062_s28 + $0x30] ss:$8 sps:$4 sm:$0xff]  }
 0x585   : > { %v3363_v54 = vadd.f32 %v3362_v53, %v10956_v45  ;;  %v3364_v55 = vpop.f32.mrb[191].mxu0  ;;  %4117 = vmatmul.mubr.bf16.gmra.mrb[184].mxu1 %v3459_v48  ;;  %v3427_v57 = vmax.f32 %v3359_v50, 0.0  ;;  %v11057_v45 = vrot.slane %v4137_v3, %v10507_v10 }
 0x586   : > { %v3365_v56 = vadd.f32 %v3364_v55, %v10959_v46  ;;  %v3428_v59 = vmax.f32 %v3361_v52, 0.0  ;;  %v9604_v52 = vld [vmem:[%s12062_s28 + $0x44] ss:$8 sps:$4 sm:$0xff]  }
 0x587   : > { %v3429_v58 = vmax.f32 %v3363_v54, 0.0 }
 0x588   : > { %v3430_v60 = vmax.f32 %v3365_v56, 0.0 }
 0x589   : > { %v3461_v61 = vpack.c.bf16 %v3429_v58, %v3427_v57  ;;  %v9602_v58 = vld [vmem:[%s12062_s28 + $0x40] ss:$8 sps:$4 sm:$0xff]  }
 0x58a   : > { %v3462_v62 = vpack.c.bf16 %v3430_v60, %v3428_v59 }
 0x58c   : > { %4126 = vmatprep.mubr.bf16.mxu1 %v3462_v62 }
 0x58d   : > { %4127 = vmatmul.mubr.bf16.gmra.mrb[188].mxu1 %v3461_v61  ;;  %v9607_v61 = vld [vmem:[%s12062_s28 + $0x54] ss:$8 sps:$4 sm:$0xff]  }
 0x5e8   : > { %v3978_v5 = vpop.f32.mrb[128].mxu1 }
 0x5e9   : > { %v4149_v46 = vadd.f32 %v11054_v42, %v3978_v5  ;;  %v3980_v6 = vpop.f32.mrb[129].mxu1 }
 0x5ea   : > { %v4150_v43 = vadd.f32 %v11057_v45, %v3980_v6  ;;  %v3982_v9 = vpop.f32.mrb[130].mxu1  ;;  %v9605_v6 = vld [vmem:[%s12062_s28 + $0x50] ss:$8 sps:$4 sm:$0xff]  }
 0x5eb   : > { %v4151_v11 = vadd.f32 %v11054_v42, %v3982_v9  ;;  %v3984_v16 = vpop.f32.mrb[131].mxu1  ;;  %v4213_v18 = vmax.f32 %v4149_v46, 0.0 }
 0x5ec   : > { %v4152_v17 = vadd.f32 %v11057_v45, %v3984_v16  ;;  %v4214_v20 = vmax.f32 %v4150_v43, 0.0 }
 0x5ed   : > { %v4215_v19 = vmax.f32 %v4151_v11, 0.0  ;;  %v9610_v11 = vld [vmem:[%s12062_s28 + $0x64] ss:$8 sps:$4 sm:$0xff]  }
 0x5ee   : > { %v4216_v21 = vmax.f32 %v4152_v17, 0.0 }
 0x5ef   : > { %v4277_v22 = vpack.c.bf16 %v4215_v19, %v4213_v18 }
 0x5f0   : > { %v3988_v23 = vpop.f32.mrb[132].mxu1  ;;  %v4278_v24 = vpack.c.bf16 %v4216_v21, %v4214_v20  ;;  %v9608_v21 = vld [vmem:[%s12062_s28 + $0x60] ss:$8 sps:$4 sm:$0xff]  }
 0x5f1   : > { %v4153_v26 = vadd.f32 %v11054_v42, %v3988_v23  ;;  %v3990_v27 = vpop.f32.mrb[133].mxu1 }
 0x5f2   : > { %v4154_v29 = vadd.f32 %v11057_v45, %v3990_v27  ;;  %v3992_v0 = vpop.f32.mrb[134].mxu1  ;;  %4545 = vmatprep.mubr.bf16.mxu0 %v4278_v24  ;;  %v9613_v24 = vld [vmem:[%s12062_s28 + $0x74] ss:$8 sps:$4 sm:$0xff]  }
 0x5f3   : > { %v4155_v30 = vadd.f32 %v11054_v42, %v3992_v0  ;;  %v3994_v31 = vpop.f32.mrb[135].mxu1  ;;  %4546 = vmatmul.mubr.bf16.vlgmr.msra.gmra.mrb[192].mxu0 %v4277_v22  ;;  %v4217_v34 = vmax.f32 %v4153_v26, 0.0  ;;  %v9611_v0 = vld [vmem:[%s12062_s28 + $0x70] ss:$8 sps:$4 sm:$0xff]  }
 0x5f4   : > { %v4156_v32 = vadd.f32 %v11057_v45, %v3994_v31  ;;  %5007 = vmatpush1.bf16.msra.mxu0 %v9590_v25  ;;  %v4218_v37 = vmax.f32 %v4154_v29, 0.0 }
 0x5f5   : > { %v4219_v35 = vmax.f32 %v4155_v30, 0.0  ;;  %5008 = vmatprep.subr.bf16.mxu0 %v9595_v28 }
 0x5f6   : > { %v4220_v13 = vmax.f32 %v4156_v32, 0.0  ;;  %v9616_v32 = vld [vmem:[%s12062_s28 + $0x84] ss:$8 sps:$4 sm:$0xff]  }
 0x5f7   : > { %v4279_v38 = vpack.c.bf16 %v4219_v35, %v4217_v34 }
 0x5f8   : > { %v3998_v39 = vpop.f32.mrb[136].mxu1  ;;  %v4280_v63 = vpack.c.bf16 %v4220_v13, %v4218_v37  ;;  %5009 = vmatpush1.bf16.msra.mxu0 %v9593_v33  ;;  %v9614_v13 = vld [vmem:[%s12062_s28 + $0x80] ss:$8 sps:$4 sm:$0xff]  }
 0x5f9   : > { %v4157_v40 = vadd.f32 %v11054_v42, %v3998_v39  ;;  %v4000_v1 = vpop.f32.mrb[137].mxu1  ;;  %5010 = vmatprep.subr.bf16.mxu0 %v9598_v36 }
 0x5fa   : > { %v4158_v44 = vadd.f32 %v11057_v45, %v4000_v1  ;;  %v4002_v47 = vpop.f32.mrb[138].mxu1  ;;  %4555 = vmatprep.mubr.bf16.mxu0 %v4280_v63  ;;  %v9619_v63 = vld [vmem:[%s12062_s28 + $0x94] ss:$8 sps:$4 sm:$0xff]  }
 0x5fb   : > { %v4159_v12 = vadd.f32 %v11054_v42, %v4002_v47  ;;  %v4004_v48 = vpop.f32.mrb[139].mxu1  ;;  %4556 = vmatmul.mubr.bf16.gmra.mrb[196].mxu0 %v4279_v38  ;;  %v4221_v50 = vmax.f32 %v4157_v40, 0.0  ;;  %v9617_v47 = vld [vmem:[%s12062_s28 + $0x90] ss:$8 sps:$4 sm:$0xff]  }
 0x5fc   : > { %v4160_v15 = vadd.f32 %v11057_v45, %v4004_v48  ;;  %5011 = vmatpush1.bf16.msra.mxu0 %v9596_v14  ;;  %v4222_v53 = vmax.f32 %v4158_v44, 0.0 }
 0x5fd   : > { %v4223_v51 = vmax.f32 %v4159_v12, 0.0  ;;  %5012 = vmatprep.subr.bf16.mxu0 %v9601_v41 }
 0x5fe   : > { %v4224_v54 = vmax.f32 %v4160_v15, 0.0  ;;  %v9622_v15 = vld [vmem:[%s12062_s28 + $0xa4] ss:$8 sps:$4 sm:$0xff]  }
 0x5ff   : > { %v4281_v55 = vpack.c.bf16 %v4223_v51, %v4221_v50 }
 0x600   : > { %v4008_v56 = vpop.f32.mrb[140].mxu1  ;;  %v4282_v57 = vpack.c.bf16 %v4224_v54, %v4222_v53  ;;  %5013 = vmatpush1.bf16.msra.mxu0 %v9599_v49  ;;  %v9620_v54 = vld [vmem:[%s12062_s28 + $0xa0] ss:$8 sps:$4 sm:$0xff]  }
 0x601   : > { %v4161_v59 = vadd.f32 %v11054_v42, %v4008_v56  ;;  %v4010_v60 = vpop.f32.mrb[141].mxu1  ;;  %5014 = vmatprep.subr.bf16.mxu0 %v9604_v52 }
 0x602   : > { %v4162_v62 = vadd.f32 %v11057_v45, %v4010_v60  ;;  %v4012_v2 = vpop.f32.mrb[142].mxu1  ;;  %4565 = vmatprep.mubr.bf16.mxu0 %v4282_v57  ;;  %v9625_v57 = vld [vmem:[%s12062_s28 + $0xb4] ss:$8 sps:$4 sm:$0xff]  }
 0x603   : > { %v4163_v3 = vadd.f32 %v11054_v42, %v4012_v2  ;;  %v4014_v5 = vpop.f32.mrb[143].mxu1  ;;  %4566 = vmatmul.mubr.bf16.gmra.mrb[200].mxu0 %v4281_v55  ;;  %v4225_v43 = vmax.f32 %v4161_v59, 0.0  ;;  %v9623_v2 = vld [vmem:[%s12062_s28 + $0xb0] ss:$8 sps:$4 sm:$0xff]  }
 0x604   : > { %v4164_v46 = vadd.f32 %v11057_v45, %v4014_v5  ;;  %5015 = vmatpush1.bf16.msra.mxu0 %v9602_v58  ;;  %v4226_v16 = vmax.f32 %v4162_v62, 0.0 }
 0x605   : > { %v4227_v9 = vmax.f32 %v4163_v3, 0.0  ;;  %5016 = vmatprep.subr.bf16.mxu0 %v9607_v61 }
 0x606   : > { %v4228_v17 = vmax.f32 %v4164_v46, 0.0  ;;  %v9628_v46 = vld [vmem:[%s12062_s28 + $0xc4] ss:$8 sps:$4 sm:$0xff]  }
 0x607   : > { %v4283_v18 = vpack.c.bf16 %v4227_v9, %v4225_v43 }
 0x608   : > { %v4018_v19 = vpop.f32.mrb[144].mxu1  ;;  %v4284_v20 = vpack.c.bf16 %v4228_v17, %v4226_v16  ;;  %5017 = vmatpush1.bf16.msra.mxu0 %v9605_v6  ;;  %v9626_v17 = vld [vmem:[%s12062_s28 + $0xc0] ss:$8 sps:$4 sm:$0xff]  }
 0x609   : > { %v4165_v22 = vadd.f32 %v11054_v42, %v4018_v19  ;;  %v4020_v23 = vpop.f32.mrb[145].mxu1  ;;  %5018 = vmatprep.subr.bf16.mxu0 %v9610_v11 }
 0x60a   : > { %v4166_v25 = vadd.f32 %v11057_v45, %v4020_v23  ;;  %v4022_v26 = vpop.f32.mrb[146].mxu1  ;;  %4575 = vmatprep.mubr.bf16.mxu0 %v4284_v20  ;;  %v9631_v20 = vld [vmem:[%s12062_s28 + $0xd4] ss:$8 sps:$4 sm:$0xff]  }
 0x60b   : > { %v4167_v27 = vadd.f32 %v11054_v42, %v4022_v26  ;;  %v4024_v28 = vpop.f32.mrb[147].mxu1  ;;  %4576 = vmatmul.mubr.bf16.gmra.mrb[204].mxu0 %v4283_v18  ;;  %v4229_v30 = vmax.f32 %v4165_v22, 0.0  ;;  %v9629_v26 = vld [vmem:[%s12062_s28 + $0xd0] ss:$8 sps:$4 sm:$0xff]  }
 0x60c   : > { %v4168_v29 = vadd.f32 %v11057_v45, %v4024_v28  ;;  %5019 = vmatpush1.bf16.msra.mxu0 %v9608_v21  ;;  %v4230_v33 = vmax.f32 %v4166_v25, 0.0 }
 0x60d   : > { %v4231_v31 = vmax.f32 %v4167_v27, 0.0  ;;  %5020 = vmatprep.subr.bf16.mxu0 %v9613_v24 }
 0x60e   : > { %v4232_v34 = vmax.f32 %v4168_v29, 0.0  ;;  %v9634_v29 = vld [vmem:[%s12062_s28 + $0xe4] ss:$8 sps:$4 sm:$0xff]  }
 0x60f   : > { %v4285_v35 = vpack.c.bf16 %v4231_v31, %v4229_v30 }
 0x610   : > { %v4028_v36 = vpop.f32.mrb[148].mxu1  ;;  %v4286_v37 = vpack.c.bf16 %v4232_v34, %v4230_v33  ;;  %5021 = vmatpush1.bf16.msra.mxu0 %v9611_v0  ;;  %v9632_v34 = vld [vmem:[%s12062_s28 + $0xe0] ss:$8 sps:$4 sm:$0xff]  }
 0x611   : > { %v4169_v38 = vadd.f32 %v11054_v42, %v4028_v36  ;;  %v4030_v39 = vpop.f32.mrb[149].mxu1  ;;  %5022 = vmatprep.subr.bf16.mxu0 %v9616_v32 }
 0x612   : > { %v4170_v14 = vadd.f32 %v11057_v45, %v4030_v39  ;;  %v4032_v40 = vpop.f32.mrb[150].mxu1  ;;  %4585 = vmatprep.mubr.bf16.mxu0 %v4286_v37 }
 0x613   : > { %v4171_v1 = vadd.f32 %v11054_v42, %v4032_v40  ;;  %v4034_v41 = vpop.f32.mrb[151].mxu1  ;;  %4586 = vmatmul.mubr.bf16.gmra.mrb[208].mxu0 %v4285_v35  ;;  %v4233_v12 = vmax.f32 %v4169_v38, 0.0 }
 0x614   : > { %v4172_v44 = vadd.f32 %v11057_v45, %v4034_v41  ;;  %5023 = vmatpush1.bf16.msra.mxu0 %v9614_v13  ;;  %v4234_v49 = vmax.f32 %v4170_v14, 0.0 }
 0x615   : > { %v4235_v48 = vmax.f32 %v4171_v1, 0.0  ;;  %5024 = vmatprep.subr.bf16.mxu0 %v9619_v63 }
 0x616   : > { %v4236_v50 = vmax.f32 %v4172_v44, 0.0 }
 0x617   : > { %v4287_v51 = vpack.c.bf16 %v4235_v48, %v4233_v12 }
 0x618   : > { %v4038_v52 = vpop.f32.mrb[152].mxu1  ;;  %v4288_v53 = vpack.c.bf16 %v4236_v50, %v4234_v49  ;;  %5025 = vmatpush1.bf16.msra.mxu0 %v9617_v47 }
 0x619   : > { %v4173_v55 = vadd.f32 %v11054_v42, %v4038_v52  ;;  %v4040_v56 = vpop.f32.mrb[153].mxu1  ;;  %5026 = vmatprep.subr.bf16.mxu0 %v9622_v15 }
 0x61a   : > { %v4174_v58 = vadd.f32 %v11057_v45, %v4040_v56  ;;  %v4042_v59 = vpop.f32.mrb[154].mxu1  ;;  %4595 = vmatprep.mubr.bf16.mxu0 %v4288_v53 }
 0x61b   : > { %v4175_v60 = vadd.f32 %v11054_v42, %v4042_v59  ;;  %v4044_v61 = vpop.f32.mrb[155].mxu1  ;;  %4596 = vmatmul.mubr.bf16.gmra.mrb[212].mxu0 %v4287_v51  ;;  %v4237_v3 = vmax.f32 %v4173_v55, 0.0 }
 0x61c   : > { %v4176_v62 = vadd.f32 %v11057_v45, %v4044_v61  ;;  %5027 = vmatpush1.bf16.msra.mxu0 %v9620_v54  ;;  %v4238_v6 = vmax.f32 %v4174_v58, 0.0 }
 0x61d   : > { %v4239_v5 = vmax.f32 %v4175_v60, 0.0  ;;  %5028 = vmatprep.subr.bf16.mxu0 %v9625_v57 }
 0x61e   : > { %v4240_v43 = vmax.f32 %v4176_v62, 0.0 }
 0x61f   : > { %v4289_v9 = vpack.c.bf16 %v4239_v5, %v4237_v3 }
 0x620   : > { %v4048_v11 = vpop.f32.mrb[156].mxu1  ;;  %v4290_v16 = vpack.c.bf16 %v4240_v43, %v4238_v6  ;;  %5029 = vmatpush1.bf16.msra.mxu0 %v9623_v2 }
 0x621   : > { %v4177_v18 = vadd.f32 %v11054_v42, %v4048_v11  ;;  %v4050_v19 = vpop.f32.mrb[157].mxu1  ;;  %5030 = vmatprep.subr.bf16.mxu0 %v9628_v46 }
 0x622   : > { %v4178_v21 = vadd.f32 %v11057_v45, %v4050_v19  ;;  %v4052_v22 = vpop.f32.mrb[158].mxu1  ;;  %4605 = vmatprep.mubr.bf16.mxu0 %v4290_v16 }
 0x623   : > { %v4179_v23 = vadd.f32 %v11054_v42, %v4052_v22  ;;  %v4054_v24 = vpop.f32.mrb[159].mxu1  ;;  %4606 = vmatmul.mubr.bf16.gmra.mrb[216].mxu0 %v4289_v9  ;;  %v4241_v27 = vmax.f32 %v4177_v18, 0.0 }
 0x624   : > { %v4180_v25 = vadd.f32 %v11057_v45, %v4054_v24  ;;  %5031 = vmatpush1.bf16.msra.mxu0 %v9626_v17  ;;  %v4242_v0 = vmax.f32 %v4178_v21, 0.0 }
 0x625   : > { %v4243_v28 = vmax.f32 %v4179_v23, 0.0  ;;  %5032 = vmatprep.subr.bf16.mxu0 %v9631_v20 }
 0x626   : > { %v4244_v30 = vmax.f32 %v4180_v25, 0.0 }
 0x627   : > { %v4291_v31 = vpack.c.bf16 %v4243_v28, %v4241_v27 }
 0x628   : > { %v4058_v32 = vpop.f32.mrb[160].mxu1  ;;  %v4292_v33 = vpack.c.bf16 %v4244_v30, %v4242_v0  ;;  %5033 = vmatpush1.bf16.msra.mxu0 %v9629_v26 }
 0x629   : > { %v4181_v35 = vadd.f32 %v11054_v42, %v4058_v32  ;;  %v4060_v36 = vpop.f32.mrb[161].mxu1  ;;  %5034 = vmatprep.subr.bf16.mxu0 %v9634_v29 }
 0x62a   : > { %v4182_v37 = vadd.f32 %v11057_v45, %v4060_v36  ;;  %v4062_v13 = vpop.f32.mrb[162].mxu1  ;;  %4615 = vmatprep.mubr.bf16.mxu0 %v4292_v33 }
 0x62b   : > { %v4183_v38 = vadd.f32 %v11054_v42, %v4062_v13  ;;  %v4064_v39 = vpop.f32.mrb[163].mxu1  ;;  %4616 = vmatmul.mubr.bf16.gmra.mrb[220].mxu0 %v4291_v31  ;;  %v4245_v14 = vmax.f32 %v4181_v35, 0.0 }
 0x62c   : > { %v4184_v63 = vadd.f32 %v11057_v45, %v4064_v39  ;;  %5035 = vmatpush1.bf16.msra.mxu0 %v9632_v34  ;;  %v4246_v1 = vmax.f32 %v4182_v37, 0.0 }
 0x62d   : > { %v4247_v40 = vmax.f32 %v4183_v38, 0.0  ;;  %v9637_v38 = vld [vmem:[%s12062_s28 + $0xf4] ss:$8 sps:$4 sm:$0xff]  }
 0x62e   : > { %v4248_v41 = vmax.f32 %v4184_v63, 0.0  ;;  %v9635_v63 = vld [vmem:[%s12062_s28 + $0xf0] ss:$8 sps:$4 sm:$0xff]   ;;  %5036 = vmatprep.subr.bf16.mxu0 %v9637_v38 }
 0x62f   : > { %v4293_v44 = vpack.c.bf16 %v4247_v40, %v4245_v14 }
 0x630   : > { %v4294_v47 = vpack.c.bf16 %v4248_v41, %v4246_v1  ;;  %v4068_v12 = vpop.f32.mrb[164].mxu1  ;;  %5037 = vmatpush1.bf16.msra.mxu0 %v9635_v63  ;;  %v9649_v63 = vld [vmem:[%s12064_s22 + $0x34] ss:$8 sps:$4 sm:$0xff]  }
 0x631   : > { %v4185_v48 = vadd.f32 %v11054_v42, %v4068_v12  ;;  %v4070_v15 = vpop.f32.mrb[165].mxu1 }
 0x632   : > { %v4186_v49 = vadd.f32 %v11057_v45, %v4070_v15  ;;  %v4072_v50 = vpop.f32.mrb[166].mxu1  ;;  %4625 = vmatprep.mubr.bf16.mxu0 %v4294_v47 }
 0x633   : > { %v4187_v51 = vadd.f32 %v11054_v42, %v4072_v50  ;;  %v4074_v52 = vpop.f32.mrb[167].mxu1  ;;  %4626 = vmatmul.mubr.bf16.gmra.mrb[224].mxu0 %v4293_v44  ;;  %v4249_v54 = vmax.f32 %v4185_v48, 0.0 }
 0x634   : > { %v4188_v53 = vadd.f32 %v11057_v45, %v4074_v52  ;;  %v4250_v56 = vmax.f32 %v4186_v49, 0.0 }
 0x635   : > { %v4251_v55 = vmax.f32 %v4187_v51, 0.0 }
 0x636   : > { %v4252_v57 = vmax.f32 %v4188_v53, 0.0 }
 0x637   : > { %v4295_v58 = vpack.c.bf16 %v4251_v55, %v4249_v54 }
 0x638   : > { %v4296_v59 = vpack.c.bf16 %v4252_v57, %v4250_v56  ;;  %v4078_v60 = vpop.f32.mrb[168].mxu1 }
 0x639   : > { %v4189_v61 = vadd.f32 %v11054_v42, %v4078_v60  ;;  %v4080_v62 = vpop.f32.mrb[169].mxu1 }
 0x63a   : > { %v4190_v2 = vadd.f32 %v11057_v45, %v4080_v62  ;;  %v4082_v3 = vpop.f32.mrb[170].mxu1  ;;  %4635 = vmatprep.mubr.bf16.mxu0 %v4296_v59 }
 0x63b   : > { %v4191_v5 = vadd.f32 %v11054_v42, %v4082_v3  ;;  %v4084_v46 = vpop.f32.mrb[171].mxu1  ;;  %4636 = vmatmul.mubr.bf16.gmra.mrb[228].mxu0 %v4295_v58  ;;  %v4253_v43 = vmax.f32 %v4189_v61, 0.0 }
 0x63c   : > { %v4192_v6 = vadd.f32 %v11057_v45, %v4084_v46  ;;  %v4254_v11 = vmax.f32 %v4190_v2, 0.0 }
 0x63d   : > { %v4255_v9 = vmax.f32 %v4191_v5, 0.0 }
 0x63e   : > { %v4256_v16 = vmax.f32 %v4192_v6, 0.0 }
 0x63f   : > { %v4297_v17 = vpack.c.bf16 %v4255_v9, %v4253_v43 }
 0x640   : > { %v4298_v18 = vpack.c.bf16 %v4256_v16, %v4254_v11  ;;  %v4088_v19 = vpop.f32.mrb[172].mxu1 }
 0x641   : > { %v4193_v20 = vadd.f32 %v11054_v42, %v4088_v19  ;;  %v4090_v21 = vpop.f32.mrb[173].mxu1 }
 0x642   : > { %v4194_v22 = vadd.f32 %v11057_v45, %v4090_v21  ;;  %v4092_v23 = vpop.f32.mrb[174].mxu1  ;;  %4645 = vmatprep.mubr.bf16.mxu0 %v4298_v18 }
 0x643   : > { %v4195_v24 = vadd.f32 %v11054_v42, %v4092_v23  ;;  %v4094_v25 = vpop.f32.mrb[175].mxu1  ;;  %4646 = vmatmul.mubr.bf16.gmra.mrb[232].mxu0 %v4297_v17  ;;  %v4257_v27 = vmax.f32 %v4193_v20, 0.0 }
 0x644   : > { %v4196_v26 = vadd.f32 %v11057_v45, %v4094_v25  ;;  %v4258_v29 = vmax.f32 %v4194_v22, 0.0 }
 0x645   : > { %v4259_v28 = vmax.f32 %v4195_v24, 0.0 }
 0x646   : > { %v4260_v0 = vmax.f32 %v4196_v26, 0.0 }
 0x647   : > { %v4299_v30 = vpack.c.bf16 %v4259_v28, %v4257_v27 }
 0x648   : > { %v4300_v31 = vpack.c.bf16 %v4260_v0, %v4258_v29  ;;  %v4098_v32 = vpop.f32.mrb[176].mxu1 }
 0x649   : > { %v4197_v33 = vadd.f32 %v11054_v42, %v4098_v32  ;;  %v4100_v34 = vpop.f32.mrb[177].mxu1  ;;  %v9638_v32 = vld [vmem:[%s12064_s22] ss:$8 sps:$4 sm:$0xff]  }
 0x64a   : > { %v4198_v35 = vadd.f32 %v11057_v45, %v4100_v34  ;;  %v4102_v36 = vpop.f32.mrb[178].mxu1  ;;  %4655 = vmatprep.mubr.bf16.mxu0 %v4300_v31  ;;  %v9643_v34 = vld [vmem:[%s12064_s22 + $0x14] ss:$8 sps:$4 sm:$0xff]  }
 0x64b   : > { %v4199_v37 = vadd.f32 %v11054_v42, %v4102_v36  ;;  %v4104_v13 = vpop.f32.mrb[179].mxu1  ;;  %4656 = vmatmul.mubr.bf16.gmra.mrb[236].mxu0 %v4299_v30  ;;  %v4261_v14 = vmax.f32 %v4197_v33, 0.0  ;;  %v9641_v33 = vld [vmem:[%s12064_s22 + $0x10] ss:$8 sps:$4 sm:$0xff]   ;;  %v9646_v36 = vld [vmem:[%s12064_s22 + $0x24] ss:$8 sps:$4 sm:$0xff]  }
 0x64c   : > { %v4200_v39 = vadd.f32 %v11057_v45, %v4104_v13  ;;  %v4262_v1 = vmax.f32 %v4198_v35, 0.0  ;;  %v9644_v35 = vld [vmem:[%s12064_s22 + $0x20] ss:$8 sps:$4 sm:$0xff]  }
 0x64d   : > { %v4263_v40 = vmax.f32 %v4199_v37, 0.0 }
 0x64e   : > { %v4264_v41 = vmax.f32 %v4200_v39, 0.0  ;;  %v9647_v39 = vld [vmem:[%s12064_s22 + $0x30] ss:$8 sps:$4 sm:$0xff]  }
 0x64f   : > { %v4301_v44 = vpack.c.bf16 %v4263_v40, %v4261_v14 }
 0x650   : > { %v4302_v47 = vpack.c.bf16 %v4264_v41, %v4262_v1  ;;  %v4108_v12 = vpop.f32.mrb[180].mxu1 }
 0x651   : > { %v4201_v48 = vadd.f32 %v11054_v42, %v4108_v12  ;;  %v4110_v15 = vpop.f32.mrb[181].mxu1  ;;  %v9650_v12 = vld [vmem:[%s12064_s22 + $0x40] ss:$8 sps:$4 sm:$0xff]  }
 0x652   : > { %v4202_v49 = vadd.f32 %v11057_v45, %v4110_v15  ;;  %v4112_v50 = vpop.f32.mrb[182].mxu1  ;;  %4665 = vmatprep.mubr.bf16.mxu0 %v4302_v47 }
 0x653   : > { %v4203_v51 = vadd.f32 %v11054_v42, %v4112_v50  ;;  %v4114_v52 = vpop.f32.mrb[183].mxu1  ;;  %4666 = vmatmul.mubr.bf16.gmra.mrb[240].mxu0 %v4301_v44  ;;  %v4265_v54 = vmax.f32 %v4201_v48, 0.0  ;;  %v9652_v48 = vld [vmem:[%s12064_s22 + $0x44] ss:$8 sps:$4 sm:$0xff]  }
 0x654   : > { %v4204_v53 = vadd.f32 %v11057_v45, %v4114_v52  ;;  %v4266_v56 = vmax.f32 %v4202_v49, 0.0  ;;  %v9655_v49 = vld [vmem:[%s12064_s22 + $0x54] ss:$8 sps:$4 sm:$0xff]  }
 0x655   : > { %v4267_v55 = vmax.f32 %v4203_v51, 0.0 }
 0x656   : > { %v4268_v57 = vmax.f32 %v4204_v53, 0.0 }
 0x657   : > { %v4303_v58 = vpack.c.bf16 %v4267_v55, %v4265_v54  ;;  %v9653_v55 = vld [vmem:[%s12064_s22 + $0x50] ss:$8 sps:$4 sm:$0xff]  }
 0x658   : > { %v4304_v59 = vpack.c.bf16 %v4268_v57, %v4266_v56  ;;  %v4118_v60 = vpop.f32.mrb[184].mxu1 }
 0x659   : > { %v4205_v61 = vadd.f32 %v11054_v42, %v4118_v60  ;;  %v4120_v62 = vpop.f32.mrb[185].mxu1 }
 0x65a   : > { %v4206_v2 = vadd.f32 %v11057_v45, %v4120_v62  ;;  %v4122_v3 = vpop.f32.mrb[186].mxu1  ;;  %4675 = vmatprep.mubr.bf16.mxu0 %v4304_v59 }
 0x65b   : > { %v4207_v5 = vadd.f32 %v11054_v42, %v4122_v3  ;;  %v4124_v46 = vpop.f32.mrb[187].mxu1  ;;  %4676 = vmatmul.mubr.bf16.gmra.mrb[244].mxu0 %v4303_v58  ;;  %v4269_v43 = vmax.f32 %v4205_v61, 0.0  ;;  %v9658_v58 = vld [vmem:[%s12064_s22 + $0x64] ss:$8 sps:$4 sm:$0xff]  }
 0x65c   : > { %v4208_v6 = vadd.f32 %v11057_v45, %v4124_v46  ;;  %v4270_v11 = vmax.f32 %v4206_v2, 0.0 }
 0x65d   : > { %v4271_v9 = vmax.f32 %v4207_v5, 0.0  ;;  %v9656_v5 = vld [vmem:[%s12064_s22 + $0x60] ss:$8 sps:$4 sm:$0xff]  }
 0x65e   : > { %v4272_v16 = vmax.f32 %v4208_v6, 0.0  ;;  %v9661_v6 = vld [vmem:[%s12064_s22 + $0x74] ss:$8 sps:$4 sm:$0xff]  }
 0x65f   : > { %v4305_v17 = vpack.c.bf16 %v4271_v9, %v4269_v43 }
 0x660   : > { %v4306_v18 = vpack.c.bf16 %v4272_v16, %v4270_v11  ;;  %v4128_v19 = vpop.f32.mrb[188].mxu1 }
 0x661   : > { %v4209_v20 = vadd.f32 %v11054_v42, %v4128_v19  ;;  %v4130_v21 = vpop.f32.mrb[189].mxu1 }
 0x662   : > { %v4210_v22 = vadd.f32 %v11057_v45, %v4130_v21  ;;  %v4132_v23 = vpop.f32.mrb[190].mxu1  ;;  %4685 = vmatprep.mubr.bf16.mxu0 %v4306_v18  ;;  %v9659_v18 = vld [vmem:[%s12064_s22 + $0x70] ss:$8 sps:$4 sm:$0xff]   ;;  %v9664_v21 = vld [vmem:[%s12064_s22 + $0x84] ss:$8 sps:$4 sm:$0xff]  }
 0x663   : > { %v4211_v24 = vadd.f32 %v11054_v42, %v4132_v23  ;;  %v4134_v25 = vpop.f32.mrb[191].mxu1  ;;  %4686 = vmatmul.mubr.bf16.gmra.mrb[248].mxu0 %v4305_v17  ;;  %v4273_v27 = vmax.f32 %v4209_v20, 0.0  ;;  %v9640_v42 = vld [vmem:[%s12064_s22 + $0x4] ss:$8 sps:$4 sm:$0xff]  }
 0x664   : > { %v4212_v26 = vadd.f32 %v11057_v45, %v4134_v25  ;;  %v4274_v29 = vmax.f32 %v4210_v22, 0.0  ;;  %5499 = vmatprep.subr.bf16.mxu1 %v9640_v42  ;;  %v4341_v45 = vld [vmem:[%s12065_s18] sm:$0x3] }
 0x665   : > { %v4275_v28 = vmax.f32 %v4211_v24, 0.0  ;;  %5500 = vmatpush1.bf16.msra.mxu1 %v9638_v32  ;;  %v11162_v37 = vrot.slane %v4341_v45, %v10503_v8  ;;  %v11165_v13 = vrot.slane %v4341_v45, %v10507_v10 }
 0x666   : > { %v4276_v0 = vmax.f32 %v4212_v26, 0.0  ;;  %5501 = vmatprep.subr.bf16.mxu1 %v9643_v34  ;;  %v9665_v34 = vld [vmem:[%s12064_s22 + $0x90] ss:$8 sps:$4 sm:$0xff]  }
 0x667   : > { %v4307_v30 = vpack.c.bf16 %v4275_v28, %v4273_v27  ;;  %v9662_v28 = vld [vmem:[%s12064_s22 + $0x80] ss:$8 sps:$4 sm:$0xff]  }
 0x668   : > { %v4308_v31 = vpack.c.bf16 %v4276_v0, %v4274_v29  ;;  %v9667_v0 = vld [vmem:[%s12064_s22 + $0x94] ss:$8 sps:$4 sm:$0xff]  }
 0x669   : > { %5502 = vmatpush1.bf16.msra.mxu1 %v9641_v33 }
 0x66a   : > { %4695 = vmatprep.mubr.bf16.mxu0 %v4308_v31  ;;  %5503 = vmatprep.subr.bf16.mxu1 %v9646_v36  ;;  %v9670_v36 = vld [vmem:[%s12064_s22 + $0xa4] ss:$8 sps:$4 sm:$0xff]  }
 0x66b   : > { %4696 = vmatmul.mubr.bf16.gmra.mrb[252].mxu0 %v4307_v30 }
 0x66d   : > { %5504 = vmatpush1.bf16.msra.mxu1 %v9644_v35 }
 0x66e   : > { %5505 = vmatprep.subr.bf16.mxu1 %v9649_v63 }
 0x671   : > { %5506 = vmatpush1.bf16.msra.mxu1 %v9647_v39 }
 0x672   : > { %5507 = vmatprep.subr.bf16.mxu1 %v9652_v48 }
 0x675   : > { %5508 = vmatpush1.bf16.msra.mxu1 %v9650_v12 }
 0x676   : > { %5509 = vmatprep.subr.bf16.mxu1 %v9655_v49 }
 0x679   : > { %5510 = vmatpush1.bf16.msra.mxu1 %v9653_v55 }
 0x67a   : > { %5511 = vmatprep.subr.bf16.mxu1 %v9658_v58 }
 0x67d   : > { %5512 = vmatpush1.bf16.msra.mxu1 %v9656_v5 }
 0x67e   : > { %5513 = vmatprep.subr.bf16.mxu1 %v9661_v6 }
 0x681   : > { %5514 = vmatpush1.bf16.msra.mxu1 %v9659_v18 }
 0x682   : > { %5515 = vmatprep.subr.bf16.mxu1 %v9664_v21 }
 0x685   : > { %5516 = vmatpush1.bf16.msra.mxu1 %v9662_v28 }
 0x686   : > { %5517 = vmatprep.subr.bf16.mxu1 %v9667_v0 }
 0x689   : > { %5518 = vmatpush1.bf16.msra.mxu1 %v9665_v34 }
 0x68a   : > { %5519 = vmatprep.subr.bf16.mxu1 %v9670_v36 }
 0x6c6   : > { %v4547_v38 = vpop.f32.mrb[192].mxu0 }
 0x6c7   : > { %v4548_v14 = vadd.f32 %v4547_v38, %v11162_v37  ;;  %v4549_v40 = vpop.f32.mrb[193].mxu0 }
 0x6c8   : > { %v4550_v1 = vadd.f32 %v4549_v40, %v11165_v13  ;;  %v4551_v41 = vpop.f32.mrb[194].mxu0 }
 0x6c9   : > { %v4552_v44 = vadd.f32 %v4551_v41, %v11162_v37  ;;  %v4553_v47 = vpop.f32.mrb[195].mxu0  ;;  %v4706_v50 = vmax.f32 %v4548_v14, 0.0  ;;  %v9668_v41 = vld [vmem:[%s12064_s22 + $0xa0] ss:$8 sps:$4 sm:$0xff]  }
 0x6ca   : > { %v4554_v15 = vadd.f32 %v4553_v47, %v11165_v13  ;;  %v4707_v52 = vmax.f32 %v4550_v1, 0.0  ;;  %v9673_v47 = vld [vmem:[%s12064_s22 + $0xb4] ss:$8 sps:$4 sm:$0xff]   ;;  %5520 = vmatpush1.bf16.msra.mxu1 %v9668_v41 }
 0x6cb   : > { %v4708_v51 = vmax.f32 %v4552_v44, 0.0  ;;  %5521 = vmatprep.subr.bf16.mxu1 %v9673_v47 }
 0x6cc   : > { %v4709_v53 = vmax.f32 %v4554_v15, 0.0 }
 0x6cd   : > { %v4770_v54 = vpack.c.bf16 %v4708_v51, %v4706_v50  ;;  %v9671_v51 = vld [vmem:[%s12064_s22 + $0xb0] ss:$8 sps:$4 sm:$0xff]  }
 0x6ce   : > { %v4557_v56 = vpop.f32.mrb[196].mxu0  ;;  %v4771_v57 = vpack.c.bf16 %v4709_v53, %v4707_v52  ;;  %5522 = vmatpush1.bf16.msra.mxu1 %v9671_v51 }
 0x6cf   : > { %v4558_v59 = vadd.f32 %v4557_v56, %v11162_v37  ;;  %v4559_v60 = vpop.f32.mrb[197].mxu0 }
 0x6d0   : > { %v4560_v61 = vadd.f32 %v4559_v60, %v11165_v13  ;;  %v4561_v62 = vpop.f32.mrb[198].mxu0  ;;  %5038 = vmatprep.mubr.bf16.mxu0 %v4771_v57 }
 0x6d1   : > { %v4562_v2 = vadd.f32 %v4561_v62, %v11162_v37  ;;  %v4563_v3 = vpop.f32.mrb[199].mxu0  ;;  %5039 = vmatmul.mubr.bf16.vlgmr.msra.gmra.mrb[0].mxu0 %v4770_v54  ;;  %v4710_v43 = vmax.f32 %v4558_v59, 0.0  ;;  %v9676_v54 = vld [vmem:[%s12064_s22 + $0xc4] ss:$8 sps:$4 sm:$0xff]  }
 0x6d2   : > { %v4564_v46 = vadd.f32 %v4563_v3, %v11165_v13  ;;  %v4711_v11 = vmax.f32 %v4560_v61, 0.0  ;;  %v9674_v61 = vld [vmem:[%s12064_s22 + $0xc0] ss:$8 sps:$4 sm:$0xff]   ;;  %5523 = vmatprep.subr.bf16.mxu1 %v9676_v54 }
 0x6d3   : > { %v4712_v9 = vmax.f32 %v4562_v2, 0.0  ;;  %v9679_v2 = vld [vmem:[%s12064_s22 + $0xd4] ss:$8 sps:$4 sm:$0xff]   ;;  %5524 = vmatpush1.bf16.msra.mxu1 %v9674_v61 }
 0x6d4   : > { %v4713_v16 = vmax.f32 %v4564_v46, 0.0  ;;  %5525 = vmatprep.subr.bf16.mxu1 %v9679_v2 }
 0x6d5   : > { %v4772_v17 = vpack.c.bf16 %v4712_v9, %v4710_v43  ;;  %v9677_v9 = vld [vmem:[%s12064_s22 + $0xd0] ss:$8 sps:$4 sm:$0xff]  }
 0x6d6   : > { %v4567_v19 = vpop.f32.mrb[200].mxu0  ;;  %v4773_v20 = vpack.c.bf16 %v4713_v16, %v4711_v11 }
 0x6d7   : > { %v4568_v22 = vadd.f32 %v4567_v19, %v11162_v37  ;;  %v4569_v23 = vpop.f32.mrb[201].mxu0  ;;  %5526 = vmatpush1.bf16.msra.mxu1 %v9677_v9 }
 0x6d8   : > { %v4570_v24 = vadd.f32 %v4569_v23, %v11165_v13  ;;  %v4571_v25 = vpop.f32.mrb[202].mxu0  ;;  %5048 = vmatprep.mubr.bf16.mxu0 %v4773_v20 }
 0x6d9   : > { %v4572_v26 = vadd.f32 %v4571_v25, %v11162_v37  ;;  %v4573_v27 = vpop.f32.mrb[203].mxu0  ;;  %5049 = vmatmul.mubr.bf16.gmra.mrb[4].mxu0 %v4772_v17  ;;  %v4714_v30 = vmax.f32 %v4568_v22, 0.0  ;;  %v9682_v17 = vld [vmem:[%s12064_s22 + $0xe4] ss:$8 sps:$4 sm:$0xff]  }
 0x6da   : > { %v4574_v29 = vadd.f32 %v4573_v27, %v11165_v13  ;;  %v4715_v32 = vmax.f32 %v4570_v24, 0.0  ;;  %v9680_v24 = vld [vmem:[%s12064_s22 + $0xe0] ss:$8 sps:$4 sm:$0xff]   ;;  %5527 = vmatprep.subr.bf16.mxu1 %v9682_v17 }
 0x6db   : > { %v4716_v31 = vmax.f32 %v4572_v26, 0.0  ;;  %5528 = vmatpush1.bf16.msra.mxu1 %v9680_v24 }
 0x6dc   : > { %v4717_v42 = vmax.f32 %v4574_v29, 0.0 }
 0x6dd   : > { %v4774_v33 = vpack.c.bf16 %v4716_v31, %v4714_v30 }
 0x6de   : > { %v4577_v45 = vpop.f32.mrb[204].mxu0  ;;  %v4775_v35 = vpack.c.bf16 %v4717_v42, %v4715_v32 }
 0x6df   : > { %v4578_v38 = vadd.f32 %v4577_v45, %v11162_v37  ;;  %v4579_v39 = vpop.f32.mrb[205].mxu0 }
 0x6e0   : > { %v4580_v63 = vadd.f32 %v4579_v39, %v11165_v13  ;;  %v4581_v14 = vpop.f32.mrb[206].mxu0  ;;  %5058 = vmatprep.mubr.bf16.mxu0 %v4775_v35 }
 0x6e1   : > { %v4582_v40 = vadd.f32 %v4581_v14, %v11162_v37  ;;  %v4583_v1 = vpop.f32.mrb[207].mxu0  ;;  %5059 = vmatmul.mubr.bf16.gmra.mrb[8].mxu0 %v4774_v33  ;;  %v4718_v12 = vmax.f32 %v4578_v38, 0.0 }
 0x6e2   : > { %v4584_v44 = vadd.f32 %v4583_v1, %v11165_v13  ;;  %v4719_v15 = vmax.f32 %v4580_v63, 0.0 }
 0x6e3   : > { %v4720_v48 = vmax.f32 %v4582_v40, 0.0 }
 0x6e4   : > { %v4721_v49 = vmax.f32 %v4584_v44, 0.0 }
 0x6e5   : > { %v4776_v50 = vpack.c.bf16 %v4720_v48, %v4718_v12 }
 0x6e6   : > { %v4587_v52 = vpop.f32.mrb[208].mxu0  ;;  %v4777_v53 = vpack.c.bf16 %v4721_v49, %v4719_v15 }
 0x6e7   : > { %v4588_v55 = vadd.f32 %v4587_v52, %v11162_v37  ;;  %v4589_v56 = vpop.f32.mrb[209].mxu0 }
 0x6e8   : > { %v4590_v57 = vadd.f32 %v4589_v56, %v11165_v13  ;;  %v4591_v58 = vpop.f32.mrb[210].mxu0  ;;  %5068 = vmatprep.mubr.bf16.mxu0 %v4777_v53 }
 0x6e9   : > { %v4592_v59 = vadd.f32 %v4591_v58, %v11162_v37  ;;  %v4593_v60 = vpop.f32.mrb[211].mxu0  ;;  %5069 = vmatmul.mubr.bf16.gmra.mrb[12].mxu0 %v4776_v50  ;;  %v4722_v3 = vmax.f32 %v4588_v55, 0.0 }
 0x6ea   : > { %v4594_v62 = vadd.f32 %v4593_v60, %v11165_v13  ;;  %v4723_v46 = vmax.f32 %v4590_v57, 0.0 }
 0x6eb   : > { %v4724_v5 = vmax.f32 %v4592_v59, 0.0 }
 0x6ec   : > { %v4725_v6 = vmax.f32 %v4594_v62, 0.0 }
 0x6ed   : > { %v4778_v43 = vpack.c.bf16 %v4724_v5, %v4722_v3 }
 0x6ee   : > { %v4597_v11 = vpop.f32.mrb[212].mxu0  ;;  %v4779_v16 = vpack.c.bf16 %v4725_v6, %v4723_v46 }
 0x6ef   : > { %v4598_v18 = vadd.f32 %v4597_v11, %v11162_v37  ;;  %v4599_v19 = vpop.f32.mrb[213].mxu0 }
 0x6f0   : > { %v4600_v20 = vadd.f32 %v4599_v19, %v11165_v13  ;;  %v4601_v21 = vpop.f32.mrb[214].mxu0  ;;  %5078 = vmatprep.mubr.bf16.mxu0 %v4779_v16 }
 0x6f1   : > { %v4602_v22 = vadd.f32 %v4601_v21, %v11162_v37  ;;  %v4603_v23 = vpop.f32.mrb[215].mxu0  ;;  %5079 = vmatmul.mubr.bf16.gmra.mrb[16].mxu0 %v4778_v43  ;;  %v4726_v26 = vmax.f32 %v4598_v18, 0.0 }
 0x6f2   : > { %v4604_v25 = vadd.f32 %v4603_v23, %v11165_v13  ;;  %v4727_v28 = vmax.f32 %v4600_v20, 0.0 }
 0x6f3   : > { %v4728_v27 = vmax.f32 %v4602_v22, 0.0 }
 0x6f4   : > { %v4729_v29 = vmax.f32 %v4604_v25, 0.0 }
 0x6f5   : > { %v4780_v0 = vpack.c.bf16 %v4728_v27, %v4726_v26 }
 0x6f6   : > { %v4607_v30 = vpop.f32.mrb[216].mxu0  ;;  %v4781_v31 = vpack.c.bf16 %v4729_v29, %v4727_v28 }
 0x6f7   : > { %v4608_v32 = vadd.f32 %v4607_v30, %v11162_v37  ;;  %v4609_v42 = vpop.f32.mrb[217].mxu0 }
 0x6f8   : > { %v4610_v33 = vadd.f32 %v4609_v42, %v11165_v13  ;;  %v4611_v34 = vpop.f32.mrb[218].mxu0  ;;  %5088 = vmatprep.mubr.bf16.mxu0 %v4781_v31 }
 0x6f9   : > { %v4612_v45 = vadd.f32 %v4611_v34, %v11162_v37  ;;  %v4613_v35 = vpop.f32.mrb[219].mxu0  ;;  %5089 = vmatmul.mubr.bf16.gmra.mrb[20].mxu0 %v4780_v0  ;;  %v4730_v38 = vmax.f32 %v4608_v32, 0.0 }
 0x6fa   : > { %v4614_v36 = vadd.f32 %v4613_v35, %v11165_v13  ;;  %v4731_v63 = vmax.f32 %v4610_v33, 0.0 }
 0x6fb   : > { %v4732_v39 = vmax.f32 %v4612_v45, 0.0 }
 0x6fc   : > { %v4733_v14 = vmax.f32 %v4614_v36, 0.0 }
 0x6fd   : > { %v4782_v40 = vpack.c.bf16 %v4732_v39, %v4730_v38 }
 0x6fe   : > { %v4617_v1 = vpop.f32.mrb[220].mxu0  ;;  %v4783_v41 = vpack.c.bf16 %v4733_v14, %v4731_v63 }
 0x6ff   : > { %v4618_v44 = vadd.f32 %v4617_v1, %v11162_v37  ;;  %v4619_v47 = vpop.f32.mrb[221].mxu0 }
 0x700   : > { %v4620_v12 = vadd.f32 %v4619_v47, %v11165_v13  ;;  %v4621_v48 = vpop.f32.mrb[222].mxu0  ;;  %5098 = vmatprep.mubr.bf16.mxu0 %v4783_v41 }
 0x701   : > { %v4622_v15 = vadd.f32 %v4621_v48, %v11162_v37  ;;  %v4623_v49 = vpop.f32.mrb[223].mxu0  ;;  %5099 = vmatmul.mubr.bf16.gmra.mrb[24].mxu0 %v4782_v40  ;;  %v4734_v51 = vmax.f32 %v4618_v44, 0.0 }
 0x702   : > { %v4624_v50 = vadd.f32 %v4623_v49, %v11165_v13  ;;  %v4735_v53 = vmax.f32 %v4620_v12, 0.0 }
 0x703   : > { %v4736_v52 = vmax.f32 %v4622_v15, 0.0 }
 0x704   : > { %v4737_v54 = vmax.f32 %v4624_v50, 0.0 }
 0x705   : > { %v4784_v55 = vpack.c.bf16 %v4736_v52, %v4734_v51 }
 0x706   : > { %v4627_v56 = vpop.f32.mrb[224].mxu0  ;;  %v4785_v57 = vpack.c.bf16 %v4737_v54, %v4735_v53 }
 0x707   : > { %v4628_v58 = vadd.f32 %v4627_v56, %v11162_v37  ;;  %v4629_v59 = vpop.f32.mrb[225].mxu0 }
 0x708   : > { %v4630_v60 = vadd.f32 %v4629_v59, %v11165_v13  ;;  %v4631_v61 = vpop.f32.mrb[226].mxu0  ;;  %5108 = vmatprep.mubr.bf16.mxu0 %v4785_v57 }
 0x709   : > { %v4632_v62 = vadd.f32 %v4631_v61, %v11162_v37  ;;  %v4633_v2 = vpop.f32.mrb[227].mxu0  ;;  %5109 = vmatmul.mubr.bf16.gmra.mrb[28].mxu0 %v4784_v55  ;;  %v4738_v5 = vmax.f32 %v4628_v58, 0.0 }
 0x70a   : > { %v4634_v3 = vadd.f32 %v4633_v2, %v11165_v13  ;;  %v4739_v6 = vmax.f32 %v4630_v60, 0.0 }
 0x70b   : > { %v4740_v46 = vmax.f32 %v4632_v62, 0.0  ;;  %v9685_v62 = vld [vmem:[%s12064_s22 + $0xf4] ss:$8 sps:$4 sm:$0xff]  }
 0x70c   : > { %v4741_v43 = vmax.f32 %v4634_v3, 0.0  ;;  %v9683_v3 = vld [vmem:[%s12064_s22 + $0xf0] ss:$8 sps:$4 sm:$0xff]   ;;  %5529 = vmatprep.subr.bf16.mxu1 %v9685_v62 }
 0x70d   : > { %v4786_v9 = vpack.c.bf16 %v4740_v46, %v4738_v5  ;;  %5530 = vmatpush1.bf16.msra.mxu1 %v9683_v3  ;;  %v9697_v3 = vld [vmem:[%s12066_s26 + $0x34] ss:$8 sps:$4 sm:$0xff]  }
 0x70e   : > { %v4787_v11 = vpack.c.bf16 %v4741_v43, %v4739_v6  ;;  %v4637_v16 = vpop.f32.mrb[228].mxu0 }
 0x70f   : > { %v4638_v17 = vadd.f32 %v4637_v16, %v11162_v37  ;;  %v4639_v18 = vpop.f32.mrb[229].mxu0 }
 0x710   : > { %v4640_v19 = vadd.f32 %v4639_v18, %v11165_v13  ;;  %v4641_v20 = vpop.f32.mrb[230].mxu0  ;;  %5118 = vmatprep.mubr.bf16.mxu0 %v4787_v11 }
 0x711   : > { %v4642_v21 = vadd.f32 %v4641_v20, %v11162_v37  ;;  %v4643_v22 = vpop.f32.mrb[231].mxu0  ;;  %5119 = vmatmul.mubr.bf16.gmra.mrb[32].mxu0 %v4786_v9  ;;  %v4742_v24 = vmax.f32 %v4638_v17, 0.0 }
 0x712   : > { %v4644_v23 = vadd.f32 %v4643_v22, %v11165_v13  ;;  %v4743_v26 = vmax.f32 %v4640_v19, 0.0 }
 0x713   : > { %v4744_v25 = vmax.f32 %v4642_v21, 0.0 }
 0x714   : > { %v4745_v27 = vmax.f32 %v4644_v23, 0.0 }
 0x715   : > { %v4788_v28 = vpack.c.bf16 %v4744_v25, %v4742_v24 }
 0x716   : > { %v4789_v29 = vpack.c.bf16 %v4745_v27, %v4743_v26  ;;  %v4647_v0 = vpop.f32.mrb[232].mxu0 }
 0x717   : > { %v4648_v30 = vadd.f32 %v4647_v0, %v11162_v37  ;;  %v4649_v31 = vpop.f32.mrb[233].mxu0 }
 0x718   : > { %v4650_v32 = vadd.f32 %v4649_v31, %v11165_v13  ;;  %v4651_v42 = vpop.f32.mrb[234].mxu0  ;;  %5128 = vmatprep.mubr.bf16.mxu0 %v4789_v29 }
 0x719   : > { %v4652_v33 = vadd.f32 %v4651_v42, %v11162_v37  ;;  %v4653_v34 = vpop.f32.mrb[235].mxu0  ;;  %5129 = vmatmul.mubr.bf16.gmra.mrb[36].mxu0 %v4788_v28  ;;  %v4746_v35 = vmax.f32 %v4648_v30, 0.0 }
 0x71a   : > { %v4654_v45 = vadd.f32 %v4653_v34, %v11165_v13  ;;  %v4747_v38 = vmax.f32 %v4650_v32, 0.0 }
 0x71b   : > { %v4748_v36 = vmax.f32 %v4652_v33, 0.0 }
 0x71c   : > { %v4749_v39 = vmax.f32 %v4654_v45, 0.0 }
 0x71d   : > { %v4790_v63 = vpack.c.bf16 %v4748_v36, %v4746_v35 }
 0x71e   : > { %v4791_v14 = vpack.c.bf16 %v4749_v39, %v4747_v38  ;;  %v4657_v40 = vpop.f32.mrb[236].mxu0 }
 0x71f   : > { %v4658_v1 = vadd.f32 %v4657_v40, %v11162_v37  ;;  %v4659_v41 = vpop.f32.mrb[237].mxu0 }
 0x720   : > { %v4660_v44 = vadd.f32 %v4659_v41, %v11165_v13  ;;  %v4661_v47 = vpop.f32.mrb[238].mxu0  ;;  %5138 = vmatprep.mubr.bf16.mxu0 %v4791_v14 }
 0x721   : > { %v4662_v12 = vadd.f32 %v4661_v47, %v11162_v37  ;;  %v4663_v48 = vpop.f32.mrb[239].mxu0  ;;  %5139 = vmatmul.mubr.bf16.gmra.mrb[40].mxu0 %v4790_v63  ;;  %v4750_v49 = vmax.f32 %v4658_v1, 0.0 }
 0x722   : > { %v4664_v15 = vadd.f32 %v4663_v48, %v11165_v13  ;;  %v4751_v51 = vmax.f32 %v4660_v44, 0.0 }
 0x723   : > { %v4752_v50 = vmax.f32 %v4662_v12, 0.0 }
 0x724   : > { %v4753_v52 = vmax.f32 %v4664_v15, 0.0 }
 0x725   : > { %v4792_v53 = vpack.c.bf16 %v4752_v50, %v4750_v49 }
 0x726   : > { %v4793_v54 = vpack.c.bf16 %v4753_v52, %v4751_v51  ;;  %v4667_v55 = vpop.f32.mrb[240].mxu0 }
 0x727   : > { %v4668_v56 = vadd.f32 %v4667_v55, %v11162_v37  ;;  %v4669_v57 = vpop.f32.mrb[241].mxu0  ;;  %v9686_v55 = vld [vmem:[%s12066_s26] ss:$8 sps:$4 sm:$0xff]  }
 0x728   : > { %v4670_v58 = vadd.f32 %v4669_v57, %v11165_v13  ;;  %v4671_v59 = vpop.f32.mrb[242].mxu0  ;;  %5148 = vmatprep.mubr.bf16.mxu0 %v4793_v54  ;;  %v9691_v57 = vld [vmem:[%s12066_s26 + $0x14] ss:$8 sps:$4 sm:$0xff]  }
 0x729   : > { %v4672_v60 = vadd.f32 %v4671_v59, %v11162_v37  ;;  %v4673_v61 = vpop.f32.mrb[243].mxu0  ;;  %5149 = vmatmul.mubr.bf16.gmra.mrb[44].mxu0 %v4792_v53  ;;  %v4754_v5 = vmax.f32 %v4668_v56, 0.0  ;;  %v9689_v56 = vld [vmem:[%s12066_s26 + $0x10] ss:$8 sps:$4 sm:$0xff]   ;;  %v9694_v59 = vld [vmem:[%s12066_s26 + $0x24] ss:$8 sps:$4 sm:$0xff]  }
 0x72a   : > { %v4674_v2 = vadd.f32 %v4673_v61, %v11165_v13  ;;  %v4755_v6 = vmax.f32 %v4670_v58, 0.0  ;;  %v9692_v58 = vld [vmem:[%s12066_s26 + $0x20] ss:$8 sps:$4 sm:$0xff]  }
 0x72b   : > { %v4756_v46 = vmax.f32 %v4672_v60, 0.0 }
 0x72c   : > { %v4757_v43 = vmax.f32 %v4674_v2, 0.0  ;;  %v9695_v2 = vld [vmem:[%s12066_s26 + $0x30] ss:$8 sps:$4 sm:$0xff]  }
 0x72d   : > { %v4794_v9 = vpack.c.bf16 %v4756_v46, %v4754_v5 }
 0x72e   : > { %v4795_v11 = vpack.c.bf16 %v4757_v43, %v4755_v6  ;;  %v4677_v16 = vpop.f32.mrb[244].mxu0 }
 0x72f   : > { %v4678_v17 = vadd.f32 %v4677_v16, %v11162_v37  ;;  %v4679_v18 = vpop.f32.mrb[245].mxu0  ;;  %v9698_v16 = vld [vmem:[%s12066_s26 + $0x40] ss:$8 sps:$4 sm:$0xff]  }
 0x730   : > { %v4680_v19 = vadd.f32 %v4679_v18, %v11165_v13  ;;  %v4681_v20 = vpop.f32.mrb[246].mxu0  ;;  %5158 = vmatprep.mubr.bf16.mxu0 %v4795_v11 }
 0x731   : > { %v4682_v21 = vadd.f32 %v4681_v20, %v11162_v37  ;;  %v4683_v22 = vpop.f32.mrb[247].mxu0  ;;  %5159 = vmatmul.mubr.bf16.gmra.mrb[48].mxu0 %v4794_v9  ;;  %v4758_v24 = vmax.f32 %v4678_v17, 0.0  ;;  %v9700_v17 = vld [vmem:[%s12066_s26 + $0x44] ss:$8 sps:$4 sm:$0xff]  }
 0x732   : > { %v4684_v23 = vadd.f32 %v4683_v22, %v11165_v13  ;;  %v4759_v26 = vmax.f32 %v4680_v19, 0.0  ;;  %v9703_v19 = vld [vmem:[%s12066_s26 + $0x54] ss:$8 sps:$4 sm:$0xff]  }
 0x733   : > { %v4760_v25 = vmax.f32 %v4682_v21, 0.0 }
 0x734   : > { %v4761_v27 = vmax.f32 %v4684_v23, 0.0 }
 0x735   : > { %v4796_v28 = vpack.c.bf16 %v4760_v25, %v4758_v24  ;;  %v9701_v25 = vld [vmem:[%s12066_s26 + $0x50] ss:$8 sps:$4 sm:$0xff]  }
 0x736   : > { %v4797_v29 = vpack.c.bf16 %v4761_v27, %v4759_v26  ;;  %v4687_v0 = vpop.f32.mrb[248].mxu0 }
 0x737   : > { %v4688_v30 = vadd.f32 %v4687_v0, %v11162_v37  ;;  %v4689_v31 = vpop.f32.mrb[249].mxu0 }
 0x738   : > { %v4690_v32 = vadd.f32 %v4689_v31, %v11165_v13  ;;  %v4691_v42 = vpop.f32.mrb[250].mxu0  ;;  %5168 = vmatprep.mubr.bf16.mxu0 %v4797_v29 }
 0x739   : > { %v4692_v33 = vadd.f32 %v4691_v42, %v11162_v37  ;;  %v4693_v34 = vpop.f32.mrb[251].mxu0  ;;  %5169 = vmatmul.mubr.bf16.gmra.mrb[52].mxu0 %v4796_v28  ;;  %v4762_v35 = vmax.f32 %v4688_v30, 0.0  ;;  %v9706_v28 = vld [vmem:[%s12066_s26 + $0x64] ss:$8 sps:$4 sm:$0xff]  }
 0x73a   : > { %v4694_v45 = vadd.f32 %v4693_v34, %v11165_v13  ;;  %v4763_v38 = vmax.f32 %v4690_v32, 0.0 }
 0x73b   : > { %v4764_v36 = vmax.f32 %v4692_v33, 0.0  ;;  %v9704_v33 = vld [vmem:[%s12066_s26 + $0x60] ss:$8 sps:$4 sm:$0xff]  }
 0x73c   : > { %v4765_v39 = vmax.f32 %v4694_v45, 0.0  ;;  %v9709_v45 = vld [vmem:[%s12066_s26 + $0x74] ss:$8 sps:$4 sm:$0xff]  }
 0x73d   : > { %v4798_v63 = vpack.c.bf16 %v4764_v36, %v4762_v35 }
 0x73e   : > { %v4799_v14 = vpack.c.bf16 %v4765_v39, %v4763_v38  ;;  %v4697_v40 = vpop.f32.mrb[252].mxu0 }
 0x73f   : > { %v4698_v1 = vadd.f32 %v4697_v40, %v11162_v37  ;;  %v4699_v41 = vpop.f32.mrb[253].mxu0 }
 0x740   : > { %v4700_v44 = vadd.f32 %v4699_v41, %v11165_v13  ;;  %v4701_v47 = vpop.f32.mrb[254].mxu0  ;;  %5178 = vmatprep.mubr.bf16.mxu0 %v4799_v14  ;;  %v9707_v14 = vld [vmem:[%s12066_s26 + $0x70] ss:$8 sps:$4 sm:$0xff]   ;;  %v9712_v41 = vld [vmem:[%s12066_s26 + $0x84] ss:$8 sps:$4 sm:$0xff]  }
 0x741   : > { %v4702_v12 = vadd.f32 %v4701_v47, %v11162_v37  ;;  %v4703_v48 = vpop.f32.mrb[255].mxu0  ;;  %5179 = vmatmul.mubr.bf16.gmra.mrb[56].mxu0 %v4798_v63  ;;  %v4766_v49 = vmax.f32 %v4698_v1, 0.0  ;;  %v9688_v37 = vld [vmem:[%s12066_s26 + $0x4] ss:$8 sps:$4 sm:$0xff]  }
 0x742   : > { %v4704_v15 = vadd.f32 %v4703_v48, %v11165_v13  ;;  %v4767_v51 = vmax.f32 %v4700_v44, 0.0  ;;  %5992 = vmatprep.subr.bf16.mxu0 %v9688_v37  ;;  %v4834_v13 = vld [vmem:[%s12067_s15] sm:$0x3] }
 0x743   : > { %v4768_v50 = vmax.f32 %v4702_v12, 0.0  ;;  %5993 = vmatpush1.bf16.msra.mxu0 %v9686_v55  ;;  %v11265_v60 = vrot.slane %v4834_v13, %v10503_v8  ;;  %v11268_v61 = vrot.slane %v4834_v13, %v10507_v10 }
 0x744   : > { %v4769_v52 = vmax.f32 %v4704_v15, 0.0  ;;  %5994 = vmatprep.subr.bf16.mxu0 %v9691_v57  ;;  %v9713_v57 = vld [vmem:[%s12066_s26 + $0x90] ss:$8 sps:$4 sm:$0xff]  }
 0x745   : > { %v4800_v53 = vpack.c.bf16 %v4768_v50, %v4766_v49  ;;  %v9710_v50 = vld [vmem:[%s12066_s26 + $0x80] ss:$8 sps:$4 sm:$0xff]  }
 0x746   : > { %v4801_v54 = vpack.c.bf16 %v4769_v52, %v4767_v51  ;;  %v9715_v52 = vld [vmem:[%s12066_s26 + $0x94] ss:$8 sps:$4 sm:$0xff]  }
 0x747   : > { %5995 = vmatpush1.bf16.msra.mxu0 %v9689_v56 }
 0x748   : > { %5188 = vmatprep.mubr.bf16.mxu0 %v4801_v54  ;;  %5996 = vmatprep.subr.bf16.mxu0 %v9694_v59  ;;  %v9718_v59 = vld [vmem:[%s12066_s26 + $0xa4] ss:$8 sps:$4 sm:$0xff]  }
 0x749   : > { %5189 = vmatmul.mubr.bf16.gmra.mrb[60].mxu0 %v4800_v53 }
 0x74b   : > { %5997 = vmatpush1.bf16.msra.mxu0 %v9692_v58 }
 0x74c   : > { %5998 = vmatprep.subr.bf16.mxu0 %v9697_v3 }
 0x74f   : > { %5999 = vmatpush1.bf16.msra.mxu0 %v9695_v2 }
 0x750   : > { %6000 = vmatprep.subr.bf16.mxu0 %v9700_v17 }
 0x753   : > { %6001 = vmatpush1.bf16.msra.mxu0 %v9698_v16 }
 0x754   : > { %6002 = vmatprep.subr.bf16.mxu0 %v9703_v19 }
 0x757   : > { %6003 = vmatpush1.bf16.msra.mxu0 %v9701_v25 }
 0x758   : > { %6004 = vmatprep.subr.bf16.mxu0 %v9706_v28 }
 0x75b   : > { %6005 = vmatpush1.bf16.msra.mxu0 %v9704_v33 }
 0x75c   : > { %6006 = vmatprep.subr.bf16.mxu0 %v9709_v45 }
 0x75f   : > { %6007 = vmatpush1.bf16.msra.mxu0 %v9707_v14 }
 0x760   : > { %6008 = vmatprep.subr.bf16.mxu0 %v9712_v41 }
 0x763   : > { %6009 = vmatpush1.bf16.msra.mxu0 %v9710_v50 }
 0x764   : > { %6010 = vmatprep.subr.bf16.mxu0 %v9715_v52 }
 0x767   : > { %6011 = vmatpush1.bf16.msra.mxu0 %v9713_v57 }
 0x768   : > { %6012 = vmatprep.subr.bf16.mxu0 %v9718_v59 }
 0x7a4   : > { %v5040_v62 = vpop.f32.mrb[0].mxu0 }
 0x7a5   : > { %v5041_v5 = vadd.f32 %v5040_v62, %v11265_v60  ;;  %v5042_v46 = vpop.f32.mrb[1].mxu0 }
 0x7a6   : > { %v5043_v6 = vadd.f32 %v5042_v46, %v11268_v61  ;;  %v5044_v43 = vpop.f32.mrb[2].mxu0 }
 0x7a7   : > { %v5045_v9 = vadd.f32 %v5044_v43, %v11265_v60  ;;  %v5046_v11 = vpop.f32.mrb[3].mxu0  ;;  %v5199_v20 = vmax.f32 %v5041_v5, 0.0  ;;  %v9716_v43 = vld [vmem:[%s12066_s26 + $0xa0] ss:$8 sps:$4 sm:$0xff]  }
 0x7a8   : > { %v5047_v18 = vadd.f32 %v5046_v11, %v11268_v61  ;;  %v5200_v22 = vmax.f32 %v5043_v6, 0.0  ;;  %v9721_v11 = vld [vmem:[%s12066_s26 + $0xb4] ss:$8 sps:$4 sm:$0xff]   ;;  %6013 = vmatpush1.bf16.msra.mxu0 %v9716_v43 }
 0x7a9   : > { %v5201_v21 = vmax.f32 %v5045_v9, 0.0  ;;  %6014 = vmatprep.subr.bf16.mxu0 %v9721_v11 }
 0x7aa   : > { %v5202_v23 = vmax.f32 %v5047_v18, 0.0 }
 0x7ab   : > { %v5263_v24 = vpack.c.bf16 %v5201_v21, %v5199_v20  ;;  %v9719_v21 = vld [vmem:[%s12066_s26 + $0xb0] ss:$8 sps:$4 sm:$0xff]  }
 0x7ac   : > { %v5264_v26 = vpack.c.bf16 %v5202_v23, %v5200_v22  ;;  %v5050_v27 = vpop.f32.mrb[4].mxu0  ;;  %6015 = vmatpush1.bf16.msra.mxu0 %v9719_v21 }
 0x7ad   : > { %v5051_v29 = vadd.f32 %v5050_v27, %v11265_v60  ;;  %v5052_v0 = vpop.f32.mrb[5].mxu0 }
 0x7ae   : > { %v5053_v30 = vadd.f32 %v5052_v0, %v11268_v61  ;;  %v5054_v31 = vpop.f32.mrb[6].mxu0  ;;  %5531 = vmatprep.mubr.bf16.mxu1 %v5264_v26 }
 0x7af   : > { %v5055_v32 = vadd.f32 %v5054_v31, %v11265_v60  ;;  %v5056_v42 = vpop.f32.mrb[7].mxu0  ;;  %5532 = vmatmul.mubr.bf16.vlgmr.msra.gmra.mrb[192].mxu1 %v5263_v24  ;;  %v5203_v35 = vmax.f32 %v5051_v29, 0.0  ;;  %v9724_v24 = vld [vmem:[%s12066_s26 + $0xc4] ss:$8 sps:$4 sm:$0xff]  }
 0x7b0   : > { %v5057_v34 = vadd.f32 %v5056_v42, %v11268_v61  ;;  %v5204_v38 = vmax.f32 %v5053_v30, 0.0  ;;  %v9722_v30 = vld [vmem:[%s12066_s26 + $0xc0] ss:$8 sps:$4 sm:$0xff]   ;;  %6016 = vmatprep.subr.bf16.mxu0 %v9724_v24 }
 0x7b1   : > { %v5205_v36 = vmax.f32 %v5055_v32, 0.0  ;;  %v9727_v32 = vld [vmem:[%s12066_s26 + $0xd4] ss:$8 sps:$4 sm:$0xff]   ;;  %6017 = vmatpush1.bf16.msra.mxu0 %v9722_v30 }
 0x7b2   : > { %v5206_v39 = vmax.f32 %v5057_v34, 0.0  ;;  %6018 = vmatprep.subr.bf16.mxu0 %v9727_v32 }
 0x7b3   : > { %v5265_v63 = vpack.c.bf16 %v5205_v36, %v5203_v35  ;;  %v9725_v36 = vld [vmem:[%s12066_s26 + $0xd0] ss:$8 sps:$4 sm:$0xff]  }
 0x7b4   : > { %v5266_v40 = vpack.c.bf16 %v5206_v39, %v5204_v38  ;;  %v5060_v1 = vpop.f32.mrb[8].mxu0 }
 0x7b5   : > { %v5061_v44 = vadd.f32 %v5060_v1, %v11265_v60  ;;  %v5062_v47 = vpop.f32.mrb[9].mxu0  ;;  %6019 = vmatpush1.bf16.msra.mxu0 %v9725_v36 }
 0x7b6   : > { %v5063_v12 = vadd.f32 %v5062_v47, %v11268_v61  ;;  %v5064_v48 = vpop.f32.mrb[10].mxu0  ;;  %5541 = vmatprep.mubr.bf16.mxu1 %v5266_v40 }
 0x7b7   : > { %v5065_v15 = vadd.f32 %v5064_v48, %v11265_v60  ;;  %v5066_v49 = vpop.f32.mrb[11].mxu0  ;;  %5542 = vmatmul.mubr.bf16.gmra.mrb[196].mxu1 %v5265_v63  ;;  %v5207_v53 = vmax.f32 %v5061_v44, 0.0  ;;  %v9730_v63 = vld [vmem:[%s12066_s26 + $0xe4] ss:$8 sps:$4 sm:$0xff]  }
 0x7b8   : > { %v5067_v51 = vadd.f32 %v5066_v49, %v11268_v61  ;;  %v5208_v55 = vmax.f32 %v5063_v12, 0.0  ;;  %v9728_v12 = vld [vmem:[%s12066_s26 + $0xe0] ss:$8 sps:$4 sm:$0xff]   ;;  %6020 = vmatprep.subr.bf16.mxu0 %v9730_v63 }
 0x7b9   : > { %v5209_v54 = vmax.f32 %v5065_v15, 0.0  ;;  %6021 = vmatpush1.bf16.msra.mxu0 %v9728_v12 }
 0x7ba   : > { %v5210_v37 = vmax.f32 %v5067_v51, 0.0 }
 0x7bb   : > { %v5267_v56 = vpack.c.bf16 %v5209_v54, %v5207_v53 }
 0x7bc   : > { %v5268_v13 = vpack.c.bf16 %v5210_v37, %v5208_v55  ;;  %v5070_v58 = vpop.f32.mrb[12].mxu0 }
 0x7bd   : > { %v5071_v62 = vadd.f32 %v5070_v58, %v11265_v60  ;;  %v5072_v2 = vpop.f32.mrb[13].mxu0 }
 0x7be   : > { %v5073_v3 = vadd.f32 %v5072_v2, %v11268_v61  ;;  %v5074_v5 = vpop.f32.mrb[14].mxu0  ;;  %5551 = vmatprep.mubr.bf16.mxu1 %v5268_v13 }
 0x7bf   : > { %v5075_v46 = vadd.f32 %v5074_v5, %v11265_v60  ;;  %v5076_v6 = vpop.f32.mrb[15].mxu0  ;;  %5552 = vmatmul.mubr.bf16.gmra.mrb[200].mxu1 %v5267_v56  ;;  %v5211_v16 = vmax.f32 %v5071_v62, 0.0 }
 0x7c0   : > { %v5077_v9 = vadd.f32 %v5076_v6, %v11268_v61  ;;  %v5212_v18 = vmax.f32 %v5073_v3, 0.0 }
 0x7c1   : > { %v5213_v17 = vmax.f32 %v5075_v46, 0.0 }
 0x7c2   : > { %v5214_v19 = vmax.f32 %v5077_v9, 0.0 }
 0x7c3   : > { %v5269_v20 = vpack.c.bf16 %v5213_v17, %v5211_v16 }
 0x7c4   : > { %v5270_v22 = vpack.c.bf16 %v5214_v19, %v5212_v18  ;;  %v5080_v23 = vpop.f32.mrb[16].mxu0 }
 0x7c5   : > { %v5081_v25 = vadd.f32 %v5080_v23, %v11265_v60  ;;  %v5082_v26 = vpop.f32.mrb[17].mxu0 }
 0x7c6   : > { %v5083_v27 = vadd.f32 %v5082_v26, %v11268_v61  ;;  %v5084_v28 = vpop.f32.mrb[18].mxu0  ;;  %5561 = vmatprep.mubr.bf16.mxu1 %v5270_v22 }
 0x7c7   : > { %v5085_v29 = vadd.f32 %v5084_v28, %v11265_v60  ;;  %v5086_v0 = vpop.f32.mrb[19].mxu0  ;;  %5562 = vmatmul.mubr.bf16.gmra.mrb[204].mxu1 %v5269_v20  ;;  %v5215_v42 = vmax.f32 %v5081_v25, 0.0 }
 0x7c8   : > { %v5087_v31 = vadd.f32 %v5086_v0, %v11268_v61  ;;  %v5216_v34 = vmax.f32 %v5083_v27, 0.0 }
 0x7c9   : > { %v5217_v33 = vmax.f32 %v5085_v29, 0.0 }
 0x7ca   : > { %v5218_v45 = vmax.f32 %v5087_v31, 0.0 }
 0x7cb   : > { %v5271_v35 = vpack.c.bf16 %v5217_v33, %v5215_v42 }
 0x7cc   : > { %v5272_v38 = vpack.c.bf16 %v5218_v45, %v5216_v34  ;;  %v5090_v39 = vpop.f32.mrb[20].mxu0 }
 0x7cd   : > { %v5091_v14 = vadd.f32 %v5090_v39, %v11265_v60  ;;  %v5092_v40 = vpop.f32.mrb[21].mxu0 }
 0x7ce   : > { %v5093_v1 = vadd.f32 %v5092_v40, %v11268_v61  ;;  %v5094_v41 = vpop.f32.mrb[22].mxu0  ;;  %5571 = vmatprep.mubr.bf16.mxu1 %v5272_v38 }
 0x7cf   : > { %v5095_v44 = vadd.f32 %v5094_v41, %v11265_v60  ;;  %v5096_v47 = vpop.f32.mrb[23].mxu0  ;;  %5572 = vmatmul.mubr.bf16.gmra.mrb[208].mxu1 %v5271_v35  ;;  %v5219_v15 = vmax.f32 %v5091_v14, 0.0 }
 0x7d0   : > { %v5097_v48 = vadd.f32 %v5096_v47, %v11268_v61  ;;  %v5220_v50 = vmax.f32 %v5093_v1, 0.0 }
 0x7d1   : > { %v5221_v49 = vmax.f32 %v5095_v44, 0.0 }
 0x7d2   : > { %v5222_v51 = vmax.f32 %v5097_v48, 0.0 }
 0x7d3   : > { %v5273_v52 = vpack.c.bf16 %v5221_v49, %v5219_v15 }
 0x7d4   : > { %v5274_v53 = vpack.c.bf16 %v5222_v51, %v5220_v50  ;;  %v5100_v54 = vpop.f32.mrb[24].mxu0 }
 0x7d5   : > { %v5101_v55 = vadd.f32 %v5100_v54, %v11265_v60  ;;  %v5102_v37 = vpop.f32.mrb[25].mxu0 }
 0x7d6   : > { %v5103_v56 = vadd.f32 %v5102_v37, %v11268_v61  ;;  %v5104_v57 = vpop.f32.mrb[26].mxu0  ;;  %5581 = vmatprep.mubr.bf16.mxu1 %v5274_v53 }
 0x7d7   : > { %v5105_v13 = vadd.f32 %v5104_v57, %v11265_v60  ;;  %v5106_v58 = vpop.f32.mrb[27].mxu0  ;;  %5582 = vmatmul.mubr.bf16.gmra.mrb[212].mxu1 %v5273_v52  ;;  %v5223_v62 = vmax.f32 %v5101_v55, 0.0 }
 0x7d8   : > { %v5107_v59 = vadd.f32 %v5106_v58, %v11268_v61  ;;  %v5224_v3 = vmax.f32 %v5103_v56, 0.0 }
 0x7d9   : > { %v5225_v2 = vmax.f32 %v5105_v13, 0.0 }
 0x7da   : > { %v5226_v5 = vmax.f32 %v5107_v59, 0.0 }
 0x7db   : > { %v5275_v46 = vpack.c.bf16 %v5225_v2, %v5223_v62 }
 0x7dc   : > { %v5276_v6 = vpack.c.bf16 %v5226_v5, %v5224_v3  ;;  %v5110_v43 = vpop.f32.mrb[28].mxu0 }
 0x7dd   : > { %v5111_v9 = vadd.f32 %v5110_v43, %v11265_v60  ;;  %v5112_v11 = vpop.f32.mrb[29].mxu0 }
 0x7de   : > { %v5113_v16 = vadd.f32 %v5112_v11, %v11268_v61  ;;  %v5114_v17 = vpop.f32.mrb[30].mxu0  ;;  %5591 = vmatprep.mubr.bf16.mxu1 %v5276_v6 }
 0x7df   : > { %v5115_v18 = vadd.f32 %v5114_v17, %v11265_v60  ;;  %v5116_v19 = vpop.f32.mrb[31].mxu0  ;;  %5592 = vmatmul.mubr.bf16.gmra.mrb[216].mxu1 %v5275_v46  ;;  %v5227_v21 = vmax.f32 %v5111_v9, 0.0 }
 0x7e0   : > { %v5117_v20 = vadd.f32 %v5116_v19, %v11268_v61  ;;  %v5228_v23 = vmax.f32 %v5113_v16, 0.0 }
 0x7e1   : > { %v5229_v22 = vmax.f32 %v5115_v18, 0.0 }
 0x7e2   : > { %v5230_v24 = vmax.f32 %v5117_v20, 0.0 }
 0x7e3   : > { %v5277_v25 = vpack.c.bf16 %v5229_v22, %v5227_v21 }
 0x7e4   : > { %v5278_v26 = vpack.c.bf16 %v5230_v24, %v5228_v23  ;;  %v5120_v27 = vpop.f32.mrb[32].mxu0 }
 0x7e5   : > { %v5121_v28 = vadd.f32 %v5120_v27, %v11265_v60  ;;  %v5122_v29 = vpop.f32.mrb[33].mxu0 }
 0x7e6   : > { %v5123_v0 = vadd.f32 %v5122_v29, %v11268_v61  ;;  %v5124_v30 = vpop.f32.mrb[34].mxu0  ;;  %5601 = vmatprep.mubr.bf16.mxu1 %v5278_v26 }
 0x7e7   : > { %v5125_v31 = vadd.f32 %v5124_v30, %v11265_v60  ;;  %v5126_v32 = vpop.f32.mrb[35].mxu0  ;;  %5602 = vmatmul.mubr.bf16.gmra.mrb[220].mxu1 %v5277_v25  ;;  %v5231_v33 = vmax.f32 %v5121_v28, 0.0 }
 0x7e8   : > { %v5127_v42 = vadd.f32 %v5126_v32, %v11268_v61  ;;  %v5232_v45 = vmax.f32 %v5123_v0, 0.0 }
 0x7e9   : > { %v5233_v34 = vmax.f32 %v5125_v31, 0.0  ;;  %v9733_v31 = vld [vmem:[%s12066_s26 + $0xf4] ss:$8 sps:$4 sm:$0xff]  }
 0x7ea   : > { %v5234_v35 = vmax.f32 %v5127_v42, 0.0  ;;  %v9731_v42 = vld [vmem:[%s12066_s26 + $0xf0] ss:$8 sps:$4 sm:$0xff]   ;;  %6022 = vmatprep.subr.bf16.mxu0 %v9733_v31 }
 0x7eb   : > { %v5279_v36 = vpack.c.bf16 %v5233_v34, %v5231_v33  ;;  %6023 = vmatpush1.bf16.msra.mxu0 %v9731_v42  ;;  %v9745_v42 = vld [vmem:[%s12068_s16 + $0x4c] ss:$12 sps:$4 sm:$0xff]  }
 0x7ec   : > { %v5280_v38 = vpack.c.bf16 %v5234_v35, %v5232_v45  ;;  %v5130_v39 = vpop.f32.mrb[36].mxu0 }
 0x7ed   : > { %v5131_v63 = vadd.f32 %v5130_v39, %v11265_v60  ;;  %v5132_v14 = vpop.f32.mrb[37].mxu0 }
 0x7ee   : > { %v5133_v40 = vadd.f32 %v5132_v14, %v11268_v61  ;;  %v5134_v1 = vpop.f32.mrb[38].mxu0  ;;  %5611 = vmatprep.mubr.bf16.mxu1 %v5280_v38 }
 0x7ef   : > { %v5135_v41 = vadd.f32 %v5134_v1, %v11265_v60  ;;  %v5136_v44 = vpop.f32.mrb[39].mxu0  ;;  %5612 = vmatmul.mubr.bf16.gmra.mrb[224].mxu1 %v5279_v36  ;;  %v5235_v12 = vmax.f32 %v5131_v63, 0.0 }
 0x7f0   : > { %v5137_v47 = vadd.f32 %v5136_v44, %v11268_v61  ;;  %v5236_v15 = vmax.f32 %v5133_v40, 0.0 }
 0x7f1   : > { %v5237_v48 = vmax.f32 %v5135_v41, 0.0 }
 0x7f2   : > { %v5238_v49 = vmax.f32 %v5137_v47, 0.0 }
 0x7f3   : > { %v5281_v50 = vpack.c.bf16 %v5237_v48, %v5235_v12 }
 0x7f4   : > { %v5282_v51 = vpack.c.bf16 %v5238_v49, %v5236_v15  ;;  %v5140_v52 = vpop.f32.mrb[40].mxu0 }
 0x7f5   : > { %v5141_v53 = vadd.f32 %v5140_v52, %v11265_v60  ;;  %v5142_v54 = vpop.f32.mrb[41].mxu0 }
 0x7f6   : > { %v5143_v55 = vadd.f32 %v5142_v54, %v11268_v61  ;;  %v5144_v37 = vpop.f32.mrb[42].mxu0  ;;  %5621 = vmatprep.mubr.bf16.mxu1 %v5282_v51 }
 0x7f7   : > { %v5145_v56 = vadd.f32 %v5144_v37, %v11265_v60  ;;  %v5146_v57 = vpop.f32.mrb[43].mxu0  ;;  %5622 = vmatmul.mubr.bf16.gmra.mrb[228].mxu1 %v5281_v50  ;;  %v5239_v58 = vmax.f32 %v5141_v53, 0.0 }
 0x7f8   : > { %v5147_v13 = vadd.f32 %v5146_v57, %v11268_v61  ;;  %v5240_v62 = vmax.f32 %v5143_v55, 0.0 }
 0x7f9   : > { %v5241_v59 = vmax.f32 %v5145_v56, 0.0 }
 0x7fa   : > { %v5242_v2 = vmax.f32 %v5147_v13, 0.0 }
 0x7fb   : > { %v5283_v3 = vpack.c.bf16 %v5241_v59, %v5239_v58 }
 0x7fc   : > { %v5284_v5 = vpack.c.bf16 %v5242_v2, %v5240_v62  ;;  %v5150_v46 = vpop.f32.mrb[44].mxu0 }
 0x7fd   : > { %v5151_v6 = vadd.f32 %v5150_v46, %v11265_v60  ;;  %v5152_v43 = vpop.f32.mrb[45].mxu0 }
 0x7fe   : > { %v5153_v9 = vadd.f32 %v5152_v43, %v11268_v61  ;;  %v5154_v11 = vpop.f32.mrb[46].mxu0  ;;  %5631 = vmatprep.mubr.bf16.mxu1 %v5284_v5 }
 0x7ff   : > { %v5155_v16 = vadd.f32 %v5154_v11, %v11265_v60  ;;  %v5156_v17 = vpop.f32.mrb[47].mxu0  ;;  %5632 = vmatmul.mubr.bf16.gmra.mrb[232].mxu1 %v5283_v3  ;;  %v5243_v19 = vmax.f32 %v5151_v6, 0.0 }
 0x800   : > { %v5157_v18 = vadd.f32 %v5156_v17, %v11268_v61  ;;  %v5244_v21 = vmax.f32 %v5153_v9, 0.0 }
 0x801   : > { %v5245_v20 = vmax.f32 %v5155_v16, 0.0 }
 0x802   : > { %v5246_v22 = vmax.f32 %v5157_v18, 0.0 }
 0x803   : > { %v5285_v23 = vpack.c.bf16 %v5245_v20, %v5243_v19 }
 0x804   : > { %v5286_v24 = vpack.c.bf16 %v5246_v22, %v5244_v21  ;;  %v5160_v25 = vpop.f32.mrb[48].mxu0 }
 0x805   : > { %v5161_v26 = vadd.f32 %v5160_v25, %v11265_v60  ;;  %v5162_v27 = vpop.f32.mrb[49].mxu0  ;;  %v9734_v25 = vld [vmem:[%s12068_s16] ss:$12 sps:$4 sm:$0xff]  }
 0x806   : > { %v5163_v28 = vadd.f32 %v5162_v27, %v11268_v61  ;;  %v5164_v29 = vpop.f32.mrb[50].mxu0  ;;  %5641 = vmatprep.mubr.bf16.mxu1 %v5286_v24  ;;  %v9739_v27 = vld [vmem:[%s12068_s16 + $0x1c] ss:$12 sps:$4 sm:$0xff]  }
 0x807   : > { %v5165_v0 = vadd.f32 %v5164_v29, %v11265_v60  ;;  %v5166_v30 = vpop.f32.mrb[51].mxu0  ;;  %5642 = vmatmul.mubr.bf16.gmra.mrb[236].mxu1 %v5285_v23  ;;  %v5247_v33 = vmax.f32 %v5161_v26, 0.0  ;;  %v9737_v26 = vld [vmem:[%s12068_s16 + $0x18] ss:$12 sps:$4 sm:$0xff]   ;;  %v9742_v29 = vld [vmem:[%s12068_s16 + $0x34] ss:$12 sps:$4 sm:$0xff]  }
 0x808   : > { %v5167_v32 = vadd.f32 %v5166_v30, %v11268_v61  ;;  %v5248_v45 = vmax.f32 %v5163_v28, 0.0  ;;  %v9740_v28 = vld [vmem:[%s12068_s16 + $0x30] ss:$12 sps:$4 sm:$0xff]  }
 0x809   : > { %v5249_v34 = vmax.f32 %v5165_v0, 0.0 }
 0x80a   : > { %v5250_v35 = vmax.f32 %v5167_v32, 0.0  ;;  %v9743_v32 = vld [vmem:[%s12068_s16 + $0x48] ss:$12 sps:$4 sm:$0xff]  }
 0x80b   : > { %v5287_v36 = vpack.c.bf16 %v5249_v34, %v5247_v33 }
 0x80c   : > { %v5288_v38 = vpack.c.bf16 %v5250_v35, %v5248_v45  ;;  %v5170_v39 = vpop.f32.mrb[52].mxu0 }
 0x80d   : > { %v5171_v63 = vadd.f32 %v5170_v39, %v11265_v60  ;;  %v5172_v14 = vpop.f32.mrb[53].mxu0  ;;  %v9746_v39 = vld [vmem:[%s12068_s16 + $0x60] ss:$12 sps:$4 sm:$0xff]  }
 0x80e   : > { %v5173_v40 = vadd.f32 %v5172_v14, %v11268_v61  ;;  %v5174_v1 = vpop.f32.mrb[54].mxu0  ;;  %5651 = vmatprep.mubr.bf16.mxu1 %v5288_v38 }
 0x80f   : > { %v5175_v41 = vadd.f32 %v5174_v1, %v11265_v60  ;;  %v5176_v44 = vpop.f32.mrb[55].mxu0  ;;  %5652 = vmatmul.mubr.bf16.gmra.mrb[240].mxu1 %v5287_v36  ;;  %v5251_v12 = vmax.f32 %v5171_v63, 0.0  ;;  %v9748_v63 = vld [vmem:[%s12068_s16 + $0x64] ss:$12 sps:$4 sm:$0xff]  }
 0x810   : > { %v5177_v47 = vadd.f32 %v5176_v44, %v11268_v61  ;;  %v5252_v15 = vmax.f32 %v5173_v40, 0.0  ;;  %v9751_v40 = vld [vmem:[%s12068_s16 + $0x7c] ss:$12 sps:$4 sm:$0xff]  }
 0x811   : > { %v5253_v48 = vmax.f32 %v5175_v41, 0.0 }
 0x812   : > { %v5254_v49 = vmax.f32 %v5177_v47, 0.0 }
 0x813   : > { %v5289_v50 = vpack.c.bf16 %v5253_v48, %v5251_v12  ;;  %v9749_v48 = vld [vmem:[%s12068_s16 + $0x78] ss:$12 sps:$4 sm:$0xff]  }
 0x814   : > { %v5290_v51 = vpack.c.bf16 %v5254_v49, %v5252_v15  ;;  %v5180_v52 = vpop.f32.mrb[56].mxu0 }
 0x815   : > { %v5181_v53 = vadd.f32 %v5180_v52, %v11265_v60  ;;  %v5182_v54 = vpop.f32.mrb[57].mxu0 }
 0x816   : > { %v5183_v55 = vadd.f32 %v5182_v54, %v11268_v61  ;;  %v5184_v37 = vpop.f32.mrb[58].mxu0  ;;  %5661 = vmatprep.mubr.bf16.mxu1 %v5290_v51 }
 0x817   : > { %v5185_v56 = vadd.f32 %v5184_v37, %v11265_v60  ;;  %v5186_v57 = vpop.f32.mrb[59].mxu0  ;;  %5662 = vmatmul.mubr.bf16.gmra.mrb[244].mxu1 %v5289_v50  ;;  %v5255_v58 = vmax.f32 %v5181_v53, 0.0  ;;  %v9754_v50 = vld [vmem:[%s12068_s16 + $0x94] ss:$12 sps:$4 sm:$0xff]  }
 0x818   : > { %v5187_v13 = vadd.f32 %v5186_v57, %v11268_v61  ;;  %v5256_v62 = vmax.f32 %v5183_v55, 0.0  ;;  %v9773_v57 = vld [vmem:[%s12068_s16 + $0xc8] ss:$12 sps:$4 sm:$0xff]  }
 0x819   : > { %v5257_v59 = vmax.f32 %v5185_v56, 0.0  ;;  %v9752_v56 = vld [vmem:[%s12068_s16 + $0x90] ss:$12 sps:$4 sm:$0xff]   ;;  %8723 = vmatprep.subr.bf16.mxu0 %v9773_v57 }
 0x81a   : > { %v5258_v2 = vmax.f32 %v5187_v13, 0.0 }
 0x81b   : > { %v5291_v3 = vpack.c.bf16 %v5257_v59, %v5255_v58  ;;  %v9757_v58 = vld [vmem:[%s12068_s16 + $0xac] ss:$12 sps:$4 sm:$0xff]   ;;  %v9774_v59 = vld [vmem:[%s12068_s16 + $0x8] ss:$12 sps:$4 sm:$0xff]  }
 0x81c   : > { %v5292_v5 = vpack.c.bf16 %v5258_v2, %v5256_v62  ;;  %v5190_v46 = vpop.f32.mrb[60].mxu0  ;;  %v9775_v62 = vld [vmem:[%s12068_s16 + $0xe0] ss:$12 sps:$4 sm:$0xff]  }
 0x81d   : > { %v5191_v6 = vadd.f32 %v5190_v46, %v11265_v60  ;;  %v5192_v43 = vpop.f32.mrb[61].mxu0 }
 0x81e   : > { %v5193_v9 = vadd.f32 %v5192_v43, %v11268_v61  ;;  %v5194_v11 = vpop.f32.mrb[62].mxu0  ;;  %5671 = vmatprep.mubr.bf16.mxu1 %v5292_v5 }
 0x81f   : > { %v5195_v16 = vadd.f32 %v5194_v11, %v11265_v60  ;;  %v5196_v17 = vpop.f32.mrb[63].mxu0  ;;  %5672 = vmatmul.mubr.bf16.gmra.mrb[248].mxu1 %v5291_v3  ;;  %v5259_v19 = vmax.f32 %v5191_v6, 0.0  ;;  %v9736_v60 = vld [vmem:[%s12068_s16 + $0x4] ss:$12 sps:$4 sm:$0xff]   ;;  %v9776_v6 = vld [vmem:[%s12068_s16 + $0x20] ss:$12 sps:$4 sm:$0xff]  }
 0x820   : > { %v5197_v18 = vadd.f32 %v5196_v17, %v11268_v61  ;;  %v5260_v21 = vmax.f32 %v5193_v9, 0.0  ;;  %6618 = vmatprep.subr.bf16.mxu1 %v9736_v60  ;;  %v5327_v61 = vld [vmem:[%s12069_s1] sm:$0x3]  ;;  %v9755_v9 = vld [vmem:[%s12068_s16 + $0xa8] ss:$12 sps:$4 sm:$0xff]  }
 0x821   : > { %v5261_v20 = vmax.f32 %v5195_v16, 0.0  ;;  %6619 = vmatpush1.bf16.msra.mxu1 %v9734_v25  ;;  %v11368_v0 = vrot.slane %v5327_v61, %v10503_v8  ;;  %v11371_v30 = vrot.slane %v5327_v61, %v10507_v10  ;;  %v9760_v17 = vld [vmem:[%s12068_s16 + $0xc4] ss:$12 sps:$4 sm:$0xff]   ;;  %v9758_v60 = vld [vmem:[%s12068_s16 + $0xc0] ss:$12 sps:$4 sm:$0xff]  }
 0x822   : > { %v5262_v22 = vmax.f32 %v5197_v18, 0.0  ;;  %6620 = vmatprep.subr.bf16.mxu1 %v9739_v27  ;;  %v9780_v18 = vld [vmem:[%s12068_s16 + $0xf8] ss:$12 sps:$4 sm:$0xff]   ;;  %v9763_v61 = vld [vmem:[%s12068_s16 + $0xdc] ss:$12 sps:$4 sm:$0xff]  }
 0x823   : > { %v5293_v23 = vpack.c.bf16 %v5261_v20, %v5259_v19 }
 0x824   : > { %v5294_v24 = vpack.c.bf16 %v5262_v22, %v5260_v21 }
 0x825   : > { %6621 = vmatpush1.bf16.msra.mxu1 %v9737_v26  ;;  %v9782_v26 = vld [vmem:[%s12068_s16 + $0x110] ss:$12 sps:$4 sm:$0xff]  }
 0x826   : > { %5681 = vmatprep.mubr.bf16.mxu1 %v5294_v24  ;;  %6622 = vmatprep.subr.bf16.mxu1 %v9742_v29 }
 0x827   : > { %5682 = vmatmul.mubr.bf16.gmra.mrb[252].mxu1 %v5293_v23  ;;  %v9781_v23 = vld [vmem:[%s12068_s16 + $0x38] ss:$12 sps:$4 sm:$0xff]  }
 0x829   : > { %6623 = vmatpush1.bf16.msra.mxu1 %v9740_v28 }
 0x82a   : > { %6624 = vmatprep.subr.bf16.mxu1 %v9745_v42  ;;  %v9783_v42 = vld [vmem:[%s12068_s16 + $0x50] ss:$12 sps:$4 sm:$0xff]  }
 0x82d   : > { %6625 = vmatpush1.bf16.msra.mxu1 %v9743_v32 }
 0x82e   : > { %6626 = vmatprep.subr.bf16.mxu1 %v9748_v63 }
 0x831   : > { %6627 = vmatpush1.bf16.msra.mxu1 %v9746_v39 }
 0x832   : > { %6628 = vmatprep.subr.bf16.mxu1 %v9751_v40 }
 0x835   : > { %6629 = vmatpush1.bf16.msra.mxu1 %v9749_v48 }
 0x836   : > { %6630 = vmatprep.subr.bf16.mxu1 %v9754_v50 }
 0x839   : > { %6631 = vmatpush1.bf16.msra.mxu1 %v9752_v56  ;;  %v9772_v56 = vld [vmem:[%s12068_s16 + $0x124] ss:$12 sps:$4 sm:$0xff]  }
 0x83a   : > { %6632 = vmatprep.subr.bf16.mxu1 %v9757_v58 }
 0x83d   : > { %6633 = vmatpush1.bf16.msra.mxu1 %v9755_v9 }
 0x83e   : > { %6634 = vmatprep.subr.bf16.mxu1 %v9760_v17  ;;  %v9777_v17 = vld [vmem:[%s12068_s16 + $0x138] ss:$12 sps:$4 sm:$0xff]  }
 0x841   : > { %6635 = vmatpush1.bf16.msra.mxu1 %v9758_v60 }
 0x842   : > { %6636 = vmatprep.subr.bf16.mxu1 %v9763_v61 }
 0x882   : > { %v5533_v31 = vpop.f32.mrb[192].mxu1 }
 0x883   : > { %v5534_v33 = vadd.f32 %v5533_v31, %v11368_v0  ;;  %v5535_v34 = vpop.f32.mrb[193].mxu1 }
 0x884   : > { %v5536_v45 = vadd.f32 %v5535_v34, %v11371_v30  ;;  %v5537_v35 = vpop.f32.mrb[194].mxu1  ;;  %v9761_v34 = vld [vmem:[%s12068_s16 + $0xd8] ss:$12 sps:$4 sm:$0xff]  }
 0x885   : > { %v5538_v36 = vadd.f32 %v5537_v35, %v11368_v0  ;;  %v5539_v38 = vpop.f32.mrb[195].mxu1  ;;  %v5692_v1 = vmax.f32 %v5534_v33, 0.0  ;;  %6637 = vmatpush1.bf16.msra.mxu1 %v9761_v34 }
 0x886   : > { %v5540_v14 = vadd.f32 %v5539_v38, %v11371_v30  ;;  %v5693_v44 = vmax.f32 %v5536_v45, 0.0  ;;  %v9787_v38 = vld [vmem:[%s12068_s16 + $0x128] ss:$12 sps:$4 sm:$0xff]  }
 0x887   : > { %v5694_v41 = vmax.f32 %v5538_v36, 0.0  ;;  %v9766_v36 = vld [vmem:[%s12068_s16 + $0xf4] ss:$12 sps:$4 sm:$0xff]  }
 0x888   : > { %v5695_v47 = vmax.f32 %v5540_v14, 0.0  ;;  %6638 = vmatprep.subr.bf16.mxu1 %v9766_v36 }
 0x889   : > { %v5756_v12 = vpack.c.bf16 %v5694_v41, %v5692_v1  ;;  %v9788_v1 = vld [vmem:[%s12068_s16 + $0x68] ss:$12 sps:$4 sm:$0xff]  }
 0x88a   : > { %v5757_v15 = vpack.c.bf16 %v5695_v47, %v5693_v44  ;;  %v5543_v49 = vpop.f32.mrb[196].mxu1  ;;  %v9764_v47 = vld [vmem:[%s12068_s16 + $0xf0] ss:$12 sps:$4 sm:$0xff]  }
 0x88b   : > { %v5544_v51 = vadd.f32 %v5543_v49, %v11368_v0  ;;  %v5545_v52 = vpop.f32.mrb[197].mxu1  ;;  %6639 = vmatpush1.bf16.msra.mxu1 %v9764_v47 }
 0x88c   : > { %v5546_v53 = vadd.f32 %v5545_v52, %v11371_v30  ;;  %v5547_v54 = vpop.f32.mrb[198].mxu1  ;;  %6024 = vmatprep.mubr.bf16.mxu0 %v5757_v15  ;;  %v9769_v15 = vld [vmem:[%s12068_s16 + $0x10c] ss:$12 sps:$4 sm:$0xff]  }
 0x88d   : > { %v5548_v55 = vadd.f32 %v5547_v54, %v11368_v0  ;;  %v5549_v37 = vpop.f32.mrb[199].mxu1  ;;  %6025 = vmatmul.mubr.bf16.vlgmr.msra.gmra.mrb[64].mxu0 %v5756_v12  ;;  %v5696_v2 = vmax.f32 %v5544_v51, 0.0  ;;  %v9789_v12 = vld [vmem:[%s12068_s16 + $0x140] ss:$12 sps:$4 sm:$0xff]   ;;  %v9767_v54 = vld [vmem:[%s12068_s16 + $0x108] ss:$12 sps:$4 sm:$0xff]   ;;  %6640 = vmatprep.subr.bf16.mxu1 %v9769_v15 }
 0x88e   : > { %v5550_v13 = vadd.f32 %v5549_v37, %v11371_v30  ;;  %v5697_v5 = vmax.f32 %v5546_v53, 0.0  ;;  %8724 = vmatpush3.bf16.msra.mxu0 %v9774_v59 }
 0x88f   : > { %v5698_v3 = vmax.f32 %v5548_v55, 0.0  ;;  %8725 = vmatprep.subr.bf16.mxu0 %v9775_v62  ;;  %6641 = vmatpush1.bf16.msra.mxu1 %v9767_v54 }
 0x890   : > { %v5699_v46 = vmax.f32 %v5550_v13, 0.0  ;;  %6642 = vmatprep.subr.bf16.mxu1 %v9772_v56 }
 0x891   : > { %v5758_v43 = vpack.c.bf16 %v5698_v3, %v5696_v2  ;;  %v9770_v3 = vld [vmem:[%s12068_s16 + $0x120] ss:$12 sps:$4 sm:$0xff]  }
 0x892   : > { %v5759_v11 = vpack.c.bf16 %v5699_v46, %v5697_v5  ;;  %v5553_v16 = vpop.f32.mrb[200].mxu1  ;;  %8726 = vmatpush3.bf16.msra.mxu0 %v9776_v6  ;;  %v9779_v46 = vld [vmem:[%s12068_s16 + $0x13c] ss:$12 sps:$4 sm:$0xff]  }
 0x893   : > { %v5554_v19 = vadd.f32 %v5553_v16, %v11368_v0  ;;  %v5555_v20 = vpop.f32.mrb[201].mxu1  ;;  %8727 = vmatprep.subr.bf16.mxu0 %v9780_v18  ;;  %6643 = vmatpush1.bf16.msra.mxu1 %v9770_v3 }
 0x894   : > { %v5556_v21 = vadd.f32 %v5555_v20, %v11371_v30  ;;  %v5557_v22 = vpop.f32.mrb[202].mxu1  ;;  %6034 = vmatprep.mubr.bf16.mxu0 %v5759_v11  ;;  %6644 = vmatprep.subr.bf16.mxu1 %v9779_v46  ;;  %v9786_v20 = vld [vmem:[%s12068_s16 + $0x154] ss:$12 sps:$4 sm:$0xff]  }
 0x895   : > { %v5558_v24 = vadd.f32 %v5557_v22, %v11368_v0  ;;  %v5559_v25 = vpop.f32.mrb[203].mxu1  ;;  %6035 = vmatmul.mubr.bf16.gmra.mrb[68].mxu0 %v5758_v43  ;;  %v5700_v28 = vmax.f32 %v5554_v19, 0.0 }
 0x896   : > { %v5560_v27 = vadd.f32 %v5559_v25, %v11371_v30  ;;  %v5701_v31 = vmax.f32 %v5556_v21, 0.0  ;;  %8728 = vmatpush3.bf16.msra.mxu0 %v9781_v23 }
 0x897   : > { %v5702_v29 = vmax.f32 %v5558_v24, 0.0  ;;  %8729 = vmatprep.subr.bf16.mxu0 %v9782_v26  ;;  %6645 = vmatpush1.bf16.msra.mxu1 %v9777_v17  ;;  %v9784_v26 = vld [vmem:[%s12068_s16 + $0x150] ss:$12 sps:$4 sm:$0xff]  }
 0x898   : > { %v5703_v32 = vmax.f32 %v5560_v27, 0.0  ;;  %6646 = vmatprep.subr.bf16.mxu1 %v9786_v20 }
 0x899   : > { %v5760_v33 = vpack.c.bf16 %v5702_v29, %v5700_v28 }
 0x89a   : > { %v5761_v45 = vpack.c.bf16 %v5703_v32, %v5701_v31  ;;  %v5563_v35 = vpop.f32.mrb[204].mxu1  ;;  %8730 = vmatpush3.bf16.msra.mxu0 %v9783_v42 }
 0x89b   : > { %v5564_v39 = vadd.f32 %v5563_v35, %v11368_v0  ;;  %v5565_v63 = vpop.f32.mrb[205].mxu1  ;;  %8731 = vmatprep.subr.bf16.mxu0 %v9787_v38  ;;  %6647 = vmatpush1.bf16.msra.mxu1 %v9784_v26 }
 0x89c   : > { %v5566_v14 = vadd.f32 %v5565_v63, %v11371_v30  ;;  %v5567_v40 = vpop.f32.mrb[206].mxu1  ;;  %6044 = vmatprep.mubr.bf16.mxu0 %v5761_v45 }
 0x89d   : > { %v5568_v41 = vadd.f32 %v5567_v40, %v11368_v0  ;;  %v5569_v44 = vpop.f32.mrb[207].mxu1  ;;  %6045 = vmatmul.mubr.bf16.gmra.mrb[72].mxu0 %v5760_v33  ;;  %v5704_v49 = vmax.f32 %v5564_v39, 0.0 }
 0x89e   : > { %v5570_v48 = vadd.f32 %v5569_v44, %v11371_v30  ;;  %v5705_v51 = vmax.f32 %v5566_v14, 0.0  ;;  %8732 = vmatpush3.bf16.msra.mxu0 %v9788_v1 }
 0x89f   : > { %v5706_v50 = vmax.f32 %v5568_v41, 0.0  ;;  %8733 = vmatprep.subr.bf16.mxu0 %v9789_v12 }
 0x8a0   : > { %v5707_v52 = vmax.f32 %v5570_v48, 0.0 }
 0x8a1   : > { %v5762_v53 = vpack.c.bf16 %v5706_v50, %v5704_v49 }
 0x8a2   : > { %v5763_v55 = vpack.c.bf16 %v5707_v52, %v5705_v51  ;;  %v5573_v37 = vpop.f32.mrb[208].mxu1 }
 0x8a3   : > { %v5574_v57 = vadd.f32 %v5573_v37, %v11368_v0  ;;  %v5575_v13 = vpop.f32.mrb[209].mxu1 }
 0x8a4   : > { %v5576_v58 = vadd.f32 %v5575_v13, %v11371_v30  ;;  %v5577_v59 = vpop.f32.mrb[210].mxu1  ;;  %6054 = vmatprep.mubr.bf16.mxu0 %v5763_v55 }
 0x8a5   : > { %v5578_v62 = vadd.f32 %v5577_v59, %v11368_v0  ;;  %v5579_v2 = vpop.f32.mrb[211].mxu1  ;;  %6055 = vmatmul.mubr.bf16.gmra.mrb[76].mxu0 %v5762_v53  ;;  %v5708_v6 = vmax.f32 %v5574_v57, 0.0 }
 0x8a6   : > { %v5580_v5 = vadd.f32 %v5579_v2, %v11371_v30  ;;  %v5709_v9 = vmax.f32 %v5576_v58, 0.0 }
 0x8a7   : > { %v5710_v43 = vmax.f32 %v5578_v62, 0.0 }
 0x8a8   : > { %v5711_v11 = vmax.f32 %v5580_v5, 0.0 }
 0x8a9   : > { %v5764_v16 = vpack.c.bf16 %v5710_v43, %v5708_v6 }
 0x8aa   : > { %v5765_v18 = vpack.c.bf16 %v5711_v11, %v5709_v9  ;;  %v5583_v19 = vpop.f32.mrb[212].mxu1 }
 0x8ab   : > { %v5584_v21 = vadd.f32 %v5583_v19, %v11368_v0  ;;  %v5585_v22 = vpop.f32.mrb[213].mxu1 }
 0x8ac   : > { %v5586_v23 = vadd.f32 %v5585_v22, %v11371_v30  ;;  %v5587_v24 = vpop.f32.mrb[214].mxu1  ;;  %6064 = vmatprep.mubr.bf16.mxu0 %v5765_v18 }
 0x8ad   : > { %v5588_v25 = vadd.f32 %v5587_v24, %v11368_v0  ;;  %v5589_v60 = vpop.f32.mrb[215].mxu1  ;;  %6065 = vmatmul.mubr.bf16.gmra.mrb[80].mxu0 %v5764_v16  ;;  %v5712_v61 = vmax.f32 %v5584_v21, 0.0 }
 0x8ae   : > { %v5590_v27 = vadd.f32 %v5589_v60, %v11371_v30  ;;  %v5713_v29 = vmax.f32 %v5586_v23, 0.0 }
 0x8af   : > { %v5714_v28 = vmax.f32 %v5588_v25, 0.0 }
 0x8b0   : > { %v5715_v31 = vmax.f32 %v5590_v27, 0.0 }
 0x8b1   : > { %v5766_v32 = vpack.c.bf16 %v5714_v28, %v5712_v61 }
 0x8b2   : > { %v5767_v42 = vpack.c.bf16 %v5715_v31, %v5713_v29  ;;  %v5593_v33 = vpop.f32.mrb[216].mxu1 }
 0x8b3   : > { %v5594_v34 = vadd.f32 %v5593_v33, %v11368_v0  ;;  %v5595_v45 = vpop.f32.mrb[217].mxu1 }
 0x8b4   : > { %v5596_v35 = vadd.f32 %v5595_v45, %v11371_v30  ;;  %v5597_v36 = vpop.f32.mrb[218].mxu1  ;;  %6074 = vmatprep.mubr.bf16.mxu0 %v5767_v42 }
 0x8b5   : > { %v5598_v38 = vadd.f32 %v5597_v36, %v11368_v0  ;;  %v5599_v39 = vpop.f32.mrb[219].mxu1  ;;  %6075 = vmatmul.mubr.bf16.gmra.mrb[84].mxu0 %v5766_v32  ;;  %v5716_v14 = vmax.f32 %v5594_v34, 0.0 }
 0x8b6   : > { %v5600_v63 = vadd.f32 %v5599_v39, %v11371_v30  ;;  %v5717_v1 = vmax.f32 %v5596_v35, 0.0 }
 0x8b7   : > { %v5718_v40 = vmax.f32 %v5598_v38, 0.0 }
 0x8b8   : > { %v5719_v41 = vmax.f32 %v5600_v63, 0.0 }
 0x8b9   : > { %v5768_v44 = vpack.c.bf16 %v5718_v40, %v5716_v14 }
 0x8ba   : > { %v5769_v47 = vpack.c.bf16 %v5719_v41, %v5717_v1  ;;  %v5603_v12 = vpop.f32.mrb[220].mxu1 }
 0x8bb   : > { %v5604_v48 = vadd.f32 %v5603_v12, %v11368_v0  ;;  %v5605_v15 = vpop.f32.mrb[221].mxu1 }
 0x8bc   : > { %v5606_v49 = vadd.f32 %v5605_v15, %v11371_v30  ;;  %v5607_v50 = vpop.f32.mrb[222].mxu1  ;;  %6084 = vmatprep.mubr.bf16.mxu0 %v5769_v47 }
 0x8bd   : > { %v5608_v51 = vadd.f32 %v5607_v50, %v11368_v0  ;;  %v5609_v52 = vpop.f32.mrb[223].mxu1  ;;  %6085 = vmatmul.mubr.bf16.gmra.mrb[88].mxu0 %v5768_v44  ;;  %v5720_v54 = vmax.f32 %v5604_v48, 0.0 }
 0x8be   : > { %v5610_v53 = vadd.f32 %v5609_v52, %v11371_v30  ;;  %v5721_v37 = vmax.f32 %v5606_v49, 0.0  ;;  %v9790_v52 = vld [vmem:[%s12068_s16 + $0x80] ss:$12 sps:$4 sm:$0xff]  }
 0x8bf   : > { %v5722_v55 = vmax.f32 %v5608_v51, 0.0  ;;  %8734 = vmatpush3.bf16.msra.mxu0 %v9790_v52 }
 0x8c0   : > { %v5723_v56 = vmax.f32 %v5610_v53, 0.0 }
 0x8c1   : > { %v5770_v57 = vpack.c.bf16 %v5722_v55, %v5720_v54 }
 0x8c2   : > { %v5771_v13 = vpack.c.bf16 %v5723_v56, %v5721_v37  ;;  %v5613_v58 = vpop.f32.mrb[224].mxu1 }
 0x8c3   : > { %v5614_v59 = vadd.f32 %v5613_v58, %v11368_v0  ;;  %v5615_v62 = vpop.f32.mrb[225].mxu1 }
 0x8c4   : > { %v5616_v2 = vadd.f32 %v5615_v62, %v11371_v30  ;;  %v5617_v3 = vpop.f32.mrb[226].mxu1  ;;  %6094 = vmatprep.mubr.bf16.mxu0 %v5771_v13 }
 0x8c5   : > { %v5618_v5 = vadd.f32 %v5617_v3, %v11368_v0  ;;  %v5619_v46 = vpop.f32.mrb[227].mxu1  ;;  %6095 = vmatmul.mubr.bf16.gmra.mrb[92].mxu0 %v5770_v57  ;;  %v5724_v43 = vmax.f32 %v5614_v59, 0.0  ;;  %v9794_v57 = vld [vmem:[%s12068_s16 + $0x158] ss:$12 sps:$4 sm:$0xff]  }
 0x8c6   : > { %v5620_v6 = vadd.f32 %v5619_v46, %v11371_v30  ;;  %v5725_v11 = vmax.f32 %v5616_v2, 0.0  ;;  %v9795_v59 = vld [vmem:[%s12068_s16 + $0x98] ss:$12 sps:$4 sm:$0xff]   ;;  %8735 = vmatprep.subr.bf16.mxu0 %v9794_v57 }
 0x8c7   : > { %v5726_v9 = vmax.f32 %v5618_v5, 0.0  ;;  %8736 = vmatpush3.bf16.msra.mxu0 %v9795_v59 }
 0x8c8   : > { %v5727_v16 = vmax.f32 %v5620_v6, 0.0 }
 0x8c9   : > { %v5772_v17 = vpack.c.bf16 %v5726_v9, %v5724_v43  ;;  %v9793_v43 = vld [vmem:[%s12068_s16 + $0x16c] ss:$12 sps:$4 sm:$0xff]   ;;  %v9796_v9 = vld [vmem:[%s12068_s16 + $0x170] ss:$12 sps:$4 sm:$0xff]  }
 0x8ca   : > { %v5773_v18 = vpack.c.bf16 %v5727_v16, %v5725_v11  ;;  %v5623_v19 = vpop.f32.mrb[228].mxu1  ;;  %v9791_v16 = vld [vmem:[%s12068_s16 + $0x168] ss:$12 sps:$4 sm:$0xff]   ;;  %6648 = vmatprep.subr.bf16.mxu1 %v9793_v43  ;;  %8737 = vmatprep.subr.bf16.mxu0 %v9796_v9 }
 0x8cb   : > { %v5624_v20 = vadd.f32 %v5623_v19, %v11368_v0  ;;  %v5625_v21 = vpop.f32.mrb[229].mxu1  ;;  %6649 = vmatpush1.bf16.msra.mxu1 %v9791_v16 }
 0x8cc   : > { %v5626_v22 = vadd.f32 %v5625_v21, %v11371_v30  ;;  %v5627_v23 = vpop.f32.mrb[230].mxu1  ;;  %6104 = vmatprep.mubr.bf16.mxu0 %v5773_v18 }
 0x8cd   : > { %v5628_v24 = vadd.f32 %v5627_v23, %v11368_v0  ;;  %v5629_v25 = vpop.f32.mrb[231].mxu1  ;;  %6105 = vmatmul.mubr.bf16.gmra.mrb[96].mxu0 %v5772_v17  ;;  %v5728_v26 = vmax.f32 %v5624_v20, 0.0  ;;  %v9797_v17 = vld [vmem:[%s12068_s16 + $0xb0] ss:$12 sps:$4 sm:$0xff]  }
 0x8ce   : > { %v5630_v60 = vadd.f32 %v5629_v25, %v11371_v30  ;;  %v5729_v61 = vmax.f32 %v5626_v22, 0.0  ;;  %8738 = vmatpush3.bf16.msra.mxu0 %v9797_v17 }
 0x8cf   : > { %v5730_v27 = vmax.f32 %v5628_v24, 0.0 }
 0x8d0   : > { %v5731_v28 = vmax.f32 %v5630_v60, 0.0 }
 0x8d1   : > { %v5774_v29 = vpack.c.bf16 %v5730_v27, %v5728_v26 }
 0x8d2   : > { %v5775_v31 = vpack.c.bf16 %v5731_v28, %v5729_v61  ;;  %v5633_v32 = vpop.f32.mrb[232].mxu1 }
 0x8d3   : > { %v5634_v42 = vadd.f32 %v5633_v32, %v11368_v0  ;;  %v5635_v33 = vpop.f32.mrb[233].mxu1 }
 0x8d4   : > { %v5636_v34 = vadd.f32 %v5635_v33, %v11371_v30  ;;  %v5637_v45 = vpop.f32.mrb[234].mxu1  ;;  %6114 = vmatprep.mubr.bf16.mxu0 %v5775_v31 }
 0x8d5   : > { %v5638_v35 = vadd.f32 %v5637_v45, %v11368_v0  ;;  %v5639_v36 = vpop.f32.mrb[235].mxu1  ;;  %6115 = vmatmul.mubr.bf16.gmra.mrb[100].mxu0 %v5774_v29  ;;  %v5732_v39 = vmax.f32 %v5634_v42, 0.0 }
 0x8d6   : > { %v5640_v38 = vadd.f32 %v5639_v36, %v11371_v30  ;;  %v5733_v14 = vmax.f32 %v5636_v34, 0.0 }
 0x8d7   : > { %v5734_v63 = vmax.f32 %v5638_v35, 0.0 }
 0x8d8   : > { %v5735_v40 = vmax.f32 %v5640_v38, 0.0 }
 0x8d9   : > { %v5776_v1 = vpack.c.bf16 %v5734_v63, %v5732_v39 }
 0x8da   : > { %v5777_v41 = vpack.c.bf16 %v5735_v40, %v5733_v14  ;;  %v5643_v44 = vpop.f32.mrb[236].mxu1 }
 0x8db   : > { %v5644_v47 = vadd.f32 %v5643_v44, %v11368_v0  ;;  %v5645_v12 = vpop.f32.mrb[237].mxu1 }
 0x8dc   : > { %v5646_v48 = vadd.f32 %v5645_v12, %v11371_v30  ;;  %v5647_v15 = vpop.f32.mrb[238].mxu1  ;;  %6124 = vmatprep.mubr.bf16.mxu0 %v5777_v41 }
 0x8dd   : > { %v5648_v49 = vadd.f32 %v5647_v15, %v11368_v0  ;;  %v5649_v50 = vpop.f32.mrb[239].mxu1  ;;  %6125 = vmatmul.mubr.bf16.gmra.mrb[104].mxu0 %v5776_v1  ;;  %v5736_v53 = vmax.f32 %v5644_v47, 0.0 }
 0x8de   : > { %v5650_v51 = vadd.f32 %v5649_v50, %v11371_v30  ;;  %v5737_v55 = vmax.f32 %v5646_v48, 0.0 }
 0x8df   : > { %v5738_v54 = vmax.f32 %v5648_v49, 0.0 }
 0x8e0   : > { %v5739_v37 = vmax.f32 %v5650_v51, 0.0 }
 0x8e1   : > { %v5778_v56 = vpack.c.bf16 %v5738_v54, %v5736_v53 }
 0x8e2   : > { %v5779_v13 = vpack.c.bf16 %v5739_v37, %v5737_v55  ;;  %v5653_v58 = vpop.f32.mrb[240].mxu1 }
 0x8e3   : > { %v5654_v62 = vadd.f32 %v5653_v58, %v11368_v0  ;;  %v5655_v2 = vpop.f32.mrb[241].mxu1 }
 0x8e4   : > { %v5656_v3 = vadd.f32 %v5655_v2, %v11371_v30  ;;  %v5657_v5 = vpop.f32.mrb[242].mxu1  ;;  %6134 = vmatprep.mubr.bf16.mxu0 %v5779_v13  ;;  %v9798_v2 = vld [vmem:[%s12070_s0] sm:$0xff]  }
 0x8e5   : > { %v5658_v46 = vadd.f32 %v5657_v5, %v11368_v0  ;;  %v5659_v6 = vpop.f32.mrb[243].mxu1  ;;  %6135 = vmatmul.mubr.bf16.gmra.mrb[108].mxu0 %v5778_v56  ;;  %v5740_v18 = vmax.f32 %v5654_v62, 0.0  ;;  %8995 = vmatprep.subr.bf16.mxu1 %v9798_v2 }
 0x8e6   : > { %v5660_v11 = vadd.f32 %v5659_v6, %v11371_v30  ;;  %v5741_v20 = vmax.f32 %v5656_v3, 0.0  ;;  %v5820_v3 = vld [vmem:[%s12071_s10] sm:$0x3] }
 0x8e7   : > { %v5742_v19 = vmax.f32 %v5658_v46, 0.0  ;;  %v11482_v5 = vrot.slane %v5820_v3, %v10503_v8 }
 0x8e8   : > { %v5743_v21 = vmax.f32 %v5660_v11, 0.0 }
 0x8e9   : > { %v5780_v22 = vpack.c.bf16 %v5742_v19, %v5740_v18 }
 0x8ea   : > { %v5781_v23 = vpack.c.bf16 %v5743_v21, %v5741_v20  ;;  %v5663_v24 = vpop.f32.mrb[244].mxu1 }
 0x8eb   : > { %v5664_v25 = vadd.f32 %v5663_v24, %v11368_v0  ;;  %v5665_v60 = vpop.f32.mrb[245].mxu1 }
 0x8ec   : > { %v5666_v26 = vadd.f32 %v5665_v60, %v11371_v30  ;;  %v5667_v27 = vpop.f32.mrb[246].mxu1  ;;  %6144 = vmatprep.mubr.bf16.mxu0 %v5781_v23 }
 0x8ed   : > { %v5668_v61 = vadd.f32 %v5667_v27, %v11368_v0  ;;  %v5669_v28 = vpop.f32.mrb[247].mxu1  ;;  %6145 = vmatmul.mubr.bf16.gmra.mrb[112].mxu0 %v5780_v22  ;;  %v5744_v31 = vmax.f32 %v5664_v25, 0.0 }
 0x8ee   : > { %v5670_v29 = vadd.f32 %v5669_v28, %v11371_v30  ;;  %v5745_v42 = vmax.f32 %v5666_v26, 0.0  ;;  %v9799_v26 = vld [vmem:[%s12070_s0 + $0x8] sm:$0xff]  }
 0x8ef   : > { %v5746_v32 = vmax.f32 %v5668_v61, 0.0 }
 0x8f0   : > { %v5747_v33 = vmax.f32 %v5670_v29, 0.0 }
 0x8f1   : > { %v5782_v34 = vpack.c.bf16 %v5746_v32, %v5744_v31 }
 0x8f2   : > { %v5783_v45 = vpack.c.bf16 %v5747_v33, %v5745_v42  ;;  %v5673_v35 = vpop.f32.mrb[248].mxu1  ;;  %v9800_v33 = vld [vmem:[%s12070_s0 + $0x10] sm:$0xff]  }
 0x8f3   : > { %v5674_v36 = vadd.f32 %v5673_v35, %v11368_v0  ;;  %v5675_v38 = vpop.f32.mrb[249].mxu1 }
 0x8f4   : > { %v5676_v39 = vadd.f32 %v5675_v38, %v11371_v30  ;;  %v5677_v63 = vpop.f32.mrb[250].mxu1  ;;  %6154 = vmatprep.mubr.bf16.mxu0 %v5783_v45 }
 0x8f5   : > { %v5678_v14 = vadd.f32 %v5677_v63, %v11368_v0  ;;  %v5679_v40 = vpop.f32.mrb[251].mxu1  ;;  %6155 = vmatmul.mubr.bf16.gmra.mrb[116].mxu0 %v5782_v34  ;;  %v5748_v41 = vmax.f32 %v5674_v36, 0.0 }
 0x8f6   : > { %v5680_v1 = vadd.f32 %v5679_v40, %v11371_v30  ;;  %v5749_v47 = vmax.f32 %v5676_v39, 0.0 }
 0x8f7   : > { %v5750_v44 = vmax.f32 %v5678_v14, 0.0  ;;  %v9801_v14 = vld [vmem:[%s12070_s0 + $0x18] sm:$0xff]  }
 0x8f8   : > { %v5751_v12 = vmax.f32 %v5680_v1, 0.0 }
 0x8f9   : > { %v5784_v48 = vpack.c.bf16 %v5750_v44, %v5748_v41 }
 0x8fa   : > { %v5785_v15 = vpack.c.bf16 %v5751_v12, %v5749_v47  ;;  %v5683_v49 = vpop.f32.mrb[252].mxu1 }
 0x8fb   : > { %v5684_v50 = vadd.f32 %v5683_v49, %v11368_v0  ;;  %v5685_v51 = vpop.f32.mrb[253].mxu1 }
 0x8fc   : > { %v5686_v52 = vadd.f32 %v5685_v51, %v11371_v30  ;;  %v5687_v53 = vpop.f32.mrb[254].mxu1  ;;  %6164 = vmatprep.mubr.bf16.mxu0 %v5785_v15  ;;  %v9802_v15 = vld [vmem:[%s12070_s0 + $0x20] sm:$0xff]  }
 0x8fd   : > { %v5688_v54 = vadd.f32 %v5687_v53, %v11368_v0  ;;  %v5689_v55 = vpop.f32.mrb[255].mxu1  ;;  %6165 = vmatmul.mubr.bf16.gmra.mrb[120].mxu0 %v5784_v48  ;;  %v5752_v56 = vmax.f32 %v5684_v50, 0.0  ;;  %v11485_v0 = vrot.slane %v5820_v3, %v10507_v10  ;;  %v9804_v3 = vld [vmem:[%s12070_s0 + $0x30] sm:$0xff]  }
 0x8fe   : > { %v5690_v37 = vadd.f32 %v5689_v55, %v11371_v30  ;;  %v5753_v13 = vmax.f32 %v5686_v52, 0.0 }
 0x8ff   : > { %v5754_v57 = vmax.f32 %v5688_v54, 0.0 }
 0x900   : > { %v5755_v58 = vmax.f32 %v5690_v37, 0.0  ;;  %v9803_v37 = vld [vmem:[%s12070_s0 + $0x28] sm:$0xff]  }
 0x901   : > { %v5786_v59 = vpack.c.bf16 %v5754_v57, %v5752_v56 }
 0x902   : > { %v5787_v62 = vpack.c.bf16 %v5755_v58, %v5753_v13 }
 0x904   : > { %6174 = vmatprep.mubr.bf16.mxu0 %v5787_v62 }
 0x905   : > { %6175 = vmatmul.mubr.bf16.gmra.mrb[124].mxu0 %v5786_v59 }
 0x960   : > { %v6026_v46 = vpop.f32.mrb[64].mxu0 }
 0x961   : > { %v6027_v30 = vadd.f32 %v6026_v46, %v11482_v5  ;;  %v6028_v6 = vpop.f32.mrb[65].mxu0 }
 0x962   : > { %v6029_v43 = vadd.f32 %v6028_v6, %v11485_v0  ;;  %v6030_v9 = vpop.f32.mrb[66].mxu0 }
 0x963   : > { %v6031_v11 = vadd.f32 %v6030_v9, %v11482_v5  ;;  %v6032_v16 = vpop.f32.mrb[67].mxu0  ;;  %v6185_v18 = vmax.f32 %v6027_v30, 0.0 }
 0x964   : > { %v6033_v17 = vadd.f32 %v6032_v16, %v11485_v0  ;;  %v6186_v20 = vmax.f32 %v6029_v43, 0.0 }
 0x965   : > { %v6187_v19 = vmax.f32 %v6031_v11, 0.0 }
 0x966   : > { %v6188_v21 = vmax.f32 %v6033_v17, 0.0  ;;  %v9805_v17 = vld [vmem:[%s12070_s0 + $0x38] sm:$0xff]  }
 0x967   : > { %v6249_v22 = vpack.c.bf16 %v6187_v19, %v6185_v18 }
 0x968   : > { %v6250_v23 = vpack.c.bf16 %v6188_v21, %v6186_v20  ;;  %v6036_v24 = vpop.f32.mrb[68].mxu0 }
 0x969   : > { %v6037_v25 = vadd.f32 %v6036_v24, %v11482_v5  ;;  %v6038_v60 = vpop.f32.mrb[69].mxu0 }
 0x96a   : > { %v6039_v27 = vadd.f32 %v6038_v60, %v11485_v0  ;;  %v6040_v61 = vpop.f32.mrb[70].mxu0  ;;  %6650 = vmatprep.mubr.bf16.mxu1 %v6250_v23  ;;  %6843 = vmatprep.mubr.bf16.mxu0 %v6250_v23 }
 0x96b   : > { %v6041_v28 = vadd.f32 %v6040_v61, %v11482_v5  ;;  %v6042_v29 = vpop.f32.mrb[71].mxu0  ;;  %6651 = vmatmul.mubr.bf16.vlgmr.msra.gmra.mrb[0].mxu1 %v6249_v22  ;;  %6844 = vmatmul.mubr.bf16.vlgmr.msra.gmra.mrb[128].mxu0 %v6249_v22  ;;  %v6189_v32 = vmax.f32 %v6037_v25, 0.0  ;;  %v9806_v25 = vld [vmem:[#allocation6 + $0x40] sm:$0xff]  }
 0x96c   : > { %v6043_v31 = vadd.f32 %v6042_v29, %v11485_v0  ;;  %8996 = vmatpush3.bf16.msra.mxu1 %v9798_v2  ;;  %v6190_v34 = vmax.f32 %v6039_v27, 0.0 }
 0x96d   : > { %v6191_v42 = vmax.f32 %v6041_v28, 0.0  ;;  %8997 = vmatprep.subr.bf16.mxu1 %v9799_v26 }
 0x96e   : > { %v6192_v45 = vmax.f32 %v6043_v31, 0.0 }
 0x96f   : > { %v6251_v35 = vpack.c.bf16 %v6191_v42, %v6189_v32 }
 0x970   : > { %v6252_v36 = vpack.c.bf16 %v6192_v45, %v6190_v34  ;;  %v6046_v38 = vpop.f32.mrb[72].mxu0  ;;  %8998 = vmatpush3.bf16.msra.mxu1 %v9799_v26 }
 0x971   : > { %v6047_v39 = vadd.f32 %v6046_v38, %v11482_v5  ;;  %v6048_v63 = vpop.f32.mrb[73].mxu0  ;;  %8999 = vmatprep.subr.bf16.mxu1 %v9800_v33 }
 0x972   : > { %v6049_v40 = vadd.f32 %v6048_v63, %v11485_v0  ;;  %v6050_v1 = vpop.f32.mrb[74].mxu0  ;;  %6660 = vmatprep.mubr.bf16.mxu1 %v6252_v36  ;;  %6851 = vmatprep.mubr.bf16.mxu0 %v6252_v36 }
 0x973   : > { %v6051_v41 = vadd.f32 %v6050_v1, %v11482_v5  ;;  %v6052_v44 = vpop.f32.mrb[75].mxu0  ;;  %6661 = vmatmul.mubr.bf16.gmra.mrb[4].mxu1 %v6251_v35  ;;  %6852 = vmatmul.mubr.bf16.gmra.mrb[132].mxu0 %v6251_v35  ;;  %v6193_v12 = vmax.f32 %v6047_v39, 0.0 }
 0x974   : > { %v6053_v47 = vadd.f32 %v6052_v44, %v11485_v0  ;;  %9000 = vmatpush3.bf16.msra.mxu1 %v9800_v33  ;;  %v6194_v49 = vmax.f32 %v6049_v40, 0.0 }
 0x975   : > { %v6195_v48 = vmax.f32 %v6051_v41, 0.0  ;;  %9001 = vmatprep.subr.bf16.mxu1 %v9801_v14 }
 0x976   : > { %v6196_v50 = vmax.f32 %v6053_v47, 0.0 }
 0x977   : > { %v6253_v51 = vpack.c.bf16 %v6195_v48, %v6193_v12 }
 0x978   : > { %v6254_v52 = vpack.c.bf16 %v6196_v50, %v6194_v49  ;;  %v6056_v53 = vpop.f32.mrb[76].mxu0  ;;  %9002 = vmatpush3.bf16.msra.mxu1 %v9801_v14 }
 0x979   : > { %v6057_v54 = vadd.f32 %v6056_v53, %v11482_v5  ;;  %v6058_v55 = vpop.f32.mrb[77].mxu0  ;;  %9003 = vmatprep.subr.bf16.mxu1 %v9802_v15 }
 0x97a   : > { %v6059_v56 = vadd.f32 %v6058_v55, %v11485_v0  ;;  %v6060_v57 = vpop.f32.mrb[78].mxu0  ;;  %6670 = vmatprep.mubr.bf16.mxu1 %v6254_v52  ;;  %6859 = vmatprep.mubr.bf16.mxu0 %v6254_v52 }
 0x97b   : > { %v6061_v13 = vadd.f32 %v6060_v57, %v11482_v5  ;;  %v6062_v58 = vpop.f32.mrb[79].mxu0  ;;  %6671 = vmatmul.mubr.bf16.gmra.mrb[8].mxu1 %v6253_v51  ;;  %6860 = vmatmul.mubr.bf16.gmra.mrb[136].mxu0 %v6253_v51  ;;  %v6197_v62 = vmax.f32 %v6057_v54, 0.0 }
 0x97c   : > { %v6063_v59 = vadd.f32 %v6062_v58, %v11485_v0  ;;  %9004 = vmatpush3.bf16.msra.mxu1 %v9802_v15  ;;  %v6198_v46 = vmax.f32 %v6059_v56, 0.0 }
 0x97d   : > { %v6199_v2 = vmax.f32 %v6061_v13, 0.0  ;;  %9005 = vmatprep.subr.bf16.mxu1 %v9803_v37 }
 0x97e   : > { %v6200_v30 = vmax.f32 %v6063_v59, 0.0 }
 0x97f   : > { %v6255_v6 = vpack.c.bf16 %v6199_v2, %v6197_v62 }
 0x980   : > { %v6256_v43 = vpack.c.bf16 %v6200_v30, %v6198_v46  ;;  %v6066_v9 = vpop.f32.mrb[80].mxu0  ;;  %9006 = vmatpush3.bf16.msra.mxu1 %v9803_v37 }
 0x981   : > { %v6067_v11 = vadd.f32 %v6066_v9, %v11482_v5  ;;  %v6068_v16 = vpop.f32.mrb[81].mxu0  ;;  %9007 = vmatprep.subr.bf16.mxu1 %v9804_v3 }
 0x982   : > { %v6069_v18 = vadd.f32 %v6068_v16, %v11485_v0  ;;  %v6070_v19 = vpop.f32.mrb[82].mxu0  ;;  %6680 = vmatprep.mubr.bf16.mxu1 %v6256_v43  ;;  %6867 = vmatprep.mubr.bf16.mxu0 %v6256_v43 }
 0x983   : > { %v6071_v20 = vadd.f32 %v6070_v19, %v11482_v5  ;;  %v6072_v21 = vpop.f32.mrb[83].mxu0  ;;  %6681 = vmatmul.mubr.bf16.gmra.mrb[12].mxu1 %v6255_v6  ;;  %6868 = vmatmul.mubr.bf16.gmra.mrb[140].mxu0 %v6255_v6  ;;  %v6201_v23 = vmax.f32 %v6067_v11, 0.0 }
 0x984   : > { %v6073_v22 = vadd.f32 %v6072_v21, %v11485_v0  ;;  %9008 = vmatpush3.bf16.msra.mxu1 %v9804_v3  ;;  %v6202_v60 = vmax.f32 %v6069_v18, 0.0 }
 0x985   : > { %v6203_v24 = vmax.f32 %v6071_v20, 0.0  ;;  %9009 = vmatprep.subr.bf16.mxu1 %v9805_v17 }
 0x986   : > { %v6204_v26 = vmax.f32 %v6073_v22, 0.0 }
 0x987   : > { %v6257_v27 = vpack.c.bf16 %v6203_v24, %v6201_v23 }
 0x988   : > { %v6258_v61 = vpack.c.bf16 %v6204_v26, %v6202_v60  ;;  %v6076_v28 = vpop.f32.mrb[84].mxu0  ;;  %9010 = vmatpush3.bf16.msra.mxu1 %v9805_v17 }
 0x989   : > { %v6077_v29 = vadd.f32 %v6076_v28, %v11482_v5  ;;  %v6078_v31 = vpop.f32.mrb[85].mxu0  ;;  %8859 = vmatprep.subr.bf16.mxu1 %v9806_v25 }
 0x98a   : > { %v6079_v32 = vadd.f32 %v6078_v31, %v11485_v0  ;;  %v6080_v42 = vpop.f32.mrb[86].mxu0  ;;  %6690 = vmatprep.mubr.bf16.mxu1 %v6258_v61  ;;  %6875 = vmatprep.mubr.bf16.mxu0 %v6258_v61 }
 0x98b   : > { %v6081_v33 = vadd.f32 %v6080_v42, %v11482_v5  ;;  %v6082_v34 = vpop.f32.mrb[87].mxu0  ;;  %6691 = vmatmul.mubr.bf16.gmra.mrb[16].mxu1 %v6257_v27  ;;  %6876 = vmatmul.mubr.bf16.gmra.mrb[144].mxu0 %v6257_v27  ;;  %v6205_v35 = vmax.f32 %v6077_v29, 0.0 }
 0x98c   : > { %v6083_v45 = vadd.f32 %v6082_v34, %v11485_v0  ;;  %v6206_v38 = vmax.f32 %v6079_v32, 0.0 }
 0x98d   : > { %v6207_v36 = vmax.f32 %v6081_v33, 0.0 }
 0x98e   : > { %v6208_v39 = vmax.f32 %v6083_v45, 0.0 }
 0x98f   : > { %v6259_v63 = vpack.c.bf16 %v6207_v36, %v6205_v35 }
 0x990   : > { %v6260_v14 = vpack.c.bf16 %v6208_v39, %v6206_v38  ;;  %v6086_v40 = vpop.f32.mrb[88].mxu0 }
 0x991   : > { %v6087_v1 = vadd.f32 %v6086_v40, %v11482_v5  ;;  %v6088_v41 = vpop.f32.mrb[89].mxu0 }
 0x992   : > { %v6089_v44 = vadd.f32 %v6088_v41, %v11485_v0  ;;  %v6090_v47 = vpop.f32.mrb[90].mxu0  ;;  %6700 = vmatprep.mubr.bf16.mxu1 %v6260_v14  ;;  %6883 = vmatprep.mubr.bf16.mxu0 %v6260_v14 }
 0x993   : > { %v6091_v12 = vadd.f32 %v6090_v47, %v11482_v5  ;;  %v6092_v48 = vpop.f32.mrb[91].mxu0  ;;  %6701 = vmatmul.mubr.bf16.gmra.mrb[20].mxu1 %v6259_v63  ;;  %6884 = vmatmul.mubr.bf16.gmra.mrb[148].mxu0 %v6259_v63  ;;  %v6209_v49 = vmax.f32 %v6087_v1, 0.0 }
 0x994   : > { %v6093_v15 = vadd.f32 %v6092_v48, %v11485_v0  ;;  %v6210_v51 = vmax.f32 %v6089_v44, 0.0 }
 0x995   : > { %v6211_v50 = vmax.f32 %v6091_v12, 0.0 }
 0x996   : > { %v6212_v52 = vmax.f32 %v6093_v15, 0.0 }
 0x997   : > { %v6261_v53 = vpack.c.bf16 %v6211_v50, %v6209_v49 }
 0x998   : > { %v6262_v54 = vpack.c.bf16 %v6212_v52, %v6210_v51  ;;  %v6096_v55 = vpop.f32.mrb[92].mxu0 }
 0x999   : > { %v6097_v37 = vadd.f32 %v6096_v55, %v11482_v5  ;;  %v6098_v56 = vpop.f32.mrb[93].mxu0 }
 0x99a   : > { %v6099_v57 = vadd.f32 %v6098_v56, %v11485_v0  ;;  %v6100_v13 = vpop.f32.mrb[94].mxu0  ;;  %6710 = vmatprep.mubr.bf16.mxu1 %v6262_v54  ;;  %6891 = vmatprep.mubr.bf16.mxu0 %v6262_v54 }
 0x99b   : > { %v6101_v58 = vadd.f32 %v6100_v13, %v11482_v5  ;;  %v6102_v59 = vpop.f32.mrb[95].mxu0  ;;  %6711 = vmatmul.mubr.bf16.gmra.mrb[24].mxu1 %v6261_v53  ;;  %6892 = vmatmul.mubr.bf16.gmra.mrb[152].mxu0 %v6261_v53  ;;  %v6213_v2 = vmax.f32 %v6097_v37, 0.0 }
 0x99c   : > { %v6103_v62 = vadd.f32 %v6102_v59, %v11485_v0  ;;  %v6214_v46 = vmax.f32 %v6099_v57, 0.0 }
 0x99d   : > { %v6215_v3 = vmax.f32 %v6101_v58, 0.0 }
 0x99e   : > { %v6216_v30 = vmax.f32 %v6103_v62, 0.0 }
 0x99f   : > { %v6263_v6 = vpack.c.bf16 %v6215_v3, %v6213_v2 }
 0x9a0   : > { %v6264_v43 = vpack.c.bf16 %v6216_v30, %v6214_v46  ;;  %v6106_v9 = vpop.f32.mrb[96].mxu0 }
 0x9a1   : > { %v6107_v11 = vadd.f32 %v6106_v9, %v11482_v5  ;;  %v6108_v16 = vpop.f32.mrb[97].mxu0 }
 0x9a2   : > { %v6109_v17 = vadd.f32 %v6108_v16, %v11485_v0  ;;  %v6110_v18 = vpop.f32.mrb[98].mxu0  ;;  %6720 = vmatprep.mubr.bf16.mxu1 %v6264_v43  ;;  %6899 = vmatprep.mubr.bf16.mxu0 %v6264_v43 }
 0x9a3   : > { %v6111_v19 = vadd.f32 %v6110_v18, %v11482_v5  ;;  %v6112_v20 = vpop.f32.mrb[99].mxu0  ;;  %6721 = vmatmul.mubr.bf16.gmra.mrb[28].mxu1 %v6263_v6  ;;  %6900 = vmatmul.mubr.bf16.gmra.mrb[156].mxu0 %v6263_v6  ;;  %v6217_v22 = vmax.f32 %v6107_v11, 0.0 }
 0x9a4   : > { %v6113_v21 = vadd.f32 %v6112_v20, %v11485_v0  ;;  %v6218_v24 = vmax.f32 %v6109_v17, 0.0 }
 0x9a5   : > { %v6219_v23 = vmax.f32 %v6111_v19, 0.0 }
 0x9a6   : > { %v6220_v25 = vmax.f32 %v6113_v21, 0.0 }
 0x9a7   : > { %v6265_v60 = vpack.c.bf16 %v6219_v23, %v6217_v22 }
 0x9a8   : > { %v6266_v26 = vpack.c.bf16 %v6220_v25, %v6218_v24  ;;  %v6116_v27 = vpop.f32.mrb[100].mxu0 }
 0x9a9   : > { %v6117_v61 = vadd.f32 %v6116_v27, %v11482_v5  ;;  %v6118_v28 = vpop.f32.mrb[101].mxu0 }
 0x9aa   : > { %v6119_v29 = vadd.f32 %v6118_v28, %v11485_v0  ;;  %v6120_v31 = vpop.f32.mrb[102].mxu0  ;;  %6730 = vmatprep.mubr.bf16.mxu1 %v6266_v26  ;;  %6907 = vmatprep.mubr.bf16.mxu0 %v6266_v26 }
 0x9ab   : > { %v6121_v32 = vadd.f32 %v6120_v31, %v11482_v5  ;;  %v6122_v42 = vpop.f32.mrb[103].mxu0  ;;  %6731 = vmatmul.mubr.bf16.gmra.mrb[32].mxu1 %v6265_v60  ;;  %6908 = vmatmul.mubr.bf16.gmra.mrb[160].mxu0 %v6265_v60  ;;  %v6221_v34 = vmax.f32 %v6117_v61, 0.0 }
 0x9ac   : > { %v6123_v33 = vadd.f32 %v6122_v42, %v11485_v0  ;;  %v6222_v35 = vmax.f32 %v6119_v29, 0.0 }
 0x9ad   : > { %v6223_v45 = vmax.f32 %v6121_v32, 0.0 }
 0x9ae   : > { %v6224_v36 = vmax.f32 %v6123_v33, 0.0 }
 0x9af   : > { %v6267_v38 = vpack.c.bf16 %v6223_v45, %v6221_v34 }
 0x9b0   : > { %v6268_v39 = vpack.c.bf16 %v6224_v36, %v6222_v35  ;;  %v6126_v63 = vpop.f32.mrb[104].mxu0 }
 0x9b1   : > { %v6127_v14 = vadd.f32 %v6126_v63, %v11482_v5  ;;  %v6128_v40 = vpop.f32.mrb[105].mxu0 }
 0x9b2   : > { %v6129_v1 = vadd.f32 %v6128_v40, %v11485_v0  ;;  %v6130_v41 = vpop.f32.mrb[106].mxu0  ;;  %6740 = vmatprep.mubr.bf16.mxu1 %v6268_v39  ;;  %6915 = vmatprep.mubr.bf16.mxu0 %v6268_v39 }
 0x9b3   : > { %v6131_v44 = vadd.f32 %v6130_v41, %v11482_v5  ;;  %v6132_v47 = vpop.f32.mrb[107].mxu0  ;;  %6741 = vmatmul.mubr.bf16.gmra.mrb[36].mxu1 %v6267_v38  ;;  %6916 = vmatmul.mubr.bf16.gmra.mrb[164].mxu0 %v6267_v38  ;;  %v6225_v48 = vmax.f32 %v6127_v14, 0.0 }
 0x9b4   : > { %v6133_v12 = vadd.f32 %v6132_v47, %v11485_v0  ;;  %v6226_v49 = vmax.f32 %v6129_v1, 0.0 }
 0x9b5   : > { %v6227_v15 = vmax.f32 %v6131_v44, 0.0 }
 0x9b6   : > { %v6228_v50 = vmax.f32 %v6133_v12, 0.0 }
 0x9b7   : > { %v6269_v51 = vpack.c.bf16 %v6227_v15, %v6225_v48 }
 0x9b8   : > { %v6270_v52 = vpack.c.bf16 %v6228_v50, %v6226_v49  ;;  %v6136_v53 = vpop.f32.mrb[108].mxu0 }
 0x9b9   : > { %v6137_v54 = vadd.f32 %v6136_v53, %v11482_v5  ;;  %v6138_v55 = vpop.f32.mrb[109].mxu0 }
 0x9ba   : > { %v6139_v37 = vadd.f32 %v6138_v55, %v11485_v0  ;;  %v6140_v56 = vpop.f32.mrb[110].mxu0  ;;  %6750 = vmatprep.mubr.bf16.mxu1 %v6270_v52  ;;  %6923 = vmatprep.mubr.bf16.mxu0 %v6270_v52 }
 0x9bb   : > { %v6141_v57 = vadd.f32 %v6140_v56, %v11482_v5  ;;  %v6142_v13 = vpop.f32.mrb[111].mxu0  ;;  %6751 = vmatmul.mubr.bf16.gmra.mrb[40].mxu1 %v6269_v51  ;;  %6924 = vmatmul.mubr.bf16.gmra.mrb[168].mxu0 %v6269_v51  ;;  %v6229_v59 = vmax.f32 %v6137_v54, 0.0 }
 0x9bc   : > { %v6143_v58 = vadd.f32 %v6142_v13, %v11485_v0  ;;  %v6230_v2 = vmax.f32 %v6139_v37, 0.0 }
 0x9bd   : > { %v6231_v62 = vmax.f32 %v6141_v57, 0.0 }
 0x9be   : > { %v6232_v3 = vmax.f32 %v6143_v58, 0.0 }
 0x9bf   : > { %v6271_v46 = vpack.c.bf16 %v6231_v62, %v6229_v59 }
 0x9c0   : > { %v6272_v30 = vpack.c.bf16 %v6232_v3, %v6230_v2  ;;  %v6146_v6 = vpop.f32.mrb[112].mxu0 }
 0x9c1   : > { %v6147_v43 = vadd.f32 %v6146_v6, %v11482_v5  ;;  %v6148_v9 = vpop.f32.mrb[113].mxu0  ;;  %v9975_v6 = vld [vmem:[%s10430_s23 + $0x8] sm:$0xff]  }
 0x9c2   : > { %v6149_v11 = vadd.f32 %v6148_v9, %v11485_v0  ;;  %v6150_v16 = vpop.f32.mrb[114].mxu0  ;;  %6760 = vmatprep.mubr.bf16.mxu1 %v6272_v30  ;;  %6931 = vmatprep.mubr.bf16.mxu0 %v6272_v30  ;;  %v9808_v30 = vld [vmem:[#allocation6 + $0x48] sm:$0xff]   ;;  %v9810_v9 = vld [vmem:[#allocation6 + $0x50] sm:$0xff]  }
 0x9c3   : > { %v6151_v17 = vadd.f32 %v6150_v16, %v11482_v5  ;;  %v6152_v18 = vpop.f32.mrb[115].mxu0  ;;  %6761 = vmatmul.mubr.bf16.gmra.mrb[44].mxu1 %v6271_v46  ;;  %6932 = vmatmul.mubr.bf16.gmra.mrb[172].mxu0 %v6271_v46  ;;  %v6233_v20 = vmax.f32 %v6147_v43, 0.0  ;;  %v9974_v46 = vld [vmem:[%s10430_s23] sm:$0xff]   ;;  %v9809_v43 = vld [vmem:[#allocation6 + $0x8] sm:$0xff]   ;;  %v9812_v16 = vld [vmem:[#allocation6 + $0x58] sm:$0xff]  }
 0x9c4   : > { %v6153_v19 = vadd.f32 %v6152_v18, %v11485_v0  ;;  %v6234_v22 = vmax.f32 %v6149_v11, 0.0  ;;  %v9811_v11 = vld [vmem:[#allocation6 + $0x10] sm:$0xff]   ;;  %v9978_v18 = vld [vmem:[%s10430_s23 + $0x20] sm:$0xff]  }
 0x9c5   : > { %v6235_v21 = vmax.f32 %v6151_v17, 0.0  ;;  %v9977_v17 = vld [vmem:[%s10430_s23 + $0x18] sm:$0xff]  }
 0x9c6   : > { %v6236_v23 = vmax.f32 %v6153_v19, 0.0  ;;  %v9813_v19 = vld [vmem:[#allocation6 + $0x18] sm:$0xff]  }
 0x9c7   : > { %v6273_v24 = vpack.c.bf16 %v6235_v21, %v6233_v20  ;;  %v9814_v20 = vld [vmem:[#allocation6 + $0x60] sm:$0xff]  }
 0x9c8   : > { %v6274_v25 = vpack.c.bf16 %v6236_v23, %v6234_v22  ;;  %v6156_v60 = vpop.f32.mrb[116].mxu0  ;;  %v9815_v21 = vld [vmem:[#allocation6 + $0x20] sm:$0xff]   ;;  %v9816_v22 = vld [vmem:[#allocation6 + $0x68] sm:$0xff]  }
 0x9c9   : > { %v6157_v26 = vadd.f32 %v6156_v60, %v11482_v5  ;;  %v6158_v27 = vpop.f32.mrb[117].mxu0  ;;  %v9979_v23 = vld [vmem:[%s10430_s23 + $0x28] sm:$0xff]   ;;  %v9818_v60 = vld [vmem:[#allocation6 + $0x70] sm:$0xff]  }
 0x9ca   : > { %v6159_v61 = vadd.f32 %v6158_v27, %v11485_v0  ;;  %v6160_v28 = vpop.f32.mrb[118].mxu0  ;;  %6770 = vmatprep.mubr.bf16.mxu1 %v6274_v25  ;;  %6939 = vmatprep.mubr.bf16.mxu0 %v6274_v25  ;;  %v9817_v25 = vld [vmem:[#allocation6 + $0x28] sm:$0xff]   ;;  %v9820_v27 = vld [vmem:[#allocation6 + $0x78] sm:$0xff]  }
 0x9cb   : > { %v6161_v29 = vadd.f32 %v6160_v28, %v11482_v5  ;;  %v6162_v31 = vpop.f32.mrb[119].mxu0  ;;  %6771 = vmatmul.mubr.bf16.gmra.mrb[48].mxu1 %v6273_v24  ;;  %6940 = vmatmul.mubr.bf16.gmra.mrb[176].mxu0 %v6273_v24  ;;  %v6237_v42 = vmax.f32 %v6157_v26, 0.0  ;;  %v9980_v24 = vld [vmem:[%s10430_s23 + $0x30] sm:$0xff]   ;;  %v9982_v28 = vld [vmem:[%s10430_s23 + $0x40] sm:$0xff]  }
 0x9cc   : > { %v6163_v32 = vadd.f32 %v6162_v31, %v11485_v0  ;;  %v6238_v34 = vmax.f32 %v6159_v61, 0.0  ;;  %v9819_v26 = vld [vmem:[#allocation6 + $0x30] sm:$0xff]   ;;  %v9981_v61 = vld [vmem:[%s10430_s23 + $0x38] sm:$0xff]   ;;  %v9983_v31 = vld [vmem:[%s10430_s23 + $0x48] sm:$0xff]  }
 0x9cd   : > { %v6239_v33 = vmax.f32 %v6161_v29, 0.0  ;;  %v9821_v29 = vld [vmem:[#allocation6 + $0x38] sm:$0xff]  }
 0x9ce   : > { %v6240_v45 = vmax.f32 %v6163_v32, 0.0  ;;  %v9984_v32 = vld [vmem:[%s10430_s23 + $0x50] sm:$0xff]  }
 0x9cf   : > { %v6275_v35 = vpack.c.bf16 %v6239_v33, %v6237_v42  ;;  %v9985_v42 = vld [vmem:[%s10430_s23 + $0x58] sm:$0xff]   ;;  %v9986_v33 = vld [vmem:[%s10430_s23 + $0x60] sm:$0xff]  }
 0x9d0   : > { %v6276_v36 = vpack.c.bf16 %v6240_v45, %v6238_v34  ;;  %v6166_v38 = vpop.f32.mrb[120].mxu0  ;;  %v9987_v34 = vld [vmem:[%s10430_s23 + $0x68] sm:$0xff]   ;;  %v9988_v45 = vld [vmem:[%s10430_s23 + $0x70] sm:$0xff]  }
 0x9d1   : > { %v6167_v39 = vadd.f32 %v6166_v38, %v11482_v5  ;;  %v6168_v63 = vpop.f32.mrb[121].mxu0 }
 0x9d2   : > { %v6169_v14 = vadd.f32 %v6168_v63, %v11485_v0  ;;  %v6170_v40 = vpop.f32.mrb[122].mxu0  ;;  %6780 = vmatprep.mubr.bf16.mxu1 %v6276_v36  ;;  %6947 = vmatprep.mubr.bf16.mxu0 %v6276_v36  ;;  %v6345_v36 = vld [vmem:[%s12072_s2] sm:$0x7] }
 0x9d3   : > { %v6171_v1 = vadd.f32 %v6170_v40, %v11482_v5  ;;  %v6172_v41 = vpop.f32.mrb[123].mxu0  ;;  %6781 = vmatmul.mubr.bf16.gmra.mrb[52].mxu1 %v6275_v35  ;;  %6948 = vmatmul.mubr.bf16.gmra.mrb[180].mxu0 %v6275_v35  ;;  %v6241_v47 = vmax.f32 %v6167_v39, 0.0  ;;  %v9989_v35 = vld [vmem:[%s10430_s23 + $0x78] sm:$0xff]   ;;  %v11576_v38 = vrot.slane %v6345_v36, %v10503_v8 }
 0x9d4   : > { %v6173_v44 = vadd.f32 %v6172_v41, %v11485_v0  ;;  %v6242_v48 = vmax.f32 %v6169_v14, 0.0  ;;  %v11579_v14 = vrot.slane %v6345_v36, %v10507_v10 }
 0x9d5   : > { %v6243_v12 = vmax.f32 %v6171_v1, 0.0 }
 0x9d6   : > { %v6244_v15 = vmax.f32 %v6173_v44, 0.0 }
 0x9d7   : > { %v6277_v49 = vpack.c.bf16 %v6243_v12, %v6241_v47 }
 0x9d8   : > { %v6278_v50 = vpack.c.bf16 %v6244_v15, %v6242_v48  ;;  %v6176_v51 = vpop.f32.mrb[124].mxu0 }
 0x9d9   : > { %v6177_v52 = vadd.f32 %v6176_v51, %v11482_v5  ;;  %v6178_v53 = vpop.f32.mrb[125].mxu0 }
 0x9da   : > { %v6179_v54 = vadd.f32 %v6178_v53, %v11485_v0  ;;  %v6180_v55 = vpop.f32.mrb[126].mxu0  ;;  %6790 = vmatprep.mubr.bf16.mxu1 %v6278_v50  ;;  %6955 = vmatprep.mubr.bf16.mxu0 %v6278_v50 }
 0x9db   : > { %v6181_v37 = vadd.f32 %v6180_v55, %v11482_v5  ;;  %v6182_v56 = vpop.f32.mrb[127].mxu0  ;;  %6791 = vmatmul.mubr.bf16.gmra.mrb[56].mxu1 %v6277_v49  ;;  %6956 = vmatmul.mubr.bf16.gmra.mrb[184].mxu0 %v6277_v49  ;;  %v6245_v13 = vmax.f32 %v6177_v52, 0.0  ;;  %v9807_v5 = vld [vmem:[#allocation6] sm:$0xff]  }
 0x9dc   : > { %v6183_v57 = vadd.f32 %v6182_v56, %v11485_v0  ;;  %v6246_v59 = vmax.f32 %v6179_v54, 0.0  ;;  %v9976_v0 = vld [vmem:[%s10430_s23 + $0x10] sm:$0xff]   ;;  %s8270_s23 = sshll.u32 %s12119_s11, 3 }
 0x9dd   : > { %v6247_v58 = vmax.f32 %v6181_v37, 0.0  ;;  %s11851_s18 = scalar_lea.vmem %s10314_s4, %s8270_s23 }
 0x9de   : > { %v6248_v62 = vmax.f32 %v6183_v57, 0.0 }
 0x9df   : > { %v6279_v2 = vpack.c.bf16 %v6247_v58, %v6245_v13 }
 0x9e0   : > { %v6280_v3 = vpack.c.bf16 %v6248_v62, %v6246_v59 }
 0x9e2   : > { %6800 = vmatprep.mubr.bf16.mxu1 %v6280_v3  ;;  %6963 = vmatprep.mubr.bf16.mxu0 %v6280_v3 }
 0x9e3   : > { %6801 = vmatmul.mubr.bf16.gmra.mrb[60].mxu1 %v6279_v2  ;;  %6964 = vmatmul.mubr.bf16.gmra.mrb[188].mxu0 %v6279_v2 }
 0x9e4   : > { %9011 = vmatprep.mubr.bf16.mxu1 %v9974_v46 }
 0x9eb   : > { %9012 = vmatmul.mubr.bf16.vlgmr.msra.gmra.mrb[64].mxu1 %v9975_v6 }
 0x9ec   : > { %8860 = vmatpush3.bf16.msra.mxu1 %v9807_v5  ;;  %9015 = vmatprep.mubr.bf16.mxu1 %v9976_v0 }
 0x9ed   : > { %8861 = vmatprep.subr.bf16.mxu1 %v9808_v30 }
 0x9f0   : > { %8862 = vmatpush3.bf16.msra.mxu1 %v9809_v43 }
 0x9f1   : > { %8863 = vmatprep.subr.bf16.mxu1 %v9810_v9  ;;  %v9822_v9 = vld [vmem:[#allocation7] sm:$0xff]  }
 0x9f2   : > { %9043 = vmatprep.subr.bf16.mxu0 %v9822_v9 }
 0x9f3   : > { %9016 = vmatmul.mubr.bf16.gmra.mrb[68].mxu1 %v9977_v17  ;;  %9044 = vmatpush3.bf16.msra.mxu0 %v9822_v9 }
 0x9f4   : > { %9019 = vmatprep.mubr.bf16.mxu1 %v9978_v18  ;;  %8864 = vmatpush3.bf16.msra.mxu1 %v9811_v11 }
 0x9f5   : > { %8865 = vmatprep.subr.bf16.mxu1 %v9812_v16 }
 0x9f8   : > { %8866 = vmatpush3.bf16.msra.mxu1 %v9813_v19 }
 0x9f9   : > { %8867 = vmatprep.subr.bf16.mxu1 %v9814_v20 }
 0x9fb   : > { %9020 = vmatmul.mubr.bf16.gmra.mrb[72].mxu1 %v9979_v23 }
 0x9fc   : > { %9023 = vmatprep.mubr.bf16.mxu1 %v9980_v24  ;;  %8868 = vmatpush3.bf16.msra.mxu1 %v9815_v21 }
 0x9fd   : > { %8869 = vmatprep.subr.bf16.mxu1 %v9816_v22 }
 0xa00   : > { %8870 = vmatpush3.bf16.msra.mxu1 %v9817_v25 }
 0xa01   : > { %8871 = vmatprep.subr.bf16.mxu1 %v9818_v60 }
 0xa03   : > { %9024 = vmatmul.mubr.bf16.gmra.mrb[76].mxu1 %v9981_v61 }
 0xa04   : > { %9027 = vmatprep.mubr.bf16.mxu1 %v9982_v28  ;;  %8872 = vmatpush3.bf16.msra.mxu1 %v9819_v26 }
 0xa05   : > { %8873 = vmatprep.subr.bf16.mxu1 %v9820_v27 }
 0xa08   : > { %8874 = vmatpush3.bf16.msra.mxu1 %v9821_v29 }
 0xa0b   : > { %9028 = vmatmul.mubr.bf16.gmra.mrb[80].mxu1 %v9983_v31 }
 0xa0c   : > { %9031 = vmatprep.mubr.bf16.mxu1 %v9984_v32 }
 0xa13   : > { %9032 = vmatmul.mubr.bf16.gmra.mrb[84].mxu1 %v9985_v42 }
 0xa14   : > { %9035 = vmatprep.mubr.bf16.mxu1 %v9986_v33 }
 0xa1b   : > { %9036 = vmatmul.mubr.bf16.gmra.mrb[88].mxu1 %v9987_v34 }
 0xa1c   : > { %9039 = vmatprep.mubr.bf16.mxu1 %v9988_v45 }
 0xa23   : > { %9040 = vmatmul.mubr.bf16.gmra.mrb[92].mxu1 %v9989_v35 }
 0xa3e   : > { %v6652_v39 = vpop.f32.mrb[0].mxu1  ;;  %v8739_v63 = vpop.f32.mrb[128].mxu0 }
 0xa3f   : > { %v6654_v40 = vpop.f32.mrb[1].mxu1  ;;  %v8740_v1 = vpop.f32.mrb[129].mxu0  ;;  %v6653_v12 = vadd.f32 %v6652_v39, %v11576_v38 }
 0xa40   : > { %v11581_v41 = vadd.f32 %v8740_v1, %v8739_v63  ;;  %v6656_v44 = vpop.f32.mrb[2].mxu1  ;;  %v8742_v47 = vpop.f32.mrb[130].mxu0  ;;  %v6655_v8 = vadd.f32 %v6654_v40, %v11579_v14 }
 0xa41   : > { %v6657_v48 = vadd.f32 %v6656_v44, %v11576_v38  ;;  %v6658_v15 = vpop.f32.mrb[3].mxu1  ;;  %v8743_v49 = vpop.f32.mrb[131].mxu0 }
 0xa42   : > { %v6659_v50 = vadd.f32 %v6658_v15, %v11579_v14  ;;  %v11587_v51 = vadd.f32 %v8743_v49, %v8742_v47 }
 0xa43   : > { %v6972_v10 = vpack.c.bf16 %v6657_v48, %v6653_v12  ;;  %v9823_v48 = vld [vmem:[#allocation7 + $0x8] sm:$0xff]  }
 0xa44   : > { %v6973_v52 = vpack.c.bf16 %v6659_v50, %v6655_v8  ;;  %9045 = vmatprep.subr.bf16.mxu0 %v9823_v48 }
 0xa45   : > { %9046 = vmatpush3.bf16.msra.mxu0 %v9823_v48 }
 0xa46   : > { %v6662_v53 = vpop.f32.mrb[4].mxu1  ;;  %v8745_v54 = vpop.f32.mrb[132].mxu0  ;;  %7421 = vmatprep.mubr.bf16.mxu1 %v6973_v52 }
 0xa47   : > { %v6664_v55 = vpop.f32.mrb[5].mxu1  ;;  %v8746_v37 = vpop.f32.mrb[133].mxu0  ;;  %7422 = vmatmul.mubr.bf16.vlgmr.msra.gmra.mrb[96].mxu1 %v6972_v10  ;;  %v6663_v58 = vadd.f32 %v6662_v53, %v11576_v38 }
 0xa48   : > { %v11589_v56 = vadd.f32 %v8746_v37, %v8745_v54  ;;  %v6666_v57 = vpop.f32.mrb[6].mxu1  ;;  %v8748_v13 = vpop.f32.mrb[134].mxu0  ;;  %v6665_v3 = vadd.f32 %v6664_v55, %v11579_v14 }
 0xa49   : > { %v6667_v59 = vadd.f32 %v6666_v57, %v11576_v38  ;;  %v6668_v62 = vpop.f32.mrb[7].mxu1  ;;  %v8749_v2 = vpop.f32.mrb[135].mxu0 }
 0xa4a   : > { %v6669_v46 = vadd.f32 %v6668_v62, %v11579_v14  ;;  %v11595_v5 = vadd.f32 %v8749_v2, %v8748_v13 }
 0xa4b   : > { %v6974_v30 = vpack.c.bf16 %v6667_v59, %v6663_v58 }
 0xa4c   : > { %v6975_v6 = vpack.c.bf16 %v6669_v46, %v6665_v3 }
 0xa4e   : > { %v6672_v0 = vpop.f32.mrb[8].mxu1  ;;  %v8751_v43 = vpop.f32.mrb[136].mxu0  ;;  %7429 = vmatprep.mubr.bf16.mxu1 %v6975_v6 }
 0xa4f   : > { %v6674_v11 = vpop.f32.mrb[9].mxu1  ;;  %v8752_v16 = vpop.f32.mrb[137].mxu0  ;;  %7430 = vmatmul.mubr.bf16.gmra.mrb[100].mxu1 %v6974_v30  ;;  %v6673_v20 = vadd.f32 %v6672_v0, %v11576_v38 }
 0xa50   : > { %v11597_v17 = vadd.f32 %v8752_v16, %v8751_v43  ;;  %v6676_v18 = vpop.f32.mrb[10].mxu1  ;;  %v8754_v19 = vpop.f32.mrb[138].mxu0  ;;  %v6675_v24 = vadd.f32 %v6674_v11, %v11579_v14 }
 0xa51   : > { %v6677_v21 = vadd.f32 %v6676_v18, %v11576_v38  ;;  %v6678_v22 = vpop.f32.mrb[11].mxu1  ;;  %v8755_v23 = vpop.f32.mrb[139].mxu0 }
 0xa52   : > { %v6679_v25 = vadd.f32 %v6678_v22, %v11579_v14  ;;  %v11603_v60 = vadd.f32 %v8755_v23, %v8754_v19 }
 0xa53   : > { %v6976_v26 = vpack.c.bf16 %v6677_v21, %v6673_v20 }
 0xa54   : > { %v6977_v27 = vpack.c.bf16 %v6679_v25, %v6675_v24  ;;  %v9824_v25 = vld [vmem:[#allocation7 + $0x10] sm:$0xff]  }
 0xa55   : > { %9047 = vmatprep.subr.bf16.mxu0 %v9824_v25 }
 0xa56   : > { %v6682_v61 = vpop.f32.mrb[12].mxu1  ;;  %v8757_v28 = vpop.f32.mrb[140].mxu0  ;;  %7437 = vmatprep.mubr.bf16.mxu1 %v6977_v27  ;;  %9048 = vmatpush3.bf16.msra.mxu0 %v9824_v25 }
 0xa57   : > { %v6684_v29 = vpop.f32.mrb[13].mxu1  ;;  %v8758_v31 = vpop.f32.mrb[141].mxu0  ;;  %7438 = vmatmul.mubr.bf16.gmra.mrb[104].mxu1 %v6976_v26  ;;  %v6683_v34 = vadd.f32 %v6682_v61, %v11576_v38 }
 0xa58   : > { %v11605_v32 = vadd.f32 %v8758_v31, %v8757_v28  ;;  %v6686_v42 = vpop.f32.mrb[14].mxu1  ;;  %v8760_v33 = vpop.f32.mrb[142].mxu0  ;;  %v6685_v39 = vadd.f32 %v6684_v29, %v11579_v14 }
 0xa59   : > { %v6687_v45 = vadd.f32 %v6686_v42, %v11576_v38  ;;  %v6688_v35 = vpop.f32.mrb[15].mxu1  ;;  %v8761_v36 = vpop.f32.mrb[143].mxu0 }
 0xa5a   : > { %v6689_v63 = vadd.f32 %v6688_v35, %v11579_v14  ;;  %v11611_v40 = vadd.f32 %v8761_v36, %v8760_v33 }
 0xa5b   : > { %v6978_v1 = vpack.c.bf16 %v6687_v45, %v6683_v34 }
 0xa5c   : > { %v6979_v44 = vpack.c.bf16 %v6689_v63, %v6685_v39 }
 0xa5e   : > { %v6692_v47 = vpop.f32.mrb[16].mxu1  ;;  %v8763_v12 = vpop.f32.mrb[144].mxu0  ;;  %7445 = vmatprep.mubr.bf16.mxu1 %v6979_v44 }
 0xa5f   : > { %v6694_v15 = vpop.f32.mrb[17].mxu1  ;;  %v8764_v49 = vpop.f32.mrb[145].mxu0  ;;  %7446 = vmatmul.mubr.bf16.gmra.mrb[108].mxu1 %v6978_v1  ;;  %v6693_v52 = vadd.f32 %v6692_v47, %v11576_v38 }
 0xa60   : > { %v11613_v8 = vadd.f32 %v8764_v49, %v8763_v12  ;;  %v6696_v50 = vpop.f32.mrb[18].mxu1  ;;  %v8766_v10 = vpop.f32.mrb[146].mxu0  ;;  %v6695_v37 = vadd.f32 %v6694_v15, %v11579_v14 }
 0xa61   : > { %v6697_v53 = vadd.f32 %v6696_v50, %v11576_v38  ;;  %v6698_v54 = vpop.f32.mrb[19].mxu1  ;;  %v8767_v55 = vpop.f32.mrb[147].mxu0 }
 0xa62   : > { %v6699_v57 = vadd.f32 %v6698_v54, %v11579_v14  ;;  %v11619_v13 = vadd.f32 %v8767_v55, %v8766_v10  ;;  %v9825_v54 = vld [vmem:[#allocation7 + $0x18] sm:$0xff]  }
 0xa63   : > { %v6980_v58 = vpack.c.bf16 %v6697_v53, %v6693_v52  ;;  %9049 = vmatprep.subr.bf16.mxu0 %v9825_v54 }
 0xa64   : > { %12073 = vst [vmem:[#allocation24_spill] sm:$0xff] %v11619_v13  ;;  %v6981_v59 = vpack.c.bf16 %v6699_v57, %v6695_v37  ;;  %9050 = vmatpush3.bf16.msra.mxu0 %v9825_v54 }
 0xa66   : > { %v6702_v62 = vpop.f32.mrb[20].mxu1  ;;  %v8769_v2 = vpop.f32.mrb[148].mxu0  ;;  %7453 = vmatprep.mubr.bf16.mxu1 %v6981_v59 }
 0xa67   : > { %v6704_v3 = vpop.f32.mrb[21].mxu1  ;;  %v8770_v46 = vpop.f32.mrb[149].mxu0  ;;  %7454 = vmatmul.mubr.bf16.gmra.mrb[112].mxu1 %v6980_v58  ;;  %v6703_v43 = vadd.f32 %v6702_v62, %v11576_v38 }
 0xa68   : > { %v11621_v30 = vadd.f32 %v8770_v46, %v8769_v2  ;;  %v6706_v6 = vpop.f32.mrb[22].mxu1  ;;  %v8772_v0 = vpop.f32.mrb[150].mxu0  ;;  %v6705_v18 = vadd.f32 %v6704_v3, %v11579_v14 }
 0xa69   : > { %v6707_v9 = vadd.f32 %v6706_v6, %v11576_v38  ;;  %v6708_v11 = vpop.f32.mrb[23].mxu1  ;;  %v8773_v16 = vpop.f32.mrb[151].mxu0 }
 0xa6a   : > { %v6709_v19 = vadd.f32 %v6708_v11, %v11579_v14  ;;  %v11627_v20 = vadd.f32 %v8773_v16, %v8772_v0 }
 0xa6b   : > { %v6982_v21 = vpack.c.bf16 %v6707_v9, %v6703_v43 }
 0xa6c   : > { %12074 = vst [vmem:[#allocation25_spill] sm:$0xff] %v11627_v20  ;;  %v6983_v22 = vpack.c.bf16 %v6709_v19, %v6705_v18 }
 0xa6e   : > { %v6712_v23 = vpop.f32.mrb[24].mxu1  ;;  %v8775_v24 = vpop.f32.mrb[152].mxu0  ;;  %7461 = vmatprep.mubr.bf16.mxu1 %v6983_v22 }
 0xa6f   : > { %v6714_v26 = vpop.f32.mrb[25].mxu1  ;;  %v8776_v27 = vpop.f32.mrb[153].mxu0  ;;  %7462 = vmatmul.mubr.bf16.gmra.mrb[116].mxu1 %v6982_v21  ;;  %v6713_v31 = vadd.f32 %v6712_v23, %v11576_v38 }
 0xa70   : > { %v11629_v61 = vadd.f32 %v8776_v27, %v8775_v24  ;;  %v6716_v28 = vpop.f32.mrb[26].mxu1  ;;  %v8778_v29 = vpop.f32.mrb[154].mxu0  ;;  %v6715_v45 = vadd.f32 %v6714_v26, %v11579_v14 }
 0xa71   : > { %v6717_v42 = vadd.f32 %v6716_v28, %v11576_v38  ;;  %v6718_v33 = vpop.f32.mrb[27].mxu1  ;;  %v8779_v34 = vpop.f32.mrb[155].mxu0 }
 0xa72   : > { %12075 = vst [vmem:[#allocation26_spill] sm:$0xff] %v11629_v61  ;;  %v6719_v35 = vadd.f32 %v6718_v33, %v11579_v14  ;;  %v11635_v36 = vadd.f32 %v8779_v34, %v8778_v29 }
 0xa73   : > { %v6984_v39 = vpack.c.bf16 %v6717_v42, %v6713_v31 }
 0xa74   : > { %12076 = vst [vmem:[#allocation27_spill] sm:$0xff] %v11635_v36  ;;  %v6985_v63 = vpack.c.bf16 %v6719_v35, %v6715_v45 }
 0xa76   : > { %v6722_v1 = vpop.f32.mrb[28].mxu1  ;;  %v8781_v44 = vpop.f32.mrb[156].mxu0  ;;  %7469 = vmatprep.mubr.bf16.mxu1 %v6985_v63 }
 0xa77   : > { %v6724_v47 = vpop.f32.mrb[29].mxu1  ;;  %v8782_v12 = vpop.f32.mrb[157].mxu0  ;;  %7470 = vmatmul.mubr.bf16.gmra.mrb[120].mxu1 %v6984_v39  ;;  %v6723_v50 = vadd.f32 %v6722_v1, %v11576_v38 }
 0xa78   : > { %v11637_v48 = vadd.f32 %v8782_v12, %v8781_v44  ;;  %v6726_v15 = vpop.f32.mrb[30].mxu1  ;;  %v8784_v49 = vpop.f32.mrb[158].mxu0  ;;  %v6725_v55 = vadd.f32 %v6724_v47, %v11579_v14 }
 0xa79   : > { %v6727_v10 = vadd.f32 %v6726_v15, %v11576_v38  ;;  %v6728_v52 = vpop.f32.mrb[31].mxu1  ;;  %v8785_v53 = vpop.f32.mrb[159].mxu0 }
 0xa7a   : > { %12077 = vst [vmem:[#allocation28_spill] sm:$0xff] %v11637_v48  ;;  %v6729_v37 = vadd.f32 %v6728_v52, %v11579_v14  ;;  %v11643_v57 = vadd.f32 %v8785_v53, %v8784_v49 }
 0xa7b   : > { %v6986_v58 = vpack.c.bf16 %v6727_v10, %v6723_v50 }
 0xa7c   : > { %12078 = vst [vmem:[#allocation29_spill] sm:$0xff] %v11643_v57  ;;  %v6987_v59 = vpack.c.bf16 %v6729_v37, %v6725_v55 }
 0xa7e   : > { %v6732_v62 = vpop.f32.mrb[32].mxu1  ;;  %v8787_v2 = vpop.f32.mrb[160].mxu0  ;;  %7477 = vmatprep.mubr.bf16.mxu1 %v6987_v59 }
 0xa7f   : > { %v6734_v3 = vpop.f32.mrb[33].mxu1  ;;  %v8788_v46 = vpop.f32.mrb[161].mxu0  ;;  %7478 = vmatmul.mubr.bf16.gmra.mrb[124].mxu1 %v6986_v58  ;;  %v6733_v9 = vadd.f32 %v6732_v62, %v11576_v38 }
 0xa80   : > { %v11645_v6 = vadd.f32 %v8788_v46, %v8787_v2  ;;  %v6736_v0 = vpop.f32.mrb[34].mxu1  ;;  %v8790_v43 = vpop.f32.mrb[162].mxu0  ;;  %v6735_v19 = vadd.f32 %v6734_v3, %v11579_v14 }
 0xa81   : > { %v6737_v11 = vadd.f32 %v6736_v0, %v11576_v38  ;;  %v6738_v16 = vpop.f32.mrb[35].mxu1  ;;  %v8791_v18 = vpop.f32.mrb[163].mxu0 }
 0xa82   : > { %12079 = vst [vmem:[#allocation30_spill] sm:$0xff] %v11645_v6  ;;  %v6739_v21 = vadd.f32 %v6738_v16, %v11579_v14  ;;  %v11651_v22 = vadd.f32 %v8791_v18, %v8790_v43 }
 0xa83   : > { %v6988_v23 = vpack.c.bf16 %v6737_v11, %v6733_v9 }
 0xa84   : > { %12080 = vst [vmem:[#allocation31_spill] sm:$0xff] %v11651_v22  ;;  %v6989_v24 = vpack.c.bf16 %v6739_v21, %v6735_v19 }
 0xa86   : > { %v6742_v25 = vpop.f32.mrb[36].mxu1  ;;  %v8793_v26 = vpop.f32.mrb[164].mxu0  ;;  %7485 = vmatprep.mubr.bf16.mxu1 %v6989_v24 }
 0xa87   : > { %v6744_v27 = vpop.f32.mrb[37].mxu1  ;;  %v8794_v28 = vpop.f32.mrb[165].mxu0  ;;  %7486 = vmatmul.mubr.bf16.gmra.mrb[128].mxu1 %v6988_v23  ;;  %v6743_v33 = vadd.f32 %v6742_v25, %v11576_v38 }
 0xa88   : > { %v11653_v29 = vadd.f32 %v8794_v28, %v8793_v26  ;;  %v6746_v31 = vpop.f32.mrb[38].mxu1  ;;  %v8796_v42 = vpop.f32.mrb[166].mxu0  ;;  %v6745_v39 = vadd.f32 %v6744_v27, %v11579_v14 }
 0xa89   : > { %v6747_v34 = vadd.f32 %v6746_v31, %v11576_v38  ;;  %v6748_v45 = vpop.f32.mrb[39].mxu1  ;;  %v8797_v35 = vpop.f32.mrb[167].mxu0 }
 0xa8a   : > { %12081 = vst [vmem:[#allocation32_spill] sm:$0xff] %v11653_v29  ;;  %v6749_v63 = vadd.f32 %v6748_v45, %v11579_v14  ;;  %v11659_v1 = vadd.f32 %v8797_v35, %v8796_v42  ;;  %v9826_v45 = vld [vmem:[#allocation7 + $0x20] sm:$0xff]  }
 0xa8b   : > { %v6990_v44 = vpack.c.bf16 %v6747_v34, %v6743_v33  ;;  %9051 = vmatprep.subr.bf16.mxu0 %v9826_v45 }
 0xa8c   : > { %12082 = vst [vmem:[#allocation33_spill] sm:$0xff] %v11659_v1  ;;  %v6991_v47 = vpack.c.bf16 %v6749_v63, %v6745_v39  ;;  %9052 = vmatpush3.bf16.msra.mxu0 %v9826_v45 }
 0xa8e   : > { %v6752_v12 = vpop.f32.mrb[40].mxu1  ;;  %v8799_v15 = vpop.f32.mrb[168].mxu0  ;;  %7493 = vmatprep.mubr.bf16.mxu1 %v6991_v47 }
 0xa8f   : > { %v6754_v49 = vpop.f32.mrb[41].mxu1  ;;  %v8800_v50 = vpop.f32.mrb[169].mxu0  ;;  %7494 = vmatmul.mubr.bf16.gmra.mrb[132].mxu1 %v6990_v44  ;;  %v6753_v54 = vadd.f32 %v6752_v12, %v11576_v38 }
 0xa90   : > { %v11661_v10 = vadd.f32 %v8800_v50, %v8799_v15  ;;  %v6756_v52 = vpop.f32.mrb[42].mxu1  ;;  %v8802_v53 = vpop.f32.mrb[170].mxu0  ;;  %v6755_v59 = vadd.f32 %v6754_v49, %v11579_v14 }
 0xa91   : > { %v6757_v55 = vadd.f32 %v6756_v52, %v11576_v38  ;;  %v6758_v37 = vpop.f32.mrb[43].mxu1  ;;  %v8803_v58 = vpop.f32.mrb[171].mxu0 }
 0xa92   : > { %12083 = vst [vmem:[#allocation34_spill] sm:$0xff] %v11661_v10  ;;  %v6759_v62 = vadd.f32 %v6758_v37, %v11579_v14  ;;  %v11667_v2 = vadd.f32 %v8803_v58, %v8802_v53 }
 0xa93   : > { %v6992_v3 = vpack.c.bf16 %v6757_v55, %v6753_v54  ;;  %v9827_v55 = vld [vmem:[#allocation7 + $0x28] sm:$0xff]  }
 0xa94   : > { %12084 = vst [vmem:[#allocation35_spill] sm:$0xff] %v11667_v2  ;;  %v6993_v46 = vpack.c.bf16 %v6759_v62, %v6755_v59  ;;  %9053 = vmatprep.subr.bf16.mxu0 %v9827_v55 }
 0xa95   : > { %9054 = vmatpush3.bf16.msra.mxu0 %v9827_v55 }
 0xa96   : > { %v6762_v0 = vpop.f32.mrb[44].mxu1  ;;  %v8805_v43 = vpop.f32.mrb[172].mxu0  ;;  %7501 = vmatprep.mubr.bf16.mxu1 %v6993_v46 }
 0xa97   : > { %v6764_v9 = vpop.f32.mrb[45].mxu1  ;;  %v8806_v11 = vpop.f32.mrb[173].mxu0  ;;  %7502 = vmatmul.mubr.bf16.gmra.mrb[136].mxu1 %v6992_v3  ;;  %v6763_v21 = vadd.f32 %v6762_v0, %v11576_v38  ;;  %v9828_v3 = vld [vmem:[#allocation7 + $0x30] sm:$0xff]  }
 0xa98   : > { %v11669_v16 = vadd.f32 %v8806_v11, %v8805_v43  ;;  %v6766_v18 = vpop.f32.mrb[46].mxu1  ;;  %v8808_v19 = vpop.f32.mrb[174].mxu0  ;;  %v6765_v26 = vadd.f32 %v6764_v9, %v11579_v14  ;;  %9055 = vmatprep.subr.bf16.mxu0 %v9828_v3 }
 0xa99   : > { %v6767_v23 = vadd.f32 %v6766_v18, %v11576_v38  ;;  %v6768_v24 = vpop.f32.mrb[47].mxu1  ;;  %v8809_v25 = vpop.f32.mrb[175].mxu0  ;;  %9056 = vmatpush3.bf16.msra.mxu0 %v9828_v3 }
 0xa9a   : > { %12085 = vst [vmem:[#allocation36_spill] sm:$0xff] %v11669_v16  ;;  %v6769_v27 = vadd.f32 %v6768_v24, %v11579_v14  ;;  %v11675_v28 = vadd.f32 %v8809_v25, %v8808_v19 }
 0xa9b   : > { %v6994_v31 = vpack.c.bf16 %v6767_v23, %v6763_v21 }
 0xa9c   : > { %12086 = vst [vmem:[#allocation37_spill] sm:$0xff] %v11675_v28  ;;  %v6995_v42 = vpack.c.bf16 %v6769_v27, %v6765_v26  ;;  %v9829_v27 = vld [vmem:[#allocation7 + $0x38] sm:$0xff]  }
 0xa9d   : > { %9057 = vmatprep.subr.bf16.mxu0 %v9829_v27 }
 0xa9e   : > { %v6772_v33 = vpop.f32.mrb[48].mxu1  ;;  %v8811_v34 = vpop.f32.mrb[176].mxu0  ;;  %7509 = vmatprep.mubr.bf16.mxu1 %v6995_v42  ;;  %9058 = vmatpush3.bf16.msra.mxu0 %v9829_v27 }
 0xa9f   : > { %v6774_v35 = vpop.f32.mrb[49].mxu1  ;;  %v8812_v39 = vpop.f32.mrb[177].mxu0  ;;  %7510 = vmatmul.mubr.bf16.gmra.mrb[140].mxu1 %v6994_v31  ;;  %v6773_v12 = vadd.f32 %v6772_v33, %v11576_v38 }
 0xaa0   : > { %v11677_v63 = vadd.f32 %v8812_v39, %v8811_v34  ;;  %v6776_v44 = vpop.f32.mrb[50].mxu1  ;;  %v8814_v47 = vpop.f32.mrb[178].mxu0  ;;  %v6775_v52 = vadd.f32 %v6774_v35, %v11579_v14 }
 0xaa1   : > { %v6777_v15 = vadd.f32 %v6776_v44, %v11576_v38  ;;  %v6778_v49 = vpop.f32.mrb[51].mxu1  ;;  %v8815_v50 = vpop.f32.mrb[179].mxu0 }
 0xaa2   : > { %12087 = vst [vmem:[#allocation38_spill] sm:$0xff] %v11677_v63  ;;  %v6779_v53 = vadd.f32 %v6778_v49, %v11579_v14  ;;  %v11683_v54 = vadd.f32 %v8815_v50, %v8814_v47 }
 0xaa3   : > { %v6996_v37 = vpack.c.bf16 %v6777_v15, %v6773_v12 }
 0xaa4   : > { %12088 = vst [vmem:[#allocation39_spill] sm:$0xff] %v11683_v54  ;;  %v6997_v58 = vpack.c.bf16 %v6779_v53, %v6775_v52 }
 0xaa6   : > { %v6782_v59 = vpop.f32.mrb[52].mxu1  ;;  %v8817_v62 = vpop.f32.mrb[180].mxu0  ;;  %7517 = vmatprep.mubr.bf16.mxu1 %v6997_v58 }
 0xaa7   : > { %v6784_v46 = vpop.f32.mrb[53].mxu1  ;;  %v8818_v0 = vpop.f32.mrb[181].mxu0  ;;  %7518 = vmatmul.mubr.bf16.gmra.mrb[144].mxu1 %v6996_v37  ;;  %v6783_v18 = vadd.f32 %v6782_v59, %v11576_v38 }
 0xaa8   : > { %v11685_v43 = vadd.f32 %v8818_v0, %v8817_v62  ;;  %v6786_v9 = vpop.f32.mrb[54].mxu1  ;;  %v8820_v11 = vpop.f32.mrb[182].mxu0  ;;  %v6785_v24 = vadd.f32 %v6784_v46, %v11579_v14 }
 0xaa9   : > { %v6787_v19 = vadd.f32 %v6786_v9, %v11576_v38  ;;  %v6788_v21 = vpop.f32.mrb[55].mxu1  ;;  %v8821_v23 = vpop.f32.mrb[183].mxu0 }
 0xaaa   : > { %12089 = vst [vmem:[#allocation40_spill] sm:$0xff] %v11685_v43  ;;  %v6789_v25 = vadd.f32 %v6788_v21, %v11579_v14  ;;  %v11691_v26 = vadd.f32 %v8821_v23, %v8820_v11 }
 0xaab   : > { %v6998_v31 = vpack.c.bf16 %v6787_v19, %v6783_v18 }
 0xaac   : > { %12090 = vst [vmem:[#allocation41_spill] sm:$0xff] %v11691_v26  ;;  %v6999_v42 = vpack.c.bf16 %v6789_v25, %v6785_v24  ;;  %v11762_v26 = vld [vmem:[%s10299_s6] ss:$0 sm:$0xff] }
 0xaae   : > { %v6792_v33 = vpop.f32.mrb[56].mxu1  ;;  %v8823_v34 = vpop.f32.mrb[184].mxu0  ;;  %7525 = vmatprep.mubr.bf16.mxu1 %v6999_v42 }
 0xaaf   : > { %v6794_v45 = vpop.f32.mrb[57].mxu1  ;;  %v8824_v35 = vpop.f32.mrb[185].mxu0  ;;  %7526 = vmatmul.mubr.bf16.gmra.mrb[148].mxu1 %v6998_v31  ;;  %v6793_v12 = vadd.f32 %v6792_v33, %v11576_v38 }
 0xab0   : > { %v11693_v39 = vadd.f32 %v8824_v35, %v8823_v34  ;;  %v6796_v44 = vpop.f32.mrb[58].mxu1  ;;  %v8826_v47 = vpop.f32.mrb[186].mxu0  ;;  %v6795_v52 = vadd.f32 %v6794_v45, %v11579_v14 }
 0xab1   : > { %v6797_v15 = vadd.f32 %v6796_v44, %v11576_v38  ;;  %v6798_v49 = vpop.f32.mrb[59].mxu1  ;;  %v8827_v50 = vpop.f32.mrb[187].mxu0 }
 0xab2   : > { %12091 = vst [vmem:[#allocation42_spill] sm:$0xff] %v11693_v39  ;;  %v6799_v53 = vadd.f32 %v6798_v49, %v11579_v14  ;;  %v11699_v55 = vadd.f32 %v8827_v50, %v8826_v47 }
 0xab3   : > { %v7000_v37 = vpack.c.bf16 %v6797_v15, %v6793_v12 }
 0xab4   : > { %12092 = vst [vmem:[#allocation43_spill] sm:$0xff] %v11699_v55  ;;  %v7001_v58 = vpack.c.bf16 %v6799_v53, %v6795_v52 }
 0xab6   : > { %v6802_v59 = vpop.f32.mrb[60].mxu1  ;;  %v8829_v62 = vpop.f32.mrb[188].mxu0  ;;  %7533 = vmatprep.mubr.bf16.mxu1 %v7001_v58 }
 0xab7   : > { %v6804_v3 = vpop.f32.mrb[61].mxu1  ;;  %v8830_v46 = vpop.f32.mrb[189].mxu0  ;;  %7534 = vmatmul.mubr.bf16.gmra.mrb[152].mxu1 %v7000_v37  ;;  %v6803_v18 = vadd.f32 %v6802_v59, %v11576_v38 }
 0xab8   : > { %v11701_v0 = vadd.f32 %v8830_v46, %v8829_v62  ;;  %v6806_v9 = vpop.f32.mrb[62].mxu1  ;;  %v8832_v11 = vpop.f32.mrb[190].mxu0  ;;  %v6805_v24 = vadd.f32 %v6804_v3, %v11579_v14 }
 0xab9   : > { %v6807_v19 = vadd.f32 %v6806_v9, %v11576_v38  ;;  %v6808_v21 = vpop.f32.mrb[63].mxu1  ;;  %v8833_v23 = vpop.f32.mrb[191].mxu0 }
 0xaba   : > { %12093 = vst [vmem:[#allocation44_spill] sm:$0xff] %v11701_v0  ;;  %v6809_v25 = vadd.f32 %v6808_v21, %v11579_v14  ;;  %v11707_v27 = vadd.f32 %v8833_v23, %v8832_v11 }
 0xabb   : > { %v7002_v31 = vpack.c.bf16 %v6807_v19, %v6803_v18 }
 0xabc   : > { %12094 = vst [vmem:[#allocation45_spill] sm:$0xff] %v11707_v27  ;;  %v7003_v42 = vpack.c.bf16 %v6809_v25, %v6805_v24 }
 0xabe   : > { %7541 = vmatprep.mubr.bf16.mxu1 %v7003_v42  ;;  %v9013_v33 = vpop.f32.mrb[64].mxu1 }
 0xabf   : > { %7542 = vmatmul.mubr.bf16.gmra.mrb[156].mxu1 %v7002_v31  ;;  %v7166_v34 = vpop.f32.mrb[65].mxu1 }
 0xac0   : > { %v9014_v45 = vpop.f32.mrb[66].mxu1 }
 0xac1   : > { %v7169_v35 = vpop.f32.mrb[67].mxu1 }
 0xac6   : > { %v11709_v44 = vpop.f32.mrb[68].mxu1 }
 0xac7   : > { %v7182_v47 = vpop.f32.mrb[69].mxu1 }
 0xac8   : > { %v11711_v38 = vpop.f32.mrb[70].mxu1 }
 0xac9   : > { %v7185_v12 = vpop.f32.mrb[71].mxu1 }
 0xace   : > { %v11713_v15 = vpop.f32.mrb[72].mxu1 }
 0xacf   : > { %v11715_v49 = vpop.f32.mrb[73].mxu1 }
 0xad0   : > { %v11717_v14 = vpop.f32.mrb[74].mxu1 }
 0xad1   : > { %v11719_v50 = vpop.f32.mrb[75].mxu1 }
 0xad6   : > { %v11721_v52 = vpop.f32.mrb[76].mxu1 }
 0xad7   : > { %v11723_v53 = vpop.f32.mrb[77].mxu1 }
 0xad8   : > { %v11725_v37 = vpop.f32.mrb[78].mxu1 }
 0xad9   : > { %v11727_v58 = vpop.f32.mrb[79].mxu1 }
 0xade   : > { %v11729_v59 = vpop.f32.mrb[80].mxu1 }
 0xadf   : > { %v11731_v62 = vpop.f32.mrb[81].mxu1 }
 0xae0   : > { %v11733_v3 = vpop.f32.mrb[82].mxu1 }
 0xae1   : > { %v11735_v46 = vpop.f32.mrb[83].mxu1 }
 0xae6   : > { %v11737_v9 = vpop.f32.mrb[84].mxu1 }
 0xae7   : > { %v11739_v11 = vpop.f32.mrb[85].mxu1 }
 0xae8   : > { %v11741_v18 = vpop.f32.mrb[86].mxu1 }
 0xae9   : > { %v11743_v19 = vpop.f32.mrb[87].mxu1 }
 0xaee   : > { %v11745_v21 = vpop.f32.mrb[88].mxu1 }
 0xaef   : > { %v11747_v23 = vpop.f32.mrb[89].mxu1 }
 0xaf0   : > { %v11749_v24 = vpop.f32.mrb[90].mxu1 }
 0xaf1   : > { %v11751_v25 = vpop.f32.mrb[91].mxu1 }
 0xaf6   : > { %v11753_v31 = vpop.f32.mrb[92].mxu1 }
 0xaf7   : > { %v11755_v42 = vpop.f32.mrb[93].mxu1 }
 0xaf8   : > { %v11757_v4 = vpop.f32.mrb[94].mxu1 }
 0xaf9   : > { %v11759_v55 = vpop.f32.mrb[95].mxu1 }
 0xb1a   : > { %v8875_v27 = vpop.f32.mrb[96].mxu1 }
 0xb1b   : > { %v8876_v39 = vpop.f32.mrb[97].mxu1 }
 0xb1c   : > { %v8877_v0 = vadd.f32 %v8876_v39, %v8875_v27  ;;  %v8878_v54 = vpop.f32.mrb[98].mxu1 }
 0xb1d   : > { %v8879_v63 = vpop.f32.mrb[99].mxu1 }
 0xb1e   : > { %v7424_v43 = vadd.f32 %v8877_v0, %v7166_v34  ;;  %v8880_v2 = vadd.f32 %v8879_v63, %v8878_v54 }
 0xb20   : > { %v7557_v28 = vadd.f32 %v11762_v26, %v7424_v43  ;;  %v7427_v10 = vadd.f32 %v8880_v2, %v7169_v35 }
 0xb22   : > { %v7558_v16 = vadd.f32 %v11762_v26, %v7427_v10  ;;  %v8881_v22 = vpop.f32.mrb[100].mxu1  ;;  %v7589_v6 = vmax.f32 %v7557_v28, 0.0 }
 0xb23   : > { %v8882_v1 = vpop.f32.mrb[101].mxu1 }
 0xb24   : > { %v7590_v29 = vmax.f32 %v7558_v16, 0.0  ;;  %v8883_v36 = vadd.f32 %v8882_v1, %v8881_v22  ;;  %v8884_v57 = vpop.f32.mrb[102].mxu1 }
 0xb25   : > { %v8885_v61 = vpop.f32.mrb[103].mxu1 }
 0xb26   : > { %v7432_v48 = vadd.f32 %v9013_v33, %v8883_v36  ;;  %v8886_v39 = vadd.f32 %v8885_v61, %v8884_v57  ;;  %v7621_v27 = vpack.c.bf16 %v7590_v29, %v7589_v6 }
 0xb28   : > { %v7559_v13 = vadd.f32 %v11762_v26, %v7432_v48  ;;  %v7435_v20 = vadd.f32 %v9014_v45, %v8886_v39  ;;  %9059 = vmatprep.mubr.bf16.mxu0 %v7621_v27 }
 0xb2a   : > { %v7560_v63 = vadd.f32 %v11762_v26, %v7435_v20  ;;  %v8887_v54 = vpop.f32.mrb[104].mxu1  ;;  %v7591_v43 = vmax.f32 %v7559_v13, 0.0 }
 0xb2b   : > { %v8888_v2 = vpop.f32.mrb[105].mxu1 }
 0xb2c   : > { %v7592_v10 = vmax.f32 %v7560_v63, 0.0  ;;  %v8889_v0 = vadd.f32 %v8888_v2, %v8887_v54  ;;  %v8890_v34 = vpop.f32.mrb[106].mxu1 }
 0xb2d   : > { %v8891_v28 = vpop.f32.mrb[107].mxu1 }
 0xb2e   : > { %v7622_v16 = vpack.c.bf16 %v7592_v10, %v7591_v43  ;;  %v7440_v22 = vadd.f32 %v8889_v0, %v7182_v47  ;;  %v8892_v1 = vadd.f32 %v8891_v28, %v8890_v34 }
 0xb30   : > { %v7561_v36 = vadd.f32 %v11762_v26, %v7440_v22  ;;  %v7443_v61 = vadd.f32 %v8892_v1, %v7185_v12  ;;  %9060 = vmatmul.mubr.bf16.vlgmr.msra.gmra.mrb[192].mxu0 %v7622_v16 }
 0xb32   : > { %v7562_v48 = vadd.f32 %v11762_v26, %v7443_v61  ;;  %v8893_v57 = vpop.f32.mrb[108].mxu1  ;;  %v7593_v29 = vmax.f32 %v7561_v36, 0.0 }
 0xb33   : > { %v8894_v6 = vpop.f32.mrb[109].mxu1 }
 0xb34   : > { %v7594_v20 = vmax.f32 %v7562_v48, 0.0  ;;  %v8895_v33 = vadd.f32 %v8894_v6, %v8893_v57  ;;  %v8896_v45 = vpop.f32.mrb[110].mxu1 }
 0xb35   : > { %v8897_v13 = vpop.f32.mrb[111].mxu1 }
 0xb36   : > { %v7448_v35 = vadd.f32 %v11709_v44, %v8895_v33  ;;  %v8898_v39 = vadd.f32 %v8897_v13, %v8896_v45  ;;  %v7623_v27 = vpack.c.bf16 %v7594_v20, %v7593_v29 }
 0xb38   : > { %v7563_v47 = vadd.f32 %v11762_v26, %v7448_v35  ;;  %v7451_v63 = vadd.f32 %v11711_v38, %v8898_v39  ;;  %9063 = vmatprep.mubr.bf16.mxu0 %v7623_v27 }
 0xb3a   : > { %v7564_v12 = vadd.f32 %v11762_v26, %v7451_v63  ;;  %v8899_v54 = vpop.f32.mrb[112].mxu1  ;;  %v7595_v43 = vmax.f32 %v7563_v47, 0.0 }
 0xb3b   : > { %v8900_v2 = vpop.f32.mrb[113].mxu1 }
 0xb3c   : > { %v7596_v10 = vmax.f32 %v7564_v12, 0.0  ;;  %v8901_v0 = vadd.f32 %v8900_v2, %v8899_v54  ;;  %v8902_v34 = vpop.f32.mrb[114].mxu1 }
 0xb3d   : > { %v8903_v28 = vpop.f32.mrb[115].mxu1 }
 0xb3e   : > { %v7624_v16 = vpack.c.bf16 %v7596_v10, %v7595_v43  ;;  %v7456_v22 = vadd.f32 %v8901_v0, %v11715_v49  ;;  %v8904_v44 = vadd.f32 %v8903_v28, %v8902_v34 }
 0xb40   : > { %v7565_v1 = vadd.f32 %v11762_v26, %v7456_v22  ;;  %v7459_v36 = vadd.f32 %v8904_v44, %v11719_v50  ;;  %9064 = vmatmul.mubr.bf16.gmra.mrb[196].mxu0 %v7624_v16 }
 0xb42   : > { %v7566_v38 = vadd.f32 %v11762_v26, %v7459_v36  ;;  %v8905_v61 = vpop.f32.mrb[116].mxu1  ;;  %v7597_v57 = vmax.f32 %v7565_v1, 0.0 }
 0xb43   : > { %v8906_v48 = vpop.f32.mrb[117].mxu1 }
 0xb44   : > { %v7598_v6 = vmax.f32 %v7566_v38, 0.0  ;;  %v8907_v29 = vadd.f32 %v8906_v48, %v8905_v61  ;;  %v8908_v20 = vpop.f32.mrb[118].mxu1 }
 0xb45   : > { %v8909_v33 = vpop.f32.mrb[119].mxu1 }
 0xb46   : > { %v7464_v45 = vadd.f32 %v11713_v15, %v8907_v29  ;;  %v8910_v13 = vadd.f32 %v8909_v33, %v8908_v20  ;;  %v7625_v35 = vpack.c.bf16 %v7598_v6, %v7597_v57 }
 0xb48   : > { %v7567_v49 = vadd.f32 %v11762_v26, %v7464_v45  ;;  %v7467_v39 = vadd.f32 %v11717_v14, %v8910_v13  ;;  %9067 = vmatprep.mubr.bf16.mxu0 %v7625_v35 }
 0xb4a   : > { %v7568_v50 = vadd.f32 %v11762_v26, %v7467_v39  ;;  %v8911_v27 = vpop.f32.mrb[120].mxu1  ;;  %v7599_v63 = vmax.f32 %v7567_v49, 0.0 }
 0xb4b   : > { %v8912_v47 = vpop.f32.mrb[121].mxu1 }
 0xb4c   : > { %v7600_v12 = vmax.f32 %v7568_v50, 0.0  ;;  %v8913_v54 = vadd.f32 %v8912_v47, %v8911_v27  ;;  %v8914_v2 = vpop.f32.mrb[122].mxu1 }
 0xb4d   : > { %v8915_v43 = vpop.f32.mrb[123].mxu1 }
 0xb4e   : > { %v7626_v10 = vpack.c.bf16 %v7600_v12, %v7599_v63  ;;  %v7472_v0 = vadd.f32 %v8913_v54, %v11723_v53  ;;  %v8916_v15 = vadd.f32 %v8915_v43, %v8914_v2 }
 0xb50   : > { %v7569_v34 = vadd.f32 %v11762_v26, %v7472_v0  ;;  %v7475_v28 = vadd.f32 %v8916_v15, %v11727_v58  ;;  %9068 = vmatmul.mubr.bf16.gmra.mrb[200].mxu0 %v7626_v10 }
 0xb52   : > { %v7570_v14 = vadd.f32 %v11762_v26, %v7475_v28  ;;  %v8917_v16 = vpop.f32.mrb[124].mxu1  ;;  %v7601_v44 = vmax.f32 %v7569_v34, 0.0 }
 0xb53   : > { %v8918_v22 = vpop.f32.mrb[125].mxu1 }
 0xb54   : > { %v7602_v1 = vmax.f32 %v7570_v14, 0.0  ;;  %v8919_v36 = vadd.f32 %v8918_v22, %v8917_v16  ;;  %v8920_v38 = vpop.f32.mrb[126].mxu1 }
 0xb55   : > { %v8921_v61 = vpop.f32.mrb[127].mxu1 }
 0xb56   : > { %v7480_v48 = vadd.f32 %v11721_v52, %v8919_v36  ;;  %v8922_v57 = vadd.f32 %v8921_v61, %v8920_v38  ;;  %v7627_v6 = vpack.c.bf16 %v7602_v1, %v7601_v44 }
 0xb58   : > { %v7571_v53 = vadd.f32 %v11762_v26, %v7480_v48  ;;  %v7483_v29 = vadd.f32 %v11725_v37, %v8922_v57  ;;  %9071 = vmatprep.mubr.bf16.mxu0 %v7627_v6 }
 0xb5a   : > { %v7572_v58 = vadd.f32 %v11762_v26, %v7483_v29  ;;  %v8923_v20 = vpop.f32.mrb[128].mxu1  ;;  %v7603_v45 = vmax.f32 %v7571_v53, 0.0 }
 0xb5b   : > { %v8924_v33 = vpop.f32.mrb[129].mxu1 }
 0xb5c   : > { %v7604_v13 = vmax.f32 %v7572_v58, 0.0  ;;  %v8925_v35 = vadd.f32 %v8924_v33, %v8923_v20  ;;  %v8926_v49 = vpop.f32.mrb[130].mxu1 }
 0xb5d   : > { %v8927_v39 = vpop.f32.mrb[131].mxu1 }
 0xb5e   : > { %v7628_v50 = vpack.c.bf16 %v7604_v13, %v7603_v45  ;;  %v7488_v27 = vadd.f32 %v8925_v35, %v11731_v62  ;;  %v8928_v52 = vadd.f32 %v8927_v39, %v8926_v49 }
 0xb60   : > { %v7573_v47 = vadd.f32 %v11762_v26, %v7488_v27  ;;  %v7491_v63 = vadd.f32 %v8928_v52, %v11735_v46  ;;  %9072 = vmatmul.mubr.bf16.gmra.mrb[204].mxu0 %v7628_v50 }
 0xb62   : > { %v7574_v37 = vadd.f32 %v11762_v26, %v7491_v63  ;;  %v8929_v12 = vpop.f32.mrb[132].mxu1  ;;  %v7605_v2 = vmax.f32 %v7573_v47, 0.0 }
 0xb63   : > { %v8930_v54 = vpop.f32.mrb[133].mxu1 }
 0xb64   : > { %v7606_v43 = vmax.f32 %v7574_v37, 0.0  ;;  %v8931_v10 = vadd.f32 %v8930_v54, %v8929_v12  ;;  %v8932_v0 = vpop.f32.mrb[134].mxu1 }
 0xb65   : > { %v8933_v15 = vpop.f32.mrb[135].mxu1 }
 0xb66   : > { %v7496_v34 = vadd.f32 %v11729_v59, %v8931_v10  ;;  %v8934_v28 = vadd.f32 %v8933_v15, %v8932_v0  ;;  %v7629_v14 = vpack.c.bf16 %v7606_v43, %v7605_v2 }
 0xb68   : > { %v7575_v62 = vadd.f32 %v11762_v26, %v7496_v34  ;;  %v7499_v16 = vadd.f32 %v11733_v3, %v8934_v28  ;;  %9075 = vmatprep.mubr.bf16.mxu0 %v7629_v14 }
 0xb6a   : > { %v7576_v46 = vadd.f32 %v11762_v26, %v7499_v16  ;;  %v8935_v22 = vpop.f32.mrb[136].mxu1  ;;  %v7607_v1 = vmax.f32 %v7575_v62, 0.0 }
 0xb6b   : > { %v8936_v44 = vpop.f32.mrb[137].mxu1 }
 0xb6c   : > { %v7608_v36 = vmax.f32 %v7576_v46, 0.0  ;;  %v8937_v38 = vadd.f32 %v8936_v44, %v8935_v22  ;;  %v8938_v61 = vpop.f32.mrb[138].mxu1 }
 0xb6d   : > { %v8939_v48 = vpop.f32.mrb[139].mxu1 }
 0xb6e   : > { %v7630_v57 = vpack.c.bf16 %v7608_v36, %v7607_v1  ;;  %v7504_v6 = vadd.f32 %v8937_v38, %v11739_v11  ;;  %v8940_v59 = vadd.f32 %v8939_v48, %v8938_v61 }
 0xb70   : > { %v7577_v53 = vadd.f32 %v11762_v26, %v7504_v6  ;;  %v7507_v29 = vadd.f32 %v8940_v59, %v11743_v19  ;;  %9076 = vmatmul.mubr.bf16.gmra.mrb[208].mxu0 %v7630_v57 }
 0xb72   : > { %v7578_v3 = vadd.f32 %v11762_v26, %v7507_v29  ;;  %v8941_v58 = vpop.f32.mrb[140].mxu1  ;;  %v7609_v33 = vmax.f32 %v7577_v53, 0.0 }
 0xb73   : > { %v8942_v20 = vpop.f32.mrb[141].mxu1 }
 0xb74   : > { %v7610_v45 = vmax.f32 %v7578_v3, 0.0  ;;  %v8943_v13 = vadd.f32 %v8942_v20, %v8941_v58  ;;  %v8944_v35 = vpop.f32.mrb[142].mxu1 }
 0xb75   : > { %v8945_v49 = vpop.f32.mrb[143].mxu1 }
 0xb76   : > { %v7512_v39 = vadd.f32 %v11737_v9, %v8943_v13  ;;  %v8946_v50 = vadd.f32 %v8945_v49, %v8944_v35  ;;  %v7631_v27 = vpack.c.bf16 %v7610_v45, %v7609_v33 }
 0xb78   : > { %v7579_v11 = vadd.f32 %v11762_v26, %v7512_v39  ;;  %v7515_v52 = vadd.f32 %v11741_v18, %v8946_v50  ;;  %9079 = vmatprep.mubr.bf16.mxu0 %v7631_v27 }
 0xb7a   : > { %v7580_v19 = vadd.f32 %v11762_v26, %v7515_v52  ;;  %v8947_v47 = vpop.f32.mrb[144].mxu1  ;;  %v7611_v37 = vmax.f32 %v7579_v11, 0.0 }
 0xb7b   : > { %v8948_v63 = vpop.f32.mrb[145].mxu1 }
 0xb7c   : > { %v7612_v12 = vmax.f32 %v7580_v19, 0.0  ;;  %v8949_v54 = vadd.f32 %v8948_v63, %v8947_v47  ;;  %v8950_v2 = vpop.f32.mrb[146].mxu1 }
 0xb7d   : > { %v8951_v43 = vpop.f32.mrb[147].mxu1 }
 0xb7e   : > { %v7632_v10 = vpack.c.bf16 %v7612_v12, %v7611_v37  ;;  %v7520_v0 = vadd.f32 %v8949_v54, %v11747_v23  ;;  %v8952_v9 = vadd.f32 %v8951_v43, %v8950_v2  ;;  %v11823_v2 = vld [vmem:[%s10309_s19] ss:$0 sm:$0xff] }
 0xb80   : > { %v7581_v15 = vadd.f32 %v11762_v26, %v7520_v0  ;;  %v7523_v34 = vadd.f32 %v8952_v9, %v11751_v25  ;;  %9080 = vmatmul.mubr.bf16.gmra.mrb[212].mxu0 %v7632_v10 }
 0xb82   : > { %v7582_v18 = vadd.f32 %v11762_v26, %v7523_v34  ;;  %v8953_v28 = vpop.f32.mrb[148].mxu1  ;;  %v7613_v62 = vmax.f32 %v7581_v15, 0.0 }
 0xb83   : > { %v8954_v14 = vpop.f32.mrb[149].mxu1 }
 0xb84   : > { %v7614_v16 = vmax.f32 %v7582_v18, 0.0  ;;  %v8955_v46 = vadd.f32 %v8954_v14, %v8953_v28  ;;  %v8956_v22 = vpop.f32.mrb[150].mxu1 }
 0xb85   : > { %v8957_v44 = vpop.f32.mrb[151].mxu1 }
 0xb86   : > { %v7528_v1 = vadd.f32 %v11745_v21, %v8955_v46  ;;  %v8958_v36 = vadd.f32 %v8957_v44, %v8956_v22  ;;  %v7633_v38 = vpack.c.bf16 %v7614_v16, %v7613_v62  ;;  %v6357_v46 = vsub.s32 2, %v10500_v7 }
 0xb88   : > { %v7583_v23 = vadd.f32 %v11762_v26, %v7528_v1  ;;  %v7531_v61 = vadd.f32 %v11749_v24, %v8958_v36  ;;  %9083 = vmatprep.mubr.bf16.mxu0 %v7633_v38 }
 0xb8a   : > { %v7584_v25 = vadd.f32 %v11762_v26, %v7531_v61  ;;  %v8959_v48 = vpop.f32.mrb[152].mxu1  ;;  %v7615_v6 = vmax.f32 %v7583_v23, 0.0 }
 0xb8b   : > { %v8960_v57 = vpop.f32.mrb[153].mxu1 }
 0xb8c   : > { %v7616_v59 = vmax.f32 %v7584_v25, 0.0  ;;  %v8961_v53 = vadd.f32 %v8960_v57, %v8959_v48  ;;  %v8962_v29 = vpop.f32.mrb[154].mxu1 }
 0xb8d   : > { %v8963_v3 = vpop.f32.mrb[155].mxu1 }
 0xb8e   : > { %v7634_v58 = vpack.c.bf16 %v7616_v59, %v7615_v6  ;;  %v7536_v20 = vadd.f32 %v8961_v53, %v11755_v42  ;;  %v8964_v21 = vadd.f32 %v8963_v3, %v8962_v29  ;;  %v9990_v29 = vld [vmem:[%s12072_s2] sm:$0x7] }
 0xb8f   : > { %v11834_v3 = vrot.slane %v9990_v29, %v6357_v46 }
 0xb90   : > { %v7585_v33 = vadd.f32 %v11762_v26, %v7536_v20  ;;  %v7539_v45 = vadd.f32 %v8964_v21, %v11759_v55  ;;  %9084 = vmatmul.mubr.bf16.gmra.mrb[216].mxu0 %v7634_v58 }
 0xb92   : > { %v7586_v24 = vadd.f32 %v11762_v26, %v7539_v45  ;;  %v8965_v13 = vpop.f32.mrb[156].mxu1  ;;  %v7617_v49 = vmax.f32 %v7585_v33, 0.0  ;;  %v12095_v33 = vlaneseq }
 0xb93   : > { %v8966_v35 = vpop.f32.mrb[157].mxu1 }
 0xb94   : > { %v7618_v39 = vmax.f32 %v7586_v24, 0.0  ;;  %v8967_v50 = vadd.f32 %v8966_v35, %v8965_v13  ;;  %v8968_v27 = vpop.f32.mrb[158].mxu1  ;;  %v11838_v45 = vand.u32 127, %v12095_v33  ;;  %v6854_v13 = vadd.f32 %v11589_v56, %v11834_v3 }
 0xb95   : > { %v8969_v11 = vpop.f32.mrb[159].mxu1  ;;  %v6846_v35 = vadd.f32 %v11581_v41, %v11834_v3 }
 0xb96   : > { %v7544_v52 = vadd.f32 %v11753_v31, %v8967_v50  ;;  %v8970_v19 = vadd.f32 %v8969_v11, %v8968_v27  ;;  %v7635_v42 = vpack.c.bf16 %v7618_v39, %v7617_v49  ;;  %v6857_v49 = vadd.f32 %v11595_v5, %v11834_v3 }
 0xb97   : > { %v6849_v39 = vadd.f32 %v11587_v51, %v11834_v3  ;;  %vm8063_vm0 = vcmp.lt.s32.totalorder %v11838_v45, 3  ;;  %v7006_v56 = vmax.f32 %v6854_v13, 0.0  ;;  %v7004_v27 = vmax.f32 %v6846_v35, 0.0 }
 0xb98   : > { %v7587_v47 = vadd.f32 %v11762_v26, %v7544_v52  ;;  %v7547_v63 = vadd.f32 %v11757_v4, %v8970_v19  ;;  %9087 = vmatprep.mubr.bf16.mxu0 %v7635_v42  ;;  %v7007_v11 = vmax.f32 %v6857_v49, 0.0 }
 0xb99   : > { %v7005_v19 = vmax.f32 %v6849_v39, 0.0 }
 0xb9a   : > { %v7588_v55 = vadd.f32 %v11762_v26, %v7547_v63  ;;  %v7619_v37 = vmax.f32 %v7587_v47, 0.0 }
 0xb9c   : > { %v7620_v12 = vmax.f32 %v7588_v55, 0.0 }
 0xb9e   : > { %v7636_v54 = vpack.c.bf16 %v7620_v12, %v7619_v37 }
 0xba0   : > { %9088 = vmatmul.mubr.bf16.gmra.mrb[220].mxu0 %v7636_v54 }
 0xc03   : > { %v9061_v43 = vpop.f32.mrb[192].mxu0 }
 0xc04   : > { %v7751_v10 = vadd.f32 %v9061_v43, %v11823_v2  ;;  %v7742_v0 = vpop.f32.mrb[193].mxu0 }
 0xc05   : > { %v7743_v31 = vadd.f32 %v11823_v2, %v7742_v0  ;;  %v9062_v9 = vpop.f32.mrb[194].mxu0 }
 0xc06   : > { %v8691_v15 = vmul.f32 -1.442695, %v7751_v10  ;;  %v7754_v34 = vadd.f32 %v9062_v9, %v11823_v2  ;;  %v7745_v4 = vpop.f32.mrb[195].mxu0 }
 0xc07   : > { %v8689_v18 = vmul.f32 -1.442695, %v7743_v31  ;;  %v7746_v26 = vadd.f32 %v11823_v2, %v7745_v4 }
 0xc08   : > { %9830 = vpow2.f32 %v8691_v15  ;;  %v8692_v28 = vmul.f32 -1.442695, %v7754_v34 }
 0xc09   : > { %9832 = vpow2.f32 %v8689_v18  ;;  %v8690_v14 = vmul.f32 -1.442695, %v7746_v26 }
 0xc0a   : > { %9834 = vpow2.f32 %v8692_v28 }
 0xc0b   : > { %9836 = vpow2.f32 %v8690_v14 }
 0xc12   : > { %v9831_v62 = vpop.eup %9830 }
 0xc13   : > { %v9833_v16 = vpop.eup %9832  ;;  %v7967_v22 = vadd.f32 1.0, %v9831_v62  ;;  %v9065_v44 = vpop.f32.mrb[196].mxu0 }
 0xc14   : > { %v9835_v1 = vpop.eup %9834  ;;  %v7965_v36 = vadd.f32 1.0, %v9833_v16  ;;  %v7767_v38 = vadd.f32 %v9065_v44, %v11823_v2  ;;  %v7758_v23 = vpop.f32.mrb[197].mxu0  ;;  %v6870_v44 = vadd.f32 %v11605_v32, %v11834_v3 }
 0xc15   : > { %v9837_v61 = vpop.eup %9836  ;;  %9838 = vrcp.f32 %v7967_v22  ;;  %v7968_v25 = vadd.f32 1.0, %v9835_v1  ;;  %v7759_v48 = vadd.f32 %v11823_v2, %v7758_v23  ;;  %v9066_v57 = vpop.f32.mrb[198].mxu0  ;;  %v6862_v1 = vadd.f32 %v11597_v17, %v11834_v3 }
 0xc16   : > { %9840 = vrcp.f32 %v7965_v36  ;;  %v7966_v6 = vadd.f32 1.0, %v9837_v61  ;;  %v8695_v59 = vmul.f32 -1.442695, %v7767_v38  ;;  %v7770_v7 = vadd.f32 %v9066_v57, %v11823_v2  ;;  %v7761_v53 = vpop.f32.mrb[199].mxu0 }
 0xc17   : > { %9842 = vrcp.f32 %v7968_v25  ;;  %v8693_v58 = vmul.f32 -1.442695, %v7759_v48  ;;  %v7762_v20 = vadd.f32 %v11823_v2, %v7761_v53  ;;  %v6873_v36 = vadd.f32 %v11611_v40, %v11834_v3 }
 0xc18   : > { %9844 = vrcp.f32 %v7966_v6  ;;  %v8696_v21 = vmul.f32 -1.442695, %v7770_v7  ;;  %v6865_v38 = vadd.f32 %v11603_v60, %v11834_v3  ;;  %v7010_v23 = vmax.f32 %v6870_v44, 0.0 }
 0xc19   : > { %9846 = vpow2.f32 %v8695_v59  ;;  %v8694_v24 = vmul.f32 -1.442695, %v7762_v20  ;;  %v7008_v25 = vmax.f32 %v6862_v1, 0.0  ;;  %v7011_v57 = vmax.f32 %v6873_v36, 0.0 }
 0xc1a   : > { %9848 = vpow2.f32 %v8693_v58  ;;  %v7009_v6 = vmax.f32 %v6865_v38, 0.0 }
 0xc1b   : > { %9850 = vpow2.f32 %v8696_v21 }
 0xc1c   : > { %9852 = vpow2.f32 %v8694_v24 }
 0xc1f   : > { %v9839_v50 = vpop.eup %9838 }
 0xc20   : > { %v9841_v41 = vpop.eup %9840  ;;  %v8066_v5 = vsel %vm8063_vm0, %v9839_v50, %v7006_v56 }
 0xc21   : > { %v9843_v52 = vpop.eup %9842  ;;  %8098 = vst [vmem:[%s11851_s18 + $0x10] sm:$0xff] %v8066_v5  ;;  %v8064_v51 = vsel %vm8063_vm0, %v9841_v41, %v7004_v27 }
 0xc22   : > { %v9845_v42 = vpop.eup %9844  ;;  %8096 = vst [vmem:[%s11851_s18] sm:$0xff] %v8064_v51  ;;  %v8067_v47 = vsel %vm8063_vm0, %v9843_v52, %v7007_v11 }
 0xc23   : > { %v9847_v63 = vpop.eup %9846  ;;  %8099 = vst [vmem:[%s11851_s18 + $0x18] sm:$0xff] %v8067_v47  ;;  %v8065_v55 = vsel %vm8063_vm0, %v9845_v42, %v7005_v19  ;;  %v9069_v37 = vpop.f32.mrb[200].mxu0  ;;  %v6886_v42 = vadd.f32 %v11621_v30, %v11834_v3  ;;  %v6878_v47 = vadd.f32 %v11613_v8, %v11834_v3 }
 0xc24   : > { %v9849_v12 = vpop.eup %9848  ;;  %8097 = vst [vmem:[%s11851_s18 + $0x8] sm:$0xff] %v8065_v55  ;;  %v7971_v54 = vadd.f32 1.0, %v9847_v63  ;;  %v7783_v43 = vadd.f32 %v9069_v37, %v11823_v2  ;;  %v7774_v10 = vpop.f32.mrb[201].mxu0  ;;  %v12096_v63 = vld [vmem:[#allocation25_spill] sm:$0xff]  ;;  %v12097_v37 = vld [vmem:[#allocation24_spill] sm:$0xff] }
 0xc25   : > { %v9851_v0 = vpop.eup %9850  ;;  %v7969_v31 = vadd.f32 1.0, %v9849_v12  ;;  %v7775_v9 = vadd.f32 %v11823_v2, %v7774_v10  ;;  %v9070_v15 = vpop.f32.mrb[202].mxu0  ;;  %v6889_v55 = vadd.f32 %v12096_v63, %v11834_v3  ;;  %v6881_v12 = vadd.f32 %v12097_v37, %v11834_v3 }
 0xc26   : > { %v9853_v34 = vpop.eup %9852  ;;  %9854 = vrcp.f32 %v7971_v54  ;;  %v7972_v4 = vadd.f32 1.0, %v9851_v0  ;;  %v8699_v18 = vmul.f32 -1.442695, %v7783_v43  ;;  %v7786_v26 = vadd.f32 %v9070_v15, %v11823_v2  ;;  %v7777_v28 = vpop.f32.mrb[203].mxu0 }
 0xc27   : > { %9856 = vrcp.f32 %v7969_v31  ;;  %v7970_v14 = vadd.f32 1.0, %v9853_v34  ;;  %v8697_v62 = vmul.f32 -1.442695, %v7775_v9  ;;  %v7778_v16 = vadd.f32 %v11823_v2, %v7777_v28 }
 0xc28   : > { %9858 = vrcp.f32 %v7972_v4  ;;  %v8700_v46 = vmul.f32 -1.442695, %v7786_v26  ;;  %v7014_v54 = vmax.f32 %v6886_v42, 0.0  ;;  %v7012_v10 = vmax.f32 %v6878_v47, 0.0 }
 0xc29   : > { %9860 = vrcp.f32 %v7970_v14  ;;  %v8698_v22 = vmul.f32 -1.442695, %v7778_v16  ;;  %v7015_v31 = vmax.f32 %v6889_v55, 0.0  ;;  %v7013_v8 = vmax.f32 %v6881_v12, 0.0 }
 0xc2a   : > { %9862 = vpow2.f32 %v8699_v18 }
 0xc2b   : > { %9864 = vpow2.f32 %v8697_v62 }
 0xc2c   : > { %9866 = vpow2.f32 %v8700_v46 }
 0xc2d   : > { %9868 = vpow2.f32 %v8698_v22 }
 0xc30   : > { %v9855_v61 = vpop.eup %9854 }
 0xc31   : > { %v9857_v48 = vpop.eup %9856  ;;  %v8070_v32 = vsel %vm8063_vm0, %v9855_v61, %v7010_v23 }
 0xc32   : > { %v9859_v17 = vpop.eup %9858  ;;  %8102 = vst [vmem:[%s11851_s18 + $0x30] sm:$0xff] %v8070_v32  ;;  %v8068_v40 = vsel %vm8063_vm0, %v9857_v48, %v7008_v25 }
 0xc33   : > { %v9861_v59 = vpop.eup %9860  ;;  %8100 = vst [vmem:[%s11851_s18 + $0x20] sm:$0xff] %v8068_v40  ;;  %v8071_v60 = vsel %vm8063_vm0, %v9859_v17, %v7011_v57  ;;  %v9073_v7 = vpop.f32.mrb[204].mxu0 }
 0xc34   : > { %v9863_v53 = vpop.eup %9862  ;;  %8103 = vst [vmem:[%s11851_s18 + $0x38] sm:$0xff] %v8071_v60  ;;  %v8069_v29 = vsel %vm8063_vm0, %v9861_v59, %v7009_v6  ;;  %v7799_v58 = vadd.f32 %v9073_v7, %v11823_v2  ;;  %v7790_v20 = vpop.f32.mrb[205].mxu0  ;;  %v12098_v59 = vld [vmem:[#allocation28_spill] sm:$0xff]  ;;  %v12099_v7 = vld [vmem:[#allocation26_spill] sm:$0xff] }
 0xc35   : > { %v9865_v21 = vpop.eup %9864  ;;  %8101 = vst [vmem:[%s11851_s18 + $0x28] sm:$0xff] %v8069_v29  ;;  %v7975_v33 = vadd.f32 1.0, %v9863_v53  ;;  %v7791_v24 = vadd.f32 %v11823_v2, %v7790_v20  ;;  %v9074_v13 = vpop.f32.mrb[206].mxu0  ;;  %v6902_v60 = vadd.f32 %v12098_v59, %v11834_v3  ;;  %v6894_v53 = vadd.f32 %v12099_v7, %v11834_v3  ;;  %v12100_v29 = vld [vmem:[#allocation29_spill] sm:$0xff]  ;;  %v12101_v20 = vld [vmem:[#allocation27_spill] sm:$0xff] }
 0xc36   : > { %v9867_v35 = vpop.eup %9866  ;;  %v7973_v49 = vadd.f32 1.0, %v9865_v21  ;;  %v7802_v39 = vadd.f32 %v9074_v13, %v11823_v2  ;;  %v7793_v56 = vpop.f32.mrb[207].mxu0  ;;  %v8703_v41 = vmul.f32 -1.442695, %v7799_v58  ;;  %v6905_v58 = vadd.f32 %v12100_v29, %v11834_v3 }
 0xc37   : > { %v9869_v50 = vpop.eup %9868  ;;  %9870 = vrcp.f32 %v7975_v33  ;;  %v7976_v27 = vadd.f32 1.0, %v9867_v35  ;;  %v7794_v11 = vadd.f32 %v11823_v2, %v7793_v56  ;;  %v8701_v52 = vmul.f32 -1.442695, %v7791_v24 }
 0xc38   : > { %9872 = vrcp.f32 %v7973_v49  ;;  %v7974_v5 = vadd.f32 1.0, %v9869_v50  ;;  %v8704_v19 = vmul.f32 -1.442695, %v7802_v39  ;;  %v6897_v21 = vadd.f32 %v12101_v20, %v11834_v3 }
 0xc39   : > { %9874 = vrcp.f32 %v7976_v27  ;;  %v8702_v51 = vmul.f32 -1.442695, %v7794_v11  ;;  %v7018_v33 = vmax.f32 %v6902_v60, 0.0  ;;  %v7016_v13 = vmax.f32 %v6894_v53, 0.0 }
 0xc3a   : > { %9876 = vrcp.f32 %v7974_v5  ;;  %v7019_v49 = vmax.f32 %v6905_v58, 0.0  ;;  %v7017_v27 = vmax.f32 %v6897_v21, 0.0 }
 0xc3b   : > { %9878 = vpow2.f32 %v8703_v41 }
 0xc3c   : > { %9880 = vpow2.f32 %v8701_v52 }
 0xc3d   : > { %9882 = vpow2.f32 %v8704_v19 }
 0xc3e   : > { %9884 = vpow2.f32 %v8702_v51 }
 0xc41   : > { %v9871_v43 = vpop.eup %9870 }
 0xc42   : > { %v9873_v0 = vpop.eup %9872  ;;  %v8074_v30 = vsel %vm8063_vm0, %v9871_v43, %v7014_v54 }
 0xc43   : > { %v9875_v9 = vpop.eup %9874  ;;  %8106 = vst [vmem:[%s11851_s18 + $0x50] sm:$0xff] %v8074_v30  ;;  %v8072_v15 = vsel %vm8063_vm0, %v9873_v0, %v7012_v10  ;;  %v9077_v34 = vpop.f32.mrb[208].mxu0 }
 0xc44   : > { %v9877_v4 = vpop.eup %9876  ;;  %8104 = vst [vmem:[%s11851_s18 + $0x40] sm:$0xff] %v8072_v15  ;;  %v8075_v18 = vsel %vm8063_vm0, %v9875_v9, %v7015_v31  ;;  %v7815_v26 = vadd.f32 %v9077_v34, %v11823_v2  ;;  %v7806_v28 = vpop.f32.mrb[209].mxu0 }
 0xc45   : > { %v9879_v14 = vpop.eup %9878  ;;  %8107 = vst [vmem:[%s11851_s18 + $0x58] sm:$0xff] %v8075_v18  ;;  %v8073_v62 = vsel %vm8063_vm0, %v9877_v4, %v7013_v8  ;;  %v7807_v16 = vadd.f32 %v11823_v2, %v7806_v28  ;;  %v9078_v46 = vpop.f32.mrb[210].mxu0  ;;  %v12102_v18 = vld [vmem:[#allocation32_spill] sm:$0xff]  ;;  %v12103_v28 = vld [vmem:[#allocation30_spill] sm:$0xff] }
 0xc46   : > { %v9881_v22 = vpop.eup %9880  ;;  %8105 = vst [vmem:[%s11851_s18 + $0x48] sm:$0xff] %v8073_v62  ;;  %v7979_v44 = vadd.f32 1.0, %v9879_v14  ;;  %v7818_v1 = vadd.f32 %v9078_v46, %v11823_v2  ;;  %v7809_v36 = vpop.f32.mrb[211].mxu0  ;;  %v8707_v57 = vmul.f32 -1.442695, %v7815_v26  ;;  %v6918_v26 = vadd.f32 %v12102_v18, %v11834_v3  ;;  %v12104_v62 = vld [vmem:[#allocation33_spill] sm:$0xff] }
 0xc47   : > { %v9883_v38 = vpop.eup %9882  ;;  %v7977_v23 = vadd.f32 1.0, %v9881_v22  ;;  %v7810_v61 = vadd.f32 %v11823_v2, %v7809_v36  ;;  %v8705_v17 = vmul.f32 -1.442695, %v7807_v16  ;;  %v6910_v14 = vadd.f32 %v12103_v28, %v11834_v3  ;;  %v12105_v46 = vld [vmem:[#allocation31_spill] sm:$0xff] }
 0xc48   : > { %v9885_v25 = vpop.eup %9884  ;;  %9886 = vrcp.f32 %v7979_v44  ;;  %v7980_v48 = vadd.f32 1.0, %v9883_v38  ;;  %v8708_v6 = vmul.f32 -1.442695, %v7818_v1  ;;  %v6921_v16 = vadd.f32 %v12104_v62, %v11834_v3 }
 0xc49   : > { %9888 = vrcp.f32 %v7977_v23  ;;  %v7978_v32 = vadd.f32 1.0, %v9885_v25  ;;  %v8706_v40 = vmul.f32 -1.442695, %v7810_v61  ;;  %v6913_v22 = vadd.f32 %v12105_v46, %v11834_v3 }
 0xc4a   : > { %9890 = vrcp.f32 %v7980_v48  ;;  %v7022_v1 = vmax.f32 %v6918_v26, 0.0  ;;  %v7020_v38 = vmax.f32 %v6910_v14, 0.0  ;;  %v7023_v48 = vmax.f32 %v6921_v16, 0.0 }
 0xc4b   : > { %9892 = vrcp.f32 %v7978_v32 }
 0xc4c   : > { %9894 = vpow2.f32 %v8707_v57 }
 0xc4d   : > { %9896 = vpow2.f32 %v8705_v17 }
 0xc4e   : > { %9898 = vpow2.f32 %v8708_v6 }
 0xc4f   : > { %9900 = vpow2.f32 %v8706_v40  ;;  %v7021_v40 = vmax.f32 %v6913_v22, 0.0 }
 0xc52   : > { %v9887_v24 = vpop.eup %9886 }
 0xc53   : > { %v9889_v35 = vpop.eup %9888  ;;  %v8078_v39 = vsel %vm8063_vm0, %v9887_v24, %v7018_v33  ;;  %v9081_v56 = vpop.f32.mrb[212].mxu0 }
 0xc54   : > { %v9891_v50 = vpop.eup %9890  ;;  %8110 = vst [vmem:[%s11851_s18 + $0x70] sm:$0xff] %v8078_v39  ;;  %v8076_v41 = vsel %vm8063_vm0, %v9889_v35, %v7016_v13  ;;  %v7831_v11 = vadd.f32 %v9081_v56, %v11823_v2  ;;  %v7822_v5 = vpop.f32.mrb[213].mxu0 }
 0xc55   : > { %v9893_v52 = vpop.eup %9892  ;;  %8108 = vst [vmem:[%s11851_s18 + $0x60] sm:$0xff] %v8076_v41  ;;  %v8079_v19 = vsel %vm8063_vm0, %v9891_v50, %v7019_v49  ;;  %v7823_v51 = vadd.f32 %v11823_v2, %v7822_v5  ;;  %v9082_v42 = vpop.f32.mrb[214].mxu0  ;;  %v12106_v41 = vld [vmem:[#allocation36_spill] sm:$0xff] }
 0xc56   : > { %v9895_v47 = vpop.eup %9894  ;;  %8111 = vst [vmem:[%s11851_s18 + $0x78] sm:$0xff] %v8079_v19  ;;  %v8077_v63 = vsel %vm8063_vm0, %v9893_v52, %v7017_v27  ;;  %v8711_v55 = vmul.f32 -1.442695, %v7831_v11  ;;  %v7834_v37 = vadd.f32 %v9082_v42, %v11823_v2  ;;  %v7825_v12 = vpop.f32.mrb[215].mxu0  ;;  %v6934_v11 = vadd.f32 %v12106_v41, %v11834_v3  ;;  %v12107_v42 = vld [vmem:[#allocation34_spill] sm:$0xff] }
 0xc57   : > { %v9897_v54 = vpop.eup %9896  ;;  %8109 = vst [vmem:[%s11851_s18 + $0x68] sm:$0xff] %v8077_v63  ;;  %v7983_v43 = vadd.f32 1.0, %v9895_v47  ;;  %v7826_v10 = vadd.f32 %v11823_v2, %v7825_v12  ;;  %v8709_v8 = vmul.f32 -1.442695, %v7823_v51  ;;  %v6926_v47 = vadd.f32 %v12107_v42, %v11834_v3  ;;  %v12108_v63 = vld [vmem:[#allocation37_spill] sm:$0xff]  ;;  %v12109_v12 = vld [vmem:[#allocation35_spill] sm:$0xff] }
 0xc58   : > { %v9899_v0 = vpop.eup %9898  ;;  %v7981_v31 = vadd.f32 1.0, %v9897_v54  ;;  %9902 = vpow2.f32 %v8711_v55  ;;  %v8712_v34 = vmul.f32 -1.442695, %v7834_v37  ;;  %v7026_v19 = vmax.f32 %v6934_v11, 0.0 }
 0xc59   : > { %v9901_v30 = vpop.eup %9900  ;;  %9904 = vrcp.f32 %v7983_v43  ;;  %v7984_v9 = vadd.f32 1.0, %v9899_v0  ;;  %v8710_v4 = vmul.f32 -1.442695, %v7826_v10  ;;  %v6937_v55 = vadd.f32 %v12108_v63, %v11834_v3  ;;  %v12114_v63 = vld [vmem:[#allocation44_spill] sm:$0xff] }
 0xc5a   : > { %9906 = vrcp.f32 %v7981_v31  ;;  %v7982_v15 = vadd.f32 1.0, %v9901_v30  ;;  %v6929_v54 = vadd.f32 %v12109_v12, %v11834_v3  ;;  %v7024_v0 = vmax.f32 %v6926_v47, 0.0 }
 0xc5b   : > { %9908 = vrcp.f32 %v7984_v9 }
 0xc5c   : > { %9910 = vrcp.f32 %v7982_v15  ;;  %v7025_v26 = vmax.f32 %v6929_v54, 0.0 }
 0xc5d   : > { %9912 = vpow2.f32 %v8709_v8  ;;  %v7027_v8 = vmax.f32 %v6937_v55, 0.0  ;;  %v6966_v55 = vadd.f32 %v12114_v63, %v11834_v3 }
 0xc5e   : > { %9914 = vpow2.f32 %v8712_v34 }
 0xc5f   : > { %9916 = vpow2.f32 %v8710_v4  ;;  %v7034_v54 = vmax.f32 %v6966_v55, 0.0 }
 0xc62   : > { %v9903_v44 = vpop.eup %9902 }
 0xc63   : > { %v9905_v36 = vpop.eup %9904  ;;  %v7987_v23 = vadd.f32 1.0, %v9903_v44  ;;  %v9085_v61 = vpop.f32.mrb[216].mxu0 }
 0xc64   : > { %v9907_v25 = vpop.eup %9906  ;;  %v8082_v57 = vsel %vm8063_vm0, %v9905_v36, %v7022_v1  ;;  %v7847_v32 = vadd.f32 %v9085_v61, %v11823_v2  ;;  %v7838_v17 = vpop.f32.mrb[217].mxu0 }
 0xc65   : > { %v9909_v6 = vpop.eup %9908  ;;  %8114 = vst [vmem:[%s11851_s18 + $0x90] sm:$0xff] %v8082_v57  ;;  %v8080_v59 = vsel %vm8063_vm0, %v9907_v25, %v7020_v38  ;;  %9918 = vrcp.f32 %v7987_v23  ;;  %v7839_v60 = vadd.f32 %v11823_v2, %v7838_v17  ;;  %v9086_v7 = vpop.f32.mrb[218].mxu0 }
 0xc66   : > { %v9911_v53 = vpop.eup %9910  ;;  %8112 = vst [vmem:[%s11851_s18 + $0x80] sm:$0xff] %v8080_v59  ;;  %v8083_v29 = vsel %vm8063_vm0, %v9909_v6, %v7023_v48  ;;  %v8715_v58 = vmul.f32 -1.442695, %v7847_v32  ;;  %v7850_v20 = vadd.f32 %v9086_v7, %v11823_v2  ;;  %v7841_v21 = vpop.f32.mrb[219].mxu0  ;;  %v12110_v6 = vld [vmem:[#allocation40_spill] sm:$0xff]  ;;  %v12111_v59 = vld [vmem:[#allocation38_spill] sm:$0xff] }
 0xc67   : > { %v9913_v33 = vpop.eup %9912  ;;  %8115 = vst [vmem:[%s11851_s18 + $0x98] sm:$0xff] %v8083_v29  ;;  %v8081_v24 = vsel %vm8063_vm0, %v9911_v53, %v7021_v40  ;;  %v8713_v13 = vmul.f32 -1.442695, %v7839_v60  ;;  %v7842_v35 = vadd.f32 %v11823_v2, %v7841_v21  ;;  %v6950_v40 = vadd.f32 %v12110_v6, %v11834_v3  ;;  %v12112_v29 = vld [vmem:[#allocation41_spill] sm:$0xff]  ;;  %v12113_v21 = vld [vmem:[#allocation39_spill] sm:$0xff] }
 0xc68   : > { %v9915_v49 = vpop.eup %9914  ;;  %8113 = vst [vmem:[%s11851_s18 + $0x88] sm:$0xff] %v8081_v24  ;;  %v7985_v39 = vadd.f32 1.0, %v9913_v33  ;;  %9920 = vpow2.f32 %v8715_v58  ;;  %v8716_v27 = vmul.f32 -1.442695, %v7850_v20  ;;  %v6942_v60 = vadd.f32 %v12111_v59, %v11834_v3 }
 0xc69   : > { %v9917_v56 = vpop.eup %9916  ;;  %v7988_v50 = vadd.f32 1.0, %v9915_v49  ;;  %9922 = vpow2.f32 %v8713_v13  ;;  %v8714_v52 = vmul.f32 -1.442695, %v7842_v35  ;;  %v6953_v58 = vadd.f32 %v12112_v29, %v11834_v3 }
 0xc6a   : > { %9924 = vrcp.f32 %v7985_v39  ;;  %v7986_v5 = vadd.f32 1.0, %v9917_v56  ;;  %v7028_v53 = vmax.f32 %v6942_v60, 0.0  ;;  %v6945_v33 = vadd.f32 %v12113_v21, %v11834_v3 }
 0xc6b   : > { %9926 = vrcp.f32 %v7988_v50  ;;  %v7031_v39 = vmax.f32 %v6953_v58, 0.0 }
 0xc6c   : > { %9928 = vrcp.f32 %v7986_v5 }
 0xc6d   : > { %9930 = vpow2.f32 %v8716_v27  ;;  %v7029_v27 = vmax.f32 %v6945_v33, 0.0 }
 0xc6e   : > { %9932 = vpow2.f32 %v8714_v52 }
 0xc6f   : > { %v9919_v51 = vpop.eup %9918 }
 0xc70   : > { %v8086_v37 = vsel %vm8063_vm0, %v9919_v51, %v7026_v19 }
 0xc71   : > { %8118 = vst [vmem:[%s11851_s18 + $0xb0] sm:$0xff] %v8086_v37  ;;  %v12115_v37 = vld [vmem:[#allocation42_spill] sm:$0xff] }
 0xc72   : > { %v9921_v43 = vpop.eup %9920  ;;  %v6958_v12 = vadd.f32 %v12115_v37, %v11834_v3 }
 0xc73   : > { %v9923_v10 = vpop.eup %9922  ;;  %v7991_v31 = vadd.f32 1.0, %v9921_v43  ;;  %v9089_v30 = vpop.f32.mrb[220].mxu0  ;;  %v12116_v43 = vld [vmem:[#allocation45_spill] sm:$0xff] }
 0xc74   : > { %v9925_v9 = vpop.eup %9924  ;;  %v7989_v15 = vadd.f32 1.0, %v9923_v10  ;;  %v7863_v34 = vadd.f32 %v9089_v30, %v11823_v2  ;;  %v7854_v4 = vpop.f32.mrb[221].mxu0  ;;  %v6969_v10 = vadd.f32 %v12116_v43, %v11834_v3  ;;  %v12117_v30 = vld [vmem:[#allocation43_spill] sm:$0xff] }
 0xc75   : > { %v9927_v18 = vpop.eup %9926  ;;  %v8084_v28 = vsel %vm8063_vm0, %v9925_v9, %v7024_v0  ;;  %9934 = vrcp.f32 %v7991_v31  ;;  %v7855_v14 = vadd.f32 %v11823_v2, %v7854_v4  ;;  %v9090_v62 = vpop.f32.mrb[222].mxu0  ;;  %v7032_v31 = vmax.f32 %v6958_v12, 0.0 }
 0xc76   : > { %v9929_v16 = vpop.eup %9928  ;;  %8116 = vst [vmem:[%s11851_s18 + $0xa0] sm:$0xff] %v8084_v28  ;;  %v8087_v46 = vsel %vm8063_vm0, %v9927_v18, %v7027_v8  ;;  %9936 = vrcp.f32 %v7989_v15  ;;  %v8719_v22 = vmul.f32 -1.442695, %v7863_v34  ;;  %v7866_v44 = vadd.f32 %v9090_v62, %v11823_v2  ;;  %v7857_v1 = vpop.f32.mrb[223].mxu0 }
 0xc77   : > { %v9931_v36 = vpop.eup %9930  ;;  %8119 = vst [vmem:[%s11851_s18 + $0xb8] sm:$0xff] %v8087_v46  ;;  %v8085_v38 = vsel %vm8063_vm0, %v9929_v16, %v7025_v26  ;;  %v8717_v23 = vmul.f32 -1.442695, %v7855_v14  ;;  %v7858_v61 = vadd.f32 %v11823_v2, %v7857_v1  ;;  %v7030_v2 = vmax.f32 %v6950_v40, 0.0 }
 0xc78   : > { %v9933_v25 = vpop.eup %9932  ;;  %8117 = vst [vmem:[%s11851_s18 + $0xa8] sm:$0xff] %v8085_v38  ;;  %v7992_v48 = vadd.f32 1.0, %v9931_v36  ;;  %9938 = vpow2.f32 %v8719_v22  ;;  %v8720_v57 = vmul.f32 -1.442695, %v7866_v44  ;;  %v6961_v9 = vadd.f32 %v12117_v30, %v11834_v3 }
 0xc79   : > { %v7990_v32 = vadd.f32 1.0, %v9933_v25  ;;  %9940 = vpow2.f32 %v8717_v23  ;;  %v8718_v17 = vmul.f32 -1.442695, %v7858_v61  ;;  %v7035_v4 = vmax.f32 %v6969_v10, 0.0 }
 0xc7a   : > { %9942 = vrcp.f32 %v7992_v48  ;;  %v7033_v26 = vmax.f32 %v6961_v9, 0.0 }
 0xc7b   : > { %9944 = vrcp.f32 %v7990_v32 }
 0xc7c   : > { %9946 = vpow2.f32 %v8720_v57 }
 0xc7d   : > { %9948 = vpow2.f32 %v8718_v17 }
 0xc7f   : > { %v9935_v7 = vpop.eup %9934 }
 0xc80   : > { %v9937_v20 = vpop.eup %9936  ;;  %v8090_v24 = vsel %vm8063_vm0, %v9935_v7, %v7030_v2 }
 0xc81   : > { %8122 = vst [vmem:[%s11851_s18 + $0xd0] sm:$0xff] %v8090_v24  ;;  %v8088_v13 = vsel %vm8063_vm0, %v9937_v20, %v7028_v53 }
 0xc82   : > { %v9939_v35 = vpop.eup %9938  ;;  %8120 = vst [vmem:[%s11851_s18 + $0xc0] sm:$0xff] %v8088_v13 }
 0xc83   : > { %v9941_v49 = vpop.eup %9940  ;;  %v7995_v56 = vadd.f32 1.0, %v9939_v35 }
 0xc84   : > { %v9943_v50 = vpop.eup %9942  ;;  %v7993_v41 = vadd.f32 1.0, %v9941_v49 }
 0xc85   : > { %v9945_v11 = vpop.eup %9944  ;;  %v8091_v5 = vsel %vm8063_vm0, %v9943_v50, %v7031_v39  ;;  %9950 = vrcp.f32 %v7995_v56 }
 0xc86   : > { %v9947_v52 = vpop.eup %9946  ;;  %8123 = vst [vmem:[%s11851_s18 + $0xd8] sm:$0xff] %v8091_v5  ;;  %v8089_v19 = vsel %vm8063_vm0, %v9945_v11, %v7029_v27  ;;  %9952 = vrcp.f32 %v7993_v41 }
 0xc87   : > { %v9949_v51 = vpop.eup %9948  ;;  %8121 = vst [vmem:[%s11851_s18 + $0xc8] sm:$0xff] %v8089_v19  ;;  %v7996_v42 = vadd.f32 1.0, %v9947_v52 }
 0xc88   : > { %v7994_v47 = vadd.f32 1.0, %v9949_v51 }
 0xc89   : > { %9954 = vrcp.f32 %v7996_v42 }
 0xc8a   : > { %9956 = vrcp.f32 %v7994_v47 }
 0xc8f   : > { %v9951_v0 = vpop.eup %9950 }
 0xc90   : > { %v9953_v8 = vpop.eup %9952  ;;  %v8094_v15 = vsel %vm8063_vm0, %v9951_v0, %v7034_v54 }
 0xc91   : > { %8126 = vst [vmem:[%s11851_s18 + $0xf0] sm:$0xff] %v8094_v15  ;;  %v8092_v34 = vsel %vm8063_vm0, %v9953_v8, %v7032_v31 }
 0xc92   : > { %8124 = vst [vmem:[%s11851_s18 + $0xe0] sm:$0xff] %v8092_v34 }
 0xc93   : > { %v9955_v18 = vpop.eup %9954 }
 0xc94   : > { %v9957_v28 = vpop.eup %9956  ;;  %v8095_v14 = vsel %vm8063_vm0, %v9955_v18, %v7035_v4 }
 0xc95   : > { %8127 = vst [vmem:[%s11851_s18 + $0xf8] sm:$0xff] %v8095_v14  ;;  %v8093_v3 = vsel %vm8063_vm0, %v9957_v28, %v7033_v26 }
 0xc96   : > { %8125 = vst [vmem:[%s11851_s18 + $0xe8] sm:$0xff] %v8093_v3 }
 0xc97 PF: > { %s72_s7 = sadd.s32 1, %s10121_s7  }
 0xc98   : > { %p69_p7 = scmp.ge.s32.totalorder %s72_s7, 4  }
 0xc9a   :  { %71 = sbr.rel (!%p69_p7) target bundleno = 46 (0x2e), region = 212 }
 0xca1   :  { %8150 = vsyncpa [#allocation3], 1 }
 0xca2   :  { %8152 = vsyncpa [#allocation3 + $0x1], 1 }
 0xca3   :  { %8153 = vsyncpa [#allocation5], 1 }
 0xca4   :  { %8154 = vsyncpa [#allocation8], 1 }

</bundles_post_ra>
